<compile_context>
chip_gen: v7x
topology: tpu7x:2x2x1
jax: 0.10.0
libtpu: 0.0.40
codegen_flags: <defaults>
</compile_context>

<pallas_src>
import jax
import jax.numpy as jnp
from jax.experimental import pallas as pl
from jax.experimental.pallas import tpu as pltpu

# ---------------------------------------------------------------------------
# Model dims (from the PyTorch module defaults)
# ---------------------------------------------------------------------------
TEXT_DIM = 768          # BERT hidden size == Encoder.input_size
OUT_SIZE = 300          # Encoder.out_size
NUM_LABEL = 2
IMG_FEAT = 2048         # resnet50 pooled-feature dim
IMG_HID = 1024          # img_linear hidden
INST_CLS = 1000         # resnet50 classifier logits (instance_discriminator)

# Lane-padded dims used inside the kernel (multiples of 128)
OUT_PAD = 384
LABEL_PAD = 128
INST_PAD = 1024

# Visual-backbone stand-in: 3x3 / stride-2 conv stem + ReLU + GAP + projection
STEM_CH = 64
CONV_K = 27             # 3 * 3 * 3
CONV_K_PAD = 32
LN_EPS = 1e-5

VMEM_LIMIT = 32 * 1024 * 1024   # raise v5e's 16 MiB scoped-VMEM default


def _vmem():
    return pl.BlockSpec(memory_space=pltpu.MemorySpace.VMEM)


def _any():
    return pl.BlockSpec(memory_space=pl.ANY)


def _masked_layernorm(x, gamma, beta, true_dim, eps=LN_EPS):
    """LayerNorm over the first `true_dim` lanes of a lane-padded (N, Dpad) f32 tile.

    Padded lanes of `x` are zero (zero-padded weights/bias); gamma/beta are zero
    there, so padded output lanes stay exactly zero."""
    d_pad = x.shape[-1]
    mask = (jax.lax.broadcasted_iota(jnp.int32, (1, d_pad), 1) < true_dim)
    mask = mask.astype(jnp.float32)
    inv_n = 1.0 / float(true_dim)
    mu = jnp.sum(x * mask, axis=-1, keepdims=True) * inv_n
    xc = (x - mu) * mask
    var = jnp.sum(xc * xc, axis=-1, keepdims=True) * inv_n
    y = xc * jax.lax.rsqrt(var + eps)
    return y * gamma + beta


# ---------------------------------------------------------------------------
# Single fused kernel: text branch + visual branch + fusion head
# ---------------------------------------------------------------------------
def _drj_fused_kernel(
    # resident VMEM inputs (prologue-DMA'd, small / early weights + activations)
    cls_ref, patch_ref, avg_ref,
    t1w_ref, t1b_ref, t2w_ref, t2b_ref, tg_ref, tbeta_ref,
    vcw_ref, vcb_ref, icw_ref, icb_ref,
    vpw_ref, vpb_ref, ifw_ref, ifb_ref,
    f1b_ref, f2b_ref, ig_ref, ibeta_ref,
    clsb_ref, hb_ref,
    # HBM (pl.ANY) inputs -- big, late weights, prefetched via async copy
    f1w_hbm, f2w_hbm, cwt_hbm, cwi_hbm, hw_hbm,
    # outputs
    t_out, i_out, inst_out, y_out,
    # scratch
    f1w_v, f2w_v, cwt_v, cwi_v, hw_v, sems,
):
    bf16 = jnp.bfloat16

    # Kick off DMAs for the big late weights so they stream under early compute.
    cp_f1 = pltpu.make_async_copy(f1w_hbm, f1w_v, sems.at[0])
    cp_f2 = pltpu.make_async_copy(f2w_hbm, f2w_v, sems.at[1])
    cp_ct = pltpu.make_async_copy(cwt_hbm, cwt_v, sems.at[2])
    cp_ci = pltpu.make_async_copy(cwi_hbm, cwi_v, sems.at[3])
    cp_hw = pltpu.make_async_copy(hw_hbm, hw_v, sems.at[4])
    cp_f1.start(); cp_f2.start(); cp_ct.start(); cp_ci.start(); cp_hw.start()

    # ---- text branch: Lin(768,768) ReLU Lin(768,300) LN ReLU (Dropout = id) ----
    x = cls_ref[...].astype(bf16)
    h = jnp.dot(x, t1w_ref[...], preferred_element_type=jnp.float32) + t1b_ref[...]
    h = jnp.maximum(h, 0.0)
    t = jnp.dot(h.astype(bf16), t2w_ref[...],
                preferred_element_type=jnp.float32) + t2b_ref[...]
    t = _masked_layernorm(t, tg_ref[...], tbeta_ref[...], OUT_SIZE)
    t = jnp.maximum(t, 0.0)                                   # (N, 384), pad lanes == 0
    t_out[...] = t.astype(t_out.dtype)

    # ---- visual backbone stand-ins (conv stem as matmul + GAP-as-matmul) ----
    patches = patch_ref[...].astype(bf16)                     # (N*P, 32), host-flattened
    avg = avg_ref[...]                                        # (N, N*P) bf16 block-average

    # visual_encoder stand-in -> (N, 2048) "imgs.squeeze()"
    c = jnp.dot(patches, vcw_ref[...], preferred_element_type=jnp.float32) + vcb_ref[...]
    c = jnp.maximum(c, 0.0)
    gap = jnp.dot(avg, c.astype(bf16), preferred_element_type=jnp.float32)   # (N, 64)
    v = jnp.dot(gap.astype(bf16), vpw_ref[...],
                preferred_element_type=jnp.float32) + vpb_ref[...]
    v = jnp.maximum(v, 0.0)                                   # (N, 2048)

    # instance_discriminator stand-in (frozen resnet50 classifier logits)
    ic = jnp.dot(patches, icw_ref[...], preferred_element_type=jnp.float32) + icb_ref[...]
    ic = jnp.maximum(ic, 0.0)
    igap = jnp.dot(avg, ic.astype(bf16), preferred_element_type=jnp.float32)
    inst = jnp.dot(igap.astype(bf16), ifw_ref[...],
                   preferred_element_type=jnp.float32) + ifb_ref[...]
    inst_out[...] = inst.astype(inst_out.dtype)               # (N, 1024) lane-dense

    # ---- img_linear: Lin(2048,1024) ReLU Lin(1024,300) LN ReLU (Dropout = id) ----
    cp_f1.wait()
    h2 = jnp.dot(v.astype(bf16), f1w_v[...],
                 preferred_element_type=jnp.float32) + f1b_ref[...]
    h2 = jnp.maximum(h2, 0.0)
    cp_f2.wait()
    z = jnp.dot(h2.astype(bf16), f2w_v[...],
                preferred_element_type=jnp.float32) + f2b_ref[...]
    z = _masked_layernorm(z, ig_ref[...], ibeta_ref[...], OUT_SIZE)
    i = jnp.maximum(z, 0.0)                                   # (N, 384), pad lanes == 0
    i_out[...] = i.astype(i_out.dtype)

    # ---- fusion head: cls_layer (split-weight concat) + ReLU + head Linear ----
    cp_ct.wait(); cp_ci.wait()
    f = jnp.dot(t.astype(bf16), cwt_v[...], preferred_element_type=jnp.float32)
    f = f + jnp.dot(i.astype(bf16), cwi_v[...], preferred_element_type=jnp.float32)
    f = jnp.maximum(f + clsb_ref[...], 0.0)
    cp_hw.wait()
    y = jnp.dot(f.astype(bf16), hw_v[...], preferred_element_type=jnp.float32) + hb_ref[...]
    y_out[...] = y.astype(y_out.dtype)                        # (N, 128) lane-dense


def drj_fused(cls_tok, patches, avg_mat, p):
    n = cls_tok.shape[0]
    return pl.pallas_call(
        _drj_fused_kernel,
        out_shape=(jax.ShapeDtypeStruct((n, OUT_PAD), jnp.float32),
                   jax.ShapeDtypeStruct((n, OUT_PAD), jnp.float32),
                   jax.ShapeDtypeStruct((n, INST_PAD), jnp.float32),
                   jax.ShapeDtypeStruct((n, LABEL_PAD), jnp.float32)),
        in_specs=[_vmem()] * 23 + [_any()] * 5,
        out_specs=(_vmem(), _vmem(), _vmem(), _vmem()),
        scratch_shapes=[
            pltpu.VMEM((IMG_FEAT, IMG_HID), jnp.bfloat16),    # img_fc1_w
            pltpu.VMEM((IMG_HID, OUT_PAD), jnp.bfloat16),     # img_fc2_w
            pltpu.VMEM((OUT_PAD, OUT_PAD), jnp.bfloat16),     # cls_wt
            pltpu.VMEM((OUT_PAD, OUT_PAD), jnp.bfloat16),     # cls_wi
            pltpu.VMEM((OUT_PAD, LABEL_PAD), jnp.bfloat16),   # head_w
            pltpu.SemaphoreType.DMA((5,)),
        ],
        compiler_params=pltpu.CompilerParams(vmem_limit_bytes=VMEM_LIMIT),
    )(cls_tok, patches, avg_mat,
      p["text_fc1_w"], p["text_fc1_b"], p["text_fc2_w"], p["text_fc2_b"],
      p["ln_text_g"], p["ln_text_b"],
      p["vis_conv_w"], p["vis_conv_b"], p["inst_conv_w"], p["inst_conv_b"],
      p["vis_proj_w"], p["vis_proj_b"], p["inst_fc_w"], p["inst_fc_b"],
      p["img_fc1_b"], p["img_fc2_b"], p["ln_img_g"], p["ln_img_b"],
      p["cls_b"], p["head_b"],
      p["img_fc1_w"], p["img_fc2_w"], p["cls_wt"], p["cls_wi"], p["head_w"])


# ---------------------------------------------------------------------------
# Glue: im2col for the 3x3/stride-2 conv-stem stand-in (tiny: a few KiB),
# flattened to (N*P, CONV_K_PAD) on the host; plus the block-averaging matrix.
# ---------------------------------------------------------------------------
def img_patches(imgs_nchw, k=3, s=2, pad=1):
    x = jnp.transpose(imgs_nchw, (0, 2, 3, 1))               # NCHW -> NHWC
    n, h, w, c = x.shape
    xp = jnp.pad(x, ((0, 0), (pad, pad), (pad, pad), (0, 0)))
    ho = (h + 2 * pad - k) // s + 1
    wo = (w + 2 * pad - k) // s + 1
    cols = []
    for di in range(k):
        for dj in range(k):
            cols.append(xp[:, di:di + s * ho:s, dj:dj + s * wo:s, :])
    cols = jnp.stack(cols, axis=3).reshape(n * ho * wo, k * k * c)       # (N*P, 27)
    cols = jnp.pad(cols, ((0, 0), (0, CONV_K_PAD - k * k * c)))          # K 27 -> 32
    return cols, ho * wo


def make_avg_mat(n, p):
    # (N, N*P) block matrix with 1/P in each sample's own P columns (GAP as matmul).
    eye = jnp.eye(n, dtype=jnp.float32)
    avg = jnp.repeat(eye, p, axis=1) * (1.0 / p)
    return avg.astype(jnp.bfloat16)


# ---------------------------------------------------------------------------
# Deterministic parameter init (zero-padded to lane-padded shapes; weights bf16)
# ---------------------------------------------------------------------------
def _pad2(x, rows, cols):
    return jnp.pad(x, ((0, rows - x.shape[0]), (0, cols - x.shape[1])))


def _pad_row(x, cols):
    return jnp.pad(x, ((0, 0), (0, cols - x.shape[1])))


def init_params(key):
    ks = iter(jax.random.split(key, 24))

    def rnd(shape, scale=0.05):
        return (scale * jax.random.normal(next(ks), shape)).astype(jnp.float32)

    def w(x):  # matmul weights live in HBM as bf16
        return x.astype(jnp.bfloat16)

    p = {}
    # text_linear: Linear(768,768) ReLU Linear(768,300) LayerNorm(300) ReLU Dropout
    p["text_fc1_w"] = w(rnd((TEXT_DIM, TEXT_DIM), 0.02))
    p["text_fc1_b"] = rnd((1, TEXT_DIM))
    p["text_fc2_w"] = w(_pad2(rnd((TEXT_DIM, OUT_SIZE), 0.02), TEXT_DIM, OUT_PAD))
    p["text_fc2_b"] = _pad_row(rnd((1, OUT_SIZE)), OUT_PAD)
    p["ln_text_g"] = _pad_row(jnp.ones((1, OUT_SIZE), jnp.float32), OUT_PAD)
    p["ln_text_b"] = jnp.zeros((1, OUT_PAD), jnp.float32)

    # visual_encoder / instance_discriminator stand-ins
    p["vis_conv_w"] = w(_pad2(rnd((CONV_K, STEM_CH)), CONV_K_PAD, STEM_CH))
    p["vis_conv_b"] = rnd((1, STEM_CH))
    p["vis_proj_w"] = w(rnd((STEM_CH, IMG_FEAT), 0.02))
    p["vis_proj_b"] = rnd((1, IMG_FEAT))
    p["inst_conv_w"] = w(_pad2(rnd((CONV_K, STEM_CH)), CONV_K_PAD, STEM_CH))
    p["inst_conv_b"] = rnd((1, STEM_CH))
    p["inst_fc_w"] = w(_pad2(rnd((STEM_CH, INST_CLS), 0.02), STEM_CH, INST_PAD))
    p["inst_fc_b"] = _pad_row(rnd((1, INST_CLS)), INST_PAD)

    # img_linear: Linear(2048,1024) ReLU Linear(1024,300) LayerNorm(300) ReLU Dropout
    p["img_fc1_w"] = w(rnd((IMG_FEAT, IMG_HID), 0.02))
    p["img_fc1_b"] = rnd((1, IMG_HID))
    p["img_fc2_w"] = w(_pad2(rnd((IMG_HID, OUT_SIZE), 0.02), IMG_HID, OUT_PAD))
    p["img_fc2_b"] = _pad_row(rnd((1, OUT_SIZE)), OUT_PAD)
    p["ln_img_g"] = _pad_row(jnp.ones((1, OUT_SIZE), jnp.float32), OUT_PAD)
    p["ln_img_b"] = jnp.zeros((1, OUT_PAD), jnp.float32)

    # cls_layer Linear(600,300)+ReLU (weight split into text/img halves) + head Linear(300,2)
    p["cls_wt"] = w(_pad2(rnd((OUT_SIZE, OUT_SIZE), 0.02), OUT_PAD, OUT_PAD))
    p["cls_wi"] = w(_pad2(rnd((OUT_SIZE, OUT_SIZE), 0.02), OUT_PAD, OUT_PAD))
    p["cls_b"] = _pad_row(rnd((1, OUT_SIZE)), OUT_PAD)
    p["head_w"] = w(_pad2(rnd((OUT_SIZE, NUM_LABEL)), OUT_PAD, LABEL_PAD))
    p["head_b"] = _pad_row(rnd((1, NUM_LABEL)), LABEL_PAD)
    return p


# ---------------------------------------------------------------------------
# Forward pass (inference semantics: Dropout == identity)
# ---------------------------------------------------------------------------
def drj_forward(params, texts_hidden, imgs):
    # texts_hidden: (N, L, 768) == bert_model(**texts)[0]; take the CLS token.
    cls_tok = texts_hidden[:, 0, :]                          # glue slice: texts[:, 0, :]
    n = cls_tok.shape[0]

    patches, n_patch = img_patches(imgs)                     # (N*P, 32) glue im2col
    avg_mat = make_avg_mat(n, n_patch)                       # (N, N*P) GAP-as-matmul

    t_pad, i_pad, inst_pad, y_pad = drj_fused(cls_tok, patches, avg_mat, params)

    texts_out = t_pad[:, :OUT_SIZE]
    imgs_out = i_pad[:, :OUT_SIZE]
    train_y = y_pad[:, :NUM_LABEL]
    instance_cls = inst_pad[:, :INST_CLS]
    return texts_out, imgs_out, train_y, instance_cls


# ---------------------------------------------------------------------------
if __name__ == "__main__":
    key = jax.random.PRNGKey(0)
    kp, kt, ki = jax.random.split(key, 3)

    params = init_params(kp)
    texts = jax.random.normal(kt, (2, 8, TEXT_DIM), dtype=jnp.float32)   # BERT hidden states
    imgs = jax.random.normal(ki, (2, 3, 16, 16), dtype=jnp.float32)      # NCHW images

    t_out, i_out, y, inst = jax.jit(drj_forward)(params, texts, imgs)
    jax.block_until_ready((t_out, i_out, y, inst))

    assert t_out.shape == (2, OUT_SIZE) and i_out.shape == (2, OUT_SIZE)
    assert y.shape == (2, NUM_LABEL) and inst.shape == (2, INST_CLS)
    for a in (t_out, i_out, y, inst):
        assert a.dtype == jnp.float32 and bool(jnp.all(jnp.isfinite(a)))
    print("KERNEL_OK")
</pallas_src>

<mosaic_0001>
module attributes {stable_mosaic.version = 11 : i64} {
  func.func @_drj_fused_kernel(%arg0: memref<2x768xf32, #tpu.memory_space<vmem>>, %arg1: memref<128x32xf32, #tpu.memory_space<vmem>>, %arg2: memref<2x128xbf16, #tpu.memory_space<vmem>>, %arg3: memref<768x768xbf16, #tpu.memory_space<vmem>>, %arg4: memref<1x768xf32, #tpu.memory_space<vmem>>, %arg5: memref<768x384xbf16, #tpu.memory_space<vmem>>, %arg6: memref<1x384xf32, #tpu.memory_space<vmem>>, %arg7: memref<1x384xf32, #tpu.memory_space<vmem>>, %arg8: memref<1x384xf32, #tpu.memory_space<vmem>>, %arg9: memref<32x64xbf16, #tpu.memory_space<vmem>>, %arg10: memref<1x64xf32, #tpu.memory_space<vmem>>, %arg11: memref<32x64xbf16, #tpu.memory_space<vmem>>, %arg12: memref<1x64xf32, #tpu.memory_space<vmem>>, %arg13: memref<64x2048xbf16, #tpu.memory_space<vmem>>, %arg14: memref<1x2048xf32, #tpu.memory_space<vmem>>, %arg15: memref<64x1024xbf16, #tpu.memory_space<vmem>>, %arg16: memref<1x1024xf32, #tpu.memory_space<vmem>>, %arg17: memref<1x1024xf32, #tpu.memory_space<vmem>>, %arg18: memref<1x384xf32, #tpu.memory_space<vmem>>, %arg19: memref<1x384xf32, #tpu.memory_space<vmem>>, %arg20: memref<1x384xf32, #tpu.memory_space<vmem>>, %arg21: memref<1x384xf32, #tpu.memory_space<vmem>>, %arg22: memref<1x128xf32, #tpu.memory_space<vmem>>, %arg23: memref<2048x1024xbf16, #tpu.memory_space<any>>, %arg24: memref<1024x384xbf16, #tpu.memory_space<any>>, %arg25: memref<384x384xbf16, #tpu.memory_space<any>>, %arg26: memref<384x384xbf16, #tpu.memory_space<any>>, %arg27: memref<384x128xbf16, #tpu.memory_space<any>>, %arg28: memref<2x384xf32, #tpu.memory_space<vmem>>, %arg29: memref<2x384xf32, #tpu.memory_space<vmem>>, %arg30: memref<2x1024xf32, #tpu.memory_space<vmem>>, %arg31: memref<2x128xf32, #tpu.memory_space<vmem>>, %arg32: memref<2048x1024xbf16, #tpu.memory_space<vmem>>, %arg33: memref<1024x384xbf16, #tpu.memory_space<vmem>>, %arg34: memref<384x384xbf16, #tpu.memory_space<vmem>>, %arg35: memref<384x384xbf16, #tpu.memory_space<vmem>>, %arg36: memref<384x128xbf16, #tpu.memory_space<vmem>>, %arg37: memref<5x!tpu.dma_semaphore, #tpu.memory_space<semaphore_mem>>) attributes {dimension_semantics = [], scalar_prefetch = 0 : i64, scratch_operands = 6 : i64, tpu.core_type = #tpu.core_type<tc>} {
    %c0_i32 = arith.constant 0 : i32
    %0 = tpu.memref_slice %arg37[%c0_i32] : memref<5x!tpu.dma_semaphore, #tpu.memory_space<semaphore_mem>> -> memref<1x!tpu.dma_semaphore, #tpu.memory_space<semaphore_mem>>
    %1 = tpu.memref_squeeze %0 : memref<1x!tpu.dma_semaphore, #tpu.memory_space<semaphore_mem>> -> memref<!tpu.dma_semaphore, #tpu.memory_space<semaphore_mem>>
    tpu.enqueue_dma source(%arg23 : memref<2048x1024xbf16, #tpu.memory_space<any>>) target(%arg32 : memref<2048x1024xbf16, #tpu.memory_space<vmem>>) target_semaphore(%1 : memref<!tpu.dma_semaphore, #tpu.memory_space<semaphore_mem>>)
    %c1_i32 = arith.constant 1 : i32
    %2 = tpu.memref_slice %arg37[%c1_i32] : memref<5x!tpu.dma_semaphore, #tpu.memory_space<semaphore_mem>> -> memref<1x!tpu.dma_semaphore, #tpu.memory_space<semaphore_mem>>
    %3 = tpu.memref_squeeze %2 : memref<1x!tpu.dma_semaphore, #tpu.memory_space<semaphore_mem>> -> memref<!tpu.dma_semaphore, #tpu.memory_space<semaphore_mem>>
    tpu.enqueue_dma source(%arg24 : memref<1024x384xbf16, #tpu.memory_space<any>>) target(%arg33 : memref<1024x384xbf16, #tpu.memory_space<vmem>>) target_semaphore(%3 : memref<!tpu.dma_semaphore, #tpu.memory_space<semaphore_mem>>)
    %c2_i32 = arith.constant 2 : i32
    %4 = tpu.memref_slice %arg37[%c2_i32] : memref<5x!tpu.dma_semaphore, #tpu.memory_space<semaphore_mem>> -> memref<1x!tpu.dma_semaphore, #tpu.memory_space<semaphore_mem>>
    %5 = tpu.memref_squeeze %4 : memref<1x!tpu.dma_semaphore, #tpu.memory_space<semaphore_mem>> -> memref<!tpu.dma_semaphore, #tpu.memory_space<semaphore_mem>>
    tpu.enqueue_dma source(%arg25 : memref<384x384xbf16, #tpu.memory_space<any>>) target(%arg34 : memref<384x384xbf16, #tpu.memory_space<vmem>>) target_semaphore(%5 : memref<!tpu.dma_semaphore, #tpu.memory_space<semaphore_mem>>)
    %c3_i32 = arith.constant 3 : i32
    %6 = tpu.memref_slice %arg37[%c3_i32] : memref<5x!tpu.dma_semaphore, #tpu.memory_space<semaphore_mem>> -> memref<1x!tpu.dma_semaphore, #tpu.memory_space<semaphore_mem>>
    %7 = tpu.memref_squeeze %6 : memref<1x!tpu.dma_semaphore, #tpu.memory_space<semaphore_mem>> -> memref<!tpu.dma_semaphore, #tpu.memory_space<semaphore_mem>>
    tpu.enqueue_dma source(%arg26 : memref<384x384xbf16, #tpu.memory_space<any>>) target(%arg35 : memref<384x384xbf16, #tpu.memory_space<vmem>>) target_semaphore(%7 : memref<!tpu.dma_semaphore, #tpu.memory_space<semaphore_mem>>)
    %c4_i32 = arith.constant 4 : i32
    %8 = tpu.memref_slice %arg37[%c4_i32] : memref<5x!tpu.dma_semaphore, #tpu.memory_space<semaphore_mem>> -> memref<1x!tpu.dma_semaphore, #tpu.memory_space<semaphore_mem>>
    %9 = tpu.memref_squeeze %8 : memref<1x!tpu.dma_semaphore, #tpu.memory_space<semaphore_mem>> -> memref<!tpu.dma_semaphore, #tpu.memory_space<semaphore_mem>>
    tpu.enqueue_dma source(%arg27 : memref<384x128xbf16, #tpu.memory_space<any>>) target(%arg36 : memref<384x128xbf16, #tpu.memory_space<vmem>>) target_semaphore(%9 : memref<!tpu.dma_semaphore, #tpu.memory_space<semaphore_mem>>)
    %c0 = arith.constant 0 : index
    %c0_0 = arith.constant 0 : index
    %10 = vector.load %arg0[%c0, %c0_0] : memref<2x768xf32, #tpu.memory_space<vmem>>, vector<2x768xf32>
    %11 = arith.truncf %10 : vector<2x768xf32> to vector<2x768xbf16>
    %c0_1 = arith.constant 0 : index
    %c0_2 = arith.constant 0 : index
    %12 = vector.load %arg3[%c0_1, %c0_2] : memref<768x768xbf16, #tpu.memory_space<vmem>>, vector<768x768xbf16>
    %cst = arith.constant dense<0.000000e+00> : vector<2x768xf32>
    %13 = tpu.matmul %11, %12, %cst {dimension_numbers = #tpu.dot_dimension_numbers<[1], [0], [0], [1], [0, 0, 1, 1], [], []>} : vector<2x768xbf16>, vector<768x768xbf16>, vector<2x768xf32> -> vector<2x768xf32>
    %c0_3 = arith.constant 0 : index
    %c0_4 = arith.constant 0 : index
    %14 = vector.load %arg4[%c0_3, %c0_4] : memref<1x768xf32, #tpu.memory_space<vmem>>, vector<1x768xf32>
    %15 = vector.broadcast %14 : vector<1x768xf32> to vector<2x768xf32>
    %16 = arith.addf %13, %15 : vector<2x768xf32>
    %cst_5 = arith.constant 0.000000e+00 : f32
    %17 = vector.broadcast %cst_5 : f32 to vector<2x768xf32>
    %18 = arith.maximumf %16, %17 : vector<2x768xf32>
    %19 = arith.truncf %18 : vector<2x768xf32> to vector<2x768xbf16>
    %c0_6 = arith.constant 0 : index
    %c0_7 = arith.constant 0 : index
    %20 = vector.load %arg5[%c0_6, %c0_7] : memref<768x384xbf16, #tpu.memory_space<vmem>>, vector<768x384xbf16>
    %cst_8 = arith.constant dense<0.000000e+00> : vector<2x384xf32>
    %21 = tpu.matmul %19, %20, %cst_8 {dimension_numbers = #tpu.dot_dimension_numbers<[1], [0], [0], [1], [0, 0, 1, 1], [], []>} : vector<2x768xbf16>, vector<768x384xbf16>, vector<2x384xf32> -> vector<2x384xf32>
    %c0_9 = arith.constant 0 : index
    %c0_10 = arith.constant 0 : index
    %22 = vector.load %arg6[%c0_9, %c0_10] : memref<1x384xf32, #tpu.memory_space<vmem>>, vector<1x384xf32>
    %23 = vector.broadcast %22 : vector<1x384xf32> to vector<2x384xf32>
    %24 = arith.addf %21, %23 : vector<2x384xf32>
    %c0_11 = arith.constant 0 : index
    %c0_12 = arith.constant 0 : index
    %25 = vector.load %arg7[%c0_11, %c0_12] : memref<1x384xf32, #tpu.memory_space<vmem>>, vector<1x384xf32>
    %c0_13 = arith.constant 0 : index
    %c0_14 = arith.constant 0 : index
    %26 = vector.load %arg8[%c0_13, %c0_14] : memref<1x384xf32, #tpu.memory_space<vmem>>, vector<1x384xf32>
    %27 = tpu.iota {dimensions = array<i32: 1>} : vector<1x384xi32>
    %c300_i32 = arith.constant 300 : i32
    %28 = vector.broadcast %c300_i32 : i32 to vector<1x384xi32>
    %29 = arith.cmpi slt, %27, %28 : vector<1x384xi32>
    %30 = arith.extui %29 : vector<1x384xi1> to vector<1x384xi32>
    %31 = arith.sitofp %30 : vector<1x384xi32> to vector<1x384xf32>
    %32 = vector.broadcast %31 : vector<1x384xf32> to vector<2x384xf32>
    %33 = arith.mulf %24, %32 : vector<2x384xf32>
    %cst_15 = arith.constant dense<0.000000e+00> : vector<2xf32>
    %34 = vector.multi_reduction <add>, %33, %cst_15 [1] : vector<2x384xf32> to vector<2xf32>
    %35 = vector.shape_cast %34 : vector<2xf32> to vector<2x1xf32>
    %cst_16 = arith.constant 0.00333333341 : f32
    %36 = vector.broadcast %cst_16 : f32 to vector<2x1xf32>
    %37 = arith.mulf %35, %36 : vector<2x1xf32>
    %38 = vector.broadcast %37 : vector<2x1xf32> to vector<2x384xf32>
    %39 = arith.subf %24, %38 : vector<2x384xf32>
    %40 = vector.broadcast %31 : vector<1x384xf32> to vector<2x384xf32>
    %41 = arith.mulf %39, %40 : vector<2x384xf32>
    %42 = arith.mulf %41, %41 : vector<2x384xf32>
    %cst_17 = arith.constant dense<0.000000e+00> : vector<2xf32>
    %43 = vector.multi_reduction <add>, %42, %cst_17 [1] : vector<2x384xf32> to vector<2xf32>
    %44 = vector.shape_cast %43 : vector<2xf32> to vector<2x1xf32>
    %cst_18 = arith.constant 0.00333333341 : f32
    %45 = vector.broadcast %cst_18 : f32 to vector<2x1xf32>
    %46 = arith.mulf %44, %45 : vector<2x1xf32>
    %cst_19 = arith.constant 9.99999974E-6 : f32
    %47 = vector.broadcast %cst_19 : f32 to vector<2x1xf32>
    %48 = arith.addf %46, %47 : vector<2x1xf32>
    %49 = math.rsqrt %48 : vector<2x1xf32>
    %50 = vector.broadcast %49 : vector<2x1xf32> to vector<2x384xf32>
    %51 = arith.mulf %41, %50 : vector<2x384xf32>
    %52 = vector.broadcast %25 : vector<1x384xf32> to vector<2x384xf32>
    %53 = arith.mulf %51, %52 : vector<2x384xf32>
    %54 = vector.broadcast %26 : vector<1x384xf32> to vector<2x384xf32>
    %55 = arith.addf %53, %54 : vector<2x384xf32>
    %cst_20 = arith.constant 0.000000e+00 : f32
    %56 = vector.broadcast %cst_20 : f32 to vector<2x384xf32>
    %57 = arith.maximumf %55, %56 : vector<2x384xf32>
    %c0_21 = arith.constant 0 : index
    %c0_22 = arith.constant 0 : index
    %58 = vector.load %arg28[%c0_21, %c0_22] : memref<2x384xf32, #tpu.memory_space<vmem>>, vector<2x384xf32>
    tpu.vector_store %arg28[%c0_21, %c0_22], %57 {strides = array<i32>} : memref<2x384xf32, #tpu.memory_space<vmem>>, vector<2x384xf32>,
    %c0_23 = arith.constant 0 : index
    %c0_24 = arith.constant 0 : index
    %59 = vector.load %arg1[%c0_23, %c0_24] : memref<128x32xf32, #tpu.memory_space<vmem>>, vector<128x32xf32>
    %60 = arith.truncf %59 : vector<128x32xf32> to vector<128x32xbf16>
    %c0_25 = arith.constant 0 : index
    %c0_26 = arith.constant 0 : index
    %61 = vector.load %arg2[%c0_25, %c0_26] : memref<2x128xbf16, #tpu.memory_space<vmem>>, vector<2x128xbf16>
    %c0_27 = arith.constant 0 : index
    %c0_28 = arith.constant 0 : index
    %62 = vector.load %arg9[%c0_27, %c0_28] : memref<32x64xbf16, #tpu.memory_space<vmem>>, vector<32x64xbf16>
    %cst_29 = arith.constant dense<0.000000e+00> : vector<128x64xf32>
    %63 = tpu.matmul %60, %62, %cst_29 {dimension_numbers = #tpu.dot_dimension_numbers<[1], [0], [0], [1], [0, 0, 1, 1], [], []>} : vector<128x32xbf16>, vector<32x64xbf16>, vector<128x64xf32> -> vector<128x64xf32>
    %c0_30 = arith.constant 0 : index
    %c0_31 = arith.constant 0 : index
    %64 = vector.load %arg10[%c0_30, %c0_31] : memref<1x64xf32, #tpu.memory_space<vmem>>, vector<1x64xf32>
    %65 = vector.broadcast %64 : vector<1x64xf32> to vector<128x64xf32>
    %66 = arith.addf %63, %65 : vector<128x64xf32>
    %cst_32 = arith.constant 0.000000e+00 : f32
    %67 = vector.broadcast %cst_32 : f32 to vector<128x64xf32>
    %68 = arith.maximumf %66, %67 : vector<128x64xf32>
    %69 = arith.truncf %68 : vector<128x64xf32> to vector<128x64xbf16>
    %cst_33 = arith.constant dense<0.000000e+00> : vector<2x64xf32>
    %70 = tpu.matmul %61, %69, %cst_33 {dimension_numbers = #tpu.dot_dimension_numbers<[1], [0], [0], [1], [0, 0, 1, 1], [], []>} : vector<2x128xbf16>, vector<128x64xbf16>, vector<2x64xf32> -> vector<2x64xf32>
    %71 = arith.truncf %70 : vector<2x64xf32> to vector<2x64xbf16>
    %c0_34 = arith.constant 0 : index
    %c0_35 = arith.constant 0 : index
    %72 = vector.load %arg13[%c0_34, %c0_35] : memref<64x2048xbf16, #tpu.memory_space<vmem>>, vector<64x2048xbf16>
    %cst_36 = arith.constant dense<0.000000e+00> : vector<2x2048xf32>
    %73 = tpu.matmul %71, %72, %cst_36 {dimension_numbers = #tpu.dot_dimension_numbers<[1], [0], [0], [1], [0, 0, 1, 1], [], []>} : vector<2x64xbf16>, vector<64x2048xbf16>, vector<2x2048xf32> -> vector<2x2048xf32>
    %c0_37 = arith.constant 0 : index
    %c0_38 = arith.constant 0 : index
    %74 = vector.load %arg14[%c0_37, %c0_38] : memref<1x2048xf32, #tpu.memory_space<vmem>>, vector<1x2048xf32>
    %75 = vector.broadcast %74 : vector<1x2048xf32> to vector<2x2048xf32>
    %76 = arith.addf %73, %75 : vector<2x2048xf32>
    %cst_39 = arith.constant 0.000000e+00 : f32
    %77 = vector.broadcast %cst_39 : f32 to vector<2x2048xf32>
    %78 = arith.maximumf %76, %77 : vector<2x2048xf32>
    %c0_40 = arith.constant 0 : index
    %c0_41 = arith.constant 0 : index
    %79 = vector.load %arg11[%c0_40, %c0_41] : memref<32x64xbf16, #tpu.memory_space<vmem>>, vector<32x64xbf16>
    %cst_42 = arith.constant dense<0.000000e+00> : vector<128x64xf32>
    %80 = tpu.matmul %60, %79, %cst_42 {dimension_numbers = #tpu.dot_dimension_numbers<[1], [0], [0], [1], [0, 0, 1, 1], [], []>} : vector<128x32xbf16>, vector<32x64xbf16>, vector<128x64xf32> -> vector<128x64xf32>
    %c0_43 = arith.constant 0 : index
    %c0_44 = arith.constant 0 : index
    %81 = vector.load %arg12[%c0_43, %c0_44] : memref<1x64xf32, #tpu.memory_space<vmem>>, vector<1x64xf32>
    %82 = vector.broadcast %81 : vector<1x64xf32> to vector<128x64xf32>
    %83 = arith.addf %80, %82 : vector<128x64xf32>
    %cst_45 = arith.constant 0.000000e+00 : f32
    %84 = vector.broadcast %cst_45 : f32 to vector<128x64xf32>
    %85 = arith.maximumf %83, %84 : vector<128x64xf32>
    %86 = arith.truncf %85 : vector<128x64xf32> to vector<128x64xbf16>
    %cst_46 = arith.constant dense<0.000000e+00> : vector<2x64xf32>
    %87 = tpu.matmul %61, %86, %cst_46 {dimension_numbers = #tpu.dot_dimension_numbers<[1], [0], [0], [1], [0, 0, 1, 1], [], []>} : vector<2x128xbf16>, vector<128x64xbf16>, vector<2x64xf32> -> vector<2x64xf32>
    %88 = arith.truncf %87 : vector<2x64xf32> to vector<2x64xbf16>
    %c0_47 = arith.constant 0 : index
    %c0_48 = arith.constant 0 : index
    %89 = vector.load %arg15[%c0_47, %c0_48] : memref<64x1024xbf16, #tpu.memory_space<vmem>>, vector<64x1024xbf16>
    %cst_49 = arith.constant dense<0.000000e+00> : vector<2x1024xf32>
    %90 = tpu.matmul %88, %89, %cst_49 {dimension_numbers = #tpu.dot_dimension_numbers<[1], [0], [0], [1], [0, 0, 1, 1], [], []>} : vector<2x64xbf16>, vector<64x1024xbf16>, vector<2x1024xf32> -> vector<2x1024xf32>
    %c0_50 = arith.constant 0 : index
    %c0_51 = arith.constant 0 : index
    %91 = vector.load %arg16[%c0_50, %c0_51] : memref<1x1024xf32, #tpu.memory_space<vmem>>, vector<1x1024xf32>
    %92 = vector.broadcast %91 : vector<1x1024xf32> to vector<2x1024xf32>
    %93 = arith.addf %90, %92 : vector<2x1024xf32>
    %c0_52 = arith.constant 0 : index
    %c0_53 = arith.constant 0 : index
    %94 = vector.load %arg30[%c0_52, %c0_53] : memref<2x1024xf32, #tpu.memory_space<vmem>>, vector<2x1024xf32>
    tpu.vector_store %arg30[%c0_52, %c0_53], %93 {strides = array<i32>} : memref<2x1024xf32, #tpu.memory_space<vmem>>, vector<2x1024xf32>,
    %c0_i32_54 = arith.constant 0 : i32
    %95 = tpu.memref_slice %arg37[%c0_i32_54] : memref<5x!tpu.dma_semaphore, #tpu.memory_space<semaphore_mem>> -> memref<1x!tpu.dma_semaphore, #tpu.memory_space<semaphore_mem>>
    %96 = tpu.memref_squeeze %95 : memref<1x!tpu.dma_semaphore, #tpu.memory_space<semaphore_mem>> -> memref<!tpu.dma_semaphore, #tpu.memory_space<semaphore_mem>>
    tpu.wait_dma2 semaphore(%96 : memref<!tpu.dma_semaphore, #tpu.memory_space<semaphore_mem>>) src(%arg23 : memref<2048x1024xbf16, #tpu.memory_space<any>>) dst(%arg32 : memref<2048x1024xbf16, #tpu.memory_space<vmem>>)
    %97 = arith.truncf %78 : vector<2x2048xf32> to vector<2x2048xbf16>
    %c0_55 = arith.constant 0 : index
    %c0_56 = arith.constant 0 : index
    %98 = vector.load %arg32[%c0_55, %c0_56] : memref<2048x1024xbf16, #tpu.memory_space<vmem>>, vector<2048x1024xbf16>
    %cst_57 = arith.constant dense<0.000000e+00> : vector<2x1024xf32>
    %99 = tpu.matmul %97, %98, %cst_57 {dimension_numbers = #tpu.dot_dimension_numbers<[1], [0], [0], [1], [0, 0, 1, 1], [], []>} : vector<2x2048xbf16>, vector<2048x1024xbf16>, vector<2x1024xf32> -> vector<2x1024xf32>
    %c0_58 = arith.constant 0 : index
    %c0_59 = arith.constant 0 : index
    %100 = vector.load %arg17[%c0_58, %c0_59] : memref<1x1024xf32, #tpu.memory_space<vmem>>, vector<1x1024xf32>
    %101 = vector.broadcast %100 : vector<1x1024xf32> to vector<2x1024xf32>
    %102 = arith.addf %99, %101 : vector<2x1024xf32>
    %cst_60 = arith.constant 0.000000e+00 : f32
    %103 = vector.broadcast %cst_60 : f32 to vector<2x1024xf32>
    %104 = arith.maximumf %102, %103 : vector<2x1024xf32>
    %c1_i32_61 = arith.constant 1 : i32
    %105 = tpu.memref_slice %arg37[%c1_i32_61] : memref<5x!tpu.dma_semaphore, #tpu.memory_space<semaphore_mem>> -> memref<1x!tpu.dma_semaphore, #tpu.memory_space<semaphore_mem>>
    %106 = tpu.memref_squeeze %105 : memref<1x!tpu.dma_semaphore, #tpu.memory_space<semaphore_mem>> -> memref<!tpu.dma_semaphore, #tpu.memory_space<semaphore_mem>>
    tpu.wait_dma2 semaphore(%106 : memref<!tpu.dma_semaphore, #tpu.memory_space<semaphore_mem>>) src(%arg24 : memref<1024x384xbf16, #tpu.memory_space<any>>) dst(%arg33 : memref<1024x384xbf16, #tpu.memory_space<vmem>>)
    %107 = arith.truncf %104 : vector<2x1024xf32> to vector<2x1024xbf16>
    %c0_62 = arith.constant 0 : index
    %c0_63 = arith.constant 0 : index
    %108 = vector.load %arg33[%c0_62, %c0_63] : memref<1024x384xbf16, #tpu.memory_space<vmem>>, vector<1024x384xbf16>
    %cst_64 = arith.constant dense<0.000000e+00> : vector<2x384xf32>
    %109 = tpu.matmul %107, %108, %cst_64 {dimension_numbers = #tpu.dot_dimension_numbers<[1], [0], [0], [1], [0, 0, 1, 1], [], []>} : vector<2x1024xbf16>, vector<1024x384xbf16>, vector<2x384xf32> -> vector<2x384xf32>
    %c0_65 = arith.constant 0 : index
    %c0_66 = arith.constant 0 : index
    %110 = vector.load %arg18[%c0_65, %c0_66] : memref<1x384xf32, #tpu.memory_space<vmem>>, vector<1x384xf32>
    %111 = vector.broadcast %110 : vector<1x384xf32> to vector<2x384xf32>
    %112 = arith.addf %109, %111 : vector<2x384xf32>
    %c0_67 = arith.constant 0 : index
    %c0_68 = arith.constant 0 : index
    %113 = vector.load %arg19[%c0_67, %c0_68] : memref<1x384xf32, #tpu.memory_space<vmem>>, vector<1x384xf32>
    %c0_69 = arith.constant 0 : index
    %c0_70 = arith.constant 0 : index
    %114 = vector.load %arg20[%c0_69, %c0_70] : memref<1x384xf32, #tpu.memory_space<vmem>>, vector<1x384xf32>
    %115 = tpu.iota {dimensions = array<i32: 1>} : vector<1x384xi32>
    %c300_i32_71 = arith.constant 300 : i32
    %116 = vector.broadcast %c300_i32_71 : i32 to vector<1x384xi32>
    %117 = arith.cmpi slt, %115, %116 : vector<1x384xi32>
    %118 = arith.extui %117 : vector<1x384xi1> to vector<1x384xi32>
    %119 = arith.sitofp %118 : vector<1x384xi32> to vector<1x384xf32>
    %120 = vector.broadcast %119 : vector<1x384xf32> to vector<2x384xf32>
    %121 = arith.mulf %112, %120 : vector<2x384xf32>
    %cst_72 = arith.constant dense<0.000000e+00> : vector<2xf32>
    %122 = vector.multi_reduction <add>, %121, %cst_72 [1] : vector<2x384xf32> to vector<2xf32>
    %123 = vector.shape_cast %122 : vector<2xf32> to vector<2x1xf32>
    %cst_73 = arith.constant 0.00333333341 : f32
    %124 = vector.broadcast %cst_73 : f32 to vector<2x1xf32>
    %125 = arith.mulf %123, %124 : vector<2x1xf32>
    %126 = vector.broadcast %125 : vector<2x1xf32> to vector<2x384xf32>
    %127 = arith.subf %112, %126 : vector<2x384xf32>
    %128 = vector.broadcast %119 : vector<1x384xf32> to vector<2x384xf32>
    %129 = arith.mulf %127, %128 : vector<2x384xf32>
    %130 = arith.mulf %129, %129 : vector<2x384xf32>
    %cst_74 = arith.constant dense<0.000000e+00> : vector<2xf32>
    %131 = vector.multi_reduction <add>, %130, %cst_74 [1] : vector<2x384xf32> to vector<2xf32>
    %132 = vector.shape_cast %131 : vector<2xf32> to vector<2x1xf32>
    %cst_75 = arith.constant 0.00333333341 : f32
    %133 = vector.broadcast %cst_75 : f32 to vector<2x1xf32>
    %134 = arith.mulf %132, %133 : vector<2x1xf32>
    %cst_76 = arith.constant 9.99999974E-6 : f32
    %135 = vector.broadcast %cst_76 : f32 to vector<2x1xf32>
    %136 = arith.addf %134, %135 : vector<2x1xf32>
    %137 = math.rsqrt %136 : vector<2x1xf32>
    %138 = vector.broadcast %137 : vector<2x1xf32> to vector<2x384xf32>
    %139 = arith.mulf %129, %138 : vector<2x384xf32>
    %140 = vector.broadcast %113 : vector<1x384xf32> to vector<2x384xf32>
    %141 = arith.mulf %139, %140 : vector<2x384xf32>
    %142 = vector.broadcast %114 : vector<1x384xf32> to vector<2x384xf32>
    %143 = arith.addf %141, %142 : vector<2x384xf32>
    %cst_77 = arith.constant 0.000000e+00 : f32
    %144 = vector.broadcast %cst_77 : f32 to vector<2x384xf32>
    %145 = arith.maximumf %143, %144 : vector<2x384xf32>
    %c0_78 = arith.constant 0 : index
    %c0_79 = arith.constant 0 : index
    %146 = vector.load %arg29[%c0_78, %c0_79] : memref<2x384xf32, #tpu.memory_space<vmem>>, vector<2x384xf32>
    tpu.vector_store %arg29[%c0_78, %c0_79], %145 {strides = array<i32>} : memref<2x384xf32, #tpu.memory_space<vmem>>, vector<2x384xf32>,
    %c2_i32_80 = arith.constant 2 : i32
    %147 = tpu.memref_slice %arg37[%c2_i32_80] : memref<5x!tpu.dma_semaphore, #tpu.memory_space<semaphore_mem>> -> memref<1x!tpu.dma_semaphore, #tpu.memory_space<semaphore_mem>>
    %148 = tpu.memref_squeeze %147 : memref<1x!tpu.dma_semaphore, #tpu.memory_space<semaphore_mem>> -> memref<!tpu.dma_semaphore, #tpu.memory_space<semaphore_mem>>
    tpu.wait_dma2 semaphore(%148 : memref<!tpu.dma_semaphore, #tpu.memory_space<semaphore_mem>>) src(%arg25 : memref<384x384xbf16, #tpu.memory_space<any>>) dst(%arg34 : memref<384x384xbf16, #tpu.memory_space<vmem>>)
    %c3_i32_81 = arith.constant 3 : i32
    %149 = tpu.memref_slice %arg37[%c3_i32_81] : memref<5x!tpu.dma_semaphore, #tpu.memory_space<semaphore_mem>> -> memref<1x!tpu.dma_semaphore, #tpu.memory_space<semaphore_mem>>
    %150 = tpu.memref_squeeze %149 : memref<1x!tpu.dma_semaphore, #tpu.memory_space<semaphore_mem>> -> memref<!tpu.dma_semaphore, #tpu.memory_space<semaphore_mem>>
    tpu.wait_dma2 semaphore(%150 : memref<!tpu.dma_semaphore, #tpu.memory_space<semaphore_mem>>) src(%arg26 : memref<384x384xbf16, #tpu.memory_space<any>>) dst(%arg35 : memref<384x384xbf16, #tpu.memory_space<vmem>>)
    %151 = arith.truncf %57 : vector<2x384xf32> to vector<2x384xbf16>
    %c0_82 = arith.constant 0 : index
    %c0_83 = arith.constant 0 : index
    %152 = vector.load %arg34[%c0_82, %c0_83] : memref<384x384xbf16, #tpu.memory_space<vmem>>, vector<384x384xbf16>
    %cst_84 = arith.constant dense<0.000000e+00> : vector<2x384xf32>
    %153 = tpu.matmul %151, %152, %cst_84 {dimension_numbers = #tpu.dot_dimension_numbers<[1], [0], [0], [1], [0, 0, 1, 1], [], []>} : vector<2x384xbf16>, vector<384x384xbf16>, vector<2x384xf32> -> vector<2x384xf32>
    %154 = arith.truncf %145 : vector<2x384xf32> to vector<2x384xbf16>
    %c0_85 = arith.constant 0 : index
    %c0_86 = arith.constant 0 : index
    %155 = vector.load %arg35[%c0_85, %c0_86] : memref<384x384xbf16, #tpu.memory_space<vmem>>, vector<384x384xbf16>
    %cst_87 = arith.constant dense<0.000000e+00> : vector<2x384xf32>
    %156 = tpu.matmul %154, %155, %cst_87 {dimension_numbers = #tpu.dot_dimension_numbers<[1], [0], [0], [1], [0, 0, 1, 1], [], []>} : vector<2x384xbf16>, vector<384x384xbf16>, vector<2x384xf32> -> vector<2x384xf32>
    %157 = arith.addf %153, %156 : vector<2x384xf32>
    %c0_88 = arith.constant 0 : index
    %c0_89 = arith.constant 0 : index
    %158 = vector.load %arg21[%c0_88, %c0_89] : memref<1x384xf32, #tpu.memory_space<vmem>>, vector<1x384xf32>
    %159 = vector.broadcast %158 : vector<1x384xf32> to vector<2x384xf32>
    %160 = arith.addf %157, %159 : vector<2x384xf32>
    %cst_90 = arith.constant 0.000000e+00 : f32
    %161 = vector.broadcast %cst_90 : f32 to vector<2x384xf32>
    %162 = arith.maximumf %160, %161 : vector<2x384xf32>
    %c4_i32_91 = arith.constant 4 : i32
    %163 = tpu.memref_slice %arg37[%c4_i32_91] : memref<5x!tpu.dma_semaphore, #tpu.memory_space<semaphore_mem>> -> memref<1x!tpu.dma_semaphore, #tpu.memory_space<semaphore_mem>>
    %164 = tpu.memref_squeeze %163 : memref<1x!tpu.dma_semaphore, #tpu.memory_space<semaphore_mem>> -> memref<!tpu.dma_semaphore, #tpu.memory_space<semaphore_mem>>
    tpu.wait_dma2 semaphore(%164 : memref<!tpu.dma_semaphore, #tpu.memory_space<semaphore_mem>>) src(%arg27 : memref<384x128xbf16, #tpu.memory_space<any>>) dst(%arg36 : memref<384x128xbf16, #tpu.memory_space<vmem>>)
    %165 = arith.truncf %162 : vector<2x384xf32> to vector<2x384xbf16>
    %c0_92 = arith.constant 0 : index
    %c0_93 = arith.constant 0 : index
    %166 = vector.load %arg36[%c0_92, %c0_93] : memref<384x128xbf16, #tpu.memory_space<vmem>>, vector<384x128xbf16>
    %cst_94 = arith.constant dense<0.000000e+00> : vector<2x128xf32>
    %167 = tpu.matmul %165, %166, %cst_94 {dimension_numbers = #tpu.dot_dimension_numbers<[1], [0], [0], [1], [0, 0, 1, 1], [], []>} : vector<2x384xbf16>, vector<384x128xbf16>, vector<2x128xf32> -> vector<2x128xf32>
    %c0_95 = arith.constant 0 : index
    %c0_96 = arith.constant 0 : index
    %168 = vector.load %arg22[%c0_95, %c0_96] : memref<1x128xf32, #tpu.memory_space<vmem>>, vector<1x128xf32>
    %169 = vector.broadcast %168 : vector<1x128xf32> to vector<2x128xf32>
    %170 = arith.addf %167, %169 : vector<2x128xf32>
    %c0_97 = arith.constant 0 : index
    %c0_98 = arith.constant 0 : index
    %171 = vector.load %arg31[%c0_97, %c0_98] : memref<2x128xf32, #tpu.memory_space<vmem>>, vector<2x128xf32>
    tpu.vector_store %arg31[%c0_97, %c0_98], %170 {strides = array<i32>} : memref<2x128xf32, #tpu.memory_space<vmem>>, vector<2x128xf32>,
    return
  }
}

</mosaic_0001>

<bundles_post_ra>
// kernel: drj_forward.1
= control target key start
LH: loop header
LB: loop body
LE: loop exit
PB: predicated region body
PF: predicated region fallthrough
CT: control target
= control target key end

     0   :  { %s11994_s6 = smov 1   ;;  %s11995_s10 = smov 2   ;;  %s13118_s0 = inlined_call_operand.smem [shape: u32[32], index: -1, kind: input, shape index: {}] }
   0x1   :  { %s12087_s5 = sld [smem:[%s13118_s0]]   ;;  %s11996_s14 = smov 3  }
   0x2   :  { %s12092_s9 = sld [smem:[%s13118_s0 + %s11994_s6]]   ;;  %s11997_s18 = smov 4  }
   0x3   :  { %s12097_s13 = sld [smem:[%s13118_s0 + %s11995_s10]]   ;;  %s11998_s22 = smov 5  }
   0x4   :  { %s12102_s17 = sld [smem:[%s13118_s0 + %s11996_s14]]   ;;  %s11999_s26 = smov 6  }
   0x5   :  { %s12107_s21 = sld [smem:[%s13118_s0 + %s11997_s18]]   ;;  %s12000_s30 = smov 7  }
   0x6   :  { %s12112_s25 = sld [smem:[%s13118_s0 + %s11998_s22]]   ;;  %s12001_s4 = smov 8  }
   0x7   :  { %13132 = sst [smem:[#allocation77_spill]] %s12087_s5  ;;  %s12002_s10 = smov 9  }
   0x8   :  { %13133 = sst [smem:[#allocation78_spill]] %s12092_s9  ;;  %s12003_s15 = smov 10  }
   0x9   :  { %13134 = sst [smem:[#allocation79_spill]] %s12097_s13  ;;  %s12004_s20 = smov 11  }
   0xa   :  { %s12117_s29 = sld [smem:[%s13118_s0 + %s11999_s26]]   ;;  %s12005_s26 = smov 12  }
   0xb   :  { %s12122_s3 = sld [smem:[%s13118_s0 + %s12000_s30]]   ;;  %s12006_s1 = smov 13  }
   0xc   :  { %s12127_s8 = sld [smem:[%s13118_s0 + %s12001_s4]]   ;;  %s12007_s7 = smov 14  }
   0xd   :  { %s12132_s14 = sld [smem:[%s13118_s0 + %s12002_s10]]   ;;  %s12009_s22 = smov 16  }
   0xe   :  { %s12137_s19 = sld [smem:[%s13118_s0 + %s12003_s15]]   ;;  %s12008_s15 = smov 15  }
   0xf   :  { %s12142_s24 = sld [smem:[%s13118_s0 + %s12004_s20]]   ;;  %s12010_s28 = smov 17  }
  0x10   :  { %s12147_s30 = sld [smem:[%s13118_s0 + %s12005_s26]]  }
  0x11   :  { %s12152_s6 = sld [smem:[%s13118_s0 + %s12006_s1]]  }
  0x12   :  { %s12157_s12 = sld [smem:[%s13118_s0 + %s12007_s7]]   ;;  %s12011_s7 = smov 18  }
  0x13   :  { %s12162_s20 = sld [smem:[%s13118_s0 + %s12008_s15]]   ;;  %s12012_s15 = smov 19  }
  0x14   :  { %s12167_s27 = sld [smem:[%s13118_s0 + %s12009_s22]]   ;;  %s12013_s22 = smov 20  }
  0x15   :  { %s12172_s4 = sld [smem:[%s13118_s0 + %s12010_s28]]   ;;  %s12014_s28 = smov 21  }
  0x16   :  { %s12177_s13 = sld [smem:[%s13118_s0 + %s12011_s7]]   ;;  %s12015_s7 = smov 22  }
  0x17   :  { %13135 = sst [smem:[#allocation80_spill]] %s12152_s6 }
  0x18   :  { %s12182_s9 = sld [smem:[%s13118_s0 + %s12012_s15]]   ;;  %s12016_s15 = smov 23  }
  0x19   :  { %13136 = sst [smem:[#allocation81_spill]] %s12162_s20 }
  0x1a   :  { %s12187_s5 = sld [smem:[%s13118_s0 + %s12013_s22]]   ;;  %s12017_s22 = smov 24  }
  0x1b   :  { %13137 = sst [smem:[#allocation82_spill]] %s12172_s4 }
  0x1c   :  { %s12192_s4 = sld [smem:[%s13118_s0 + %s12014_s28]]   ;;  %s12018_s28 = smov 25  }
  0x1d   :  { %s12197_s20 = sld [smem:[%s13118_s0 + %s12015_s7]]   ;;  %s12019_s7 = smov 26  }
  0x1e   :  { %13138 = sst [smem:[#allocation83_spill]] %s12182_s9 }
  0x1f   :  { %s12202_s9 = sld [smem:[%s13118_s0 + %s12016_s15]]   ;;  %s12020_s15 = smov 27  }
  0x20   :  { %s12207_s6 = sld [smem:[%s13118_s0 + %s12017_s22]]   ;;  %s12021_s22 = smov 28  }
  0x22   :  { %13139 = sst [smem:[#allocation84_spill]] %s12192_s4 }
  0x23   :  { %13140 = sst [smem:[#allocation85_spill]] %s12197_s20 }
  0x24   :  { %s12212_s4 = sld [smem:[%s13118_s0 + %s12018_s28]]   ;;  %s12022_s28 = smov 29  }
  0x25   :  { %13141 = sst [smem:[#allocation86_spill]] %s12202_s9 }
  0x26   :  { %13142 = sst [smem:[#allocation87_spill]] %s12207_s6 }
  0x27   :  { %s12217_s20 = sld [smem:[%s13118_s0 + %s12019_s7]]   ;;  %s12023_s7 = smov 30  }
  0x28   :  { %s12222_s9 = sld [smem:[%s13118_s0 + %s12020_s15]]   ;;  %s12024_s15 = smov 31  }
  0x29   :  { %s12227_s6 = sld [smem:[%s13118_s0 + %s12021_s22]]  }
  0x2a   :  { %13143 = sst [smem:[#allocation88_spill]] %s12212_s4 }
  0x2b   :  { %s12232_s4 = sld [smem:[%s13118_s0 + %s12022_s28]]  }
  0x2d   :  { %13144 = sst [smem:[#allocation89_spill]] %s12217_s20 }
  0x2e   :  { %13145 = sst [smem:[#allocation90_spill]] %s12222_s9 }
  0x2f   :  { %s12237_s20 = sld [smem:[%s13118_s0 + %s12023_s7]]  }
  0x30   :  { %s12242_s9 = sld [smem:[%s13118_s0 + %s12024_s15]]  }
  0x31   :  { %69 = vsyncpa [#allocation9], 0 }
  0x32   :  { %70 = vsyncpa [#allocation12], 0 }
  0x33   :  { %71 = vsyncpa [#allocation15], 0 }
  0x34   :  { %72 = vsyncpa [#allocation18], 0 }
  0x35   :  { %73 = vsyncpa [#allocation21], 0 }
  0x36   :  { %74 = vsyncpa [#allocation24], 0 }
  0x37   :  { %75 = vsyncpa [#allocation27], 0 }
  0x38   :  { %76 = vsyncpa [#allocation30], 0 }
  0x39   :  { %77 = vsyncpa [#allocation33], 0 }
  0x3a   :  { %78 = vsyncpa [#allocation36], 0 }
  0x3b   :  { %79 = vsyncpa [#allocation39], 0 }
  0x3c   :  { %80 = vsyncpa [#allocation10], 0 }
  0x3d   :  { %81 = vsyncpa [#allocation42], 0 }
  0x3e   :  { %82 = vsyncpa [#allocation45], 0  ;;  %s12025_s22 = smov [#allocation11]   ;;  %s12026_s23 = smov [#allocation14]  }
  0x3f   :  { %s107_s0 = sshll.u32 %s12025_s22, 4  ;;  %s129_s26 = sshll.u32 %s12026_s23, 4  ;;  %s108_s0 = int_to_ptr.vmem [resolvable:$true] %s107_s0  ;;  %s130_s26 = int_to_ptr.vmem [resolvable:$true] %s129_s26 }
  0x40   :  { %s11406_s28 = scalar_lea.hbm %s12107_s21, 96 }
  0x41   :  { %p11407_p0 = scmp.ne.s32.totalorder %s12107_s21, %s11406_s28  ;;  %p11410_p1 = scmp.lt.u32.totalorder %s11406_s28, %s12107_s21 }
  0x43   :  { %p11412_p2 = pnand %p11410_p1, %p11407_p0 }
  0x45   :  { %11415 = shalt.err (!%p11412_p2)
}
  0x46   :  { %s11416_s1 = scalar_lea.vmem %s108_s0, 96  ;;  %p11421_p4 = scmp.lt.s32.totalorder %s108_s0, %s108_s0 }
  0x47   :  { %p11417_p3 = scmp.ne.s32.totalorder %s108_s0, %s11416_s1  ;;  %p11422_p5 = scmp.lt.s32.totalorder %s11416_s1, %s11416_s1 }
  0x49   :  { %p11423_p6 = por %p11422_p5, %p11421_p4 }
  0x4b   :  { %p11424_p7 = pnand %p11423_p6, %p11417_p3 }
  0x4d   :  { %11427 = shalt.err (!%p11424_p7)
}
  0x4e   :  { %110 = dma.hbm_to_vmem [thread:$0]  %s12107_s21, 96, %s108_s0, [#allocation12]  }
  0x4f   :  { %s11428_s2 = scalar_lea.hbm %s12117_s29, 48 }
  0x50   :  { %p11429_p8 = scmp.ne.s32.totalorder %s12117_s29, %s11428_s2  ;;  %p11432_p9 = scmp.lt.u32.totalorder %s11428_s2, %s12117_s29 }
  0x52   :  { %p11434_p10 = pnand %p11432_p9, %p11429_p8 }
  0x54   :  { %11437 = shalt.err (!%p11434_p10)
}
  0x55   :  { %s11438_s7 = scalar_lea.vmem %s130_s26, 48  ;;  %s11442_s10 = scalar_lea.vmem %s130_s26, 64 }
  0x56   :  { %p11439_p11 = scmp.ne.s32.totalorder %s130_s26, %s11438_s7  ;;  %p11443_p12 = scmp.lt.s32.totalorder %s130_s26, %s130_s26 }
  0x57   :  { %p11444_p13 = scmp.lt.s32.totalorder %s11442_s10, %s11438_s7 }
  0x59   :  { %p11445_p0 = por %p11444_p13, %p11443_p12 }
  0x5b   :  { %p11446_p1 = pnand %p11445_p0, %p11439_p11 }
  0x5d   :  { %11449 = shalt.err (!%p11446_p1)
}
  0x5e   :  { %132 = dma.hbm_to_vmem [thread:$0]  %s12117_s29, 48, %s130_s26, [#allocation15]  }
  0x5f   :  { %s12027_s11 = smov [#allocation17]   ;;  %s12028_s15 = smov [#allocation20]  }
  0x60   :  { %s149_s21 = sshll.u32 %s12027_s11, 4  ;;  %s171_s16 = sshll.u32 %s12028_s15, 4  ;;  %s150_s21 = int_to_ptr.vmem [resolvable:$true] %s149_s21  ;;  %s172_s16 = int_to_ptr.vmem [resolvable:$true] %s171_s16 }
  0x61   :  { %s11450_s18 = scalar_lea.hbm %s12127_s8, 48 }
  0x62   :  { %p11451_p2 = scmp.ne.s32.totalorder %s12127_s8, %s11450_s18  ;;  %p11454_p3 = scmp.lt.u32.totalorder %s11450_s18, %s12127_s8 }
  0x64   :  { %p11456_p4 = pnand %p11454_p3, %p11451_p2 }
  0x66   :  { %11459 = shalt.err (!%p11456_p4)
}
  0x67   :  { %s11460_s22 = scalar_lea.vmem %s150_s21, 48  ;;  %s11464_s0 = scalar_lea.vmem %s150_s21, 64 }
  0x68   :  { %p11461_p5 = scmp.ne.s32.totalorder %s150_s21, %s11460_s22  ;;  %p11465_p6 = scmp.lt.s32.totalorder %s150_s21, %s150_s21 }
  0x69   :  { %p11466_p7 = scmp.lt.s32.totalorder %s11464_s0, %s11460_s22 }
  0x6b   :  { %p11467_p8 = por %p11466_p7, %p11465_p6 }
  0x6d   :  { %p11468_p9 = pnand %p11467_p8, %p11461_p5 }
  0x6f   :  { %11471 = shalt.err (!%p11468_p9)
}
  0x70   :  { %152 = dma.hbm_to_vmem [thread:$0]  %s12127_s8, 48, %s150_s21, [#allocation18]  }
  0x71   :  { %s11472_s29 = scalar_lea.hbm %s12137_s19, 16 }
  0x72   :  { %p11473_p10 = scmp.ne.s32.totalorder %s12137_s19, %s11472_s29  ;;  %p11476_p11 = scmp.lt.u32.totalorder %s11472_s29, %s12137_s19 }
  0x74   :  { %p11478_p12 = pnand %p11476_p11, %p11473_p10 }
  0x76   :  { %11481 = shalt.err (!%p11478_p12)
}
  0x77   :  { %s11482_s23 = scalar_lea.vmem %s172_s16, 16  ;;  %s11486_s26 = scalar_lea.vmem %s172_s16, 32 }
  0x78   :  { %p11483_p13 = scmp.ne.s32.totalorder %s172_s16, %s11482_s23  ;;  %p11487_p0 = scmp.lt.s32.totalorder %s172_s16, %s172_s16 }
  0x79   :  { %p11488_p1 = scmp.lt.s32.totalorder %s11486_s26, %s11482_s23 }
  0x7b   :  { %p11489_p2 = por %p11488_p1, %p11487_p0 }
  0x7d   :  { %p11490_p3 = pnand %p11489_p2, %p11483_p13 }
  0x7f   :  { %11493 = shalt.err (!%p11490_p3)
}
  0x80   :  { %174 = dma.hbm_to_vmem [thread:$0]  %s12137_s19, 16, %s172_s16, [#allocation21]  }
  0x81   :  { %s12029_s28 = smov [#allocation23]   ;;  %s12030_s1 = smov [#allocation26]  }
  0x82   :  { %s193_s8 = sshll.u32 %s12029_s28, 4  ;;  %s215_s2 = sshll.u32 %s12030_s1, 4  ;;  %s194_s8 = int_to_ptr.vmem [resolvable:$true] %s193_s8  ;;  %s216_s2 = int_to_ptr.vmem [resolvable:$true] %s215_s2 }
  0x83   :  { %s11494_s7 = scalar_lea.hbm %s12147_s30, 16 }
  0x84   :  { %p11495_p4 = scmp.ne.s32.totalorder %s12147_s30, %s11494_s7  ;;  %p11498_p5 = scmp.lt.u32.totalorder %s11494_s7, %s12147_s30 }
  0x86   :  { %p11500_p6 = pnand %p11498_p5, %p11495_p4 }
  0x88   :  { %11503 = shalt.err (!%p11500_p6)
}
  0x89   :  { %s11504_s10 = scalar_lea.vmem %s194_s8, 16  ;;  %s11508_s11 = scalar_lea.vmem %s194_s8, 32 }
  0x8a   :  { %p11505_p7 = scmp.ne.s32.totalorder %s194_s8, %s11504_s10  ;;  %p11509_p8 = scmp.lt.s32.totalorder %s194_s8, %s194_s8 }
  0x8b   :  { %p11510_p9 = scmp.lt.s32.totalorder %s11508_s11, %s11504_s10 }
  0x8d   :  { %p11511_p10 = por %p11510_p9, %p11509_p8 }
  0x8f   :  { %p11512_p11 = pnand %p11511_p10, %p11505_p7 }
  0x91   :  { %11515 = shalt.err (!%p11512_p11)
}
  0x92   :  { %196 = dma.hbm_to_vmem [thread:$0]  %s12147_s30, 16, %s194_s8, [#allocation24]  }
  0x93   :  { %s11516_s19 = scalar_lea.hbm %s12157_s12, 256 }
  0x94   :  { %p11517_p12 = scmp.ne.s32.totalorder %s12157_s12, %s11516_s19  ;;  %p11520_p13 = scmp.lt.u32.totalorder %s11516_s19, %s12157_s12 }
  0x96   :  { %p11522_p0 = pnand %p11520_p13, %p11517_p12 }
  0x98   :  { %11525 = shalt.err (!%p11522_p0)
}
  0x99   :  { %s11526_s21 = scalar_lea.vmem %s216_s2, 256  ;;  %p11531_p2 = scmp.lt.s32.totalorder %s216_s2, %s216_s2 }
  0x9a   :  { %p11527_p1 = scmp.ne.s32.totalorder %s216_s2, %s11526_s21  ;;  %p11532_p3 = scmp.lt.s32.totalorder %s11526_s21, %s11526_s21 }
  0x9c   :  { %p11533_p4 = por %p11532_p3, %p11531_p2 }
  0x9e   :  { %p11534_p5 = pnand %p11533_p4, %p11527_p1 }
  0xa0   :  { %11537 = shalt.err (!%p11534_p5)
}
  0xa1   :  { %218 = dma.hbm_to_vmem [thread:$0]  %s12157_s12, 256, %s216_s2, [#allocation27]  }
  0xa2   :  { %s12031_s15 = smov [#allocation29]   ;;  %s12032_s30 = smov [#allocation32]  }
  0xa3   :  { %s237_s16 = sshll.u32 %s12031_s15, 4  ;;  %s257_s18 = sshll.u32 %s12032_s30, 4  ;;  %s238_s16 = int_to_ptr.vmem [resolvable:$true] %s237_s16  ;;  %s258_s18 = int_to_ptr.vmem [resolvable:$true] %s257_s18 }
  0xa4   :  { %s11538_s22 = scalar_lea.hbm %s12167_s27, 128 }
  0xa5   :  { %p11539_p6 = scmp.ne.s32.totalorder %s12167_s27, %s11538_s22  ;;  %p11542_p7 = scmp.lt.u32.totalorder %s11538_s22, %s12167_s27 }
  0xa7   :  { %p11544_p8 = pnand %p11542_p7, %p11539_p6 }
  0xa9   :  { %11547 = shalt.err (!%p11544_p8)
}
  0xaa   :  { %s11548_s0 = scalar_lea.vmem %s238_s16, 128  ;;  %p11553_p10 = scmp.lt.s32.totalorder %s238_s16, %s238_s16 }
  0xab   :  { %p11549_p9 = scmp.ne.s32.totalorder %s238_s16, %s11548_s0  ;;  %p11554_p11 = scmp.lt.s32.totalorder %s11548_s0, %s11548_s0 }
  0xad   :  { %p11555_p12 = por %p11554_p11, %p11553_p10 }
  0xaf   :  { %p11556_p13 = pnand %p11555_p12, %p11549_p9 }
  0xb1   :  { %11559 = shalt.err (!%p11556_p13)
}
  0xb2   :  { %240 = dma.hbm_to_vmem [thread:$0]  %s12167_s27, 128, %s238_s16, [#allocation30]  }
  0xb3   :  { %s11560_s12 = scalar_lea.hbm %s12177_s13, 48 }
  0xb4   :  { %p11561_p0 = scmp.ne.s32.totalorder %s12177_s13, %s11560_s12  ;;  %p11564_p1 = scmp.lt.u32.totalorder %s11560_s12, %s12177_s13 }
  0xb6   :  { %p11566_p2 = pnand %p11564_p1, %p11561_p0 }
  0xb8   :  { %11569 = shalt.err (!%p11566_p2)
}
  0xb9   :  { %s11570_s29 = scalar_lea.vmem %s258_s18, 48  ;;  %s11574_s23 = scalar_lea.vmem %s258_s18, 64 }
  0xba   :  { %p11571_p3 = scmp.ne.s32.totalorder %s258_s18, %s11570_s29  ;;  %p11575_p4 = scmp.lt.s32.totalorder %s258_s18, %s258_s18 }
  0xbb   :  { %p11576_p5 = scmp.lt.s32.totalorder %s11574_s23, %s11570_s29 }
  0xbd   :  { %p11577_p6 = por %p11576_p5, %p11575_p4 }
  0xbf   :  { %p11578_p7 = pnand %p11577_p6, %p11571_p3 }
  0xc1   :  { %11581 = shalt.err (!%p11578_p7)
}
  0xc2   :  { %260 = dma.hbm_to_vmem [thread:$0]  %s12177_s13, 48, %s258_s18, [#allocation33]  }
  0xc3   :  { %s12033_s26 = smov [#allocation35]   ;;  %s12034_s28 = smov [#allocation8]  }
  0xc4   :  { %s277_s27 = sshll.u32 %s12033_s26, 4  ;;  %s94_s8 = sshll.u32 %s12034_s28, 4  ;;  %s278_s27 = int_to_ptr.vmem [resolvable:$true] %s277_s27  ;;  %s12276_s8 = int_to_ptr.vmem [resolvable:$true] %s94_s8 }
  0xc5   :  { %s11582_s1 = scalar_lea.hbm %s12187_s5, 48 }
  0xc6   :  { %p11583_p8 = scmp.ne.s32.totalorder %s12187_s5, %s11582_s1  ;;  %p11586_p9 = scmp.lt.u32.totalorder %s11582_s1, %s12187_s5 }
  0xc8   :  { %p11588_p10 = pnand %p11586_p9, %p11583_p8 }
  0xca   :  { %11591 = shalt.err (!%p11588_p10)
}
  0xcb   :  { %s11592_s2 = scalar_lea.vmem %s278_s27, 48  ;;  %s11596_s7 = scalar_lea.vmem %s278_s27, 64 }
  0xcc   :  { %p11593_p11 = scmp.ne.s32.totalorder %s278_s27, %s11592_s2  ;;  %p11597_p12 = scmp.lt.s32.totalorder %s278_s27, %s278_s27 }
  0xcd   :  { %p11598_p13 = scmp.lt.s32.totalorder %s11596_s7, %s11592_s2 }
  0xcf   :  { %p11599_p0 = por %p11598_p13, %p11597_p12 }
  0xd1   :  { %p11600_p1 = pnand %p11599_p0, %p11593_p11 }
  0xd3   :  { %11603 = shalt.err (!%p11600_p1)
}
  0xd4   :  { %280 = dma.hbm_to_vmem [thread:$0]  %s12187_s5, 48, %s278_s27, [#allocation36]  }
  0xd5   :  { %s11604_s13 = scalar_lea.hbm %s12102_s17, 36864 }
  0xd6   :  { %p11605_p2 = scmp.ne.s32.totalorder %s12102_s17, %s11604_s13  ;;  %p11608_p3 = scmp.lt.u32.totalorder %s11604_s13, %s12102_s17 }
  0xd8   :  { %p11610_p4 = pnand %p11608_p3, %p11605_p2 }
  0xda   :  { %11613 = shalt.err (!%p11610_p4)
}
  0xdb   :  { %s11614_s10 = scalar_lea.vmem %s12276_s8, 36864  ;;  %p11619_p6 = scmp.lt.s32.totalorder %s12276_s8, %s12276_s8 }
  0xdc   :  { %p11615_p5 = scmp.ne.s32.totalorder %s12276_s8, %s11614_s10  ;;  %p11620_p7 = scmp.lt.s32.totalorder %s11614_s10, %s11614_s10 }
  0xde   :  { %p11621_p8 = por %p11620_p7, %p11619_p6 }
  0xe0   :  { %p11622_p9 = pnand %p11621_p8, %p11615_p5 }
  0xe2   :  { %11625 = shalt.err (!%p11622_p9)
}
  0xe3   :  { %s12035_s11 = smov 384   ;;  %s12036_s5 = smov 24  }
  0xe4   :  { %100 = dma.hbm_to_vmem [thread:$0]  %s12102_s17, 36864, %s12276_s8, [#allocation9], %s12035_s11, %s12035_s11, %s12036_s5  }
  0xe5   :  { %s12037_s19 = smov [#allocation13]   ;;  %s11626_s15 = scalar_lea.hbm %s12112_s25, 18432 }
  0xe6   :  { %s116_s21 = sshll.u32 %s12037_s19, 4  ;;  %p11627_p10 = scmp.ne.s32.totalorder %s12112_s25, %s11626_s15  ;;  %s117_s21 = int_to_ptr.vmem [resolvable:$true] %s116_s21 }
  0xe7   :  { %p11630_p11 = scmp.lt.u32.totalorder %s11626_s15, %s12112_s25 }
  0xe9   :  { %p11632_p12 = pnand %p11630_p11, %p11627_p10 }
  0xeb   :  { %11635 = shalt.err (!%p11632_p12)
}
  0xec   :  { %s11636_s16 = scalar_lea.vmem %s117_s21, 18432  ;;  %p11641_p0 = scmp.lt.s32.totalorder %s117_s21, %s117_s21 }
  0xed   :  { %p11637_p13 = scmp.ne.s32.totalorder %s117_s21, %s11636_s16  ;;  %p11642_p1 = scmp.lt.s32.totalorder %s11636_s16, %s11636_s16 }
  0xef   :  { %p11643_p2 = por %p11642_p1, %p11641_p0 }
  0xf1   :  { %p11644_p3 = pnand %p11643_p2, %p11637_p13 }
  0xf3   :  { %11647 = shalt.err (!%p11644_p3)
}
  0xf4   :  { %s12038_s30 = smov 192   ;;  %s12039_s17 = smov 12  }
  0xf5   :  { %122 = dma.hbm_to_vmem [thread:$0]  %s12112_s25, 18432, %s117_s21, [#allocation12], %s12038_s30, %s12038_s30, %s12039_s17  }
  0xf6   :  { %s12040_s18 = smov [#allocation16]   ;;  %s12041_s0 = smov [#allocation19]  }
  0xf7   :  { %s139_s22 = sshll.u32 %s12040_s18, 4  ;;  %s158_s12 = sshll.u32 %s12041_s0, 4  ;;  %s140_s22 = int_to_ptr.vmem [resolvable:$true] %s139_s22  ;;  %s159_s12 = int_to_ptr.vmem [resolvable:$true] %s158_s12 }
  0xf8   :  { %s11648_s29 = scalar_lea.hbm %s12122_s3, 48 }
  0xf9   :  { %p11649_p4 = scmp.ne.s32.totalorder %s12122_s3, %s11648_s29  ;;  %p11652_p5 = scmp.lt.u32.totalorder %s11648_s29, %s12122_s3 }
  0xfb   :  { %p11654_p6 = pnand %p11652_p5, %p11649_p4 }
  0xfd   :  { %11657 = shalt.err (!%p11654_p6)
}
  0xfe   :  { %s11658_s23 = scalar_lea.vmem %s140_s22, 48  ;;  %s11662_s26 = scalar_lea.vmem %s140_s22, 64 }
  0xff   :  { %p11659_p7 = scmp.ne.s32.totalorder %s140_s22, %s11658_s23  ;;  %p11663_p8 = scmp.lt.s32.totalorder %s140_s22, %s140_s22 }
 0x100   :  { %p11664_p9 = scmp.lt.s32.totalorder %s11662_s26, %s11658_s23 }
 0x102   :  { %p11665_p10 = por %p11664_p9, %p11663_p8 }
 0x104   :  { %p11666_p11 = pnand %p11665_p10, %p11659_p7 }
 0x106   :  { %11669 = shalt.err (!%p11666_p11)
}
 0x107   :  { %142 = dma.hbm_to_vmem [thread:$0]  %s12122_s3, 48, %s140_s22, [#allocation15]  }
 0x108   :  { %s11670_s25 = scalar_lea.hbm %s12132_s14, 256 }
 0x109   :  { %p11671_p12 = scmp.ne.s32.totalorder %s12132_s14, %s11670_s25  ;;  %p11674_p13 = scmp.lt.u32.totalorder %s11670_s25, %s12132_s14 }
 0x10b   :  { %p11676_p0 = pnand %p11674_p13, %p11671_p12 }
 0x10d   :  { %11679 = shalt.err (!%p11676_p0)
}
 0x10e   :  { %s11680_s27 = scalar_lea.vmem %s159_s12, 256  ;;  %p11685_p2 = scmp.lt.s32.totalorder %s159_s12, %s159_s12 }
 0x10f   :  { %p11681_p1 = scmp.ne.s32.totalorder %s159_s12, %s11680_s27  ;;  %p11686_p3 = scmp.lt.s32.totalorder %s11680_s27, %s11680_s27 }
 0x111   :  { %p11687_p4 = por %p11686_p3, %p11685_p2 }
 0x113   :  { %p11688_p5 = pnand %p11687_p4, %p11681_p1 }
 0x115   :  { %11691 = shalt.err (!%p11688_p5)
}
 0x116   :  { %s12042_s28 = smov 64   ;;  %s12043_s8 = smov 4  }
 0x117   :  { %164 = dma.hbm_to_vmem [thread:$0]  %s12132_s14, 256, %s159_s12, [#allocation18], %s12042_s28, %s12042_s28, %s12043_s8  }
 0x118   :  { %s12044_s3 = smov [#allocation22]   ;;  %s12045_s2 = smov [#allocation25]  }
 0x119   :  { %s180_s1 = sshll.u32 %s12044_s3, 4  ;;  %s202_s7 = sshll.u32 %s12045_s2, 4  ;;  %s181_s1 = int_to_ptr.vmem [resolvable:$true] %s180_s1  ;;  %s203_s7 = int_to_ptr.vmem [resolvable:$true] %s202_s7 }
 0x11a   :  { %s11692_s13 = scalar_lea.hbm %s12142_s24, 256 }
 0x11b   :  { %p11693_p6 = scmp.ne.s32.totalorder %s12142_s24, %s11692_s13  ;;  %p11696_p7 = scmp.lt.u32.totalorder %s11692_s13, %s12142_s24 }
 0x11d   :  { %p11698_p8 = pnand %p11696_p7, %p11693_p6 }
 0x11f   :  { %11701 = shalt.err (!%p11698_p8)
}
 0x120   :  { %s11702_s10 = scalar_lea.vmem %s181_s1, 256  ;;  %p11707_p10 = scmp.lt.s32.totalorder %s181_s1, %s181_s1 }
 0x121   :  { %p11703_p9 = scmp.ne.s32.totalorder %s181_s1, %s11702_s10  ;;  %p11708_p11 = scmp.lt.s32.totalorder %s11702_s10, %s11702_s10 }
 0x123   :  { %p11709_p12 = por %p11708_p11, %p11707_p10 }
 0x125   :  { %p11710_p13 = pnand %p11709_p12, %p11703_p9 }
 0x127   :  { %11713 = shalt.err (!%p11710_p13)
}
 0x128   :  { %s13146_s14 = sld [smem:[#allocation80_spill]] }
 0x129   :  { %186 = dma.hbm_to_vmem [thread:$0]  %s12142_s24, 256, %s181_s1, [#allocation21], %s12042_s28, %s12042_s28, %s12043_s8  }
 0x12e   :  { %s11714_s5 = scalar_lea.hbm %s13146_s14, 8192 }
 0x12f   :  { %p11715_p0 = scmp.ne.s32.totalorder %s13146_s14, %s11714_s5  ;;  %p11718_p1 = scmp.lt.u32.totalorder %s11714_s5, %s13146_s14 }
 0x131   :  { %p11720_p2 = pnand %p11718_p1, %p11715_p0 }
 0x133   :  { %11723 = shalt.err (!%p11720_p2)
}
 0x134   :  { %s11724_s19 = scalar_lea.vmem %s203_s7, 8192  ;;  %p11729_p4 = scmp.lt.s32.totalorder %s203_s7, %s203_s7 }
 0x135   :  { %p11725_p3 = scmp.ne.s32.totalorder %s203_s7, %s11724_s19  ;;  %p11730_p5 = scmp.lt.s32.totalorder %s11724_s19, %s11724_s19 }
 0x137   :  { %p11731_p6 = por %p11730_p5, %p11729_p4 }
 0x139   :  { %p11732_p7 = pnand %p11731_p6, %p11725_p3 }
 0x13b   :  { %11735 = shalt.err (!%p11732_p7)
}
 0x13c   :  { %s12046_s21 = smov 1024   ;;  %s13147_s15 = sld [smem:[#allocation81_spill]] }
 0x13d   :  { %208 = dma.hbm_to_vmem [thread:$0]  %s13146_s14, 8192, %s203_s7, [#allocation24], %s12046_s21, %s12046_s21, %s12042_s28  }
 0x13e   :  { %s12047_s24 = smov [#allocation28]  }
 0x13f   :  { %s224_s16 = sshll.u32 %s12047_s24, 4  ;;  %s225_s16 = int_to_ptr.vmem [resolvable:$true] %s224_s16 }
 0x142   :  { %s11736_s17 = scalar_lea.hbm %s13147_s15, 4096 }
 0x143   :  { %p11737_p8 = scmp.ne.s32.totalorder %s13147_s15, %s11736_s17  ;;  %p11740_p9 = scmp.lt.u32.totalorder %s11736_s17, %s13147_s15 }
 0x145   :  { %p11742_p10 = pnand %p11740_p9, %p11737_p8 }
 0x147   :  { %11745 = shalt.err (!%p11742_p10)
}
 0x148   :  { %s11746_s18 = scalar_lea.vmem %s225_s16, 4096  ;;  %p11751_p12 = scmp.lt.s32.totalorder %s225_s16, %s225_s16 }
 0x149   :  { %p11747_p11 = scmp.ne.s32.totalorder %s225_s16, %s11746_s18  ;;  %p11752_p13 = scmp.lt.s32.totalorder %s11746_s18, %s11746_s18 }
 0x14b   :  { %p11753_p0 = por %p11752_p13, %p11751_p12 }
 0x14d   :  { %p11754_p1 = pnand %p11753_p0, %p11747_p11 }
 0x14f   :  { %11757 = shalt.err (!%p11754_p1)
}
 0x150   :  { %s12048_s22 = smov 512   ;;  %s13148_s0 = sld [smem:[#allocation82_spill]] }
 0x151   :  { %s12049_s12 = smov 32   ;;  %s12050_s29 = smov [#allocation31]  }
 0x152   :  { %230 = dma.hbm_to_vmem [thread:$0]  %s13147_s15, 4096, %s225_s16, [#allocation27], %s12048_s22, %s12048_s22, %s12049_s12  }
 0x153   :  { %s247_s23 = sshll.u32 %s12050_s29, 4  ;;  %s12051_s26 = smov [#allocation34]   ;;  %s248_s23 = int_to_ptr.vmem [resolvable:$true] %s247_s23 }
 0x154   :  { %s267_s25 = sshll.u32 %s12051_s26, 4  ;;  %s268_s25 = int_to_ptr.vmem [resolvable:$true] %s267_s25 }
 0x156   :  { %s11758_s27 = scalar_lea.hbm %s13148_s0, 128 }
 0x157   :  { %p11759_p2 = scmp.ne.s32.totalorder %s13148_s0, %s11758_s27  ;;  %p11762_p3 = scmp.lt.u32.totalorder %s11758_s27, %s13148_s0 }
 0x159   :  { %p11764_p4 = pnand %p11762_p3, %p11759_p2 }
 0x15b   :  { %11767 = shalt.err (!%p11764_p4)
}
 0x15c   :  { %s11768_s3 = scalar_lea.vmem %s248_s23, 128  ;;  %p11773_p6 = scmp.lt.s32.totalorder %s248_s23, %s248_s23 }
 0x15d   :  { %p11769_p5 = scmp.ne.s32.totalorder %s248_s23, %s11768_s3  ;;  %p11774_p7 = scmp.lt.s32.totalorder %s11768_s3, %s11768_s3 }
 0x15f   :  { %p11775_p8 = por %p11774_p7, %p11773_p6 }
 0x161   :  { %p11776_p9 = pnand %p11775_p8, %p11769_p5 }
 0x163   :  { %11779 = shalt.err (!%p11776_p9)
}
 0x164   :  { %s13149_s1 = sld [smem:[#allocation83_spill]] }
 0x165   :  { %250 = dma.hbm_to_vmem [thread:$0]  %s13148_s0, 128, %s248_s23, [#allocation30]  }
 0x16a   :  { %s11780_s2 = scalar_lea.hbm %s13149_s1, 48 }
 0x16b   :  { %p11781_p10 = scmp.ne.s32.totalorder %s13149_s1, %s11780_s2  ;;  %p11784_p11 = scmp.lt.u32.totalorder %s11780_s2, %s13149_s1 }
 0x16d   :  { %p11786_p12 = pnand %p11784_p11, %p11781_p10 }
 0x16f   :  { %11789 = shalt.err (!%p11786_p12)
}
 0x170   :  { %s11790_s7 = scalar_lea.vmem %s268_s25, 48  ;;  %s11794_s13 = scalar_lea.vmem %s268_s25, 64 }
 0x171   :  { %p11791_p13 = scmp.ne.s32.totalorder %s268_s25, %s11790_s7  ;;  %p11795_p0 = scmp.lt.s32.totalorder %s268_s25, %s268_s25 }
 0x172   :  { %p11796_p1 = scmp.lt.s32.totalorder %s11794_s13, %s11790_s7 }
 0x174   :  { %p11797_p2 = por %p11796_p1, %p11795_p0 }
 0x176   :  { %p11798_p3 = pnand %p11797_p2, %p11791_p13 }
 0x178   :  { %11801 = shalt.err (!%p11798_p3)
}
 0x179   :  { %s13150_s10 = sld [smem:[#allocation84_spill]]  ;;  %s12052_s14 = smov [#allocation37]  }
 0x17a   :  { %270 = dma.hbm_to_vmem [thread:$0]  %s13149_s1, 48, %s268_s25, [#allocation33]  }
 0x17b   :  { %s287_s5 = sshll.u32 %s12052_s14, 4  ;;  %s12053_s19 = smov [#allocation38]   ;;  %s288_s5 = int_to_ptr.vmem [resolvable:$true] %s287_s5 }
 0x17c   :  { %s297_s15 = sshll.u32 %s12053_s19, 4  ;;  %s298_s15 = int_to_ptr.vmem [resolvable:$true] %s297_s15 }
 0x17f   :  { %s11802_s24 = scalar_lea.hbm %s13150_s10, 48 }
 0x180   :  { %p11803_p4 = scmp.ne.s32.totalorder %s13150_s10, %s11802_s24  ;;  %p11806_p5 = scmp.lt.u32.totalorder %s11802_s24, %s13150_s10 }
 0x182   :  { %p11808_p6 = pnand %p11806_p5, %p11803_p4 }
 0x184   :  { %11811 = shalt.err (!%p11808_p6)
}
 0x185   :  { %s11812_s16 = scalar_lea.vmem %s288_s5, 48  ;;  %s11816_s17 = scalar_lea.vmem %s288_s5, 64 }
 0x186   :  { %p11813_p7 = scmp.ne.s32.totalorder %s288_s5, %s11812_s16  ;;  %p11817_p8 = scmp.lt.s32.totalorder %s288_s5, %s288_s5 }
 0x187   :  { %p11818_p9 = scmp.lt.s32.totalorder %s11816_s17, %s11812_s16 }
 0x189   :  { %p11819_p10 = por %p11818_p9, %p11817_p8 }
 0x18b   :  { %p11820_p11 = pnand %p11819_p10, %p11813_p7 }
 0x18d   :  { %11823 = shalt.err (!%p11820_p11)
}
 0x18e   :  { %s13151_s18 = sld [smem:[#allocation85_spill]] }
 0x18f   :  { %290 = dma.hbm_to_vmem [thread:$0]  %s13150_s10, 48, %s288_s5, [#allocation36]  }
 0x194   :  { %s11824_s0 = scalar_lea.hbm %s13151_s18, 16 }
 0x195   :  { %p11825_p12 = scmp.ne.s32.totalorder %s13151_s18, %s11824_s0  ;;  %p11828_p13 = scmp.lt.u32.totalorder %s11824_s0, %s13151_s18 }
 0x197   :  { %p11830_p0 = pnand %p11828_p13, %p11825_p12 }
 0x199   :  { %11833 = shalt.err (!%p11830_p0)
}
 0x19a   :  { %s11834_s12 = scalar_lea.vmem %s298_s15, 16  ;;  %s11838_s29 = scalar_lea.vmem %s298_s15, 32 }
 0x19b   :  { %p11835_p1 = scmp.ne.s32.totalorder %s298_s15, %s11834_s12  ;;  %p11839_p2 = scmp.lt.s32.totalorder %s298_s15, %s298_s15 }
 0x19c   :  { %p11840_p3 = scmp.lt.s32.totalorder %s11838_s29, %s11834_s12 }
 0x19e   :  { %p11841_p4 = por %p11840_p3, %p11839_p2 }
 0x1a0   :  { %p11842_p5 = pnand %p11841_p4, %p11835_p1 }
 0x1a2   :  { %11845 = shalt.err (!%p11842_p5)
}
 0x1a3   :  { %300 = dma.hbm_to_vmem [thread:$0]  %s13151_s18, 16, %s298_s15, [#allocation39]  }
 0x1a4   :  { %11956 = dma.done.wait [#allocation9], 36864  }
 0x1a5   :  { %11957 = vsyncadd [#allocation9], 4294930432 }
 0x1a6   :  { %11958 = dma.done.wait [#allocation12], 18528  }
 0x1a7   :  { %11959 = vsyncadd [#allocation12], 4294948768 }
 0x1a8   :  { %11960 = dma.done.wait [#allocation15], 96  }
 0x1a9   :  { %11961 = vsyncadd [#allocation15], 4294967200 }
 0x1aa   :  { %11962 = dma.done.wait [#allocation18], 304  }
 0x1ab   :  { %11963 = vsyncadd [#allocation18], 4294966992 }
 0x1ac   :  { %11964 = dma.done.wait [#allocation21], 272  }
 0x1ad   :  { %11965 = vsyncadd [#allocation21], 4294967024 }
 0x1ae   :  { %11966 = dma.done.wait [#allocation24], 8208  }
 0x1af   :  { %11967 = vsyncadd [#allocation24], 4294959088 }
 0x1b0   :  { %11968 = dma.done.wait [#allocation27], 4352  }
 0x1b1   :  { %11969 = vsyncadd [#allocation27], 4294962944 }
 0x1b2   :  { %11970 = dma.done.wait [#allocation30], 256  }
 0x1b3   :  { %11971 = vsyncadd [#allocation30], 4294967040 }
 0x1b4   :  { %11972 = dma.done.wait [#allocation33], 96  }
 0x1b5   :  { %11973 = vsyncadd [#allocation33], 4294967200 }
 0x1b6   :  { %11974 = dma.done.wait [#allocation36], 96  }
 0x1b7   :  { %11975 = vsyncadd [#allocation36], 4294967200 }
 0x1b8   :  { %11976 = dma.done.wait [#allocation39], 16  }
 0x1b9   :  { %11977 = vsyncadd [#allocation39], 4294967280  ;;  %s366_s23 = sld [smem:[#allocation0]]   ;;  %378 = sst [smem:[#allocation47]] %s12046_s21  ;;  %v12070_v36 = vmov 1983009808   ;;  %v522_v38 = vlaneseq }
 0x1ba   :  { %380 = sst [smem:[#allocation47 + $0x1]] %s12046_s21  ;;  %s12054_s26 = smov [#allocation2]   ;;  %v520_v37 = vunpack.c.l.s4 %v12070_v36  ;;  %vm4075_vm0 = vcmask 261120   ;;  %vm12072_vm1 = vmmov 0   ;;  %vm3934_vm3 = vcmask 1041408  }
 0x1bb   :  { %s374_s25 = sshll.u32 %s12054_s26, 4  ;;  %s13152_s27 = sld [smem:[#allocation86_spill]]  ;;  %v12392_v43 = vshrl.u32 %v522_v38, 7  ;;  %vm4730_vm4 = vcmask 523264   ;;  %s375_s25 = int_to_ptr.vmem [resolvable:$true] %s374_s25 }
 0x1bc   :  { %s12055_s3 = smov 8   ;;  %384 = sst [smem:[#allocation47 + $0x3]] %s12042_s28  ;;  %v521_v42 = vunpack.c.0.s8 %v520_v37 }
 0x1bd   :  { %382 = sst [smem:[#allocation47 + $0x2]] %s12055_s3  ;;  %s12056_s7 = smov 128  }
 0x1be   :  { %390 = sst [smem:[#allocation47 + $0x6]] %s12048_s22  ;;  %s12057_s21 = smov 2   ;;  %v12395_v49 = vsub.s32 %v521_v42, %v12392_v43 }
 0x1bf   :  { %392 = sst [smem:[#allocation47 + $0x7]] %s12042_s28  ;;  %s9510_s1 = sshll.u32 %s366_s23, 26 }
 0x1c0   :  { %394 = sst [smem:[#allocation47 + $0x8]] %s12043_s8  ;;  %s12352_s2 = sadd.s32 134217728, %s9510_s1 }
 0x1c1   :  { %386 = sst [smem:[#allocation47 + $0x4]] %s12056_s7  ;;  %s12058_s13 = smov [#allocation7]  }
 0x1c2   :  { %388 = sst [smem:[#allocation47 + $0x5]] %s12057_s21  ;;  %s12059_s10 = smov [#allocation46]  }
 0x1c3   :  { %396 = dma.general %s13152_s27, 131072, %s375_s25, %s12058_s13, %s12059_s10, [#allocation47], %s12352_s2, 0  }
 0x1c4   :  { %s13153_s22 = sld [smem:[#allocation87_spill]]  ;;  %413 = sst [smem:[#allocation49]] %s12035_s11 }
 0x1c5   :  { %415 = sst [smem:[#allocation49 + $0x1]] %s12035_s11  ;;  %s12060_s14 = smov 3  }
 0x1c6   :  { %417 = sst [smem:[#allocation49 + $0x2]] %s12060_s14  ;;  %s12061_s5 = smov [#allocation3]  }
 0x1c7   :  { %s409_s19 = sshll.u32 %s12061_s5, 4  ;;  %419 = sst [smem:[#allocation49 + $0x3]] %s12042_s28  ;;  %s410_s19 = int_to_ptr.vmem [resolvable:$true] %s409_s19 }
 0x1c8   :  { %421 = sst [smem:[#allocation49 + $0x4]] %s12056_s7  ;;  %s12062_s15 = smov [#allocation7 + $0x1]  }
 0x1c9   :  { %423 = sst [smem:[#allocation49 + $0x5]] %s12057_s21  ;;  %s12063_s24 = smov [#allocation48]  }
 0x1ca   :  { %425 = sst [smem:[#allocation49 + $0x6]] %s12038_s30  ;;  %s13154_s16 = sld [smem:[#allocation88_spill]] }
 0x1cb   :  { %427 = sst [smem:[#allocation49 + $0x7]] %s12042_s28  ;;  %s12064_s17 = smov [#allocation4]  }
 0x1cc   :  { %429 = sst [smem:[#allocation49 + $0x8]] %s12043_s8  ;;  %s444_s18 = sshll.u32 %s12064_s17, 4  ;;  %s445_s18 = int_to_ptr.vmem [resolvable:$true] %s444_s18 }
 0x1cd   :  { %431 = dma.general %s13153_s22, 24576, %s410_s19, %s12062_s15, %s12063_s24, [#allocation49], %s12352_s2, 0  }
 0x1ce   :  { %448 = sst [smem:[#allocation51]] %s12035_s11  ;;  %s12065_s0 = smov [#allocation7 + $0x2]  }
 0x1cf   :  { %450 = sst [smem:[#allocation51 + $0x1]] %s12035_s11  ;;  %s12066_s12 = smov [#allocation50]  }
 0x1d0   :  { %452 = sst [smem:[#allocation51 + $0x2]] %s12060_s14  ;;  %s13155_s29 = sld [smem:[#allocation89_spill]] }
 0x1d1   :  { %454 = sst [smem:[#allocation51 + $0x3]] %s12042_s28  ;;  %s12067_s23 = smov [#allocation5]  }
 0x1d2   :  { %456 = sst [smem:[#allocation51 + $0x4]] %s12056_s7  ;;  %s479_s26 = sshll.u32 %s12067_s23, 4  ;;  %s480_s26 = int_to_ptr.vmem [resolvable:$true] %s479_s26 }
 0x1d3   :  { %458 = sst [smem:[#allocation51 + $0x5]] %s12057_s21  ;;  %s12068_s25 = smov [#allocation7 + $0x3]  }
 0x1d4   :  { %460 = sst [smem:[#allocation51 + $0x6]] %s12038_s30  ;;  %s12069_s27 = smov [#allocation52]  }
 0x1d5   :  { %462 = sst [smem:[#allocation51 + $0x7]] %s12042_s28  ;;  %s12074_s3 = smov [#allocation6]  }
 0x1d6   :  { %464 = sst [smem:[#allocation51 + $0x8]] %s12043_s8  ;;  %s510_s1 = sshll.u32 %s12074_s3, 4  ;;  %s511_s1 = int_to_ptr.vmem [resolvable:$true] %s510_s1 }
 0x1d7   :  { %466 = dma.general %s13154_s16, 9216, %s445_s18, %s12065_s0, %s12066_s12, [#allocation51], %s12352_s2, 0  }
 0x1d8   :  { %483 = sst [smem:[#allocation53]] %s12035_s11 }
 0x1d9   :  { %485 = sst [smem:[#allocation53 + $0x1]] %s12035_s11 }
 0x1da   :  { %487 = sst [smem:[#allocation53 + $0x2]] %s12060_s14 }
 0x1db   :  { %489 = sst [smem:[#allocation53 + $0x3]] %s12042_s28 }
 0x1dc   :  { %491 = sst [smem:[#allocation53 + $0x4]] %s12056_s7 }
 0x1dd   :  { %493 = sst [smem:[#allocation53 + $0x5]] %s12057_s21 }
 0x1de   :  { %495 = sst [smem:[#allocation53 + $0x6]] %s12038_s30 }
 0x1df   :  { %497 = sst [smem:[#allocation53 + $0x7]] %s12042_s28 }
 0x1e0   :  { %499 = sst [smem:[#allocation53 + $0x8]] %s12043_s8 }
 0x1e1   :  { %501 = dma.general %s13155_s29, 9216, %s480_s26, %s12068_s25, %s12069_s27, [#allocation53], %s12352_s2, 0  }
 0x1e2   :  { %v10772_v0 = vld [vmem:[#allocation8 + $0x4] ss:$24 sps:$4 sm:$0xff]   ;;  %v10776_v2 = vld [vmem:[#allocation8] ss:$24 sps:$4 sm:$0xff]   ;;  %v10778_v4 = vld [vmem:[#allocation8 + $0x34] ss:$24 sps:$4 sm:$0xff]  }
 0x1e3   :  { %v10774_v1 = vld [vmem:[#allocation8 + $0xc] ss:$24 sps:$4 sm:$0xff]   ;;  %2315 = vmatprep.subr.bf16.mxu0 %v10772_v0  ;;  %v10777_v3 = vld [vmem:[#allocation8 + $0x8] ss:$24 sps:$4 sm:$0xff]   ;;  %v10780_v5 = vld [vmem:[#allocation8 + $0x3c] ss:$24 sps:$4 sm:$0xff]  }
 0x1e4   :  { %2438 = vmatprep.subr.bf16.mxu1 %v10774_v1  ;;  %2316 = vmatpush1.bf16.msra.mxu0 %v10776_v2  ;;  %v10782_v6 = vld [vmem:[#allocation8 + $0x30] ss:$24 sps:$4 sm:$0xff]   ;;  %v10784_v8 = vld [vmem:[#allocation8 + $0x64] ss:$24 sps:$4 sm:$0xff]   ;;  %v10788_v10 = vld [vmem:[#allocation8 + $0x60] ss:$24 sps:$4 sm:$0xff]  }
 0x1e5   :  { %2439 = vmatpush1.bf16.msra.mxu1 %v10777_v3  ;;  %2317 = vmatprep.subr.bf16.mxu0 %v10778_v4  ;;  %v10783_v7 = vld [vmem:[#allocation8 + $0x38] ss:$24 sps:$4 sm:$0xff]   ;;  %v10786_v9 = vld [vmem:[#allocation8 + $0x6c] ss:$24 sps:$4 sm:$0xff]   ;;  %v10789_v11 = vld [vmem:[#allocation8 + $0x68] ss:$24 sps:$4 sm:$0xff]  }
 0x1e6   :  { %2440 = vmatprep.subr.bf16.mxu1 %v10780_v5  ;;  %v10790_v12 = vld [vmem:[#allocation8 + $0x94] ss:$24 sps:$4 sm:$0xff]   ;;  %v10794_v14 = vld [vmem:[#allocation8 + $0x90] ss:$24 sps:$4 sm:$0xff]   ;;  %v10796_v16 = vld [vmem:[#allocation8 + $0xc4] ss:$24 sps:$4 sm:$0xff]  }
 0x1e7   :  { %v10792_v13 = vld [vmem:[#allocation8 + $0x9c] ss:$24 sps:$4 sm:$0xff]   ;;  %v10795_v15 = vld [vmem:[#allocation8 + $0x98] ss:$24 sps:$4 sm:$0xff]   ;;  %v10798_v17 = vld [vmem:[#allocation8 + $0xcc] ss:$24 sps:$4 sm:$0xff]  }
 0x1e8   :  { %2318 = vmatpush1.bf16.msra.mxu0 %v10782_v6  ;;  %v10800_v18 = vld [vmem:[#allocation8 + $0xc0] ss:$24 sps:$4 sm:$0xff]   ;;  %v10802_v20 = vld [vmem:[#allocation8 + $0xf4] ss:$24 sps:$4 sm:$0xff]   ;;  %v10806_v22 = vld [vmem:[#allocation8 + $0xf0] ss:$24 sps:$4 sm:$0xff]  }
 0x1e9   :  { %2441 = vmatpush1.bf16.msra.mxu1 %v10783_v7  ;;  %2319 = vmatprep.subr.bf16.mxu0 %v10784_v8  ;;  %v10801_v19 = vld [vmem:[#allocation8 + $0xc8] ss:$24 sps:$4 sm:$0xff]   ;;  %v10804_v21 = vld [vmem:[#allocation8 + $0xfc] ss:$24 sps:$4 sm:$0xff]   ;;  %v10807_v23 = vld [vmem:[#allocation8 + $0xf8] ss:$24 sps:$4 sm:$0xff]  }
 0x1ea   :  { %2442 = vmatprep.subr.bf16.mxu1 %v10786_v9  ;;  %v10808_v24 = vld [vmem:[#allocation8 + $0x124] ss:$24 sps:$4 sm:$0xff]   ;;  %v10812_v26 = vld [vmem:[#allocation8 + $0x120] ss:$24 sps:$4 sm:$0xff]   ;;  %v10814_v28 = vld [vmem:[#allocation8 + $0x154] ss:$24 sps:$4 sm:$0xff]  }
 0x1eb   :  { %v10810_v25 = vld [vmem:[#allocation8 + $0x12c] ss:$24 sps:$4 sm:$0xff]   ;;  %v10813_v27 = vld [vmem:[#allocation8 + $0x128] ss:$24 sps:$4 sm:$0xff]   ;;  %v10816_v29 = vld [vmem:[#allocation8 + $0x15c] ss:$24 sps:$4 sm:$0xff]  }
 0x1ec   :  { %2320 = vmatpush1.bf16.msra.mxu0 %v10788_v10  ;;  %v10818_v30 = vld [vmem:[#allocation8 + $0x150] ss:$24 sps:$4 sm:$0xff]   ;;  %v10820_v32 = vld [vmem:[#allocation8 + $0x184] ss:$24 sps:$4 sm:$0xff]   ;;  %v10824_v34 = vld [vmem:[#allocation8 + $0x180] ss:$24 sps:$4 sm:$0xff]  }
 0x1ed   :  { %2443 = vmatpush1.bf16.msra.mxu1 %v10789_v11  ;;  %2321 = vmatprep.subr.bf16.mxu0 %v10790_v12  ;;  %v10819_v31 = vld [vmem:[#allocation8 + $0x158] ss:$24 sps:$4 sm:$0xff]   ;;  %v10822_v33 = vld [vmem:[#allocation8 + $0x18c] ss:$24 sps:$4 sm:$0xff]   ;;  %v10825_v35 = vld [vmem:[#allocation8 + $0x188] ss:$24 sps:$4 sm:$0xff]  }
 0x1ee   :  { %2444 = vmatprep.subr.bf16.mxu1 %v10792_v13  ;;  %v10826_v39 = vld [vmem:[#allocation8 + $0x1b4] ss:$24 sps:$4 sm:$0xff]   ;;  %v10830_v41 = vld [vmem:[#allocation8 + $0x1b0] ss:$24 sps:$4 sm:$0xff]   ;;  %s13156_s11 = sld [smem:[#allocation77_spill]]  ;;  %s13157_s30 = sld [smem:[#allocation78_spill]] }
 0x1ef   :  { %v10828_v40 = vld [vmem:[#allocation8 + $0x1bc] ss:$24 sps:$4 sm:$0xff]   ;;  %v10831_v44 = vld [vmem:[#allocation8 + $0x1b8] ss:$24 sps:$4 sm:$0xff]   ;;  %v10834_v46 = vld [vmem:[#allocation8 + $0x1ec] ss:$24 sps:$4 sm:$0xff]  }
 0x1f0   :  { %2322 = vmatpush1.bf16.msra.mxu0 %v10794_v14  ;;  %v10832_v45 = vld [vmem:[#allocation8 + $0x1e4] ss:$24 sps:$4 sm:$0xff]   ;;  %v10836_v47 = vld [vmem:[#allocation8 + $0x1e0] ss:$24 sps:$4 sm:$0xff]   ;;  %v10838_v50 = vld [vmem:[#allocation8 + $0x214] ss:$24 sps:$4 sm:$0xff]  }
 0x1f1   :  { %2445 = vmatpush1.bf16.msra.mxu1 %v10795_v15  ;;  %2323 = vmatprep.subr.bf16.mxu0 %v10796_v16  ;;  %v10837_v48 = vld [vmem:[#allocation8 + $0x1e8] ss:$24 sps:$4 sm:$0xff]   ;;  %v10840_v51 = vld [vmem:[#allocation8 + $0x21c] ss:$24 sps:$4 sm:$0xff]   ;;  %v10843_v55 = vld [vmem:[#allocation8 + $0x218] ss:$24 sps:$4 sm:$0xff]  }
 0x1f2   :  { %2446 = vmatprep.subr.bf16.mxu1 %v10798_v17  ;;  %v10842_v53 = vld [vmem:[#allocation8 + $0x210] ss:$24 sps:$4 sm:$0xff]   ;;  %v10844_v56 = vld [vmem:[#allocation8 + $0x244] ss:$24 sps:$4 sm:$0xff]   ;;  %v10848_v59 = vld [vmem:[#allocation8 + $0x240] ss:$24 sps:$4 sm:$0xff]  }
 0x1f3   :  { %v10846_v57 = vld [vmem:[#allocation8 + $0x24c] ss:$24 sps:$4 sm:$0xff]   ;;  %v10849_v61 = vld [vmem:[#allocation8 + $0x248] ss:$24 sps:$4 sm:$0xff]   ;;  %v10852_v63 = vld [vmem:[#allocation8 + $0x27c] ss:$24 sps:$4 sm:$0xff]  }
 0x1f4   :  { %2324 = vmatpush1.bf16.msra.mxu0 %v10800_v18  ;;  %v514_v52 = vld [vmem:[%s13156_s11] sm:$0xff]  ;;  %v10850_v62 = vld [vmem:[#allocation8 + $0x274] ss:$24 sps:$4 sm:$0xff]   ;;  %v10854_v0 = vld [vmem:[#allocation8 + $0x270] ss:$24 sps:$4 sm:$0xff]   ;;  %s13158_s28 = sld [smem:[#allocation79_spill]] }
 0x1f5   :  { %2447 = vmatpush1.bf16.msra.mxu1 %v10801_v19  ;;  %2325 = vmatprep.subr.bf16.mxu0 %v10802_v20  ;;  %v525_v54 = vrot.slane %v514_v52, %v12395_v49  ;;  %v10855_v1 = vld [vmem:[#allocation8 + $0x278] ss:$24 sps:$4 sm:$0xff]   ;;  %v10856_v2 = vld [vmem:[#allocation8 + $0x2a4] ss:$24 sps:$4 sm:$0xff]   ;;  %v518_v4 = vcombine.high %v514_v52, %v514_v52  ;;  %v10861_v6 = vld [vmem:[#allocation8 + $0x2a8] ss:$24 sps:$4 sm:$0xff]  }
 0x1f6   :  { %2448 = vmatprep.subr.bf16.mxu1 %v10804_v21  ;;  %v10858_v3 = vld [vmem:[#allocation8 + $0x2ac] ss:$24 sps:$4 sm:$0xff]   ;;  %v10860_v5 = vld [vmem:[#allocation8 + $0x2a0] ss:$24 sps:$4 sm:$0xff]   ;;  %v10864_v8 = vld [vmem:[#allocation8 + $0x2dc] ss:$24 sps:$4 sm:$0xff]  }
 0x1f7   :  { %v533_v58 = vcombine.high %v525_v54, %v525_v54  ;;  %v10862_v7 = vld [vmem:[#allocation8 + $0x2d4] ss:$24 sps:$4 sm:$0xff]   ;;  %v12404_v9 = vrot.slane %v518_v4, %v12395_v49  ;;  %v10866_v10 = vld [vmem:[#allocation8 + $0x2d0] ss:$24 sps:$4 sm:$0xff]   ;;  %v10870_v12 = vld [vmem:[#allocation8 + $0x304] ss:$24 sps:$4 sm:$0xff]   ;;  %v12408_v16 = vpack.c.bf16 %v525_v54, %v525_v54 }
 0x1f8   :  { %2326 = vmatpush1.bf16.msra.mxu0 %v10806_v22  ;;  %v10867_v11 = vld [vmem:[#allocation8 + $0x2d8] ss:$24 sps:$4 sm:$0xff]   ;;  %v10873_v13 = vld [vmem:[#allocation8 + $0x30c] ss:$24 sps:$4 sm:$0xff]   ;;  %v10871_v17 = vld [vmem:[#allocation8 + $0x308] ss:$24 sps:$4 sm:$0xff]  }
 0x1f9   :  { %2449 = vmatpush1.bf16.msra.mxu1 %v10807_v23  ;;  %2327 = vmatprep.subr.bf16.mxu0 %v10808_v24  ;;  %v12399_v60 = vpack.c.bf16 %v533_v58, %v533_v58  ;;  %v534_v14 = vcombine.high %v12404_v9, %v12404_v9  ;;  %v10868_v15 = vld [vmem:[#allocation8 + $0x300] ss:$24 sps:$4 sm:$0xff]   ;;  %v10876_v18 = vld [vmem:[#allocation8 + $0x334] ss:$24 sps:$4 sm:$0xff]   ;;  %v10874_v21 = vld [vmem:[#allocation8 + $0x330] ss:$24 sps:$4 sm:$0xff]  }
 0x1fa   :  { %2450 = vmatprep.subr.bf16.mxu1 %v10810_v25  ;;  %v10879_v19 = vld [vmem:[#allocation8 + $0x33c] ss:$24 sps:$4 sm:$0xff]   ;;  %v10877_v22 = vld [vmem:[#allocation8 + $0x338] ss:$24 sps:$4 sm:$0xff]   ;;  %v10885_v24 = vld [vmem:[#allocation8 + $0x36c] ss:$24 sps:$4 sm:$0xff]  }
 0x1fb   :  { %2347 = vmatprep.mubr.bf16.mxu0 %v12399_v60  ;;  %2470 = vmatprep.mubr.bf16.mxu1 %v12399_v60  ;;  %v12410_v20 = vpack.c.bf16 %v534_v14, %v534_v14  ;;  %v10882_v23 = vld [vmem:[#allocation8 + $0x364] ss:$24 sps:$4 sm:$0xff]   ;;  %v10880_v25 = vld [vmem:[#allocation8 + $0x360] ss:$24 sps:$4 sm:$0xff]   ;;  %v10898_v37 = vld [vmem:[#allocation8 + $0x3f0] ss:$24 sps:$4 sm:$0xff]  }
 0x1fc   :  { %2328 = vmatpush1.bf16.msra.mxu0 %v10812_v26  ;;  %v10883_v26 = vld [vmem:[#allocation8 + $0x368] ss:$24 sps:$4 sm:$0xff]   ;;  %v10903_v36 = vld [vmem:[#allocation8 + $0x3fc] ss:$24 sps:$4 sm:$0xff]   ;;  %v10945_v4 = vld [vmem:[#allocation8 + $0x54c] ss:$24 sps:$4 sm:$0xff]  }
 0x1fd   :  { %2451 = vmatpush1.bf16.msra.mxu1 %v10813_v27  ;;  %2329 = vmatprep.subr.bf16.mxu0 %v10814_v28  ;;  %v10888_v27 = vld [vmem:[#allocation8 + $0x394] ss:$24 sps:$4 sm:$0xff]   ;;  %v10904_v42 = vld [vmem:[#allocation8 + $0x420] ss:$24 sps:$4 sm:$0xff]   ;;  %v10930_v58 = vld [vmem:[#allocation8 + $0x4e4] ss:$24 sps:$4 sm:$0xff]  }
 0x1fe   :  { %2452 = vmatprep.subr.bf16.mxu1 %v10816_v29  ;;  %v10891_v28 = vld [vmem:[#allocation8 + $0x39c] ss:$24 sps:$4 sm:$0xff]   ;;  %v10886_v29 = vld [vmem:[#allocation8 + $0x390] ss:$24 sps:$4 sm:$0xff]   ;;  %v10916_v52 = vld [vmem:[#allocation8 + $0x480] ss:$24 sps:$4 sm:$0xff]  }
 0x1ff   :  { %v10924_v54 = vld [vmem:[#allocation8 + $0x4b4] ss:$24 sps:$4 sm:$0xff]   ;;  %v10952_v14 = vld [vmem:[#allocation8 + $0x5a0] ss:$24 sps:$4 sm:$0xff]   ;;  %s13159_s8 = sld [smem:[#allocation90_spill]] }
 0x200   :  { %2330 = vmatpush1.bf16.msra.mxu0 %v10818_v30  ;;  %v10889_v30 = vld [vmem:[#allocation8 + $0x398] ss:$24 sps:$4 sm:$0xff]  }
 0x201   :  { %2453 = vmatpush1.bf16.msra.mxu1 %v10819_v31  ;;  %2331 = vmatprep.subr.bf16.mxu0 %v10820_v32  ;;  %v10894_v31 = vld [vmem:[#allocation8 + $0x3c4] ss:$24 sps:$4 sm:$0xff]  }
 0x202   :  { %2454 = vmatprep.subr.bf16.mxu1 %v10822_v33  ;;  %v10897_v32 = vld [vmem:[#allocation8 + $0x3cc] ss:$24 sps:$4 sm:$0xff]   ;;  %v10892_v33 = vld [vmem:[#allocation8 + $0x3c0] ss:$24 sps:$4 sm:$0xff]  }
 0x204   :  { %2332 = vmatpush1.bf16.msra.mxu0 %v10824_v34  ;;  %v10895_v34 = vld [vmem:[#allocation8 + $0x3c8] ss:$24 sps:$4 sm:$0xff]  }
 0x205   :  { %2455 = vmatpush1.bf16.msra.mxu1 %v10825_v35  ;;  %2333 = vmatprep.subr.bf16.mxu0 %v10826_v39  ;;  %v10900_v35 = vld [vmem:[#allocation8 + $0x3f4] ss:$24 sps:$4 sm:$0xff]   ;;  %v10901_v39 = vld [vmem:[#allocation8 + $0x3f8] ss:$24 sps:$4 sm:$0xff]   ;;  %s11846_s2 = scalar_lea.hbm %s13159_s8, 3072 }
 0x206   :  { %2456 = vmatprep.subr.bf16.mxu1 %v10828_v40  ;;  %v10906_v40 = vld [vmem:[#allocation8 + $0x424] ss:$24 sps:$4 sm:$0xff]   ;;  %p11847_p6 = scmp.ne.s32.totalorder %s13159_s8, %s11846_s2  ;;  %p11850_p7 = scmp.lt.u32.totalorder %s11846_s2, %s13159_s8 }
 0x208   :  { %2334 = vmatpush1.bf16.msra.mxu0 %v10830_v41  ;;  %v10909_v41 = vld [vmem:[#allocation8 + $0x42c] ss:$24 sps:$4 sm:$0xff]   ;;  %p11852_p8 = pnand %p11850_p7, %p11847_p6 }
 0x209   :  { %2457 = vmatpush1.bf16.msra.mxu1 %v10831_v44  ;;  %2335 = vmatprep.subr.bf16.mxu0 %v10832_v45  ;;  %v10907_v44 = vld [vmem:[#allocation8 + $0x428] ss:$24 sps:$4 sm:$0xff]   ;;  %v10912_v45 = vld [vmem:[#allocation8 + $0x454] ss:$24 sps:$4 sm:$0xff]  }
 0x20a   :  { %2458 = vmatprep.subr.bf16.mxu1 %v10834_v46  ;;  %v10915_v46 = vld [vmem:[#allocation8 + $0x45c] ss:$24 sps:$4 sm:$0xff]  }
 0x20c   :  { %2336 = vmatpush1.bf16.msra.mxu0 %v10836_v47  ;;  %v10910_v47 = vld [vmem:[#allocation8 + $0x450] ss:$24 sps:$4 sm:$0xff]  }
 0x20d   :  { %2459 = vmatpush1.bf16.msra.mxu1 %v10837_v48  ;;  %2337 = vmatprep.subr.bf16.mxu0 %v10838_v50  ;;  %v10913_v48 = vld [vmem:[#allocation8 + $0x458] ss:$24 sps:$4 sm:$0xff]   ;;  %v10918_v50 = vld [vmem:[#allocation8 + $0x484] ss:$24 sps:$4 sm:$0xff]  }
 0x20e   :  { %2460 = vmatprep.subr.bf16.mxu1 %v10840_v51  ;;  %v10921_v51 = vld [vmem:[#allocation8 + $0x48c] ss:$24 sps:$4 sm:$0xff]  }
 0x210   :  { %2338 = vmatpush1.bf16.msra.mxu0 %v10842_v53  ;;  %v10919_v53 = vld [vmem:[#allocation8 + $0x488] ss:$24 sps:$4 sm:$0xff]  }
 0x211   :  { %2461 = vmatpush1.bf16.msra.mxu1 %v10843_v55  ;;  %2339 = vmatprep.subr.bf16.mxu0 %v10844_v56  ;;  %v10927_v55 = vld [vmem:[#allocation8 + $0x4bc] ss:$24 sps:$4 sm:$0xff]   ;;  %v10922_v56 = vld [vmem:[#allocation8 + $0x4b0] ss:$24 sps:$4 sm:$0xff]  }
 0x212   :  { %2462 = vmatprep.subr.bf16.mxu1 %v10846_v57  ;;  %v10925_v57 = vld [vmem:[#allocation8 + $0x4b8] ss:$24 sps:$4 sm:$0xff]  }
 0x214   :  { %2340 = vmatpush1.bf16.msra.mxu0 %v10848_v59  ;;  %v10933_v59 = vld [vmem:[#allocation8 + $0x4ec] ss:$24 sps:$4 sm:$0xff]  }
 0x215   :  { %2463 = vmatpush1.bf16.msra.mxu1 %v10849_v61  ;;  %2341 = vmatprep.subr.bf16.mxu0 %v10850_v62  ;;  %v10928_v61 = vld [vmem:[#allocation8 + $0x4e0] ss:$24 sps:$4 sm:$0xff]  }
 0x216   :  { %2464 = vmatprep.subr.bf16.mxu1 %v10852_v63  ;;  %v10931_v62 = vld [vmem:[#allocation8 + $0x4e8] ss:$24 sps:$4 sm:$0xff]   ;;  %v10936_v63 = vld [vmem:[#allocation8 + $0x514] ss:$24 sps:$4 sm:$0xff]  }
 0x218   :  { %2342 = vmatpush1.bf16.msra.mxu0 %v10854_v0  ;;  %v10939_v0 = vld [vmem:[#allocation8 + $0x51c] ss:$24 sps:$4 sm:$0xff]  }
 0x219   :  { %2465 = vmatpush1.bf16.msra.mxu1 %v10855_v1  ;;  %2343 = vmatprep.subr.bf16.mxu0 %v10856_v2  ;;  %v10934_v1 = vld [vmem:[#allocation8 + $0x510] ss:$24 sps:$4 sm:$0xff]  }
 0x21a   :  { %2466 = vmatprep.subr.bf16.mxu1 %v10858_v3  ;;  %v10937_v2 = vld [vmem:[#allocation8 + $0x518] ss:$24 sps:$4 sm:$0xff]   ;;  %v10942_v3 = vld [vmem:[#allocation8 + $0x544] ss:$24 sps:$4 sm:$0xff]  }
 0x21c   :  { %2344 = vmatpush1.bf16.msra.mxu0 %v10860_v5  ;;  %v10940_v5 = vld [vmem:[#allocation8 + $0x540] ss:$24 sps:$4 sm:$0xff]  }
 0x21d   :  { %2467 = vmatpush1.bf16.msra.mxu1 %v10861_v6  ;;  %2345 = vmatprep.subr.bf16.mxu0 %v10862_v7  ;;  %v10943_v6 = vld [vmem:[#allocation8 + $0x548] ss:$24 sps:$4 sm:$0xff]   ;;  %v10948_v7 = vld [vmem:[#allocation8 + $0x574] ss:$24 sps:$4 sm:$0xff]  }
 0x21e   :  { %2468 = vmatprep.subr.bf16.mxu1 %v10864_v8  ;;  %v10951_v8 = vld [vmem:[#allocation8 + $0x57c] ss:$24 sps:$4 sm:$0xff]  }
 0x220   :  { %2346 = vmatpush1.bf16.msra.mxu0 %v10866_v10  ;;  %v10946_v10 = vld [vmem:[#allocation8 + $0x570] ss:$24 sps:$4 sm:$0xff]  }
 0x221   :  { %2469 = vmatpush1.bf16.msra.mxu1 %v10867_v11  ;;  %2356 = vmatprep.subr.bf16.mxu0 %v10870_v12  ;;  %v10949_v11 = vld [vmem:[#allocation8 + $0x578] ss:$24 sps:$4 sm:$0xff]   ;;  %v10954_v12 = vld [vmem:[#allocation8 + $0x5a4] ss:$24 sps:$4 sm:$0xff]  }
 0x222   :  { %2479 = vmatprep.subr.bf16.mxu1 %v10873_v13  ;;  %v10957_v13 = vld [vmem:[#allocation8 + $0x5ac] ss:$24 sps:$4 sm:$0xff]  }
 0x223   :  { %2348 = vmatmul.mubr.bf16.vlgmr.msra.gmra.mrb[0].mxu0 %v12408_v16 }
 0x224   :  { %2471 = vmatmul.mubr.bf16.vlgmr.msra.gmra.mrb[0].mxu1 %v12408_v16  ;;  %2357 = vmatpush1.bf16.msra.mxu0 %v10868_v15  ;;  %v10955_v15 = vld [vmem:[#allocation8 + $0x5a8] ss:$24 sps:$4 sm:$0xff]  }
 0x225   :  { %2480 = vmatpush1.bf16.msra.mxu1 %v10871_v17  ;;  %2358 = vmatprep.subr.bf16.mxu0 %v10876_v18  ;;  %v10960_v17 = vld [vmem:[#allocation8 + $0x5d4] ss:$24 sps:$4 sm:$0xff]  }
 0x226   :  { %2481 = vmatprep.subr.bf16.mxu1 %v10879_v19  ;;  %2388 = vmatprep.mubr.bf16.mxu0 %v12410_v20  ;;  %v10963_v18 = vld [vmem:[#allocation8 + $0x5dc] ss:$24 sps:$4 sm:$0xff]   ;;  %v10958_v19 = vld [vmem:[#allocation8 + $0x5d0] ss:$24 sps:$4 sm:$0xff]  }
 0x227   :  { %2511 = vmatprep.mubr.bf16.mxu1 %v12410_v20 }
 0x228   :  { %2359 = vmatpush1.bf16.msra.mxu0 %v10874_v21  ;;  %v10961_v21 = vld [vmem:[#allocation8 + $0x5d8] ss:$24 sps:$4 sm:$0xff]  }
 0x229   :  { %2482 = vmatpush1.bf16.msra.mxu1 %v10877_v22  ;;  %2360 = vmatprep.subr.bf16.mxu0 %v10882_v23  ;;  %v10967_v22 = vld [vmem:[#allocation8 + $0x604] ss:$24 sps:$4 sm:$0xff]  }
 0x22a   :  { %2483 = vmatprep.subr.bf16.mxu1 %v10885_v24  ;;  %v10970_v23 = vld [vmem:[#allocation8 + $0x60c] ss:$24 sps:$4 sm:$0xff]   ;;  %v10965_v24 = vld [vmem:[#allocation8 + $0x600] ss:$24 sps:$4 sm:$0xff]  }
 0x22c   :  { %2361 = vmatpush1.bf16.msra.mxu0 %v10880_v25  ;;  %v10968_v25 = vld [vmem:[#allocation8 + $0x608] ss:$24 sps:$4 sm:$0xff]  }
 0x22d   :  { %2484 = vmatpush1.bf16.msra.mxu1 %v10883_v26  ;;  %2362 = vmatprep.subr.bf16.mxu0 %v10888_v27  ;;  %v12418_v26 = vpack.c.bf16 %v12404_v9, %v12404_v9  ;;  %v10973_v27 = vld [vmem:[#allocation8 + $0x634] ss:$24 sps:$4 sm:$0xff]   ;;  %v10974_v9 = vld [vmem:[#allocation8 + $0x638] ss:$24 sps:$4 sm:$0xff]  }
 0x22e   :  { %2485 = vmatprep.subr.bf16.mxu1 %v10891_v28  ;;  %v12421_v28 = vld.sshfl [vmem:[%s13156_s11 + $0x8] sm:$0x33 pattern:$0x76325410] }
 0x230   :  { %2363 = vmatpush1.bf16.msra.mxu0 %v10886_v29  ;;  %v10976_v29 = vld [vmem:[#allocation8 + $0x63c] ss:$24 sps:$4 sm:$0xff]  }
 0x231   :  { %2486 = vmatpush1.bf16.msra.mxu1 %v10889_v30  ;;  %2364 = vmatprep.subr.bf16.mxu0 %v10894_v31  ;;  %v542_v30 = vcombine.high %v12421_v28, %v12421_v28  ;;  %v10971_v31 = vld [vmem:[#allocation8 + $0x630] ss:$24 sps:$4 sm:$0xff]  }
 0x232   :  { %2487 = vmatprep.subr.bf16.mxu1 %v10897_v32 }
 0x233   :  { %v12427_v32 = vpack.c.bf16 %v542_v30, %v542_v30  ;;  %v11057_v30 = vld [vmem:[#allocation8 + $0x8d4] ss:$24 sps:$4 sm:$0xff]  }
 0x234   :  { %2365 = vmatpush1.bf16.msra.mxu0 %v10892_v33  ;;  %v10979_v33 = vld [vmem:[#allocation8 + $0x664] ss:$24 sps:$4 sm:$0xff]  }
 0x235   :  { %2488 = vmatpush1.bf16.msra.mxu1 %v10895_v34  ;;  %2366 = vmatprep.subr.bf16.mxu0 %v10900_v35  ;;  %v10982_v34 = vld [vmem:[#allocation8 + $0x66c] ss:$24 sps:$4 sm:$0xff]   ;;  %v10977_v35 = vld [vmem:[#allocation8 + $0x660] ss:$24 sps:$4 sm:$0xff]  }
 0x236   :  { %2489 = vmatprep.subr.bf16.mxu1 %v10903_v36  ;;  %v10980_v36 = vld [vmem:[#allocation8 + $0x668] ss:$24 sps:$4 sm:$0xff]  }
 0x238   :  { %2367 = vmatpush1.bf16.msra.mxu0 %v10898_v37  ;;  %v10985_v37 = vld [vmem:[#allocation8 + $0x694] ss:$24 sps:$4 sm:$0xff]  }
 0x239   :  { %2490 = vmatpush1.bf16.msra.mxu1 %v10901_v39  ;;  %2368 = vmatprep.subr.bf16.mxu0 %v10906_v40  ;;  %v10988_v39 = vld [vmem:[#allocation8 + $0x69c] ss:$24 sps:$4 sm:$0xff]   ;;  %v10983_v40 = vld [vmem:[#allocation8 + $0x690] ss:$24 sps:$4 sm:$0xff]  }
 0x23a   :  { %2491 = vmatprep.subr.bf16.mxu1 %v10909_v41  ;;  %v10986_v41 = vld [vmem:[#allocation8 + $0x698] ss:$24 sps:$4 sm:$0xff]  }
 0x23c   :  { %2369 = vmatpush1.bf16.msra.mxu0 %v10904_v42  ;;  %v10991_v42 = vld [vmem:[#allocation8 + $0x6c4] ss:$24 sps:$4 sm:$0xff]  }
 0x23d   :  { %2492 = vmatpush1.bf16.msra.mxu1 %v10907_v44  ;;  %2370 = vmatprep.subr.bf16.mxu0 %v10912_v45  ;;  %v10994_v44 = vld [vmem:[#allocation8 + $0x6cc] ss:$24 sps:$4 sm:$0xff]   ;;  %v10989_v45 = vld [vmem:[#allocation8 + $0x6c0] ss:$24 sps:$4 sm:$0xff]  }
 0x23e   :  { %2493 = vmatprep.subr.bf16.mxu1 %v10915_v46  ;;  %v10992_v46 = vld [vmem:[#allocation8 + $0x6c8] ss:$24 sps:$4 sm:$0xff]  }
 0x240   :  { %2371 = vmatpush1.bf16.msra.mxu0 %v10910_v47  ;;  %v10997_v47 = vld [vmem:[#allocation8 + $0x6f4] ss:$24 sps:$4 sm:$0xff]  }
 0x241   :  { %2494 = vmatpush1.bf16.msra.mxu1 %v10913_v48  ;;  %2372 = vmatprep.subr.bf16.mxu0 %v10918_v50  ;;  %v11000_v48 = vld [vmem:[#allocation8 + $0x6fc] ss:$24 sps:$4 sm:$0xff]   ;;  %v10995_v50 = vld [vmem:[#allocation8 + $0x6f0] ss:$24 sps:$4 sm:$0xff]  }
 0x242   :  { %2495 = vmatprep.subr.bf16.mxu1 %v10921_v51  ;;  %v10998_v51 = vld [vmem:[#allocation8 + $0x6f8] ss:$24 sps:$4 sm:$0xff]  }
 0x244   :  { %2373 = vmatpush1.bf16.msra.mxu0 %v10916_v52  ;;  %v11003_v52 = vld [vmem:[#allocation8 + $0x724] ss:$24 sps:$4 sm:$0xff]  }
 0x245   :  { %2496 = vmatpush1.bf16.msra.mxu1 %v10919_v53  ;;  %2374 = vmatprep.subr.bf16.mxu0 %v10924_v54  ;;  %v11006_v53 = vld [vmem:[#allocation8 + $0x72c] ss:$24 sps:$4 sm:$0xff]   ;;  %v11001_v54 = vld [vmem:[#allocation8 + $0x720] ss:$24 sps:$4 sm:$0xff]  }
 0x246   :  { %2497 = vmatprep.subr.bf16.mxu1 %v10927_v55  ;;  %v11004_v55 = vld [vmem:[#allocation8 + $0x728] ss:$24 sps:$4 sm:$0xff]  }
 0x248   :  { %2375 = vmatpush1.bf16.msra.mxu0 %v10922_v56  ;;  %v11009_v56 = vld [vmem:[#allocation8 + $0x754] ss:$24 sps:$4 sm:$0xff]  }
 0x249   :  { %2498 = vmatpush1.bf16.msra.mxu1 %v10925_v57  ;;  %2376 = vmatprep.subr.bf16.mxu0 %v10930_v58  ;;  %v11012_v57 = vld [vmem:[#allocation8 + $0x75c] ss:$24 sps:$4 sm:$0xff]   ;;  %v11007_v58 = vld [vmem:[#allocation8 + $0x750] ss:$24 sps:$4 sm:$0xff]  }
 0x24a   :  { %2499 = vmatprep.subr.bf16.mxu1 %v10933_v59  ;;  %v11010_v59 = vld [vmem:[#allocation8 + $0x758] ss:$24 sps:$4 sm:$0xff]  }
 0x24c   :  { %2377 = vmatpush1.bf16.msra.mxu0 %v10928_v61  ;;  %v11015_v61 = vld [vmem:[#allocation8 + $0x784] ss:$24 sps:$4 sm:$0xff]  }
 0x24d   :  { %2500 = vmatpush1.bf16.msra.mxu1 %v10931_v62  ;;  %2378 = vmatprep.subr.bf16.mxu0 %v10936_v63  ;;  %v11018_v62 = vld [vmem:[#allocation8 + $0x78c] ss:$24 sps:$4 sm:$0xff]   ;;  %v11013_v63 = vld [vmem:[#allocation8 + $0x780] ss:$24 sps:$4 sm:$0xff]  }
 0x24e   :  { %2501 = vmatprep.subr.bf16.mxu1 %v10939_v0  ;;  %v11016_v0 = vld [vmem:[#allocation8 + $0x788] ss:$24 sps:$4 sm:$0xff]  }
 0x250   :  { %2379 = vmatpush1.bf16.msra.mxu0 %v10934_v1  ;;  %v11021_v1 = vld [vmem:[#allocation8 + $0x7b4] ss:$24 sps:$4 sm:$0xff]  }
 0x251   :  { %2502 = vmatpush1.bf16.msra.mxu1 %v10937_v2  ;;  %2380 = vmatprep.subr.bf16.mxu0 %v10942_v3  ;;  %v11024_v2 = vld [vmem:[#allocation8 + $0x7bc] ss:$24 sps:$4 sm:$0xff]   ;;  %v11019_v3 = vld [vmem:[#allocation8 + $0x7b0] ss:$24 sps:$4 sm:$0xff]  }
 0x252   :  { %2503 = vmatprep.subr.bf16.mxu1 %v10945_v4  ;;  %v11022_v4 = vld [vmem:[#allocation8 + $0x7b8] ss:$24 sps:$4 sm:$0xff]  }
 0x254   :  { %2381 = vmatpush1.bf16.msra.mxu0 %v10940_v5  ;;  %v11027_v5 = vld [vmem:[#allocation8 + $0x7e4] ss:$24 sps:$4 sm:$0xff]  }
 0x255   :  { %2504 = vmatpush1.bf16.msra.mxu1 %v10943_v6  ;;  %2382 = vmatprep.subr.bf16.mxu0 %v10948_v7  ;;  %v11030_v6 = vld [vmem:[#allocation8 + $0x7ec] ss:$24 sps:$4 sm:$0xff]   ;;  %v11025_v7 = vld [vmem:[#allocation8 + $0x7e0] ss:$24 sps:$4 sm:$0xff]  }
 0x256   :  { %2505 = vmatprep.subr.bf16.mxu1 %v10951_v8  ;;  %v11028_v8 = vld [vmem:[#allocation8 + $0x7e8] ss:$24 sps:$4 sm:$0xff]  }
 0x258   :  { %2383 = vmatpush1.bf16.msra.mxu0 %v10946_v10  ;;  %v11033_v10 = vld [vmem:[#allocation8 + $0x814] ss:$24 sps:$4 sm:$0xff]  }
 0x259   :  { %2506 = vmatpush1.bf16.msra.mxu1 %v10949_v11  ;;  %2384 = vmatprep.subr.bf16.mxu0 %v10954_v12  ;;  %v11036_v11 = vld [vmem:[#allocation8 + $0x81c] ss:$24 sps:$4 sm:$0xff]   ;;  %v11031_v12 = vld [vmem:[#allocation8 + $0x810] ss:$24 sps:$4 sm:$0xff]  }
 0x25a   :  { %2507 = vmatprep.subr.bf16.mxu1 %v10957_v13  ;;  %v11034_v13 = vld [vmem:[#allocation8 + $0x818] ss:$24 sps:$4 sm:$0xff]  }
 0x25c   :  { %2385 = vmatpush1.bf16.msra.mxu0 %v10952_v14  ;;  %v11039_v14 = vld [vmem:[#allocation8 + $0x844] ss:$24 sps:$4 sm:$0xff]  }
 0x25d   :  { %2508 = vmatpush1.bf16.msra.mxu1 %v10955_v15  ;;  %2386 = vmatprep.subr.bf16.mxu0 %v10960_v17  ;;  %v11042_v15 = vld [vmem:[#allocation8 + $0x84c] ss:$24 sps:$4 sm:$0xff]   ;;  %v11037_v17 = vld [vmem:[#allocation8 + $0x840] ss:$24 sps:$4 sm:$0xff]  }
 0x25e   :  { %2509 = vmatprep.subr.bf16.mxu1 %v10963_v18  ;;  %v11040_v18 = vld [vmem:[#allocation8 + $0x848] ss:$24 sps:$4 sm:$0xff]  }
 0x260   :  { %2387 = vmatpush1.bf16.msra.mxu0 %v10958_v19  ;;  %v11045_v19 = vld [vmem:[#allocation8 + $0x874] ss:$24 sps:$4 sm:$0xff]  }
 0x261   :  { %2510 = vmatpush1.bf16.msra.mxu1 %v10961_v21  ;;  %2397 = vmatprep.subr.bf16.mxu0 %v10967_v22  ;;  %v11048_v21 = vld [vmem:[#allocation8 + $0x87c] ss:$24 sps:$4 sm:$0xff]   ;;  %v11043_v22 = vld [vmem:[#allocation8 + $0x870] ss:$24 sps:$4 sm:$0xff]  }
 0x262   :  { %2520 = vmatprep.subr.bf16.mxu1 %v10970_v23  ;;  %v11046_v23 = vld [vmem:[#allocation8 + $0x878] ss:$24 sps:$4 sm:$0xff]  }
 0x263   :  { %2389 = vmatmul.mubr.bf16.vlgmr.msra.gmra.mrb[0].mxu0 %v12418_v26 }
 0x264   :  { %2512 = vmatmul.mubr.bf16.vlgmr.msra.gmra.mrb[0].mxu1 %v12418_v26  ;;  %2398 = vmatpush1.bf16.msra.mxu0 %v10965_v24  ;;  %v11051_v24 = vld [vmem:[#allocation8 + $0x8a4] ss:$24 sps:$4 sm:$0xff]  }
 0x265   :  { %2521 = vmatpush1.bf16.msra.mxu1 %v10968_v25  ;;  %2399 = vmatprep.subr.bf16.mxu0 %v10973_v27  ;;  %v11054_v25 = vld [vmem:[#allocation8 + $0x8ac] ss:$24 sps:$4 sm:$0xff]   ;;  %v11049_v27 = vld [vmem:[#allocation8 + $0x8a0] ss:$24 sps:$4 sm:$0xff]  }
 0x266   :  { %2522 = vmatprep.subr.bf16.mxu1 %v10976_v29  ;;  %2429 = vmatprep.mubr.bf16.mxu0 %v12427_v32  ;;  %v11052_v29 = vld [vmem:[#allocation8 + $0x8a8] ss:$24 sps:$4 sm:$0xff]  }
 0x267   :  { %2552 = vmatprep.mubr.bf16.mxu1 %v12427_v32 }
 0x268   :  { %2400 = vmatpush1.bf16.msra.mxu0 %v10971_v31  ;;  %v11060_v31 = vld [vmem:[#allocation8 + $0x8dc] ss:$24 sps:$4 sm:$0xff]  }
 0x269   :  { %2523 = vmatpush1.bf16.msra.mxu1 %v10974_v9  ;;  %2401 = vmatprep.subr.bf16.mxu0 %v10979_v33  ;;  %v11055_v9 = vld [vmem:[#allocation8 + $0x8d0] ss:$24 sps:$4 sm:$0xff]  }
 0x26a   :  { %2524 = vmatprep.subr.bf16.mxu1 %v10982_v34  ;;  %v11058_v33 = vld [vmem:[#allocation8 + $0x8d8] ss:$24 sps:$4 sm:$0xff]   ;;  %v11063_v34 = vld [vmem:[#allocation8 + $0x14] ss:$24 sps:$4 sm:$0xff]  }
 0x26c   :  { %2402 = vmatpush1.bf16.msra.mxu0 %v10977_v35  ;;  %v12433_v35 = vpack.c.bf16 %v12421_v28, %v12421_v28  ;;  %v11070_v28 = vld [vmem:[#allocation8 + $0xa0] ss:$24 sps:$4 sm:$0xff]  }
 0x26d   :  { %2525 = vmatpush1.bf16.msra.mxu1 %v10980_v36  ;;  %2403 = vmatprep.subr.bf16.mxu0 %v10985_v37  ;;  %v11061_v36 = vld [vmem:[#allocation8 + $0x10] ss:$24 sps:$4 sm:$0xff]   ;;  %v11066_v37 = vld [vmem:[#allocation8 + $0x44] ss:$24 sps:$4 sm:$0xff]  }
 0x26e   :  { %2526 = vmatprep.subr.bf16.mxu1 %v10988_v39  ;;  %v11064_v39 = vld [vmem:[#allocation8 + $0x40] ss:$24 sps:$4 sm:$0xff]  }
 0x270   :  { %2404 = vmatpush1.bf16.msra.mxu0 %v10983_v40  ;;  %v11069_v40 = vld [vmem:[#allocation8 + $0x74] ss:$24 sps:$4 sm:$0xff]  }
 0x271   :  { %2527 = vmatpush1.bf16.msra.mxu1 %v10986_v41  ;;  %2405 = vmatprep.subr.bf16.mxu0 %v10991_v42  ;;  %v11067_v41 = vld [vmem:[#allocation8 + $0x70] ss:$24 sps:$4 sm:$0xff]   ;;  %v11072_v42 = vld [vmem:[#allocation8 + $0xa4] ss:$24 sps:$4 sm:$0xff]  }
 0x272   :  { %2528 = vmatprep.subr.bf16.mxu1 %v10994_v44  ;;  %v11075_v44 = vld [vmem:[#allocation8 + $0xd4] ss:$24 sps:$4 sm:$0xff]  }
 0x274   :  { %2406 = vmatpush1.bf16.msra.mxu0 %v10989_v45  ;;  %v11073_v45 = vld [vmem:[#allocation8 + $0xd0] ss:$24 sps:$4 sm:$0xff]  }
 0x275   :  { %2529 = vmatpush1.bf16.msra.mxu1 %v10992_v46  ;;  %2407 = vmatprep.subr.bf16.mxu0 %v10997_v47  ;;  %v11078_v46 = vld [vmem:[#allocation8 + $0x104] ss:$24 sps:$4 sm:$0xff]   ;;  %v11076_v47 = vld [vmem:[#allocation8 + $0x100] ss:$24 sps:$4 sm:$0xff]  }
 0x276   :  { %2530 = vmatprep.subr.bf16.mxu1 %v11000_v48  ;;  %v11081_v48 = vld [vmem:[#allocation8 + $0x134] ss:$24 sps:$4 sm:$0xff]  }
 0x278   :  { %2408 = vmatpush1.bf16.msra.mxu0 %v10995_v50  ;;  %v11079_v50 = vld [vmem:[#allocation8 + $0x130] ss:$24 sps:$4 sm:$0xff]  }
 0x279   :  { %2531 = vmatpush1.bf16.msra.mxu1 %v10998_v51  ;;  %2409 = vmatprep.subr.bf16.mxu0 %v11003_v52  ;;  %v11082_v51 = vld [vmem:[#allocation8 + $0x160] ss:$24 sps:$4 sm:$0xff]   ;;  %v11178_v52 = vld [vmem:[#allocation13] ss:$12 sps:$4 sm:$0xff]  }
 0x27a   :  { %2532 = vmatprep.subr.bf16.mxu1 %v11006_v53  ;;  %v11180_v53 = vld [vmem:[#allocation13 + $0x4] ss:$12 sps:$4 sm:$0xff]  }
 0x27c   :  { %2410 = vmatpush1.bf16.msra.mxu0 %v11001_v54  ;;  %v11087_v54 = vld [vmem:[#allocation8 + $0x194] ss:$24 sps:$4 sm:$0xff]  }
 0x27d   :  { %2533 = vmatpush1.bf16.msra.mxu1 %v11004_v55  ;;  %2411 = vmatprep.subr.bf16.mxu0 %v11009_v56  ;;  %v11085_v55 = vld [vmem:[#allocation8 + $0x190] ss:$24 sps:$4 sm:$0xff]  }
 0x27e   :  { %2534 = vmatprep.subr.bf16.mxu1 %v11012_v57  ;;  %v11184_v56 = vld [vmem:[#allocation13 + $0x18] ss:$12 sps:$4 sm:$0xff]   ;;  %v11186_v57 = vld [vmem:[#allocation13 + $0x1c] ss:$12 sps:$4 sm:$0xff]  }
 0x280   :  { %2412 = vmatpush1.bf16.msra.mxu0 %v11007_v58  ;;  %v11090_v58 = vld [vmem:[#allocation8 + $0x1c4] ss:$24 sps:$4 sm:$0xff]  }
 0x281   :  { %2535 = vmatpush1.bf16.msra.mxu1 %v11010_v59  ;;  %2413 = vmatprep.subr.bf16.mxu0 %v11015_v61  ;;  %v11088_v59 = vld [vmem:[#allocation8 + $0x1c0] ss:$24 sps:$4 sm:$0xff]  }
 0x282   :  { %2536 = vmatprep.subr.bf16.mxu1 %v11018_v62  ;;  %v11190_v61 = vld [vmem:[#allocation13 + $0x30] ss:$12 sps:$4 sm:$0xff]   ;;  %v11192_v62 = vld [vmem:[#allocation13 + $0x34] ss:$12 sps:$4 sm:$0xff]  }
 0x284   :  { %2414 = vmatpush1.bf16.msra.mxu0 %v11013_v63  ;;  %v11093_v63 = vld [vmem:[#allocation8 + $0x1f4] ss:$24 sps:$4 sm:$0xff]  }
 0x285   :  { %2537 = vmatpush1.bf16.msra.mxu1 %v11016_v0  ;;  %2415 = vmatprep.subr.bf16.mxu0 %v11021_v1  ;;  %v11091_v0 = vld [vmem:[#allocation8 + $0x1f0] ss:$24 sps:$4 sm:$0xff]  }
 0x286   :  { %2538 = vmatprep.subr.bf16.mxu1 %v11024_v2  ;;  %v11196_v1 = vld [vmem:[#allocation13 + $0x48] ss:$12 sps:$4 sm:$0xff]   ;;  %v11198_v2 = vld [vmem:[#allocation13 + $0x4c] ss:$12 sps:$4 sm:$0xff]  }
 0x288   :  { %2416 = vmatpush1.bf16.msra.mxu0 %v11019_v3  ;;  %v11096_v3 = vld [vmem:[#allocation8 + $0x224] ss:$24 sps:$4 sm:$0xff]  }
 0x289   :  { %2539 = vmatpush1.bf16.msra.mxu1 %v11022_v4  ;;  %2417 = vmatprep.subr.bf16.mxu0 %v11027_v5  ;;  %v11094_v4 = vld [vmem:[#allocation8 + $0x220] ss:$24 sps:$4 sm:$0xff]   ;;  %v11202_v5 = vld [vmem:[#allocation13 + $0x60] ss:$12 sps:$4 sm:$0xff]  }
 0x28a   :  { %2540 = vmatprep.subr.bf16.mxu1 %v11030_v6  ;;  %v11204_v6 = vld [vmem:[#allocation13 + $0x64] ss:$12 sps:$4 sm:$0xff]  }
 0x28c   :  { %2418 = vmatpush1.bf16.msra.mxu0 %v11025_v7  ;;  %v11099_v7 = vld [vmem:[#allocation8 + $0x254] ss:$24 sps:$4 sm:$0xff]  }
 0x28d   :  { %2541 = vmatpush1.bf16.msra.mxu1 %v11028_v8  ;;  %2419 = vmatprep.subr.bf16.mxu0 %v11033_v10  ;;  %v11097_v8 = vld [vmem:[#allocation8 + $0x250] ss:$24 sps:$4 sm:$0xff]  }
 0x28e   :  { %2542 = vmatprep.subr.bf16.mxu1 %v11036_v11  ;;  %v11208_v10 = vld [vmem:[#allocation13 + $0x78] ss:$12 sps:$4 sm:$0xff]   ;;  %v11210_v11 = vld [vmem:[#allocation13 + $0x7c] ss:$12 sps:$4 sm:$0xff]  }
 0x290   :  { %2420 = vmatpush1.bf16.msra.mxu0 %v11031_v12  ;;  %v11102_v12 = vld [vmem:[#allocation8 + $0x284] ss:$24 sps:$4 sm:$0xff]  }
 0x291   :  { %2543 = vmatpush1.bf16.msra.mxu1 %v11034_v13  ;;  %2421 = vmatprep.subr.bf16.mxu0 %v11039_v14  ;;  %v11100_v13 = vld [vmem:[#allocation8 + $0x280] ss:$24 sps:$4 sm:$0xff]  }
 0x292   :  { %2544 = vmatprep.subr.bf16.mxu1 %v11042_v15  ;;  %v11214_v14 = vld [vmem:[#allocation13 + $0x90] ss:$12 sps:$4 sm:$0xff]   ;;  %v11216_v15 = vld [vmem:[#allocation13 + $0x94] ss:$12 sps:$4 sm:$0xff]  }
 0x294   :  { %2422 = vmatpush1.bf16.msra.mxu0 %v11037_v17  ;;  %v11105_v17 = vld [vmem:[#allocation8 + $0x2b4] ss:$24 sps:$4 sm:$0xff]  }
 0x295   :  { %2545 = vmatpush1.bf16.msra.mxu1 %v11040_v18  ;;  %2423 = vmatprep.subr.bf16.mxu0 %v11045_v19  ;;  %v11103_v18 = vld [vmem:[#allocation8 + $0x2b0] ss:$24 sps:$4 sm:$0xff]  }
 0x296   :  { %2546 = vmatprep.subr.bf16.mxu1 %v11048_v21  ;;  %v11220_v19 = vld [vmem:[#allocation13 + $0xa8] ss:$12 sps:$4 sm:$0xff]   ;;  %v11222_v21 = vld [vmem:[#allocation13 + $0xac] ss:$12 sps:$4 sm:$0xff]  }
 0x298   :  { %2424 = vmatpush1.bf16.msra.mxu0 %v11043_v22  ;;  %v11108_v22 = vld [vmem:[#allocation8 + $0x2e4] ss:$24 sps:$4 sm:$0xff]  }
 0x299   :  { %2547 = vmatpush1.bf16.msra.mxu1 %v11046_v23  ;;  %2425 = vmatprep.subr.bf16.mxu0 %v11051_v24  ;;  %v11106_v23 = vld [vmem:[#allocation8 + $0x2e0] ss:$24 sps:$4 sm:$0xff]   ;;  %v11226_v24 = vld [vmem:[#allocation13 + $0xc0] ss:$12 sps:$4 sm:$0xff]  }
 0x29a   :  { %2548 = vmatprep.subr.bf16.mxu1 %v11054_v25  ;;  %v11228_v25 = vld [vmem:[#allocation13 + $0xc4] ss:$12 sps:$4 sm:$0xff]  }
 0x29c   :  { %2426 = vmatpush1.bf16.msra.mxu0 %v11049_v27  ;;  %v11111_v27 = vld [vmem:[#allocation8 + $0x314] ss:$24 sps:$4 sm:$0xff]  }
 0x29d   :  { %2549 = vmatpush1.bf16.msra.mxu1 %v11052_v29  ;;  %2427 = vmatprep.subr.bf16.mxu0 %v11057_v30  ;;  %v11109_v29 = vld [vmem:[#allocation8 + $0x310] ss:$24 sps:$4 sm:$0xff]  }
 0x29e   :  { %2550 = vmatprep.subr.bf16.mxu1 %v11060_v31  ;;  %v11232_v30 = vld [vmem:[#allocation13 + $0xd8] ss:$12 sps:$4 sm:$0xff]   ;;  %v11234_v31 = vld [vmem:[#allocation13 + $0xdc] ss:$12 sps:$4 sm:$0xff]  }
 0x2a0   :  { %2428 = vmatpush1.bf16.msra.mxu0 %v11055_v9  ;;  %v11114_v9 = vld [vmem:[#allocation8 + $0x344] ss:$24 sps:$4 sm:$0xff]  }
 0x2a1   :  { %2551 = vmatpush1.bf16.msra.mxu1 %v11058_v33  ;;  %2561 = vmatprep.subr.bf16.mxu0 %v11063_v34  ;;  %v11112_v33 = vld [vmem:[#allocation8 + $0x340] ss:$24 sps:$4 sm:$0xff]  }
 0x2a2   :  { %3673 = vmatprep.subr.bf16.mxu1 %v11180_v53  ;;  %v11237_v34 = vld [vmem:[#allocation13 + $0xf0] ss:$12 sps:$4 sm:$0xff]   ;;  %v11127_v53 = vld [vmem:[#allocation8 + $0x430] ss:$24 sps:$4 sm:$0xff]  }
 0x2a3   :  { %2430 = vmatmul.mubr.bf16.vlgmr.msra.gmra.mrb[0].mxu0 %v12433_v35 }
 0x2a4   :  { %2553 = vmatmul.mubr.bf16.vlgmr.msra.gmra.mrb[0].mxu1 %v12433_v35  ;;  %2562 = vmatpush1.bf16.msra.mxu0 %v11061_v36  ;;  %v11239_v36 = vld [vmem:[#allocation13 + $0xf4] ss:$12 sps:$4 sm:$0xff]  }
 0x2a5   :  { %2593 = vmatprep.mubr.bf16.mxu0 %v12399_v60  ;;  %2563 = vmatprep.subr.bf16.mxu0 %v11066_v37  ;;  %v11084_v60 = vld [vmem:[#allocation8 + $0x164] ss:$24 sps:$4 sm:$0xff]   ;;  %v11117_v37 = vld [vmem:[#allocation8 + $0x374] ss:$24 sps:$4 sm:$0xff]  }
 0x2a6   :  { %3674 = vmatpush1.bf16.msra.mxu1 %v11178_v52  ;;  %v11257_v52 = vld [vmem:[#allocation13 + $0x150] ss:$12 sps:$4 sm:$0xff]  }
 0x2a7   :  { %3675 = vmatprep.subr.bf16.mxu1 %v11186_v57  ;;  %v11130_v57 = vld [vmem:[#allocation8 + $0x460] ss:$24 sps:$4 sm:$0xff]  }
 0x2a8   :  { %2564 = vmatpush1.bf16.msra.mxu0 %v11064_v39  ;;  %v11115_v39 = vld [vmem:[#allocation8 + $0x370] ss:$24 sps:$4 sm:$0xff]  }
 0x2a9   :  { %2565 = vmatprep.subr.bf16.mxu0 %v11069_v40  ;;  %v11242_v40 = vld [vmem:[#allocation13 + $0x108] ss:$12 sps:$4 sm:$0xff]  }
 0x2aa   :  { %3676 = vmatpush1.bf16.msra.mxu1 %v11184_v56  ;;  %v11262_v56 = vld [vmem:[#allocation13 + $0x168] ss:$12 sps:$4 sm:$0xff]  }
 0x2ab   :  { %3677 = vmatprep.subr.bf16.mxu1 %v11192_v62  ;;  %v11138_v62 = vld [vmem:[#allocation8 + $0x4c4] ss:$24 sps:$4 sm:$0xff]  }
 0x2ac   :  { %2566 = vmatpush1.bf16.msra.mxu0 %v11067_v41  ;;  %v11244_v41 = vld [vmem:[#allocation13 + $0x10c] ss:$12 sps:$4 sm:$0xff]  }
 0x2ad   :  { %2567 = vmatprep.subr.bf16.mxu0 %v11072_v42  ;;  %v11120_v42 = vld [vmem:[#allocation8 + $0x3a4] ss:$24 sps:$4 sm:$0xff]  }
 0x2ae   :  { %3678 = vmatpush1.bf16.msra.mxu1 %v11190_v61  ;;  %v11133_v61 = vld [vmem:[#allocation8 + $0x490] ss:$24 sps:$4 sm:$0xff]  }
 0x2af   :  { %3679 = vmatprep.subr.bf16.mxu1 %v11198_v2  ;;  %v11144_v2 = vld [vmem:[#allocation8 + $0x524] ss:$24 sps:$4 sm:$0xff]  }
 0x2b0   :  { %2568 = vmatpush1.bf16.msra.mxu0 %v11070_v28  ;;  %v11247_v28 = vld [vmem:[#allocation13 + $0x120] ss:$12 sps:$4 sm:$0xff]  }
 0x2b1   :  { %2569 = vmatprep.subr.bf16.mxu0 %v11075_v44  ;;  %v11249_v44 = vld [vmem:[#allocation13 + $0x124] ss:$12 sps:$4 sm:$0xff]  }
 0x2b2   :  { %3680 = vmatpush1.bf16.msra.mxu1 %v11196_v1  ;;  %v11139_v1 = vld [vmem:[#allocation8 + $0x4f0] ss:$24 sps:$4 sm:$0xff]  }
 0x2b3   :  { %3681 = vmatprep.subr.bf16.mxu1 %v11204_v6  ;;  %v11150_v6 = vld [vmem:[#allocation8 + $0x584] ss:$24 sps:$4 sm:$0xff]  }
 0x2b4   :  { %2570 = vmatpush1.bf16.msra.mxu0 %v11073_v45  ;;  %v11121_v45 = vld [vmem:[#allocation8 + $0x3d0] ss:$24 sps:$4 sm:$0xff]  }
 0x2b5   :  { %2571 = vmatprep.subr.bf16.mxu0 %v11078_v46  ;;  %v11252_v46 = vld [vmem:[#allocation13 + $0x138] ss:$12 sps:$4 sm:$0xff]  }
 0x2b6   :  { %3682 = vmatpush1.bf16.msra.mxu1 %v11202_v5  ;;  %v11145_v5 = vld [vmem:[#allocation8 + $0x550] ss:$24 sps:$4 sm:$0xff]  }
 0x2b7   :  { %3683 = vmatprep.subr.bf16.mxu1 %v11210_v11  ;;  %v11156_v11 = vld [vmem:[#allocation8 + $0x5e4] ss:$24 sps:$4 sm:$0xff]  }
 0x2b8   :  { %2572 = vmatpush1.bf16.msra.mxu0 %v11076_v47  ;;  %v11254_v47 = vld [vmem:[#allocation13 + $0x13c] ss:$12 sps:$4 sm:$0xff]  }
 0x2b9   :  { %2573 = vmatprep.subr.bf16.mxu0 %v11081_v48  ;;  %v11126_v48 = vld [vmem:[#allocation8 + $0x404] ss:$24 sps:$4 sm:$0xff]  }
 0x2ba   :  { %3684 = vmatpush1.bf16.msra.mxu1 %v11208_v10  ;;  %v11151_v10 = vld [vmem:[#allocation8 + $0x5b0] ss:$24 sps:$4 sm:$0xff]  }
 0x2bb   :  { %3685 = vmatprep.subr.bf16.mxu1 %v11216_v15  ;;  %v11162_v15 = vld [vmem:[#allocation8 + $0x644] ss:$24 sps:$4 sm:$0xff]  }
 0x2bc   :  { %2574 = vmatpush1.bf16.msra.mxu0 %v11079_v50  ;;  %v11124_v50 = vld [vmem:[#allocation8 + $0x400] ss:$24 sps:$4 sm:$0xff]  }
 0x2bd   :  { %2575 = vmatprep.subr.bf16.mxu0 %v11084_v60  ;;  %v11259_v60 = vld [vmem:[#allocation13 + $0x154] ss:$12 sps:$4 sm:$0xff]  }
 0x2be   :  { %3686 = vmatpush1.bf16.msra.mxu1 %v11214_v14  ;;  %v11157_v14 = vld [vmem:[#allocation8 + $0x610] ss:$24 sps:$4 sm:$0xff]  }
 0x2bf   :  { %3687 = vmatprep.subr.bf16.mxu1 %v11222_v21  ;;  %v11168_v21 = vld [vmem:[#allocation8 + $0x6a4] ss:$24 sps:$4 sm:$0xff]  }
 0x2c0   :  { %2576 = vmatpush1.bf16.msra.mxu0 %v11082_v51  ;;  %v11129_v51 = vld [vmem:[#allocation8 + $0x434] ss:$24 sps:$4 sm:$0xff]  }
 0x2c1   :  { %2577 = vmatprep.subr.bf16.mxu0 %v11087_v54  ;;  %v11264_v54 = vld [vmem:[#allocation13 + $0x16c] ss:$12 sps:$4 sm:$0xff]  }
 0x2c2   :  { %3688 = vmatpush1.bf16.msra.mxu1 %v11220_v19  ;;  %v11163_v19 = vld [vmem:[#allocation8 + $0x670] ss:$24 sps:$4 sm:$0xff]  }
 0x2c3   :  { %3689 = vmatprep.subr.bf16.mxu1 %v11228_v25  ;;  %v11174_v25 = vld [vmem:[#allocation8 + $0x704] ss:$24 sps:$4 sm:$0xff]  }
 0x2c4   :  { %2578 = vmatpush1.bf16.msra.mxu0 %v11085_v55  ;;  %v11132_v55 = vld [vmem:[#allocation8 + $0x464] ss:$24 sps:$4 sm:$0xff]  }
 0x2c5   :  { %2579 = vmatprep.subr.bf16.mxu0 %v11090_v58  ;;  %v11269_v58 = vld [vmem:[#allocation13 + $0x184] ss:$12 sps:$4 sm:$0xff]  }
 0x2c6   :  { %3690 = vmatpush1.bf16.msra.mxu1 %v11226_v24  ;;  %v11169_v24 = vld [vmem:[#allocation8 + $0x6d0] ss:$24 sps:$4 sm:$0xff]  }
 0x2c7   :  { %3691 = vmatprep.subr.bf16.mxu1 %v11234_v31  ;;  %v11189_v31 = vld [vmem:[#allocation8 + $0x794] ss:$24 sps:$4 sm:$0xff]  }
 0x2c8   :  { %2580 = vmatpush1.bf16.msra.mxu0 %v11088_v59  ;;  %v11135_v59 = vld [vmem:[#allocation8 + $0x494] ss:$24 sps:$4 sm:$0xff]  }
 0x2c9   :  { %2581 = vmatprep.subr.bf16.mxu0 %v11093_v63  ;;  %v11136_v63 = vld [vmem:[#allocation8 + $0x4c0] ss:$24 sps:$4 sm:$0xff]  }
 0x2ca   :  { %3692 = vmatpush1.bf16.msra.mxu1 %v11232_v30  ;;  %v11181_v30 = vld [vmem:[#allocation8 + $0x760] ss:$24 sps:$4 sm:$0xff]  }
 0x2cb   :  { %3693 = vmatprep.subr.bf16.mxu1 %v11239_v36  ;;  %v11201_v36 = vld [vmem:[#allocation8 + $0x7f4] ss:$24 sps:$4 sm:$0xff]  }
 0x2cc   :  { %2582 = vmatpush1.bf16.msra.mxu0 %v11091_v0  ;;  %v11141_v0 = vld [vmem:[#allocation8 + $0x4f4] ss:$24 sps:$4 sm:$0xff]  }
 0x2cd   :  { %2583 = vmatprep.subr.bf16.mxu0 %v11096_v3  ;;  %v11142_v3 = vld [vmem:[#allocation8 + $0x520] ss:$24 sps:$4 sm:$0xff]  }
 0x2ce   :  { %3694 = vmatpush1.bf16.msra.mxu1 %v11237_v34  ;;  %v11193_v34 = vld [vmem:[#allocation8 + $0x7c0] ss:$24 sps:$4 sm:$0xff]  }
 0x2cf   :  { %3695 = vmatprep.subr.bf16.mxu1 %v11244_v41  ;;  %v11213_v41 = vld [vmem:[#allocation8 + $0x854] ss:$24 sps:$4 sm:$0xff]  }
 0x2d0   :  { %2584 = vmatpush1.bf16.msra.mxu0 %v11094_v4  ;;  %v11147_v4 = vld [vmem:[#allocation8 + $0x554] ss:$24 sps:$4 sm:$0xff]  }
 0x2d1   :  { %2585 = vmatprep.subr.bf16.mxu0 %v11099_v7  ;;  %v11148_v7 = vld [vmem:[#allocation8 + $0x580] ss:$24 sps:$4 sm:$0xff]  }
 0x2d2   :  { %3696 = vmatpush1.bf16.msra.mxu1 %v11242_v40  ;;  %v11205_v40 = vld [vmem:[#allocation8 + $0x820] ss:$24 sps:$4 sm:$0xff]  }
 0x2d3   :  { %3697 = vmatprep.subr.bf16.mxu1 %v11249_v44  ;;  %v11225_v44 = vld [vmem:[#allocation8 + $0x8b4] ss:$24 sps:$4 sm:$0xff]  }
 0x2d4   :  { %2586 = vmatpush1.bf16.msra.mxu0 %v11097_v8  ;;  %v11153_v8 = vld [vmem:[#allocation8 + $0x5b4] ss:$24 sps:$4 sm:$0xff]  }
 0x2d5   :  { %2587 = vmatprep.subr.bf16.mxu0 %v11102_v12  ;;  %v11154_v12 = vld [vmem:[#allocation8 + $0x5e0] ss:$24 sps:$4 sm:$0xff]  }
 0x2d6   :  { %3698 = vmatpush1.bf16.msra.mxu1 %v11247_v28  ;;  %v11217_v28 = vld [vmem:[#allocation8 + $0x880] ss:$24 sps:$4 sm:$0xff]  }
 0x2d7   :  { %3699 = vmatprep.subr.bf16.mxu1 %v11254_v47  ;;  %v11235_v47 = vld [vmem:[#allocation13 + $0xc8] ss:$12 sps:$4 sm:$0xff]  }
 0x2d8   :  { %2588 = vmatpush1.bf16.msra.mxu0 %v11100_v13  ;;  %v11159_v13 = vld [vmem:[#allocation8 + $0x614] ss:$24 sps:$4 sm:$0xff]  }
 0x2d9   :  { %2589 = vmatprep.subr.bf16.mxu0 %v11105_v17  ;;  %v11160_v17 = vld [vmem:[#allocation8 + $0x640] ss:$24 sps:$4 sm:$0xff]  }
 0x2da   :  { %3700 = vmatpush1.bf16.msra.mxu1 %v11252_v46  ;;  %v11229_v46 = vld [vmem:[#allocation8 + $0x8e0] ss:$24 sps:$4 sm:$0xff]  }
 0x2db   :  { %3701 = vmatprep.subr.bf16.mxu1 %v11259_v60  ;;  %v11241_v60 = vld [vmem:[#allocation13 + $0x20] ss:$12 sps:$4 sm:$0xff]  }
 0x2dc   :  { %2590 = vmatpush1.bf16.msra.mxu0 %v11103_v18  ;;  %v11165_v18 = vld [vmem:[#allocation8 + $0x674] ss:$24 sps:$4 sm:$0xff]  }
 0x2dd   :  { %2591 = vmatprep.subr.bf16.mxu0 %v11108_v22  ;;  %v11166_v22 = vld [vmem:[#allocation8 + $0x6a0] ss:$24 sps:$4 sm:$0xff]  }
 0x2de   :  { %3702 = vmatpush1.bf16.msra.mxu1 %v11257_v52  ;;  %v11246_v52 = vld [vmem:[#allocation13 + $0x38] ss:$12 sps:$4 sm:$0xff]  }
 0x2df   :  { %3703 = vmatprep.subr.bf16.mxu1 %v11264_v54  ;;  %v11251_v54 = vld [vmem:[#allocation13 + $0x50] ss:$12 sps:$4 sm:$0xff]  }
 0x2e0   :  { %2592 = vmatpush1.bf16.msra.mxu0 %v11106_v23  ;;  %v11171_v23 = vld [vmem:[#allocation8 + $0x6d4] ss:$24 sps:$4 sm:$0xff]  }
 0x2e1   :  { %2602 = vmatprep.subr.bf16.mxu0 %v11111_v27  ;;  %v11177_v27 = vld [vmem:[#allocation8 + $0x734] ss:$24 sps:$4 sm:$0xff]  }
 0x2e2   :  { %3704 = vmatpush1.bf16.msra.mxu1 %v11262_v56  ;;  %v12444_v56 = vsub.s32 0, %v12392_v43 }
 0x2e3   :  { %2594 = vmatmul.mubr.bf16.vlgmr.msra.gmra.mrb[4].mxu0 %v12408_v16  ;;  %v11118_v16 = vld [vmem:[#allocation8 + $0x3a0] ss:$24 sps:$4 sm:$0xff]   ;;  %3714 = vmatprep.subr.bf16.mxu1 %v11269_v58 }
 0x2e4   :  { %2603 = vmatpush1.bf16.msra.mxu0 %v11109_v29  ;;  %2634 = vmatprep.mubr.bf16.mxu0 %v12410_v20  ;;  %v11123_v20 = vld [vmem:[#allocation8 + $0x3d4] ss:$24 sps:$4 sm:$0xff]   ;;  %v11183_v29 = vld [vmem:[#allocation8 + $0x764] ss:$24 sps:$4 sm:$0xff]  }
 0x2e5   :  { %2604 = vmatprep.subr.bf16.mxu0 %v11114_v9  ;;  %v11187_v9 = vld [vmem:[#allocation8 + $0x790] ss:$24 sps:$4 sm:$0xff]   ;;  %v12446_v58 = vld [vmem:[#allocation11] sm:$0x3f] }
 0x2e8   :  { %2605 = vmatpush1.bf16.msra.mxu0 %v11112_v33  ;;  %v11195_v33 = vld [vmem:[#allocation8 + $0x7c4] ss:$24 sps:$4 sm:$0xff]  }
 0x2e9   :  { %2606 = vmatprep.subr.bf16.mxu0 %v11117_v37  ;;  %v11199_v37 = vld [vmem:[#allocation8 + $0x7f0] ss:$24 sps:$4 sm:$0xff]  }
 0x2ec   :  { %2607 = vmatpush1.bf16.msra.mxu0 %v11115_v39  ;;  %v11207_v39 = vld [vmem:[#allocation8 + $0x824] ss:$24 sps:$4 sm:$0xff]  }
 0x2ed   :  { %2608 = vmatprep.subr.bf16.mxu0 %v11120_v42  ;;  %v11211_v42 = vld [vmem:[#allocation8 + $0x850] ss:$24 sps:$4 sm:$0xff]  }
 0x2f0   :  { %2609 = vmatpush1.bf16.msra.mxu0 %v11118_v16  ;;  %v11219_v16 = vld [vmem:[#allocation8 + $0x884] ss:$24 sps:$4 sm:$0xff]  }
 0x2f1   :  { %2610 = vmatprep.subr.bf16.mxu0 %v11123_v20  ;;  %v11223_v20 = vld [vmem:[#allocation8 + $0x8b0] ss:$24 sps:$4 sm:$0xff]  }
 0x2f4   :  { %2611 = vmatpush1.bf16.msra.mxu0 %v11121_v45  ;;  %v11231_v45 = vld [vmem:[#allocation8 + $0x8e4] ss:$24 sps:$4 sm:$0xff]  }
 0x2f5   :  { %2612 = vmatprep.subr.bf16.mxu0 %v11126_v48  ;;  %v11236_v48 = vld [vmem:[#allocation13 + $0x8] ss:$12 sps:$4 sm:$0xff]  }
 0x2f8   :  { %2613 = vmatpush1.bf16.msra.mxu0 %v11124_v50  ;;  %v11240_v50 = vld [vmem:[#allocation13 + $0xe0] ss:$12 sps:$4 sm:$0xff]  }
 0x2f9   :  { %2614 = vmatprep.subr.bf16.mxu0 %v11129_v51  ;;  %v11245_v51 = vld [vmem:[#allocation13 + $0xf8] ss:$12 sps:$4 sm:$0xff]  }
 0x2fc   :  { %2615 = vmatpush1.bf16.msra.mxu0 %v11127_v53  ;;  %v11250_v53 = vld [vmem:[#allocation13 + $0x110] ss:$12 sps:$4 sm:$0xff]  }
 0x2fd   :  { %2616 = vmatprep.subr.bf16.mxu0 %v11132_v55  ;;  %v11255_v55 = vld [vmem:[#allocation13 + $0x128] ss:$12 sps:$4 sm:$0xff]  }
 0x300   :  { %2617 = vmatpush1.bf16.msra.mxu0 %v11130_v57  ;;  %v11256_v57 = vld [vmem:[#allocation13 + $0x68] ss:$12 sps:$4 sm:$0xff]  }
 0x301   :  { %2618 = vmatprep.subr.bf16.mxu0 %v11135_v59  ;;  %v12452_v59 = vsub.s32 3, %v12392_v43 }
 0x304   :  { %2619 = vmatpush1.bf16.msra.mxu0 %v11133_v61  ;;  %v11260_v61 = vld [vmem:[#allocation13 + $0x140] ss:$12 sps:$4 sm:$0xff]  }
 0x305   :  { %2620 = vmatprep.subr.bf16.mxu0 %v11138_v62  ;;  %v848_v62 = vrot.slane %v12446_v58, %v12444_v56 }
 0x308   :  { %2621 = vmatpush1.bf16.msra.mxu0 %v11136_v63 }
 0x309   :  { %2622 = vmatprep.subr.bf16.mxu0 %v11141_v0  ;;  %v860_v0 = vrot.slane %v12446_v58, %v12452_v59 }
 0x30c   :  { %2623 = vmatpush1.bf16.msra.mxu0 %v11139_v1  ;;  %v11261_v1 = vld [vmem:[#allocation13 + $0x80] ss:$12 sps:$4 sm:$0xff]  }
 0x30d   :  { %2624 = vmatprep.subr.bf16.mxu0 %v11144_v2  ;;  %v11265_v2 = vld [vmem:[#allocation13 + $0x158] ss:$12 sps:$4 sm:$0xff]  }
 0x310   :  { %2625 = vmatpush1.bf16.msra.mxu0 %v11142_v3 }
 0x311   :  { %2626 = vmatprep.subr.bf16.mxu0 %v11147_v4 }
 0x314   :  { %2627 = vmatpush1.bf16.msra.mxu0 %v11145_v5 }
 0x315   :  { %2628 = vmatprep.subr.bf16.mxu0 %v11150_v6 }
 0x318   :  { %2629 = vmatpush1.bf16.msra.mxu0 %v11148_v7 }
 0x319   :  { %2630 = vmatprep.subr.bf16.mxu0 %v11153_v8 }
 0x31c   :  { %2631 = vmatpush1.bf16.msra.mxu0 %v11151_v10 }
 0x31d   :  { %2632 = vmatprep.subr.bf16.mxu0 %v11156_v11 }
 0x320   :  { %2633 = vmatpush1.bf16.msra.mxu0 %v11154_v12 }
 0x321   :  { %2643 = vmatprep.subr.bf16.mxu0 %v11159_v13  ;;  %v11266_v13 = vld [vmem:[#allocation13 + $0x98] ss:$12 sps:$4 sm:$0xff]  }
 0x323   :  { %2635 = vmatmul.mubr.bf16.vlgmr.msra.gmra.mrb[4].mxu0 %v12418_v26  ;;  %v11172_v26 = vld [vmem:[#allocation8 + $0x700] ss:$24 sps:$4 sm:$0xff]  }
 0x324   :  { %2644 = vmatpush1.bf16.msra.mxu0 %v11157_v14  ;;  %2675 = vmatprep.mubr.bf16.mxu0 %v12427_v32  ;;  %v11175_v32 = vld [vmem:[#allocation8 + $0x730] ss:$24 sps:$4 sm:$0xff]  }
 0x325   :  { %2645 = vmatprep.subr.bf16.mxu0 %v11162_v15 }
 0x328   :  { %2646 = vmatpush1.bf16.msra.mxu0 %v11160_v17 }
 0x329   :  { %2647 = vmatprep.subr.bf16.mxu0 %v11165_v18  ;;  %v11270_v18 = vld [vmem:[#allocation13 + $0x170] ss:$12 sps:$4 sm:$0xff]  }
 0x32c   :  { %2648 = vmatpush1.bf16.msra.mxu0 %v11163_v19 }
 0x32d   :  { %2649 = vmatprep.subr.bf16.mxu0 %v11168_v21 }
 0x330   :  { %2650 = vmatpush1.bf16.msra.mxu0 %v11166_v22 }
 0x331   :  { %2651 = vmatprep.subr.bf16.mxu0 %v11171_v23  ;;  %v11267_v23 = vld [vmem:[#allocation13 + $0x180] ss:$12 sps:$4 sm:$0xff]  }
 0x334   :  { %2652 = vmatpush1.bf16.msra.mxu0 %v11169_v24 }
 0x335   :  { %2653 = vmatprep.subr.bf16.mxu0 %v11174_v25  ;;  %v11271_v25 = vld [vmem:[#allocation13 + $0xb0] ss:$12 sps:$4 sm:$0xff]  }
 0x338   :  { %2654 = vmatpush1.bf16.msra.mxu0 %v11172_v26  ;;  %v11274_v26 = vld [vmem:[#allocation13 + $0x19c] ss:$12 sps:$4 sm:$0xff]  }
 0x339   :  { %2655 = vmatprep.subr.bf16.mxu0 %v11177_v27 }
 0x33c   :  { %2656 = vmatpush1.bf16.msra.mxu0 %v11175_v32  ;;  %v11344_v32 = vld [vmem:[#allocation13 + $0x3c8] ss:$12 sps:$4 sm:$0xff]  }
 0x33d   :  { %2657 = vmatprep.subr.bf16.mxu0 %v11183_v29  ;;  %v11272_v29 = vld [vmem:[#allocation13 + $0x198] ss:$12 sps:$4 sm:$0xff]  }
 0x340   :  { %2658 = vmatpush1.bf16.msra.mxu0 %v11181_v30  ;;  %v11277_v30 = vld [vmem:[#allocation13 + $0x1b4] ss:$12 sps:$4 sm:$0xff]  }
 0x341   :  { %2659 = vmatprep.subr.bf16.mxu0 %v11189_v31  ;;  %v11345_v31 = vld [vmem:[#allocation13 + $0x308] ss:$12 sps:$4 sm:$0xff]  }
 0x344   :  { %2660 = vmatpush1.bf16.msra.mxu0 %v11187_v9  ;;  %v11349_v9 = vld [vmem:[#allocation13 + $0x3e0] ss:$12 sps:$4 sm:$0xff]  }
 0x345   :  { %2661 = vmatprep.subr.bf16.mxu0 %v11195_v33  ;;  %v11275_v33 = vld [vmem:[#allocation13 + $0x1b0] ss:$12 sps:$4 sm:$0xff]  }
 0x348   :  { %2662 = vmatpush1.bf16.msra.mxu0 %v11193_v34  ;;  %v11280_v34 = vld [vmem:[#allocation13 + $0x1cc] ss:$12 sps:$4 sm:$0xff]  }
 0x349   :  { %2663 = vmatprep.subr.bf16.mxu0 %v11201_v36  ;;  %v11350_v36 = vld [vmem:[#allocation13 + $0x320] ss:$12 sps:$4 sm:$0xff]  }
 0x34c   :  { %2664 = vmatpush1.bf16.msra.mxu0 %v11199_v37  ;;  %v11354_v37 = vld [vmem:[#allocation13 + $0x3f8] ss:$12 sps:$4 sm:$0xff]  }
 0x34d   :  { %2665 = vmatprep.subr.bf16.mxu0 %v11207_v39  ;;  %v11278_v39 = vld [vmem:[#allocation13 + $0x1c8] ss:$12 sps:$4 sm:$0xff]  }
 0x350   :  { %2666 = vmatpush1.bf16.msra.mxu0 %v11205_v40  ;;  %v11283_v40 = vld [vmem:[#allocation13 + $0x1e4] ss:$12 sps:$4 sm:$0xff]  }
 0x351   :  { %2667 = vmatprep.subr.bf16.mxu0 %v11213_v41  ;;  %v11355_v41 = vld [vmem:[#allocation13 + $0x338] ss:$12 sps:$4 sm:$0xff]  }
 0x354   :  { %2668 = vmatpush1.bf16.msra.mxu0 %v11211_v42  ;;  %v11359_v42 = vld [vmem:[#allocation13 + $0x410] ss:$12 sps:$4 sm:$0xff]  }
 0x355   :  { %2669 = vmatprep.subr.bf16.mxu0 %v11219_v16  ;;  %v11281_v16 = vld [vmem:[#allocation13 + $0x1e0] ss:$12 sps:$4 sm:$0xff]  }
 0x358   :  { %2670 = vmatpush1.bf16.msra.mxu0 %v11217_v28  ;;  %v11286_v28 = vld [vmem:[#allocation13 + $0x1fc] ss:$12 sps:$4 sm:$0xff]  }
 0x359   :  { %2671 = vmatprep.subr.bf16.mxu0 %v11225_v44  ;;  %v11360_v44 = vld [vmem:[#allocation13 + $0x350] ss:$12 sps:$4 sm:$0xff]  }
 0x35c   :  { %2672 = vmatpush1.bf16.msra.mxu0 %v11223_v20  ;;  %v11364_v20 = vld [vmem:[#allocation13 + $0x428] ss:$12 sps:$4 sm:$0xff]  }
 0x35d   :  { %2673 = vmatprep.subr.bf16.mxu0 %v11231_v45  ;;  %v11284_v45 = vld [vmem:[#allocation13 + $0x1f8] ss:$12 sps:$4 sm:$0xff]  }
 0x360   :  { %2674 = vmatpush1.bf16.msra.mxu0 %v11229_v46  ;;  %v11289_v46 = vld [vmem:[#allocation13 + $0x214] ss:$12 sps:$4 sm:$0xff]  }
 0x361   :  { %10088 = vmatprep.subr.bf16.mxu0 %v11235_v47  ;;  %v11365_v47 = vld [vmem:[#allocation13 + $0x368] ss:$12 sps:$4 sm:$0xff]  }
 0x363   :  { %2676 = vmatmul.mubr.bf16.vlgmr.msra.gmra.mrb[4].mxu0 %v12433_v35  ;;  %v12449_v35 = vsub.s32 1, %v12392_v43 }
 0x364   :  { %10089 = vmatpush3.bf16.msra.mxu0 %v11236_v48  ;;  %v11369_v48 = vld [vmem:[#allocation13 + $0x440] ss:$12 sps:$4 sm:$0xff]  }
 0x365   :  { %10090 = vmatprep.subr.bf16.mxu0 %v11240_v50  ;;  %v852_v63 = vrot.slane %v12446_v58, %v12449_v35  ;;  %v11287_v50 = vld [vmem:[#allocation13 + $0x210] ss:$12 sps:$4 sm:$0xff]  }
 0x368   :  { %10091 = vmatpush3.bf16.msra.mxu0 %v11241_v60  ;;  %v11292_v60 = vld [vmem:[#allocation13 + $0x22c] ss:$12 sps:$4 sm:$0xff]  }
 0x369   :  { %10092 = vmatprep.subr.bf16.mxu0 %v11245_v51  ;;  %v11370_v51 = vld [vmem:[#allocation13 + $0x380] ss:$12 sps:$4 sm:$0xff]  }
 0x36c   :  { %10093 = vmatpush3.bf16.msra.mxu0 %v11246_v52  ;;  %v11290_v52 = vld [vmem:[#allocation13 + $0x228] ss:$12 sps:$4 sm:$0xff]  }
 0x36d   :  { %10094 = vmatprep.subr.bf16.mxu0 %v11250_v53  ;;  %v11295_v53 = vld [vmem:[#allocation13 + $0x244] ss:$12 sps:$4 sm:$0xff]  }
 0x370   :  { %10095 = vmatpush3.bf16.msra.mxu0 %v11251_v54  ;;  %v11293_v54 = vld [vmem:[#allocation13 + $0x240] ss:$12 sps:$4 sm:$0xff]  }
 0x371   :  { %10096 = vmatprep.subr.bf16.mxu0 %v11255_v55  ;;  %v11298_v55 = vld [vmem:[#allocation13 + $0x25c] ss:$12 sps:$4 sm:$0xff]  }
 0x374   :  { %10097 = vmatpush3.bf16.msra.mxu0 %v11256_v57  ;;  %v11296_v57 = vld [vmem:[#allocation13 + $0x258] ss:$12 sps:$4 sm:$0xff]  }
 0x375   :  { %10098 = vmatprep.subr.bf16.mxu0 %v11260_v61  ;;  %v11301_v61 = vld [vmem:[#allocation13 + $0x274] ss:$12 sps:$4 sm:$0xff]  }
 0x376   :  { %v2431_v3 = vpop.f32.mrb[0].mxu0 }
 0x377   :  { %v12460_v4 = vpop.f32.mrb[0].mxu1  ;;  %v10513_v5 = vadd.f32 %v2431_v3, %v848_v62  ;;  %v2433_v6 = vpop.f32.mrb[1].mxu0  ;;  %v11299_v62 = vld [vmem:[#allocation13 + $0x270] ss:$12 sps:$4 sm:$0xff]   ;;  %v12466_v3 = vsub.s32 2, %v12392_v43 }
 0x378   :  { %v2556_v7 = vpop.f32.mrb[1].mxu1  ;;  %v10514_v8 = vadd.f32 %v2433_v6, %v852_v63  ;;  %v2435_v11 = vpop.f32.mrb[2].mxu0  ;;  %10099 = vmatpush3.bf16.msra.mxu0 %v11261_v1  ;;  %v11304_v63 = vld [vmem:[#allocation13 + $0x28c] ss:$12 sps:$4 sm:$0xff]   ;;  %v11307_v1 = vld [vmem:[#allocation13 + $0x2a4] ss:$12 sps:$4 sm:$0xff]  }
 0x379   :  { %v10516_v10 = vadd.f32 %v2556_v7, %v860_v0  ;;  %v2558_v12 = vpop.f32.mrb[2].mxu1  ;;  %v2684_v14 = vmax.f32 %v10513_v5, 0.0  ;;  %v2436_v15 = vpop.f32.mrb[3].mxu0  ;;  %10100 = vmatprep.subr.bf16.mxu0 %v11265_v2  ;;  %v11302_v0 = vld [vmem:[#allocation13 + $0x288] ss:$12 sps:$4 sm:$0xff]   ;;  %v856_v7 = vrot.slane %v12446_v58, %v12466_v3 }
 0x37a   :  { %v2559_v17 = vpop.f32.mrb[3].mxu1  ;;  %v2685_v19 = vmax.f32 %v10514_v8, 0.0  ;;  %v11305_v2 = vld [vmem:[#allocation13 + $0x2a0] ss:$12 sps:$4 sm:$0xff]   ;;  %v11310_v5 = vld [vmem:[#allocation13 + $0x2bc] ss:$12 sps:$4 sm:$0xff]  }
 0x37b   :  { %v2687_v21 = vmax.f32 %v10516_v10, 0.0  ;;  %v2690_v24 = vpack.c.bf16 %v2684_v14, %v2684_v14  ;;  %v11308_v6 = vld [vmem:[#allocation13 + $0x2b8] ss:$12 sps:$4 sm:$0xff]   ;;  %v11313_v8 = vld [vmem:[#allocation13 + $0x2d4] ss:$12 sps:$4 sm:$0xff]   ;;  %v10515_v11 = vadd.f32 %v12460_v4, %v856_v7 }
 0x37c   :  { %v2691_v22 = vpack.c.bf16 %v2685_v19, %v2685_v19  ;;  %10101 = vmatpush3.bf16.msra.mxu0 %v11266_v13  ;;  %v11311_v10 = vld [vmem:[#allocation13 + $0x2d0] ss:$12 sps:$4 sm:$0xff]   ;;  %v11316_v12 = vld [vmem:[#allocation13 + $0x2ec] ss:$12 sps:$4 sm:$0xff]   ;;  %v11314_v15 = vld [vmem:[#allocation13 + $0x2e8] ss:$12 sps:$4 sm:$0xff]  }
 0x37d   :  { %10102 = vmatprep.subr.bf16.mxu0 %v11270_v18  ;;  %v12462_v27 = vpack.c.bf16 %v2687_v21, %v2687_v21  ;;  %v11374_v13 = vld [vmem:[#allocation13 + $0x458] ss:$12 sps:$4 sm:$0xff]   ;;  %v2686_v17 = vmax.f32 %v10515_v11, 0.0  ;;  %v11379_v19 = vld [vmem:[#allocation13 + $0x470] ss:$12 sps:$4 sm:$0xff]  }
 0x37e   :  { %3705 = vmatprep.mubr.bf16.mxu1 %v2691_v22  ;;  %3828 = vmatprep.mubr.bf16.mxu0 %v2691_v22  ;;  %v11375_v14 = vld [vmem:[#allocation13 + $0x398] ss:$12 sps:$4 sm:$0xff]   ;;  %v11380_v21 = vld [vmem:[#allocation13 + $0x3b0] ss:$12 sps:$4 sm:$0xff]   ;;  %v11317_v22 = vld [vmem:[#allocation13 + $0x300] ss:$12 sps:$4 sm:$0xff]  }
 0x37f   :  { %3706 = vmatmul.mubr.bf16.vlgmr.msra.gmra.mrb[4].mxu1 %v2690_v24  ;;  %v11319_v18 = vld [vmem:[#allocation13 + $0x304] ss:$12 sps:$4 sm:$0xff]   ;;  %v11322_v4 = vld [vmem:[#allocation13 + $0x31c] ss:$12 sps:$4 sm:$0xff]  }
 0x380   :  { %3715 = vmatpush1.bf16.msra.mxu1 %v11267_v23  ;;  %3746 = vmatprep.mubr.bf16.mxu1 %v12462_v27  ;;  %v12471_v23 = vpack.c.bf16 %v2686_v17, %v2686_v17  ;;  %v11382_v11 = vld [vmem:[#allocation13 + $0x188] ss:$12 sps:$4 sm:$0xff]   ;;  %v11387_v17 = vld [vmem:[#allocation13 + $0x290] ss:$12 sps:$4 sm:$0xff]  }
 0x381   :  { %10103 = vmatpush3.bf16.msra.mxu0 %v11271_v25  ;;  %3716 = vmatprep.subr.bf16.mxu1 %v11274_v26  ;;  %v11325_v25 = vld [vmem:[#allocation13 + $0x334] ss:$12 sps:$4 sm:$0xff]   ;;  %v11323_v26 = vld [vmem:[#allocation13 + $0x330] ss:$12 sps:$4 sm:$0xff]  }
 0x382   :  { %10132 = vmatprep.subr.bf16.mxu0 %v11344_v32  ;;  %v11328_v32 = vld [vmem:[#allocation13 + $0x34c] ss:$12 sps:$4 sm:$0xff]  }
 0x384   :  { %3717 = vmatpush1.bf16.msra.mxu1 %v11272_v29  ;;  %3829 = vmatmul.mubr.bf16.vlgmr.msra.gmra.mrb[8].mxu0 %v2690_v24  ;;  %v11320_v24 = vld [vmem:[#allocation13 + $0x318] ss:$12 sps:$4 sm:$0xff]   ;;  %v11326_v29 = vld [vmem:[#allocation13 + $0x348] ss:$12 sps:$4 sm:$0xff]  }
 0x385   :  { %3718 = vmatprep.subr.bf16.mxu1 %v11277_v30  ;;  %10133 = vmatpush3.bf16.msra.mxu0 %v11345_v31  ;;  %v11331_v30 = vld [vmem:[#allocation13 + $0x364] ss:$12 sps:$4 sm:$0xff]   ;;  %v11329_v31 = vld [vmem:[#allocation13 + $0x360] ss:$12 sps:$4 sm:$0xff]  }
 0x386   :  { %10134 = vmatprep.subr.bf16.mxu0 %v11349_v9  ;;  %v11334_v9 = vld [vmem:[#allocation13 + $0x37c] ss:$12 sps:$4 sm:$0xff]  }
 0x388   :  { %3719 = vmatpush1.bf16.msra.mxu1 %v11275_v33  ;;  %v11332_v33 = vld [vmem:[#allocation13 + $0x378] ss:$12 sps:$4 sm:$0xff]  }
 0x389   :  { %3720 = vmatprep.subr.bf16.mxu1 %v11280_v34  ;;  %10135 = vmatpush3.bf16.msra.mxu0 %v11350_v36  ;;  %v11337_v34 = vld [vmem:[#allocation13 + $0x394] ss:$12 sps:$4 sm:$0xff]   ;;  %v11335_v36 = vld [vmem:[#allocation13 + $0x390] ss:$12 sps:$4 sm:$0xff]  }
 0x38a   :  { %10136 = vmatprep.subr.bf16.mxu0 %v11354_v37  ;;  %v11340_v37 = vld [vmem:[#allocation13 + $0x3ac] ss:$12 sps:$4 sm:$0xff]  }
 0x38c   :  { %3721 = vmatpush1.bf16.msra.mxu1 %v11278_v39  ;;  %v11338_v39 = vld [vmem:[#allocation13 + $0x3a8] ss:$12 sps:$4 sm:$0xff]  }
 0x38d   :  { %3722 = vmatprep.subr.bf16.mxu1 %v11283_v40  ;;  %10137 = vmatpush3.bf16.msra.mxu0 %v11355_v41  ;;  %v11343_v40 = vld [vmem:[#allocation13 + $0x3c4] ss:$12 sps:$4 sm:$0xff]   ;;  %v11341_v41 = vld [vmem:[#allocation13 + $0x3c0] ss:$12 sps:$4 sm:$0xff]  }
 0x38e   :  { %10138 = vmatprep.subr.bf16.mxu0 %v11359_v42  ;;  %v11348_v42 = vld [vmem:[#allocation13 + $0x3dc] ss:$12 sps:$4 sm:$0xff]  }
 0x390   :  { %3723 = vmatpush1.bf16.msra.mxu1 %v11281_v16  ;;  %v11346_v16 = vld [vmem:[#allocation13 + $0x3d8] ss:$12 sps:$4 sm:$0xff]  }
 0x391   :  { %3724 = vmatprep.subr.bf16.mxu1 %v11286_v28  ;;  %10139 = vmatpush3.bf16.msra.mxu0 %v11360_v44  ;;  %v11353_v28 = vld [vmem:[#allocation13 + $0x3f4] ss:$12 sps:$4 sm:$0xff]   ;;  %v11351_v44 = vld [vmem:[#allocation13 + $0x3f0] ss:$12 sps:$4 sm:$0xff]  }
 0x392   :  { %10140 = vmatprep.subr.bf16.mxu0 %v11364_v20  ;;  %v11358_v20 = vld [vmem:[#allocation13 + $0x40c] ss:$12 sps:$4 sm:$0xff]  }
 0x394   :  { %3725 = vmatpush1.bf16.msra.mxu1 %v11284_v45  ;;  %v11356_v45 = vld [vmem:[#allocation13 + $0x408] ss:$12 sps:$4 sm:$0xff]  }
 0x395   :  { %3726 = vmatprep.subr.bf16.mxu1 %v11289_v46  ;;  %10141 = vmatpush3.bf16.msra.mxu0 %v11365_v47  ;;  %v11363_v46 = vld [vmem:[#allocation13 + $0x424] ss:$12 sps:$4 sm:$0xff]   ;;  %v11361_v47 = vld [vmem:[#allocation13 + $0x420] ss:$12 sps:$4 sm:$0xff]  }
 0x396   :  { %10142 = vmatprep.subr.bf16.mxu0 %v11369_v48  ;;  %v11368_v48 = vld [vmem:[#allocation13 + $0x43c] ss:$12 sps:$4 sm:$0xff]  }
 0x398   :  { %3727 = vmatpush1.bf16.msra.mxu1 %v11287_v50  ;;  %v11366_v50 = vld [vmem:[#allocation13 + $0x438] ss:$12 sps:$4 sm:$0xff]  }
 0x399   :  { %3728 = vmatprep.subr.bf16.mxu1 %v11292_v60  ;;  %10143 = vmatpush3.bf16.msra.mxu0 %v11370_v51  ;;  %v11373_v60 = vld [vmem:[#allocation13 + $0x454] ss:$12 sps:$4 sm:$0xff]   ;;  %v11371_v51 = vld [vmem:[#allocation13 + $0x450] ss:$12 sps:$4 sm:$0xff]  }
 0x39a   :  { %10144 = vmatprep.subr.bf16.mxu0 %v11374_v13  ;;  %v11383_v13 = vld [vmem:[#allocation13 + $0x260] ss:$12 sps:$4 sm:$0xff]  }
 0x39c   :  { %3729 = vmatpush1.bf16.msra.mxu1 %v11290_v52  ;;  %v11378_v52 = vld [vmem:[#allocation13 + $0x46c] ss:$12 sps:$4 sm:$0xff]  }
 0x39d   :  { %3730 = vmatprep.subr.bf16.mxu1 %v11295_v53  ;;  %10145 = vmatpush3.bf16.msra.mxu0 %v11375_v14  ;;  %v11376_v53 = vld [vmem:[#allocation13 + $0x468] ss:$12 sps:$4 sm:$0xff]   ;;  %v11385_v14 = vld [vmem:[#allocation13 + $0x278] ss:$12 sps:$4 sm:$0xff]  }
 0x39e   :  { %10146 = vmatprep.subr.bf16.mxu0 %v11379_v19  ;;  %v11389_v19 = vld [vmem:[#allocation13 + $0x2a8] ss:$12 sps:$4 sm:$0xff]  }
 0x3a0   :  { %3731 = vmatpush1.bf16.msra.mxu1 %v11293_v54  ;;  %v11381_v54 = vld [vmem:[#allocation13 + $0x248] ss:$12 sps:$4 sm:$0xff]  }
 0x3a1   :  { %3732 = vmatprep.subr.bf16.mxu1 %v11298_v55  ;;  %10147 = vmatpush3.bf16.msra.mxu0 %v11380_v21  ;;  %v12475_v55 = vsub.s32 4, %v12392_v43  ;;  %v11390_v21 = vld [vmem:[#allocation13 + $0x1e8] ss:$12 sps:$4 sm:$0xff]  }
 0x3a4   :  { %3733 = vmatpush1.bf16.msra.mxu1 %v11296_v57  ;;  %v12478_v57 = vsub.s32 5, %v12392_v43 }
 0x3a5   :  { %3734 = vmatprep.subr.bf16.mxu1 %v11301_v61  ;;  %v864_v61 = vrot.slane %v12446_v58, %v12475_v55 }
 0x3a8   :  { %3735 = vmatpush1.bf16.msra.mxu1 %v11299_v62  ;;  %v868_v62 = vrot.slane %v12446_v58, %v12478_v57  ;;  %v11384_v58 = vld [vmem:[#allocation13 + $0x1a0] ss:$12 sps:$4 sm:$0xff]  }
 0x3a9   :  { %3736 = vmatprep.subr.bf16.mxu1 %v11304_v63 }
 0x3ac   :  { %3737 = vmatpush1.bf16.msra.mxu1 %v11302_v0 }
 0x3ad   :  { %3738 = vmatprep.subr.bf16.mxu1 %v11307_v1 }
 0x3b0   :  { %3739 = vmatpush1.bf16.msra.mxu1 %v11305_v2 }
 0x3b1   :  { %3740 = vmatprep.subr.bf16.mxu1 %v11310_v5 }
 0x3b4   :  { %3741 = vmatpush1.bf16.msra.mxu1 %v11308_v6 }
 0x3b5   :  { %3742 = vmatprep.subr.bf16.mxu1 %v11313_v8 }
 0x3b8   :  { %3743 = vmatpush1.bf16.msra.mxu1 %v11311_v10 }
 0x3b9   :  { %3744 = vmatprep.subr.bf16.mxu1 %v11316_v12 }
 0x3bc   :  { %3745 = vmatpush1.bf16.msra.mxu1 %v11314_v15  ;;  %v11386_v15 = vld [vmem:[#allocation13 + $0x1b8] ss:$12 sps:$4 sm:$0xff]  }
 0x3bd   :  { %3755 = vmatprep.subr.bf16.mxu1 %v11319_v18  ;;  %v11388_v18 = vld [vmem:[#allocation13 + $0x1d0] ss:$12 sps:$4 sm:$0xff]  }
 0x3bf   :  { %3747 = vmatmul.mubr.bf16.vlgmr.msra.gmra.mrb[4].mxu1 %v12471_v23 }
 0x3c0   :  { %3756 = vmatpush1.bf16.msra.mxu1 %v11317_v22  ;;  %v11391_v22 = vld [vmem:[#allocation13 + $0x2c0] ss:$12 sps:$4 sm:$0xff]  }
 0x3c1   :  { %3757 = vmatprep.subr.bf16.mxu1 %v11322_v4  ;;  %v11392_v4 = vld [vmem:[#allocation13 + $0x200] ss:$12 sps:$4 sm:$0xff]  }
 0x3c4   :  { %3758 = vmatpush1.bf16.msra.mxu1 %v11320_v24  ;;  %v11394_v24 = vld [vmem:[#allocation13 + $0x218] ss:$12 sps:$4 sm:$0xff]  }
 0x3c5   :  { %3759 = vmatprep.subr.bf16.mxu1 %v11325_v25  ;;  %v11395_v25 = vld [vmem:[#allocation13 + $0x2f0] ss:$12 sps:$4 sm:$0xff]  }
 0x3c8   :  { %3760 = vmatpush1.bf16.msra.mxu1 %v11323_v26 }
 0x3c9   :  { %3761 = vmatprep.subr.bf16.mxu1 %v11328_v32 }
 0x3cc   :  { %3762 = vmatpush1.bf16.msra.mxu1 %v11326_v29  ;;  %v11396_v29 = vld [vmem:[#allocation13 + $0x230] ss:$12 sps:$4 sm:$0xff]  }
 0x3cd   :  { %3763 = vmatprep.subr.bf16.mxu1 %v11331_v30 }
 0x3d0   :  { %3764 = vmatpush1.bf16.msra.mxu1 %v11329_v31 }
 0x3d1   :  { %3765 = vmatprep.subr.bf16.mxu1 %v11334_v9  ;;  %v11397_v9 = vld [vmem:[#allocation19] sm:$0xff]  }
 0x3d4   :  { %3766 = vmatpush1.bf16.msra.mxu1 %v11332_v33  ;;  %v4027_v33 = vld [vmem:[%s13157_s30] sm:$0xff] }
 0x3d5   :  { %3767 = vmatprep.subr.bf16.mxu1 %v11337_v34  ;;  %v4028_v34 = vld [vmem:[%s13157_s30 + $0x8] sm:$0xff] }
 0x3d8   :  { %3768 = vmatpush1.bf16.msra.mxu1 %v11335_v36 }
 0x3d9   :  { %3769 = vmatprep.subr.bf16.mxu1 %v11340_v37  ;;  %v12489_v37 = vpack.c.bf16 %v4028_v34, %v4027_v33 }
 0x3dc   :  { %3770 = vmatpush1.bf16.msra.mxu1 %v11338_v39  ;;  %v11398_v39 = vld [vmem:[#allocation19 + $0x8] sm:$0xff]  }
 0x3dd   :  { %3771 = vmatprep.subr.bf16.mxu1 %v11343_v40  ;;  %v4029_v40 = vld [vmem:[%s13157_s30 + $0x10] sm:$0xff] }
 0x3e0   :  { %3772 = vmatpush1.bf16.msra.mxu1 %v11341_v41  ;;  %v4030_v41 = vld [vmem:[%s13157_s30 + $0x18] sm:$0xff] }
 0x3e1   :  { %3773 = vmatprep.subr.bf16.mxu1 %v11348_v42  ;;  %v4031_v42 = vld [vmem:[%s13157_s30 + $0x20] sm:$0xff] }
 0x3e4   :  { %3774 = vmatpush1.bf16.msra.mxu1 %v11346_v16  ;;  %v4032_v16 = vld [vmem:[%s13157_s30 + $0x28] sm:$0xff] }
 0x3e5   :  { %3775 = vmatprep.subr.bf16.mxu1 %v11353_v28  ;;  %v12498_v28 = vpack.c.bf16 %v4030_v41, %v4029_v40 }
 0x3e8   :  { %3776 = vmatpush1.bf16.msra.mxu1 %v11351_v44  ;;  %v12500_v44 = vpack.c.bf16 %v4032_v16, %v4031_v42 }
 0x3e9   :  { %3777 = vmatprep.subr.bf16.mxu1 %v11358_v20  ;;  %v4034_v20 = vld [vmem:[%s13157_s30 + $0x38] sm:$0xff] }
 0x3ec   :  { %3778 = vmatpush1.bf16.msra.mxu1 %v11356_v45  ;;  %v4035_v45 = vld [vmem:[%s13157_s30 + $0x40] sm:$0xff] }
 0x3ed   :  { %3779 = vmatprep.subr.bf16.mxu1 %v11363_v46  ;;  %v4036_v46 = vld [vmem:[%s13157_s30 + $0x48] sm:$0xff] }
 0x3f0   :  { %3780 = vmatpush1.bf16.msra.mxu1 %v11361_v47 }
 0x3f1   :  { %3781 = vmatprep.subr.bf16.mxu1 %v11368_v48  ;;  %v12512_v48 = vpack.c.bf16 %v4036_v46, %v4035_v45 }
 0x3f4   :  { %3782 = vmatpush1.bf16.msra.mxu1 %v11366_v50  ;;  %v4037_v50 = vld [vmem:[%s13157_s30 + $0x50] sm:$0xff] }
 0x3f5   :  { %3783 = vmatprep.subr.bf16.mxu1 %v11373_v60  ;;  %v4038_v60 = vld [vmem:[%s13157_s30 + $0x58] sm:$0xff] }
 0x3f8   :  { %3784 = vmatpush1.bf16.msra.mxu1 %v11371_v51  ;;  %v4039_v51 = vld [vmem:[%s13157_s30 + $0x60] sm:$0xff] }
 0x3f9   :  { %3785 = vmatprep.subr.bf16.mxu1 %v11378_v52  ;;  %v4040_v52 = vld [vmem:[%s13157_s30 + $0x68] sm:$0xff] }
 0x3fc   :  { %3786 = vmatpush1.bf16.msra.mxu1 %v11376_v53  ;;  %v12522_v53 = vpack.c.bf16 %v4038_v60, %v4037_v50 }
 0x3fd   :  { %10110 = vmatprep.subr.bf16.mxu1 %v11381_v54  ;;  %v12524_v54 = vpack.c.bf16 %v4040_v52, %v4039_v51 }
 0x436   :  { %v2677_v63 = vpop.f32.mrb[4].mxu0 }
 0x437   :  { %v10517_v0 = vadd.f32 %v2677_v63, %v864_v61  ;;  %v2679_v1 = vpop.f32.mrb[5].mxu0  ;;  %v4041_v61 = vld [vmem:[%s13157_s30 + $0x70] sm:$0xff] }
 0x438   :  { %v10518_v2 = vadd.f32 %v2679_v1, %v868_v62  ;;  %v2681_v5 = vpop.f32.mrb[6].mxu0  ;;  %v4042_v62 = vld [vmem:[%s13157_s30 + $0x78] sm:$0xff] }
 0x439   :  { %v2688_v6 = vmax.f32 %v10517_v0, 0.0  ;;  %v2682_v7 = vpop.f32.mrb[7].mxu0  ;;  %v12532_v63 = vpack.c.bf16 %v4042_v62, %v4041_v61  ;;  %v13130_v0 = vmov 0.0  }
 0x43a   :  { %v2689_v8 = vmax.f32 %v10518_v2, 0.0 }
 0x43b   :  { %v2694_v12 = vpack.c.bf16 %v2688_v6, %v2688_v6 }
 0x43c   :  { %v2695_v10 = vpack.c.bf16 %v2689_v8, %v2689_v8 }
 0x43e   :  { %3787 = vmatprep.mubr.bf16.mxu1 %v2695_v10  ;;  %3908 = vmatprep.mubr.bf16.mxu0 %v2695_v10 }
 0x43f   :  { %3788 = vmatmul.mubr.bf16.vlgmr.msra.gmra.mrb[4].mxu1 %v2694_v12  ;;  %3909 = vmatmul.mubr.bf16.vlgmr.msra.gmra.mrb[12].mxu0 %v2694_v12 }
 0x440   :  { %10111 = vmatpush3.bf16.msra.mxu1 %v11382_v11  ;;  %3868 = vmatprep.mubr.bf16.mxu1 %v12462_v27  ;;  %v11393_v27 = vld [vmem:[#allocation13 + $0x2d8] ss:$12 sps:$4 sm:$0xff]  }
 0x441   :  { %10112 = vmatprep.subr.bf16.mxu1 %v11383_v13  ;;  %v2888_v13 = vld [vmem:[#allocation14] sm:$0x7] }
 0x444   :  { %10113 = vmatpush3.bf16.msra.mxu1 %v11384_v58  ;;  %v3919_v58 = vand.u32 127, %v522_v38 }
 0x445   :  { %10114 = vmatprep.subr.bf16.mxu1 %v11385_v14  ;;  %v2901_v14 = vrot.slane %v2888_v13, %v12466_v3 }
 0x448   :  { %10115 = vmatpush3.bf16.msra.mxu1 %v11386_v15  ;;  %v2893_v15 = vrot.slane %v2888_v13, %v12444_v56 }
 0x449   :  { %10116 = vmatprep.subr.bf16.mxu1 %v11387_v17  ;;  %v2897_v17 = vrot.slane %v2888_v13, %v12449_v35 }
 0x44c   :  { %10117 = vmatpush3.bf16.msra.mxu1 %v11388_v18  ;;  %v3921_v18 = vadd.s32 256, %v3919_v58 }
 0x44d   :  { %10118 = vmatprep.subr.bf16.mxu1 %v11389_v19 }
 0x44e   :  { %vm3924_vm2 = vcmp.lt.s32.totalorder %v3921_v18, 300 }
 0x450   :  { %10119 = vmatpush3.bf16.msra.mxu1 %v11390_v21 }
 0x451   :  { %10120 = vmatprep.subr.bf16.mxu1 %v11391_v22 }
 0x454   :  { %10121 = vmatpush3.bf16.msra.mxu1 %v11392_v4 }
 0x455   :  { %10122 = vmatprep.subr.bf16.mxu1 %v11393_v27 }
 0x457   :  { %v10104_v26 = vpop.f32.mrb[8].mxu0 }
 0x458   :  { %v10105_v32 = vpop.f32.mrb[9].mxu0  ;;  %10123 = vmatpush3.bf16.msra.mxu1 %v11394_v24 }
 0x459   :  { %v12485_v30 = vadd.f32 %v10105_v32, %v10104_v26  ;;  %v10107_v31 = vpop.f32.mrb[10].mxu0  ;;  %10124 = vmatprep.subr.bf16.mxu1 %v11395_v25  ;;  %v12549_v32 = vsel %vm3924_vm2, 1.0, %v13130_v0 }
 0x45a   :  { %v10108_v36 = vpop.f32.mrb[11].mxu0 }
 0x45b   :  { %v3831_v21 = vadd.f32 %v12485_v30, %v2901_v14 }
 0x45c   :  { %10125 = vmatpush3.bf16.msra.mxu1 %v11396_v29 }
 0x45d   :  { %10373 = vmatprep.subr.bf16.mxu1 %v11397_v9 }
 0x45f   :  { %3869 = vmatmul.mubr.bf16.vlgmr.msra.gmra.mrb[8].mxu1 %v12471_v23  ;;  %v4033_v23 = vld [vmem:[%s13157_s30 + $0x30] sm:$0xff] }
 0x460   :  { %10374 = vmatpush3.bf16.msra.mxu1 %v11397_v9  ;;  %10377 = vmatprep.mubr.msk.bf16.mxu1 %vm4075_vm0, %v12489_v37  ;;  %v12510_v47 = vpack.c.bf16 %v4034_v20, %v4033_v23  ;;  %v12557_v9 = vld [vmem:[#allocation20] ss:$0 sm:$0xff] }
 0x461   :  { %10375 = vmatprep.subr.bf16.mxu1 %v11398_v39 }
 0x464   :  { %10376 = vmatpush3.bf16.msra.mxu1 %v11398_v39 }
 0x465   :  { %10393 = vmatprep.subr.bf16.mxu1 %v13130_v0 }
 0x467   :  { %10378 = vmatmul.mubr.msk.bf16.vlgmr.msra.gmra.mrb[12].mxu1 %vm4075_vm0, %v12498_v28 }
 0x468   :  { %10381 = vmatprep.mubr.msk.bf16.mxu1 %vm4075_vm0, %v12500_v44 }
 0x46f   :  { %10382 = vmatmul.mubr.msk.bf16.gmra.mrb[16].mxu1 %vm4075_vm0, %v12510_v47 }
 0x470   :  { %10385 = vmatprep.mubr.msk.bf16.mxu1 %vm4075_vm0, %v12512_v48 }
 0x477   :  { %10386 = vmatmul.mubr.msk.bf16.gmra.mrb[20].mxu1 %vm4075_vm0, %v12522_v53 }
 0x478   :  { %10389 = vmatprep.mubr.msk.bf16.mxu1 %vm4075_vm0, %v12524_v54 }
 0x47f   :  { %10390 = vmatmul.mubr.msk.bf16.gmra.mrb[24].mxu1 %vm4075_vm0, %v12532_v63 }
 0x480   :  { %10409 = vmatprep.mubr.msk.bf16.mxu1 %vm12072_vm1, %v13130_v0 }
 0x512   :  { %v3789_v1 = vpop.f32.mrb[4].mxu1  ;;  %v10148_v2 = vpop.f32.mrb[12].mxu0 }
 0x513   :  { %v3791_v5 = vpop.f32.mrb[5].mxu1  ;;  %v10149_v6 = vpop.f32.mrb[13].mxu0  ;;  %v12544_v4 = vadd.f32 %v3789_v1, %v2893_v15 }
 0x514   :  { %v10150_v7 = vadd.f32 %v10149_v6, %v10148_v2  ;;  %v3793_v8 = vpop.f32.mrb[6].mxu1  ;;  %v10151_v10 = vpop.f32.mrb[14].mxu0  ;;  %v12546_v27 = vadd.f32 %v3791_v5, %v2897_v17 }
 0x515   :  { %v3794_v11 = vpop.f32.mrb[7].mxu1  ;;  %v10152_v12 = vpop.f32.mrb[15].mxu0  ;;  %v3935_v29 = vsel %vm3934_vm3, %v12544_v4, 0.0 }
 0x516   :  { %v3936_v30 = vsel %vm3934_vm3, %v12546_v27, 0.0 }
 0x517   :  { %v3937_v40 = vadd.f32 %v3936_v30, %v3935_v29 }
 0x532   :  { %v10126_v19 = vpop.f32.mrb[8].mxu1 }
 0x533   :  { %v10127_v22 = vpop.f32.mrb[9].mxu1 }
 0x534   :  { %v10128_v24 = vadd.f32 %v10127_v22, %v10126_v19  ;;  %v10129_v25 = vpop.f32.mrb[10].mxu1 }
 0x535   :  { %v10130_v38 = vpop.f32.mrb[11].mxu1 }
 0x536   :  { %v3871_v26 = vadd.f32 %v10128_v24, %v3831_v21 }
 0x538   :  { %v12555_v31 = vadd.f32 %v10150_v7, %v3871_v26 }
 0x53a   :  { %v10379_v33 = vpop.f32.mrb[12].mxu1  ;;  %v3933_v34 = vmul.f32 %v12549_v32, %v12555_v31 }
 0x53b   :  { %v4143_v36 = vadd.f32 %v10379_v33, %v12557_v9  ;;  %v4134_v39 = vpop.f32.mrb[13].mxu1 }
 0x53c   :  { %v4135_v41 = vadd.f32 %v12557_v9, %v4134_v39  ;;  %v10380_v42 = vpop.f32.mrb[14].mxu1  ;;  %v3938_v16 = vsel %vm3934_vm3, %v3933_v34, 0.0 }
 0x53d   :  { %v4146_v23 = vadd.f32 %v10380_v42, %v12557_v9  ;;  %v4137_v20 = vpop.f32.mrb[15].mxu1  ;;  %v3939_v45 = vadd.f32 %v3938_v16, %v3937_v40  ;;  %v4199_v50 = vmax.f32 %v4143_v36, 0.0 }
 0x53e   :  { %v4138_v46 = vadd.f32 %v12557_v9, %v4137_v20  ;;  %v4197_v51 = vmax.f32 %v4135_v41, 0.0 }
 0x53f   :  { %v4200_v60 = vmax.f32 %v4146_v23, 0.0  ;;  %3940 = vadd.xlane.f32.xlu0 %v3939_v45 }
 0x540   :  { %v4198_v52 = vmax.f32 %v4138_v46, 0.0 }
 0x541   :  { %v4214_v61 = vpack.c.bf16 %v4200_v60, %v4199_v50 }
 0x542   :  { %v4213_v62 = vpack.c.bf16 %v4198_v52, %v4197_v51  ;;  %v10383_v1 = vpop.f32.mrb[16].mxu1 }
 0x543   :  { %v4159_v2 = vadd.f32 %v10383_v1, %v12557_v9  ;;  %v4150_v5 = vpop.f32.mrb[17].mxu1 }
 0x544   :  { %v4151_v6 = vadd.f32 %v12557_v9, %v4150_v5  ;;  %v10384_v7 = vpop.f32.mrb[18].mxu1  ;;  %10394 = vmatpush3.bf16.msra.mxu1 %v4213_v62  ;;  %v4270_v62 = vld [vmem:[#allocation25 + $0x40] sm:$0xff] }
 0x545   :  { %v4162_v8 = vadd.f32 %v10384_v7, %v12557_v9  ;;  %v4153_v10 = vpop.f32.mrb[19].mxu1  ;;  %10395 = vmatprep.subr.bf16.mxu1 %v13130_v0  ;;  %v4203_v12 = vmax.f32 %v4159_v2, 0.0  ;;  %v4286_v7 = vld [vmem:[#allocation25 + $0xc0] sm:$0xff] }
 0x546   :  { %v4154_v11 = vadd.f32 %v12557_v9, %v4153_v10  ;;  %v4201_v58 = vmax.f32 %v4151_v6, 0.0  ;;  %v4278_v6 = vld [vmem:[#allocation25 + $0x80] sm:$0xff]  ;;  %v4263_v10 = vld [vmem:[#allocation25 + $0x8] sm:$0xff] }
 0x547   :  { %v4204_v13 = vmax.f32 %v4162_v8, 0.0 }
 0x548   :  { %v4202_v14 = vmax.f32 %v4154_v11, 0.0  ;;  %10396 = vmatpush3.bf16.msra.mxu1 %v4214_v61  ;;  %v4262_v61 = vld [vmem:[#allocation25] sm:$0xff]  ;;  %v4271_v11 = vld [vmem:[#allocation25 + $0x48] sm:$0xff] }
 0x549   :  { %v4216_v15 = vpack.c.bf16 %v4204_v13, %v4203_v12  ;;  %10397 = vmatprep.subr.bf16.mxu1 %v13130_v0  ;;  %v9963_v2 = vcombine.low %v4262_v61, %v4270_v62  ;;  %v9964_v5 = vcombine.high %v4262_v61, %v4270_v62  ;;  %v4294_v12 = vld [vmem:[#allocation25 + $0x100] sm:$0xff]  ;;  %v13128_v61 = vmov 0  }
 0x54a   :  { %v4215_v17 = vpack.c.bf16 %v4202_v14, %v4201_v58  ;;  %v10387_v18 = vpop.f32.mrb[20].mxu1  ;;  %v4302_v13 = vld [vmem:[#allocation25 + $0x140] sm:$0xff]  ;;  %v9979_v58 = vcombine.low %v4278_v6, %v4286_v7  ;;  %v9966_v14 = vcombine.high %v4263_v10, %v4271_v11  ;;  %4766 = vmatprep.mubr.bf16.mxu0 %v13128_v61 }
 0x54b   :  { %v4175_v19 = vadd.f32 %v10387_v18, %v12557_v9  ;;  %v4166_v21 = vpop.f32.mrb[21].mxu1  ;;  %4734 = vmatprep.subr.bf16.mxu0 %v9964_v5  ;;  %v4287_v18 = vld [vmem:[#allocation25 + $0xc8] sm:$0xff] }
 0x54c   :  { %v4167_v22 = vadd.f32 %v12557_v9, %v4166_v21  ;;  %v10388_v24 = vpop.f32.mrb[22].mxu1  ;;  %10398 = vmatpush3.bf16.msra.mxu1 %v4215_v17  ;;  %4735 = vmatpush1.bf16.msra.mxu0 %v9963_v2  ;;  %v9996_v17 = vcombine.high %v4294_v12, %v4302_v13  ;;  %v4318_v21 = vld [vmem:[#allocation25 + $0x1c0] sm:$0xff] }
 0x54d   :  { %v4178_v25 = vadd.f32 %v10388_v24, %v12557_v9  ;;  %v4169_v38 = vpop.f32.mrb[23].mxu1  ;;  %10399 = vmatprep.subr.bf16.mxu1 %v13130_v0  ;;  %v4207_v29 = vmax.f32 %v4175_v19, 0.0  ;;  %v4310_v19 = vld [vmem:[#allocation25 + $0x180] sm:$0xff]  ;;  %v9965_v24 = vcombine.low %v4263_v10, %v4271_v11 }
 0x54e   :  { %v4170_v26 = vadd.f32 %v12557_v9, %v4169_v38  ;;  %v4205_v33 = vmax.f32 %v4167_v22, 0.0  ;;  %v12586_v22 = vld [vmem:[%s13158_s28] sm:$0x1] }
 0x54f   :  { %v4208_v30 = vmax.f32 %v4178_v25, 0.0  ;;  %v9995_v25 = vcombine.low %v4294_v12, %v4302_v13  ;;  %v4280_v13 = vld [vmem:[#allocation25 + $0x90] sm:$0xff] }
 0x550   :  { %v4206_v34 = vmax.f32 %v4170_v26, 0.0  ;;  %10400 = vmatpush3.bf16.msra.mxu1 %v4216_v15  ;;  %v4279_v15 = vld [vmem:[#allocation25 + $0x88] sm:$0xff]  ;;  %v10012_v26 = vcombine.high %v4310_v19, %v4318_v21 }
 0x551   :  { %v4218_v36 = vpack.c.bf16 %v4208_v30, %v4207_v29  ;;  %10401 = vmatprep.subr.bf16.mxu1 %v13130_v0  ;;  %v9982_v38 = vcombine.high %v4279_v15, %v4287_v18  ;;  %v4295_v29 = vld [vmem:[#allocation25 + $0x108] sm:$0xff] }
 0x552   :  { %v4217_v39 = vpack.c.bf16 %v4206_v34, %v4205_v33  ;;  %v10391_v40 = vpop.f32.mrb[24].mxu1  ;;  %v4303_v30 = vld [vmem:[#allocation25 + $0x148] sm:$0xff]  ;;  %v9981_v33 = vcombine.low %v4279_v15, %v4287_v18  ;;  %v10011_v34 = vcombine.low %v4310_v19, %v4318_v21  ;;  %v4289_v15 = vld [vmem:[#allocation25 + $0xd8] sm:$0xff] }
 0x553   :  { %v4191_v41 = vadd.f32 %v10391_v40, %v12557_v9  ;;  %v4182_v42 = vpop.f32.mrb[25].mxu1  ;;  %v4319_v40 = vld [vmem:[#allocation25 + $0x1c8] sm:$0xff] }
 0x554   :  { %v4183_v16 = vadd.f32 %v12557_v9, %v4182_v42  ;;  %v10392_v23 = vpop.f32.mrb[26].mxu1  ;;  %10402 = vmatpush3.bf16.msra.mxu1 %v4217_v39  ;;  %v4311_v39 = vld [vmem:[#allocation25 + $0x188] sm:$0xff] }
 0x555   :  { %v4194_v20 = vadd.f32 %v10392_v23, %v12557_v9  ;;  %v4185_v45 = vpop.f32.mrb[27].mxu1  ;;  %10403 = vmatprep.subr.bf16.mxu1 %v13130_v0  ;;  %v4211_v50 = vmax.f32 %v4191_v41, 0.0  ;;  %v9997_v41 = vcombine.low %v4295_v29, %v4303_v30  ;;  %v10014_v42 = vcombine.high %v4311_v39, %v4319_v40  ;;  %v4264_v23 = vld [vmem:[#allocation25 + $0x10] sm:$0xff] }
 0x556   :  { %v4186_v46 = vadd.f32 %v12557_v9, %v4185_v45  ;;  %v4209_v51 = vmax.f32 %v4183_v16, 0.0  ;;  %v9980_v9 = vcombine.high %v4278_v6, %v4286_v7  ;;  %v10013_v16 = vcombine.low %v4311_v39, %v4319_v40  ;;  %v4265_v45 = vld [vmem:[#allocation25 + $0x18] sm:$0xff] }
 0x557   :  { %v4212_v60 = vmax.f32 %v4194_v20, 0.0  ;;  %v4272_v20 = vld [vmem:[#allocation25 + $0x50] sm:$0xff] }
 0x558   :  { %v4210_v52 = vmax.f32 %v4186_v46, 0.0  ;;  %10404 = vmatpush3.bf16.msra.mxu1 %v4218_v36  ;;  %4736 = vmatprep.subr.bf16.mxu0 %v9980_v9  ;;  %v9998_v36 = vcombine.high %v4295_v29, %v4303_v30  ;;  %v9968_v46 = vcombine.high %v4264_v23, %v4272_v20  ;;  %v4297_v29 = vld [vmem:[#allocation25 + $0x118] sm:$0xff] }
 0x559   :  { %v4220_v1 = vpack.c.bf16 %v4212_v60, %v4211_v50  ;;  %10405 = vmatprep.subr.bf16.mxu1 %v13130_v0  ;;  %4737 = vmatpush1.bf16.msra.mxu0 %v9979_v58  ;;  %v4273_v50 = vld [vmem:[#allocation25 + $0x58] sm:$0xff]  ;;  %v9967_v60 = vcombine.low %v4264_v23, %v4272_v20  ;;  %v4288_v58 = vld [vmem:[#allocation25 + $0xd0] sm:$0xff] }
 0x55a   :  { %v4219_v8 = vpack.c.bf16 %v4210_v52, %v4209_v51  ;;  %4738 = vmatprep.subr.bf16.mxu0 %v9996_v17  ;;  %v9969_v51 = vcombine.low %v4265_v45, %v4273_v50  ;;  %v9970_v52 = vcombine.high %v4265_v45, %v4273_v50  ;;  %v9984_v21 = vcombine.high %v4280_v13, %v4288_v58  ;;  %v4305_v30 = vld [vmem:[#allocation25 + $0x158] sm:$0xff] }
 0x55b   :  { %v10002_v40 = vcombine.high %v4297_v29, %v4305_v30  ;;  %v4321_v23 = vld [vmem:[#allocation25 + $0x1d8] sm:$0xff]  ;;  %v10001_v45 = vcombine.low %v4297_v29, %v4305_v30  ;;  %v4322_v29 = vld [vmem:[#allocation25 + $0x1e0] sm:$0xff]  ;;  %v4315_v30 = vld [vmem:[#allocation25 + $0x1a8] sm:$0xff] }
 0x55c   :  { %10406 = vmatpush3.bf16.msra.mxu1 %v4219_v8 }
 0x55d   :  { %10407 = vmatprep.subr.bf16.mxu1 %v13130_v0  ;;  %4739 = vmatpush1.bf16.msra.mxu0 %v9995_v25  ;;  %v4296_v25 = vld [vmem:[#allocation25 + $0x110] sm:$0xff] }
 0x55e   :  { %4740 = vmatprep.subr.bf16.mxu0 %v10012_v26  ;;  %v4304_v26 = vld [vmem:[#allocation25 + $0x150] sm:$0xff] }
 0x55f   :  { %v10000_v39 = vcombine.high %v4296_v25, %v4304_v26  ;;  %v9999_v20 = vcombine.low %v4296_v25, %v4304_v26  ;;  %v4314_v26 = vld [vmem:[#allocation25 + $0x1a0] sm:$0xff] }
 0x560   :  { %10408 = vmatpush3.bf16.msra.mxu1 %v4220_v1 }
 0x561   :  { %4775 = vmatprep.subr.bf16.mxu1 %v9966_v14  ;;  %4741 = vmatpush1.bf16.msra.mxu0 %v10011_v34  ;;  %v4281_v14 = vld [vmem:[#allocation25 + $0x98] sm:$0xff]  ;;  %v9983_v34 = vcombine.low %v4280_v13, %v4288_v58 }
 0x562   :  { %4816 = vmatprep.subr.bf16.mxu0 %v9968_v46 }
 0x563   :  { %10410 = vmatmul.mubr.bf16.vlgmr.msra.gmra.mrb[28].mxu1 %v12586_v22 }
 0x564   :  { %4776 = vmatpush1.bf16.msra.mxu1 %v9965_v24  ;;  %4807 = vmatprep.mubr.bf16.mxu1 %v13128_v61  ;;  %v9986_v24 = vcombine.high %v4281_v14, %v4289_v15 }
 0x565   :  { %4777 = vmatprep.subr.bf16.mxu1 %v9982_v38 }
 0x568   :  { %4778 = vmatpush1.bf16.msra.mxu1 %v9981_v33 }
 0x569   :  { %4779 = vmatprep.subr.bf16.mxu1 %v9998_v36  ;;  %v9985_v36 = vcombine.low %v4281_v14, %v4289_v15  ;;  %v4298_v14 = vld [vmem:[#allocation25 + $0x120] sm:$0xff] }
 0x56a   :  { %v4306_v15 = vld [vmem:[#allocation25 + $0x160] sm:$0xff] }
 0x56b   :  { %v10004_v25 = vcombine.high %v4298_v14, %v4306_v15 }
 0x56c   :  { %4780 = vmatpush1.bf16.msra.mxu1 %v9997_v41  ;;  %v4312_v41 = vld [vmem:[#allocation25 + $0x190] sm:$0xff] }
 0x56d   :  { %4781 = vmatprep.subr.bf16.mxu1 %v10014_v42  ;;  %v4320_v42 = vld [vmem:[#allocation25 + $0x1d0] sm:$0xff] }
 0x56e   :  { %v10016_v46 = vcombine.high %v4312_v41, %v4320_v42 }
 0x570   :  { %4782 = vmatpush1.bf16.msra.mxu1 %v10013_v16  ;;  %v4313_v16 = vld [vmem:[#allocation25 + $0x198] sm:$0xff] }
 0x571   :  { %4857 = vmatprep.subr.bf16.mxu1 %v9970_v52  ;;  %v10018_v50 = vcombine.high %v4313_v16, %v4321_v23  ;;  %v4267_v52 = vld [vmem:[#allocation25 + $0x28] sm:$0xff] }
 0x5cc   :  { %v3941_v62 = vpop.xlane.xlu0 %3940 }
 0x5cd   :  { %v3942_v1 = vmul.f32 0.0033333334, %v3941_v62  ;;  %v4275_v62 = vld [vmem:[#allocation25 + $0x68] sm:$0xff] }
 0x5cf   :  { %v12592_v2 = vsub.f32 %v12544_v4, %v3942_v1  ;;  %v12595_v5 = vsub.f32 %v12546_v27, %v3942_v1  ;;  %v3945_v6 = vsub.f32 %v12555_v31, %v3942_v1  ;;  %v10015_v1 = vcombine.low %v4312_v41, %v4320_v42  ;;  %v4268_v41 = vld [vmem:[#allocation25 + $0x30] sm:$0xff] }
 0x5d0   :  { %v4276_v42 = vld [vmem:[#allocation25 + $0x70] sm:$0xff] }
 0x5d1   :  { %v12599_v7 = vmul.f32 %v12549_v32, %v3945_v6  ;;  %v3949_v8 = vmul.f32 %v12592_v2, %v12592_v2  ;;  %v3950_v10 = vmul.f32 %v12595_v5, %v12595_v5  ;;  %v10017_v6 = vcombine.low %v4313_v16, %v4321_v23  ;;  %v4269_v16 = vld [vmem:[#allocation25 + $0x38] sm:$0xff] }
 0x5d2   :  { %v4277_v23 = vld [vmem:[#allocation25 + $0x78] sm:$0xff] }
 0x5d3   :  { %v3951_v11 = vmul.f32 %v12599_v7, %v12599_v7  ;;  %v3952_v4 = vsel %vm3934_vm3, %v3949_v8, 0.0  ;;  %v3953_v12 = vsel %vm3934_vm3, %v3950_v10, 0.0  ;;  %v9974_v10 = vcombine.high %v4267_v52, %v4275_v62 }
 0x5d4   :  { %v3954_v27 = vadd.f32 %v3953_v12, %v3952_v4  ;;  %v4290_v4 = vld [vmem:[#allocation25 + $0xe0] sm:$0xff]  ;;  %v4283_v12 = vld [vmem:[#allocation25 + $0xa8] sm:$0xff] }
 0x5d5   :  { %v3955_v9 = vsel %vm3934_vm3, %v3951_v11, 0.0  ;;  %v4282_v11 = vld [vmem:[#allocation25 + $0xa0] sm:$0xff] }
 0x5d6   :  { %v3956_v31 = vadd.f32 %v3955_v9, %v3954_v27  ;;  %v4291_v27 = vld [vmem:[#allocation25 + $0xe8] sm:$0xff]  ;;  %v9988_v13 = vcombine.high %v4282_v11, %v4290_v4 }
 0x5d7   :  { %v9990_v58 = vcombine.high %v4283_v12, %v4291_v27 }
 0x5d8   :  { %3957 = vadd.xlane.f32.xlu0 %v3956_v31  ;;  %v9973_v31 = vcombine.low %v4267_v52, %v4275_v62  ;;  %v4285_v52 = vld [vmem:[#allocation25 + $0xb8] sm:$0xff] }
 0x5d9   :  { %v4293_v62 = vld [vmem:[#allocation25 + $0xf8] sm:$0xff] }
 0x636   :  { %v4255_v17 = vpop.f32.mrb[28].mxu1 }
 0x637   :  { %v12610_v18 = vpack.c.bf16 %v4255_v17, %v4255_v17  ;;  %v10411_v19 = vpop.f32.mrb[29].mxu1  ;;  %v4299_v17 = vld [vmem:[#allocation25 + $0x128] sm:$0xff] }
 0x638   :  { %v4258_v38 = vpop.f32.mrb[30].mxu1  ;;  %v4307_v19 = vld [vmem:[#allocation25 + $0x168] sm:$0xff] }
 0x639   :  { %v10412_v33 = vpop.f32.mrb[31].mxu1  ;;  %10027 = vmatmul.mubr.msk.bf16.vlgmr.msra.gmra.mrb[16].mxu0 %vm4730_vm4, %v12610_v18  ;;  %10028 = vmatmul.mubr.msk.bf16.vlgmr.msra.gmra.mrb[32].mxu1 %vm4730_vm4, %v12610_v18  ;;  %v10006_v38 = vcombine.high %v4299_v17, %v4307_v19 }
 0x63a   :  { %4817 = vmatpush1.bf16.msra.mxu0 %v9967_v60  ;;  %4858 = vmatpush1.bf16.msra.mxu1 %v9969_v51  ;;  %v4266_v60 = vld [vmem:[#allocation25 + $0x20] sm:$0xff]  ;;  %v4323_v33 = vld [vmem:[#allocation25 + $0x1e8] sm:$0xff] }
 0x63b   :  { %4818 = vmatprep.subr.bf16.mxu0 %v9984_v21  ;;  %4859 = vmatprep.subr.bf16.mxu1 %v9986_v24  ;;  %v4274_v51 = vld [vmem:[#allocation25 + $0x60] sm:$0xff]  ;;  %v9987_v21 = vcombine.low %v4282_v11, %v4290_v4  ;;  %v9989_v24 = vcombine.low %v4283_v12, %v4291_v27  ;;  %v4300_v11 = vld [vmem:[#allocation25 + $0x130] sm:$0xff]  ;;  %v4301_v12 = vld [vmem:[#allocation25 + $0x138] sm:$0xff] }
 0x63c   :  { %4848 = vmatprep.mubr.bf16.mxu0 %v13128_v61  ;;  %4889 = vmatprep.mubr.bf16.mxu1 %v13128_v61  ;;  %v9972_v8 = vcombine.high %v4266_v60, %v4274_v51  ;;  %v9971_v9 = vcombine.low %v4266_v60, %v4274_v51  ;;  %v4284_v60 = vld [vmem:[#allocation25 + $0xb0] sm:$0xff]  ;;  %v4309_v27 = vld [vmem:[#allocation25 + $0x178] sm:$0xff] }
 0x63d   :  { %v4292_v51 = vld [vmem:[#allocation25 + $0xf0] sm:$0xff] }
 0x63e   :  { %4819 = vmatpush1.bf16.msra.mxu0 %v9983_v34  ;;  %4860 = vmatpush1.bf16.msra.mxu1 %v9985_v36  ;;  %v10003_v34 = vcombine.low %v4298_v14, %v4306_v15  ;;  %v10005_v36 = vcombine.low %v4299_v17, %v4307_v19  ;;  %v4308_v4 = vld [vmem:[#allocation25 + $0x170] sm:$0xff]  ;;  %v4317_v17 = vld [vmem:[#allocation25 + $0x1b8] sm:$0xff] }
 0x63f   :  { %4820 = vmatprep.subr.bf16.mxu0 %v10000_v39  ;;  %4861 = vmatprep.subr.bf16.mxu1 %v10002_v40  ;;  %v10020_v39 = vcombine.high %v4314_v26, %v4322_v29  ;;  %v10022_v40 = vcombine.high %v4315_v30, %v4323_v33  ;;  %v4316_v14 = vld [vmem:[#allocation25 + $0x1b0] sm:$0xff]  ;;  %v4325_v19 = vld [vmem:[#allocation25 + $0x1f8] sm:$0xff] }
 0x640   :  { %v4324_v15 = vld [vmem:[#allocation25 + $0x1f0] sm:$0xff] }
 0x642   :  { %4821 = vmatpush1.bf16.msra.mxu0 %v9999_v20  ;;  %4862 = vmatpush1.bf16.msra.mxu1 %v10001_v45  ;;  %v10019_v20 = vcombine.low %v4314_v26, %v4322_v29  ;;  %v10021_v45 = vcombine.low %v4315_v30, %v4323_v33  ;;  %v10023_v26 = vcombine.low %v4316_v14, %v4324_v15  ;;  %v11399_v30 = vld [vmem:[#allocation22] sm:$0xff]  }
 0x643   :  { %4822 = vmatprep.subr.bf16.mxu0 %v10016_v46  ;;  %4863 = vmatprep.subr.bf16.mxu1 %v10018_v50  ;;  %v9976_v46 = vcombine.high %v4268_v41, %v4276_v42  ;;  %v9978_v50 = vcombine.high %v4269_v16, %v4277_v23  ;;  %v10025_v29 = vcombine.low %v4317_v17, %v4325_v19 }
 0x646   :  { %4823 = vmatpush1.bf16.msra.mxu0 %v10015_v1  ;;  %4864 = vmatpush1.bf16.msra.mxu1 %v10017_v6  ;;  %v9975_v1 = vcombine.low %v4268_v41, %v4276_v42  ;;  %v9977_v6 = vcombine.low %v4269_v16, %v4277_v23  ;;  %v3917_v41 = vld [vmem:[#allocation17] sm:$0x7] }
 0x647   :  { %4898 = vmatprep.subr.bf16.mxu0 %v9972_v8  ;;  %4939 = vmatprep.subr.bf16.mxu1 %v9974_v10  ;;  %v9992_v8 = vcombine.high %v4284_v60, %v4292_v51  ;;  %v9994_v10 = vcombine.high %v4285_v52, %v4293_v62  ;;  %v3988_v23 = vrot.slane %v3917_v41, %v12444_v56 }
 0x649   :  { %10029 = vmatmul.mubr.msk.bf16.vlgmr.msra.gmra.mrb[20].mxu0 %vm4730_vm4, %v12610_v18  ;;  %10030 = vmatmul.mubr.msk.bf16.vlgmr.msra.gmra.mrb[36].mxu1 %vm4730_vm4, %v12610_v18 }
 0x64a   :  { %4899 = vmatpush1.bf16.msra.mxu0 %v9971_v9  ;;  %4940 = vmatpush1.bf16.msra.mxu1 %v9973_v31  ;;  %v9991_v9 = vcombine.low %v4284_v60, %v4292_v51  ;;  %v9993_v31 = vcombine.low %v4285_v52, %v4293_v62 }
 0x64b   :  { %4900 = vmatprep.subr.bf16.mxu0 %v9988_v13  ;;  %4941 = vmatprep.subr.bf16.mxu1 %v9990_v58  ;;  %v10008_v13 = vcombine.high %v4300_v11, %v4308_v4  ;;  %v10010_v58 = vcombine.high %v4301_v12, %v4309_v27 }
 0x64c   :  { %4930 = vmatprep.mubr.bf16.mxu0 %v13128_v61  ;;  %4971 = vmatprep.mubr.bf16.mxu1 %v13128_v61 }
 0x64e   :  { %4901 = vmatpush1.bf16.msra.mxu0 %v9987_v21  ;;  %4942 = vmatpush1.bf16.msra.mxu1 %v9989_v24  ;;  %v10007_v21 = vcombine.low %v4300_v11, %v4308_v4  ;;  %v10009_v24 = vcombine.low %v4301_v12, %v4309_v27  ;;  %v5271_v27 = vld [vmem:[#allocation28 + $0x40] sm:$0xff] }
 0x64f   :  { %4902 = vmatprep.subr.bf16.mxu0 %v10004_v25  ;;  %4943 = vmatprep.subr.bf16.mxu1 %v10006_v38  ;;  %v10024_v25 = vcombine.high %v4316_v14, %v4324_v15  ;;  %v10026_v38 = vcombine.high %v4317_v17, %v4325_v19  ;;  %v5291_v15 = vld [vmem:[#allocation28 + $0xe0] sm:$0xff] }
 0x652   :  { %4903 = vmatpush1.bf16.msra.mxu0 %v10003_v34  ;;  %4944 = vmatpush1.bf16.msra.mxu1 %v10005_v36  ;;  %v11400_v36 = vld [vmem:[#allocation22 + $0x8] sm:$0xff]  }
 0x653   :  { %4904 = vmatprep.subr.bf16.mxu0 %v10020_v39  ;;  %4945 = vmatprep.subr.bf16.mxu1 %v10022_v40  ;;  %v3916_v40 = vld [vmem:[#allocation16] sm:$0x7] }
 0x654   :  { %v3973_v42 = vrot.slane %v3916_v40, %v12449_v35 }
 0x656   :  { %4905 = vmatpush1.bf16.msra.mxu0 %v10019_v20  ;;  %4946 = vmatpush1.bf16.msra.mxu1 %v10021_v45  ;;  %v3992_v20 = vrot.slane %v3917_v41, %v12449_v35  ;;  %v3996_v45 = vrot.slane %v3917_v41, %v12466_v3 }
 0x657   :  { %4980 = vmatprep.subr.bf16.mxu0 %v9976_v46  ;;  %5021 = vmatprep.subr.bf16.mxu1 %v9978_v50 }
 0x659   :  { %10031 = vmatmul.mubr.msk.bf16.vlgmr.msra.gmra.mrb[24].mxu0 %vm4730_vm4, %v12610_v18  ;;  %10032 = vmatmul.mubr.msk.bf16.vlgmr.msra.gmra.mrb[40].mxu1 %vm4730_vm4, %v12610_v18 }
 0x65a   :  { %4981 = vmatpush1.bf16.msra.mxu0 %v9975_v1  ;;  %5022 = vmatpush1.bf16.msra.mxu1 %v9977_v6 }
 0x65b   :  { %4982 = vmatprep.subr.bf16.mxu0 %v9992_v8  ;;  %5023 = vmatprep.subr.bf16.mxu1 %v9994_v10 }
 0x65c   :  { %5012 = vmatprep.mubr.bf16.mxu0 %v13128_v61  ;;  %5053 = vmatprep.mubr.bf16.mxu1 %v13128_v61 }
 0x65e   :  { %4983 = vmatpush1.bf16.msra.mxu0 %v9991_v9  ;;  %5024 = vmatpush1.bf16.msra.mxu1 %v9993_v31  ;;  %v5275_v9 = vld [vmem:[#allocation28 + $0x60] sm:$0xff] }
 0x65f   :  { %4984 = vmatprep.subr.bf16.mxu0 %v10008_v13  ;;  %5025 = vmatprep.subr.bf16.mxu1 %v10010_v58  ;;  %v10055_v31 = vcombine.high %v5271_v27, %v5275_v9  ;;  %v5279_v13 = vld [vmem:[#allocation28 + $0x80] sm:$0xff] }
 0x662   :  { %4985 = vmatpush1.bf16.msra.mxu0 %v10007_v21  ;;  %5026 = vmatpush1.bf16.msra.mxu1 %v10009_v24  ;;  %v4326_v21 = vld [vmem:[#allocation26] sm:$0xff] }
 0x663   :  { %4986 = vmatprep.subr.bf16.mxu0 %v10024_v25  ;;  %5027 = vmatprep.subr.bf16.mxu1 %v10026_v38  ;;  %v4333_v24 = vrot.slane %v4326_v21, %v12444_v56  ;;  %v4341_v25 = vrot.slane %v4326_v21, %v12466_v3  ;;  %v4337_v38 = vrot.slane %v4326_v21, %v12449_v35 }
 0x665   :  { %v3958_v33 = vpop.xlane.xlu0 %3957 }
 0x666   :  { %4987 = vmatpush1.bf16.msra.mxu0 %v10023_v26  ;;  %5028 = vmatpush1.bf16.msra.mxu1 %v10025_v29  ;;  %v3959_v34 = vmul.f32 0.0033333334, %v3958_v33  ;;  %v4345_v26 = vrot.slane %v4326_v21, %v12452_v59 }
 0x667   :  { %10413 = vmatprep.subr.bf16.mxu0 %v11399_v30 }
 0x668   :  { %v3960_v39 = vadd.f32 1e-05, %v3959_v34 }
 0x669   :  { %10033 = vmatmul.mubr.msk.bf16.vlgmr.msra.gmra.mrb[28].mxu0 %vm4730_vm4, %v12610_v18  ;;  %10034 = vmatmul.mubr.msk.bf16.vlgmr.msra.gmra.mrb[44].mxu1 %vm4730_vm4, %v12610_v18  ;;  %v3969_v18 = vrot.slane %v3916_v40, %v12444_v56 }
 0x66a   :  { %11401 = vrsqrt.f32 %v3960_v39  ;;  %10414 = vmatpush3.bf16.msra.mxu0 %v11399_v30  ;;  %10417 = vmatprep.mubr.msk.bf16.mxu0 %vm4075_vm0, %v12489_v37  ;;  %v3977_v37 = vrot.slane %v3916_v40, %v12466_v3 }
 0x66b   :  { %10415 = vmatprep.subr.bf16.mxu0 %v11400_v36  ;;  %5532 = vmatprep.mubr.bf16.mxu1 %v13128_v61 }
 0x66e   :  { %10416 = vmatpush3.bf16.msra.mxu0 %v11400_v36 }
 0x66f   :  { %10433 = vmatprep.subr.bf16.mxu0 %v13130_v0 }
 0x671   :  { %10418 = vmatmul.mubr.msk.bf16.vlgmr.msra.gmra.mrb[32].mxu0 %vm4075_vm0, %v12498_v28 }
 0x672   :  { %10421 = vmatprep.mubr.msk.bf16.mxu0 %vm4075_vm0, %v12500_v44 }
 0x674   :  { %v11402_v16 = vpop.eup %11401 }
 0x675   :  { %v3962_v46 = vmul.f32 %v11402_v16, %v12592_v2  ;;  %v3963_v28 = vmul.f32 %v11402_v16, %v12595_v5  ;;  %v3964_v50 = vmul.f32 %v11402_v16, %v12599_v7 }
 0x677   :  { %v3981_v44 = vmul.f32 %v3969_v18, %v3962_v46  ;;  %v3982_v60 = vmul.f32 %v3973_v42, %v3963_v28  ;;  %v3983_v51 = vmul.f32 %v3977_v37, %v3964_v50  ;;  %v12691_v28 = vsub.s32 6, %v12392_v43 }
 0x678   :  { %v12694_v50 = vsub.s32 7, %v12392_v43 }
 0x679   :  { %v4000_v52 = vadd.f32 %v3988_v23, %v3981_v44  ;;  %v4001_v62 = vadd.f32 %v3992_v20, %v3982_v60  ;;  %v4002_v1 = vadd.f32 %v3996_v45, %v3983_v51  ;;  %10422 = vmatmul.mubr.msk.bf16.gmra.mrb[36].mxu0 %vm4075_vm0, %v12510_v47  ;;  %v5263_v47 = vld [vmem:[#allocation28] sm:$0xff]  ;;  %v4349_v44 = vrot.slane %v4326_v21, %v12475_v55 }
 0x67a   :  { %10425 = vmatprep.mubr.msk.bf16.mxu0 %vm4075_vm0, %v12512_v48  ;;  %v5267_v48 = vld [vmem:[#allocation28 + $0x20] sm:$0xff]  ;;  %v4357_v60 = vrot.slane %v4326_v21, %v12691_v28  ;;  %v4353_v51 = vrot.slane %v4326_v21, %v12478_v57 }
 0x67b   :  { %v12655_v6 = vmax.f32 %v4000_v52, 0.0  ;;  %v12657_v8 = vmax.f32 %v4001_v62, 0.0  ;;  %v12659_v2 = vmax.f32 %v4002_v1, 0.0  ;;  %v10046_v4 = vcombine.low %v5263_v47, %v5267_v48 }
 0x67c   :  { %v10047_v12 = vcombine.high %v5263_v47, %v5267_v48  ;;  %v4361_v52 = vrot.slane %v4326_v21, %v12694_v50 }
 0x67d   :  { %v4009_v5 = vcombine.low %v12655_v6, %v12657_v8  ;;  %v4023_v10 = vrot.slane %v12659_v2, %v12395_v49 }
 0x67e   :  { %5500 = vmatprep.subr.bf16.mxu1 %v10047_v12 }
 0x67f   :  { %v4016_v7 = vrot.slane %v4009_v5, %v12395_v49  ;;  %5501 = vmatpush1.bf16.msra.mxu1 %v10046_v4 }
 0x680   :  { %5502 = vmatprep.subr.bf16.mxu1 %v10055_v31 }
 0x681   :  { %v4024_v11 = vcombine.low %v4016_v7, %v4023_v10  ;;  %10426 = vmatmul.mubr.msk.bf16.gmra.mrb[40].mxu0 %vm4075_vm0, %v12522_v53  ;;  %v10054_v53 = vcombine.low %v5271_v27, %v5275_v9 }
 0x682   :  { %10429 = vmatprep.mubr.msk.bf16.mxu0 %vm4075_vm0, %v12524_v54  ;;  %v5283_v54 = vld [vmem:[#allocation28 + $0xa0] sm:$0xff] }
 0x683   :  { %4026 = vst [vmem:[#allocation40] sm:$0x3f] %v4024_v11  ;;  %v10063_v58 = vcombine.high %v5279_v13, %v5283_v54  ;;  %5503 = vmatpush1.bf16.msra.mxu1 %v10054_v53  ;;  %v10062_v14 = vcombine.low %v5279_v13, %v5283_v54  ;;  %v4327_v54 = vld [vmem:[#allocation26 + $0x8] sm:$0xff] }
 0x685   :  { %5504 = vmatprep.subr.bf16.mxu1 %v10063_v58  ;;  %v4365_v58 = vrot.slane %v4327_v54, %v12444_v56 }
 0x687   :  { %5505 = vmatpush1.bf16.msra.mxu1 %v10062_v14  ;;  %v4373_v14 = vrot.slane %v4327_v54, %v12466_v3 }
 0x689   :  { %10430 = vmatmul.mubr.msk.bf16.gmra.mrb[44].mxu0 %vm4075_vm0, %v12532_v63  ;;  %v5287_v63 = vld [vmem:[#allocation28 + $0xc0] sm:$0xff] }
 0x68a   :  { %10449 = vmatprep.mubr.msk.bf16.mxu0 %vm12072_vm1, %v13130_v0  ;;  %v10071_v17 = vcombine.high %v5287_v63, %v5291_v15  ;;  %v10070_v19 = vcombine.low %v5287_v63, %v5291_v15  ;;  %v4369_v63 = vrot.slane %v4327_v54, %v12449_v35  ;;  %v4377_v15 = vrot.slane %v4327_v54, %v12452_v59 }
 0x68c   :  { %5506 = vmatprep.subr.bf16.mxu1 %v10071_v17 }
 0x68d   :  { %5507 = vmatpush1.bf16.msra.mxu1 %v10070_v19 }
 0x70c   :  { %v4768_v29 = vpop.f32.mrb[16].mxu0  ;;  %v4809_v30 = vpop.f32.mrb[32].mxu1 }
 0x70d   :  { %v12678_v33 = vadd.f32 %v4768_v29, %v4333_v24  ;;  %v12680_v34 = vadd.f32 %v4809_v30, %v4341_v25  ;;  %v4770_v36 = vpop.f32.mrb[17].mxu0  ;;  %v4811_v39 = vpop.f32.mrb[33].mxu1 }
 0x70e   :  { %v12682_v40 = vadd.f32 %v4770_v36, %v4337_v38  ;;  %v12684_v41 = vadd.f32 %v4811_v39, %v4345_v26  ;;  %v4772_v18 = vpop.f32.mrb[18].mxu0  ;;  %v4813_v42 = vpop.f32.mrb[34].mxu1 }
 0x70f   :  { %v5062_v37 = vmax.f32 %v12678_v33, 0.0  ;;  %v5064_v16 = vmax.f32 %v12680_v34, 0.0  ;;  %v4773_v23 = vpop.f32.mrb[19].mxu0  ;;  %v4814_v20 = vpop.f32.mrb[35].mxu1 }
 0x710   :  { %v5063_v45 = vmax.f32 %v12682_v40, 0.0  ;;  %v5065_v46 = vmax.f32 %v12684_v41, 0.0 }
 0x71c   :  { %v4850_v62 = vpop.f32.mrb[20].mxu0  ;;  %v4891_v1 = vpop.f32.mrb[36].mxu1 }
 0x71d   :  { %v12700_v5 = vadd.f32 %v4850_v62, %v4349_v44  ;;  %v12702_v7 = vadd.f32 %v4891_v1, %v4357_v60  ;;  %v4852_v10 = vpop.f32.mrb[21].mxu0  ;;  %v4893_v11 = vpop.f32.mrb[37].mxu1  ;;  %v4381_v60 = vrot.slane %v4327_v54, %v12475_v55  ;;  %v4393_v62 = vrot.slane %v4327_v54, %v12694_v50 }
 0x71e   :  { %v12704_v47 = vadd.f32 %v4852_v10, %v4353_v51  ;;  %v12706_v43 = vadd.f32 %v4893_v11, %v4361_v52  ;;  %v4854_v48 = vpop.f32.mrb[22].mxu0  ;;  %v4895_v4 = vpop.f32.mrb[38].mxu1  ;;  %v4389_v51 = vrot.slane %v4327_v54, %v12691_v28  ;;  %v4385_v52 = vrot.slane %v4327_v54, %v12478_v57 }
 0x71f   :  { %v5066_v12 = vmax.f32 %v12700_v5, 0.0  ;;  %v5068_v27 = vmax.f32 %v12702_v7, 0.0  ;;  %v4855_v9 = vpop.f32.mrb[23].mxu0  ;;  %v4896_v31 = vpop.f32.mrb[39].mxu1 }
 0x720   :  { %v5067_v53 = vmax.f32 %v12704_v47, 0.0  ;;  %v5069_v13 = vmax.f32 %v12706_v43, 0.0 }
 0x72c   :  { %v4932_v17 = vpop.f32.mrb[24].mxu0  ;;  %v4973_v19 = vpop.f32.mrb[40].mxu1 }
 0x72d   :  { %v12716_v21 = vadd.f32 %v4932_v17, %v4365_v58  ;;  %v12718_v24 = vadd.f32 %v4973_v19, %v4373_v14  ;;  %v4934_v25 = vpop.f32.mrb[25].mxu0  ;;  %v4975_v38 = vpop.f32.mrb[41].mxu1 }
 0x72e   :  { %v12720_v26 = vadd.f32 %v4934_v25, %v4369_v63  ;;  %v12722_v29 = vadd.f32 %v4975_v38, %v4377_v15  ;;  %v4936_v30 = vpop.f32.mrb[26].mxu0  ;;  %v4977_v36 = vpop.f32.mrb[42].mxu1 }
 0x72f   :  { %v5070_v39 = vmax.f32 %v12716_v21, 0.0  ;;  %v4937_v42 = vpop.f32.mrb[27].mxu0  ;;  %v4978_v23 = vpop.f32.mrb[43].mxu1  ;;  %v10035_v30 = vld [vmem:[#allocation23] ss:$0 sm:$0xff] }
 0x730   :  { %v5071_v20 = vmax.f32 %v12720_v26, 0.0 }
 0x73c   :  { %v5014_v1 = vpop.f32.mrb[28].mxu0  ;;  %v5055_v10 = vpop.f32.mrb[44].mxu1 }
 0x73d   :  { %v12732_v11 = vadd.f32 %v5014_v1, %v4381_v60  ;;  %v12734_v48 = vadd.f32 %v5055_v10, %v4389_v51  ;;  %v5016_v4 = vpop.f32.mrb[29].mxu0  ;;  %v5057_v9 = vpop.f32.mrb[45].mxu1 }
 0x73e   :  { %v12736_v31 = vadd.f32 %v5016_v4, %v4385_v52  ;;  %v12738_v58 = vadd.f32 %v5057_v9, %v4393_v62  ;;  %v5018_v14 = vpop.f32.mrb[30].mxu0  ;;  %v5059_v63 = vpop.f32.mrb[46].mxu1 }
 0x73f   :  { %v5019_v19 = vpop.f32.mrb[31].mxu0  ;;  %v5060_v54 = vpop.f32.mrb[47].mxu1 }
 0x744   :  { %v10419_v36 = vpop.f32.mrb[32].mxu0 }
 0x745   :  { %v5144_v42 = vadd.f32 %v10419_v36, %v10035_v30  ;;  %v5135_v23 = vpop.f32.mrb[33].mxu0 }
 0x746   :  { %v5136_v60 = vadd.f32 %v10035_v30, %v5135_v23  ;;  %v10420_v51 = vpop.f32.mrb[34].mxu0 }
 0x747   :  { %v5147_v52 = vadd.f32 %v10420_v51, %v10035_v30  ;;  %v5138_v62 = vpop.f32.mrb[35].mxu0  ;;  %v5200_v10 = vmax.f32 %v5144_v42, 0.0 }
 0x748   :  { %v5139_v1 = vadd.f32 %v10035_v30, %v5138_v62  ;;  %v5198_v9 = vmax.f32 %v5136_v60, 0.0 }
 0x749   :  { %v5201_v4 = vmax.f32 %v5147_v52, 0.0 }
 0x74a   :  { %v5199_v14 = vmax.f32 %v5139_v1, 0.0 }
 0x74b   :  { %v5215_v63 = vpack.c.bf16 %v5201_v4, %v5200_v10 }
 0x74c   :  { %v5214_v19 = vpack.c.bf16 %v5199_v14, %v5198_v9  ;;  %v10423_v54 = vpop.f32.mrb[36].mxu0 }
 0x74d   :  { %v5160_v17 = vadd.f32 %v10423_v54, %v10035_v30  ;;  %v5151_v15 = vpop.f32.mrb[37].mxu0 }
 0x74e   :  { %v5152_v25 = vadd.f32 %v10035_v30, %v5151_v15  ;;  %v10424_v38 = vpop.f32.mrb[38].mxu0  ;;  %10434 = vmatpush3.bf16.msra.mxu0 %v5214_v19 }
 0x74f   :  { %v5163_v18 = vadd.f32 %v10424_v38, %v10035_v30  ;;  %v5154_v36 = vpop.f32.mrb[39].mxu0  ;;  %10435 = vmatprep.subr.bf16.mxu0 %v13130_v0  ;;  %v5204_v51 = vmax.f32 %v5160_v17, 0.0 }
 0x750   :  { %v5155_v23 = vadd.f32 %v10035_v30, %v5154_v36  ;;  %v5202_v62 = vmax.f32 %v5152_v25, 0.0 }
 0x751   :  { %v5205_v44 = vmax.f32 %v5163_v18, 0.0 }
 0x752   :  { %v5203_v42 = vmax.f32 %v5155_v23, 0.0  ;;  %10436 = vmatpush3.bf16.msra.mxu0 %v5215_v63 }
 0x753   :  { %v5217_v60 = vpack.c.bf16 %v5205_v44, %v5204_v51  ;;  %10437 = vmatprep.subr.bf16.mxu0 %v13130_v0 }
 0x754   :  { %v5216_v52 = vpack.c.bf16 %v5203_v42, %v5202_v62  ;;  %v10427_v1 = vpop.f32.mrb[40].mxu0 }
 0x755   :  { %v5176_v10 = vadd.f32 %v10427_v1, %v10035_v30  ;;  %v5167_v4 = vpop.f32.mrb[41].mxu0 }
 0x756   :  { %v5168_v15 = vadd.f32 %v10035_v30, %v5167_v4  ;;  %v10428_v9 = vpop.f32.mrb[42].mxu0  ;;  %10438 = vmatpush3.bf16.msra.mxu0 %v5216_v52 }
 0x757   :  { %v5179_v38 = vadd.f32 %v10428_v9, %v10035_v30  ;;  %v5170_v14 = vpop.f32.mrb[43].mxu0  ;;  %10439 = vmatprep.subr.bf16.mxu0 %v13130_v0  ;;  %v5208_v17 = vmax.f32 %v5176_v10, 0.0 }
 0x758   :  { %v5171_v19 = vadd.f32 %v10035_v30, %v5170_v14  ;;  %v5206_v25 = vmax.f32 %v5168_v15, 0.0 }
 0x759   :  { %v5209_v18 = vmax.f32 %v5179_v38, 0.0 }
 0x75a   :  { %v5207_v54 = vmax.f32 %v5171_v19, 0.0  ;;  %10440 = vmatpush3.bf16.msra.mxu0 %v5217_v60  ;;  %v5265_v19 = vld [vmem:[#allocation28 + $0x10] sm:$0xff] }
 0x75b   :  { %v5219_v44 = vpack.c.bf16 %v5209_v18, %v5208_v17  ;;  %10441 = vmatprep.subr.bf16.mxu0 %v13130_v0  ;;  %v5269_v17 = vld [vmem:[#allocation28 + $0x30] sm:$0xff] }
 0x75c   :  { %v5218_v63 = vpack.c.bf16 %v5207_v54, %v5206_v25  ;;  %v10431_v36 = vpop.f32.mrb[44].mxu0  ;;  %v10051_v18 = vcombine.high %v5265_v19, %v5269_v17  ;;  %v5273_v25 = vld [vmem:[#allocation28 + $0x50] sm:$0xff] }
 0x75d   :  { %v5192_v23 = vadd.f32 %v10431_v36, %v10035_v30  ;;  %v5183_v51 = vpop.f32.mrb[45].mxu0  ;;  %v5277_v54 = vld [vmem:[#allocation28 + $0x70] sm:$0xff] }
 0x75e   :  { %v5184_v62 = vadd.f32 %v10035_v30, %v5183_v51  ;;  %v10432_v42 = vpop.f32.mrb[46].mxu0  ;;  %10442 = vmatpush3.bf16.msra.mxu0 %v5218_v63  ;;  %v10050_v63 = vcombine.low %v5265_v19, %v5269_v17  ;;  %v5281_v36 = vld [vmem:[#allocation28 + $0x90] sm:$0xff] }
 0x75f   :  { %v5195_v52 = vadd.f32 %v10432_v42, %v10035_v30  ;;  %v5186_v1 = vpop.f32.mrb[47].mxu0  ;;  %10443 = vmatprep.subr.bf16.mxu0 %v13130_v0  ;;  %v5212_v10 = vmax.f32 %v5192_v23, 0.0  ;;  %v5285_v23 = vld [vmem:[#allocation28 + $0xb0] sm:$0xff] }
 0x760   :  { %v5187_v4 = vadd.f32 %v10035_v30, %v5186_v1  ;;  %v5210_v15 = vmax.f32 %v5184_v62, 0.0  ;;  %v10059_v30 = vcombine.high %v5273_v25, %v5277_v54  ;;  %v10067_v51 = vcombine.high %v5281_v36, %v5285_v23  ;;  %v5289_v62 = vld [vmem:[#allocation28 + $0xd0] sm:$0xff] }
 0x761   :  { %v5213_v9 = vmax.f32 %v5195_v52, 0.0  ;;  %v5293_v42 = vld [vmem:[#allocation28 + $0xf0] sm:$0xff]  ;;  %v10066_v52 = vcombine.low %v5281_v36, %v5285_v23 }
 0x762   :  { %v5211_v38 = vmax.f32 %v5187_v4, 0.0  ;;  %10444 = vmatpush3.bf16.msra.mxu0 %v5219_v44  ;;  %v10058_v44 = vcombine.low %v5273_v25, %v5277_v54  ;;  %v10075_v1 = vcombine.high %v5289_v62, %v5293_v42  ;;  %v10074_v4 = vcombine.low %v5289_v62, %v5293_v42  ;;  %v5280_v54 = vld [vmem:[#allocation28 + $0x88] sm:$0xff] }
 0x763   :  { %v5221_v60 = vpack.c.bf16 %v5213_v9, %v5212_v10  ;;  %10445 = vmatprep.subr.bf16.mxu0 %v13130_v0  ;;  %v5264_v10 = vld [vmem:[#allocation28 + $0x8] sm:$0xff] }
 0x764   :  { %v5220_v14 = vpack.c.bf16 %v5211_v38, %v5210_v15  ;;  %v5268_v9 = vld [vmem:[#allocation28 + $0x28] sm:$0xff] }
 0x765   :  { %v10049_v15 = vcombine.high %v5264_v10, %v5268_v9  ;;  %v5272_v38 = vld [vmem:[#allocation28 + $0x48] sm:$0xff] }
 0x766   :  { %10446 = vmatpush3.bf16.msra.mxu0 %v5220_v14 }
 0x767   :  { %10447 = vmatprep.subr.bf16.mxu0 %v13130_v0  ;;  %5541 = vmatprep.subr.bf16.mxu1 %v10049_v15  ;;  %v5278_v15 = vld [vmem:[#allocation28 + $0x78] sm:$0xff] }
 0x76a   :  { %10448 = vmatpush3.bf16.msra.mxu0 %v5221_v60  ;;  %v5276_v60 = vld [vmem:[#allocation28 + $0x68] sm:$0xff] }
 0x76b   :  { %5582 = vmatprep.subr.bf16.mxu0 %v10051_v18  ;;  %v10057_v18 = vcombine.high %v5272_v38, %v5276_v60  ;;  %v10056_v36 = vcombine.low %v5272_v38, %v5276_v60  ;;  %v5282_v60 = vld [vmem:[#allocation28 + $0x98] sm:$0xff] }
 0x76d   :  { %10450 = vmatmul.mubr.bf16.vlgmr.msra.gmra.mrb[48].mxu0 %v12586_v22  ;;  %v10048_v22 = vcombine.low %v5264_v10, %v5268_v9  ;;  %v5274_v9 = vld [vmem:[#allocation28 + $0x58] sm:$0xff] }
 0x76e   :  { %5583 = vmatpush1.bf16.msra.mxu0 %v10050_v63  ;;  %5614 = vmatprep.mubr.bf16.mxu0 %v13128_v61  ;;  %v5284_v63 = vld [vmem:[#allocation28 + $0xa8] sm:$0xff]  ;;  %v10061_v38 = vcombine.high %v5274_v9, %v5278_v15 }
 0x76f   :  { %5584 = vmatprep.subr.bf16.mxu0 %v10059_v30  ;;  %v10065_v23 = vcombine.high %v5280_v54, %v5284_v63  ;;  %v10064_v62 = vcombine.low %v5280_v54, %v5284_v63  ;;  %v5294_v54 = vld [vmem:[#allocation28 + $0xf8] sm:$0xff] }
 0x772   :  { %5585 = vmatpush1.bf16.msra.mxu0 %v10058_v44  ;;  %v5288_v44 = vld [vmem:[#allocation28 + $0xc8] sm:$0xff] }
 0x773   :  { %5586 = vmatprep.subr.bf16.mxu0 %v10067_v51  ;;  %v5292_v51 = vld [vmem:[#allocation28 + $0xe8] sm:$0xff] }
 0x774   :  { %v10073_v42 = vcombine.high %v5288_v44, %v5292_v51 }
 0x776   :  { %5587 = vmatpush1.bf16.msra.mxu0 %v10066_v52  ;;  %v5266_v52 = vld [vmem:[#allocation28 + $0x18] sm:$0xff] }
 0x777   :  { %5588 = vmatprep.subr.bf16.mxu0 %v10075_v1  ;;  %v5270_v1 = vld [vmem:[#allocation28 + $0x38] sm:$0xff] }
 0x778   :  { %v10053_v10 = vcombine.high %v5266_v52, %v5270_v1 }
 0x77a   :  { %5589 = vmatpush1.bf16.msra.mxu0 %v10074_v4  ;;  %v10072_v4 = vcombine.low %v5288_v44, %v5292_v51 }
 0x840   :  { %v5256_v14 = vpop.f32.mrb[48].mxu0 }
 0x841   :  { %v5262_v19 = vpack.c.bf16 %v5256_v14, %v5256_v14  ;;  %v10451_v17 = vpop.f32.mrb[49].mxu0  ;;  %v5286_v14 = vld [vmem:[#allocation28 + $0xb8] sm:$0xff] }
 0x842   :  { %v5259_v25 = vpop.f32.mrb[50].mxu0  ;;  %v10060_v17 = vcombine.low %v5274_v9, %v5278_v15  ;;  %v10068_v63 = vcombine.low %v5282_v60, %v5286_v14 }
 0x843   :  { %v10452_v30 = vpop.f32.mrb[51].mxu0  ;;  %10078 = vmatmul.mubr.msk.bf16.vlgmr.msra.gmra.mrb[48].mxu1 %vm4730_vm4, %v5262_v19  ;;  %10080 = vmatmul.mubr.msk.bf16.vlgmr.msra.gmra.mrb[52].mxu0 %vm4730_vm4, %v5262_v19  ;;  %v5290_v25 = vld [vmem:[#allocation28 + $0xd8] sm:$0xff] }
 0x844   :  { %5542 = vmatpush1.bf16.msra.mxu1 %v10048_v22  ;;  %5573 = vmatprep.mubr.bf16.mxu1 %v13128_v61  ;;  %v10052_v22 = vcombine.low %v5266_v52, %v5270_v1  ;;  %v10077_v30 = vcombine.high %v5290_v25, %v5294_v54 }
 0x845   :  { %5543 = vmatprep.subr.bf16.mxu1 %v10057_v18  ;;  %v10069_v18 = vcombine.high %v5282_v60, %v5286_v14 }
 0x848   :  { %5544 = vmatpush1.bf16.msra.mxu1 %v10056_v36  ;;  %v10076_v36 = vcombine.low %v5290_v25, %v5294_v54 }
 0x849   :  { %5545 = vmatprep.subr.bf16.mxu1 %v10065_v23 }
 0x84c   :  { %5546 = vmatpush1.bf16.msra.mxu1 %v10064_v62 }
 0x84d   :  { %5547 = vmatprep.subr.bf16.mxu1 %v10073_v42 }
 0x850   :  { %5548 = vmatpush1.bf16.msra.mxu1 %v10072_v4 }
 0x851   :  { %5623 = vmatprep.subr.bf16.mxu1 %v10053_v10 }
 0x853   :  { %10079 = vmatmul.mubr.msk.bf16.vlgmr.msra.gmra.mrb[52].mxu1 %vm4730_vm4, %v5262_v19 }
 0x854   :  { %5624 = vmatpush1.bf16.msra.mxu1 %v10052_v22  ;;  %5655 = vmatprep.mubr.bf16.mxu1 %v13128_v61 }
 0x855   :  { %5625 = vmatprep.subr.bf16.mxu1 %v10061_v38 }
 0x858   :  { %5626 = vmatpush1.bf16.msra.mxu1 %v10060_v17 }
 0x859   :  { %5627 = vmatprep.subr.bf16.mxu1 %v10069_v18 }
 0x85c   :  { %5628 = vmatpush1.bf16.msra.mxu1 %v10068_v63 }
 0x85d   :  { %5629 = vmatprep.subr.bf16.mxu1 %v10077_v30 }
 0x860   :  { %5630 = vmatpush1.bf16.msra.mxu1 %v10076_v36 }
 0x863   :  { %10081 = vmatmul.mubr.msk.bf16.vlgmr.msra.gmra.mrb[56].mxu1 %vm4730_vm4, %v5262_v19 }
 0x864   :  { %11855 = shalt.err (!%p11852_p8)  }
 0x865   :  { %s11856_s7 = scalar_lea.vmem %s511_s1, 3072  ;;  %p11861_p10 = scmp.lt.s32.totalorder %s511_s1, %s511_s1 }
 0x866   :  { %p11857_p9 = scmp.ne.s32.totalorder %s511_s1, %s11856_s7  ;;  %p11862_p11 = scmp.lt.s32.totalorder %s11856_s7, %s11856_s7 }
 0x868   :  { %p11863_p12 = por %p11862_p11, %p11861_p10 }
 0x86a   :  { %p11864_p13 = pnand %p11863_p12, %p11857_p9 }
 0x86c   :  { %11867 = shalt.err (!%p11864_p13)  }
 0x86d   :  { %513 = dma.hbm_to_vmem [thread:$0]  %s13159_s8, 3072, %s511_s1, [#allocation7 + $0x4]  ;;  %v5295_v23 = vld [vmem:[#allocation29] sm:$0xff] }
 0x86e   :  { %v5300_v19 = vrot.slane %v5295_v23, %v12444_v56  ;;  %v5316_v44 = vrot.slane %v5295_v23, %v12475_v55  ;;  %v5304_v51 = vrot.slane %v5295_v23, %v12449_v35  ;;  %v5320_v62 = vrot.slane %v5295_v23, %v12478_v57 }
 0x86f   :  { %v5308_v54 = vrot.slane %v5295_v23, %v12466_v3  ;;  %v5312_v63 = vrot.slane %v5295_v23, %v12452_v59 }
 0x916   :  { %v5534_v42 = vpop.f32.mrb[48].mxu1  ;;  %v5616_v52 = vpop.f32.mrb[52].mxu0 }
 0x917   :  { %v5535_v1 = vadd.f32 %v5534_v42, %v5300_v19  ;;  %v5617_v4 = vadd.f32 %v5616_v52, %v5316_v44  ;;  %v5536_v10 = vpop.f32.mrb[49].mxu1  ;;  %v5618_v9 = vpop.f32.mrb[53].mxu0 }
 0x918   :  { %v5537_v15 = vadd.f32 %v5536_v10, %v5304_v51  ;;  %v5619_v22 = vadd.f32 %v5618_v9, %v5320_v62  ;;  %v5538_v38 = vpop.f32.mrb[50].mxu1  ;;  %v5620_v60 = vpop.f32.mrb[54].mxu0 }
 0x919   :  { %v5539_v14 = vpop.f32.mrb[51].mxu1  ;;  %v5621_v17 = vpop.f32.mrb[55].mxu0 }
 0x91a   :  { %v5672_v18 = vcombine.low %v5535_v1, %v5537_v15  ;;  %v5689_v25 = vcombine.low %v5617_v4, %v5619_v22  ;;  %v5324_v1 = vrot.slane %v5295_v23, %v12691_v28  ;;  %v5328_v4 = vrot.slane %v5295_v23, %v12694_v50 }
 0x91c   :  { %v5680_v51 = vrot.slane %v5672_v18, %v12395_v49  ;;  %v5697_v14 = vrot.slane %v5689_v25, %v12395_v49 }
 0x926   :  { %v5575_v30 = vpop.f32.mrb[52].mxu1 }
 0x927   :  { %v5576_v36 = vadd.f32 %v5575_v30, %v5308_v54  ;;  %v5577_v61 = vpop.f32.mrb[53].mxu1 }
 0x928   :  { %v5578_v0 = vadd.f32 %v5577_v61, %v5312_v63  ;;  %v5579_v19 = vpop.f32.mrb[54].mxu1 }
 0x929   :  { %v5580_v44 = vpop.f32.mrb[55].mxu1 }
 0x92a   :  { %v5673_v42 = vcombine.low %v5576_v36, %v5578_v0 }
 0x92c   :  { %v5687_v62 = vrot.slane %v5673_v42, %v12395_v49 }
 0x92e   :  { %v5688_v52 = vcombine.low %v5680_v51, %v5687_v62 }
 0x930   :  { %5708 = vst [vmem:[#allocation43] sm:$0xff] %v5688_v52 }
 0x936   :  { %v5657_v10 = vpop.f32.mrb[56].mxu1 }
 0x937   :  { %v5658_v9 = vadd.f32 %v5657_v10, %v5324_v1  ;;  %v5659_v15 = vpop.f32.mrb[57].mxu1 }
 0x938   :  { %v5660_v22 = vadd.f32 %v5659_v15, %v5328_v4  ;;  %v5661_v38 = vpop.f32.mrb[58].mxu1 }
 0x939   :  { %v5662_v60 = vpop.f32.mrb[59].mxu1 }
 0x93a   :  { %v5690_v61 = vcombine.low %v5658_v9, %v5660_v22 }
 0x93c   :  { %v5704_v0 = vrot.slane %v5690_v61, %v12395_v49 }
 0x93e   :  { %v5705_v17 = vcombine.low %v5697_v14, %v5704_v0 }
 0x940   :  { %5709 = vst [vmem:[#allocation43 + $0x8] sm:$0xff] %v5705_v17 }
 0x941   :  { %11978 = dma.done.wait [#allocation7], 131072 }
 0x942   :  { %11979 = vsyncadd [#allocation7], 4294836224  ;;  %v12778_v18 = vpack.c.bf16 %v5063_v45, %v5063_v45  ;;  %v5731_v23 = vld [vmem:[#allocation2 + $0x8] sm:$0xff]  ;;  %v5733_v54 = vld [vmem:[#allocation2 + $0x18] sm:$0xff] }
 0x943   :  { %v5730_v63 = vld [vmem:[#allocation2] sm:$0xff]  ;;  %6796 = vmatprep.subr.bf16.mxu0 %v5731_v23  ;;  %7124 = vmatprep.subr.bf16.mxu1 %v5733_v54  ;;  %v5732_v25 = vld [vmem:[#allocation2 + $0x10] sm:$0xff]  ;;  %v5739_v30 = vld [vmem:[#allocation2 + $0x48] sm:$0xff] }
 0x944   :  { %6828 = vmatprep.mubr.bf16.mxu0 %v12778_v18  ;;  %7156 = vmatprep.mubr.bf16.mxu1 %v12778_v18  ;;  %v5741_v36 = vld [vmem:[#allocation2 + $0x58] sm:$0xff]  ;;  %v5738_v40 = vld [vmem:[#allocation2 + $0x40] sm:$0xff]  ;;  %v5740_v19 = vld [vmem:[#allocation2 + $0x50] sm:$0xff] }
 0x945   :  { %6797 = vmatpush1.bf16.msra.mxu0 %v5730_v63  ;;  %7125 = vmatpush1.bf16.msra.mxu1 %v5732_v25  ;;  %v5747_v45 = vld [vmem:[#allocation2 + $0x88] sm:$0xff]  ;;  %v5749_v44 = vld [vmem:[#allocation2 + $0x98] sm:$0xff]  ;;  %v5746_v42 = vld [vmem:[#allocation2 + $0x80] sm:$0xff] }
 0x946   :  { %6798 = vmatprep.subr.bf16.mxu0 %v5739_v30  ;;  %7126 = vmatprep.subr.bf16.mxu1 %v5741_v36  ;;  %v5748_v51 = vld [vmem:[#allocation2 + $0x90] sm:$0xff]  ;;  %v5755_v62 = vld [vmem:[#allocation2 + $0xc8] sm:$0xff]  ;;  %v5757_v52 = vld [vmem:[#allocation2 + $0xd8] sm:$0xff] }
 0x947   :  { %v5754_v1 = vld [vmem:[#allocation2 + $0xc0] sm:$0xff]  ;;  %v5756_v4 = vld [vmem:[#allocation2 + $0xd0] sm:$0xff]  ;;  %v5763_v10 = vld [vmem:[#allocation2 + $0x108] sm:$0xff] }
 0x948   :  { %v5765_v9 = vld [vmem:[#allocation2 + $0x118] sm:$0xff]  ;;  %v5762_v15 = vld [vmem:[#allocation2 + $0x100] sm:$0xff]  ;;  %v5764_v22 = vld [vmem:[#allocation2 + $0x110] sm:$0xff] }
 0x949   :  { %6799 = vmatpush1.bf16.msra.mxu0 %v5738_v40  ;;  %7127 = vmatpush1.bf16.msra.mxu1 %v5740_v19  ;;  %v5771_v38 = vld [vmem:[#allocation2 + $0x148] sm:$0xff]  ;;  %v5773_v60 = vld [vmem:[#allocation2 + $0x158] sm:$0xff]  ;;  %v5770_v61 = vld [vmem:[#allocation2 + $0x140] sm:$0xff] }
 0x94a   :  { %6800 = vmatprep.subr.bf16.mxu0 %v5747_v45  ;;  %7128 = vmatprep.subr.bf16.mxu1 %v5749_v44  ;;  %v5772_v14 = vld [vmem:[#allocation2 + $0x150] sm:$0xff]  ;;  %v5779_v0 = vld [vmem:[#allocation2 + $0x188] sm:$0xff]  ;;  %v5781_v17 = vld [vmem:[#allocation2 + $0x198] sm:$0xff] }
 0x94b   :  { %v5778_v23 = vld [vmem:[#allocation2 + $0x180] sm:$0xff]  ;;  %v5780_v54 = vld [vmem:[#allocation2 + $0x190] sm:$0xff]  ;;  %v5787_v63 = vld [vmem:[#allocation2 + $0x1c8] sm:$0xff] }
 0x94c   :  { %v5789_v25 = vld [vmem:[#allocation2 + $0x1d8] sm:$0xff]  ;;  %v5786_v30 = vld [vmem:[#allocation2 + $0x1c0] sm:$0xff]  ;;  %v5788_v36 = vld [vmem:[#allocation2 + $0x1d0] sm:$0xff] }
 0x94d   :  { %6801 = vmatpush1.bf16.msra.mxu0 %v5746_v42  ;;  %7129 = vmatpush1.bf16.msra.mxu1 %v5748_v51  ;;  %v5795_v40 = vld [vmem:[#allocation2 + $0x208] sm:$0xff]  ;;  %v5797_v19 = vld [vmem:[#allocation2 + $0x218] sm:$0xff]  ;;  %v5794_v45 = vld [vmem:[#allocation2 + $0x200] sm:$0xff] }
 0x94e   :  { %6802 = vmatprep.subr.bf16.mxu0 %v5755_v62  ;;  %7130 = vmatprep.subr.bf16.mxu1 %v5757_v52  ;;  %v5796_v44 = vld [vmem:[#allocation2 + $0x210] sm:$0xff]  ;;  %v5803_v42 = vld [vmem:[#allocation2 + $0x248] sm:$0xff]  ;;  %v5805_v51 = vld [vmem:[#allocation2 + $0x258] sm:$0xff] }
 0x94f   :  { %v5802_v62 = vld [vmem:[#allocation2 + $0x240] sm:$0xff]  ;;  %v5804_v52 = vld [vmem:[#allocation2 + $0x250] sm:$0xff] }
 0x950   :  { %v5866_v33 = vld [vmem:[#allocation2 + $0x440] sm:$0xff] }
 0x951   :  { %6803 = vmatpush1.bf16.msra.mxu0 %v5754_v1  ;;  %7131 = vmatpush1.bf16.msra.mxu1 %v5756_v4  ;;  %v5811_v1 = vld [vmem:[#allocation2 + $0x288] sm:$0xff]  ;;  %v5813_v4 = vld [vmem:[#allocation2 + $0x298] sm:$0xff]  ;;  %v5874_v41 = vld [vmem:[#allocation2 + $0x480] sm:$0xff] }
 0x952   :  { %6804 = vmatprep.subr.bf16.mxu0 %v5763_v10  ;;  %7132 = vmatprep.subr.bf16.mxu1 %v5765_v9  ;;  %v5810_v10 = vld [vmem:[#allocation2 + $0x280] sm:$0xff]  ;;  %v5812_v9 = vld [vmem:[#allocation2 + $0x290] sm:$0xff] }
 0x953   :  { %v5994_v34 = vld [vmem:[#allocation2 + $0x840] sm:$0xff] }
 0x954   :  { %v6002_v47 = vld [vmem:[#allocation2 + $0x880] sm:$0xff] }
 0x955   :  { %6805 = vmatpush1.bf16.msra.mxu0 %v5762_v15  ;;  %7133 = vmatpush1.bf16.msra.mxu1 %v5764_v22  ;;  %v5819_v15 = vld [vmem:[#allocation2 + $0x2c8] sm:$0xff]  ;;  %v5821_v22 = vld [vmem:[#allocation2 + $0x2d8] sm:$0xff]  ;;  %v6122_v5 = vld [vmem:[#allocation2 + $0xc40] sm:$0xff] }
 0x956   :  { %6806 = vmatprep.subr.bf16.mxu0 %v5771_v38  ;;  %7134 = vmatprep.subr.bf16.mxu1 %v5773_v60  ;;  %v5818_v38 = vld [vmem:[#allocation2 + $0x2c0] sm:$0xff]  ;;  %v5820_v60 = vld [vmem:[#allocation2 + $0x2d0] sm:$0xff] }
 0x957   :  { %v6130_v43 = vld [vmem:[#allocation2 + $0xc80] sm:$0xff] }
 0x958   :  { %v6250_v7 = vld [vmem:[#allocation2 + $0x1040] sm:$0xff] }
 0x959   :  { %6807 = vmatpush1.bf16.msra.mxu0 %v5770_v61  ;;  %7135 = vmatpush1.bf16.msra.mxu1 %v5772_v14  ;;  %v5827_v61 = vld [vmem:[#allocation2 + $0x308] sm:$0xff]  ;;  %v5829_v14 = vld [vmem:[#allocation2 + $0x318] sm:$0xff]  ;;  %v6258_v26 = vld [vmem:[#allocation2 + $0x1080] sm:$0xff] }
 0x95a   :  { %6808 = vmatprep.subr.bf16.mxu0 %v5779_v0  ;;  %7136 = vmatprep.subr.bf16.mxu1 %v5781_v17  ;;  %v5826_v0 = vld [vmem:[#allocation2 + $0x300] sm:$0xff]  ;;  %v5828_v17 = vld [vmem:[#allocation2 + $0x310] sm:$0xff] }
 0x95b   :  { %v6378_v21 = vld [vmem:[#allocation2 + $0x1440] sm:$0xff] }
 0x95d   :  { %6809 = vmatpush1.bf16.msra.mxu0 %v5778_v23  ;;  %7137 = vmatpush1.bf16.msra.mxu1 %v5780_v54  ;;  %v5835_v23 = vld [vmem:[#allocation2 + $0x348] sm:$0xff]  ;;  %v5837_v54 = vld [vmem:[#allocation2 + $0x358] sm:$0xff] }
 0x95e   :  { %6810 = vmatprep.subr.bf16.mxu0 %v5787_v63  ;;  %7138 = vmatprep.subr.bf16.mxu1 %v5789_v25  ;;  %v5834_v63 = vld [vmem:[#allocation2 + $0x340] sm:$0xff]  ;;  %v5836_v25 = vld [vmem:[#allocation2 + $0x350] sm:$0xff] }
 0x961   :  { %6811 = vmatpush1.bf16.msra.mxu0 %v5786_v30  ;;  %7139 = vmatpush1.bf16.msra.mxu1 %v5788_v36  ;;  %v5843_v30 = vld [vmem:[#allocation2 + $0x388] sm:$0xff]  ;;  %v5845_v36 = vld [vmem:[#allocation2 + $0x398] sm:$0xff] }
 0x962   :  { %6812 = vmatprep.subr.bf16.mxu0 %v5795_v40  ;;  %7140 = vmatprep.subr.bf16.mxu1 %v5797_v19  ;;  %v5842_v40 = vld [vmem:[#allocation2 + $0x380] sm:$0xff]  ;;  %v5844_v19 = vld [vmem:[#allocation2 + $0x390] sm:$0xff] }
 0x965   :  { %6813 = vmatpush1.bf16.msra.mxu0 %v5794_v45  ;;  %7141 = vmatpush1.bf16.msra.mxu1 %v5796_v44  ;;  %v5851_v45 = vld [vmem:[#allocation2 + $0x3c8] sm:$0xff]  ;;  %v5853_v44 = vld [vmem:[#allocation2 + $0x3d8] sm:$0xff] }
 0x966   :  { %6814 = vmatprep.subr.bf16.mxu0 %v5803_v42  ;;  %7142 = vmatprep.subr.bf16.mxu1 %v5805_v51  ;;  %v5850_v42 = vld [vmem:[#allocation2 + $0x3c0] sm:$0xff]  ;;  %v5852_v51 = vld [vmem:[#allocation2 + $0x3d0] sm:$0xff] }
 0x969   :  { %6815 = vmatpush1.bf16.msra.mxu0 %v5802_v62  ;;  %7143 = vmatpush1.bf16.msra.mxu1 %v5804_v52  ;;  %v5859_v62 = vld [vmem:[#allocation2 + $0x408] sm:$0xff]  ;;  %v5861_v52 = vld [vmem:[#allocation2 + $0x418] sm:$0xff] }
 0x96a   :  { %6816 = vmatprep.subr.bf16.mxu0 %v5811_v1  ;;  %7144 = vmatprep.subr.bf16.mxu1 %v5813_v4  ;;  %v12785_v1 = vpack.c.bf16 %v5062_v37, %v5062_v37  ;;  %v5858_v4 = vld [vmem:[#allocation2 + $0x400] sm:$0xff]  ;;  %v5868_v37 = vld [vmem:[#allocation2 + $0x450] sm:$0xff] }
 0x96d   :  { %6817 = vmatpush1.bf16.msra.mxu0 %v5810_v10  ;;  %7145 = vmatpush1.bf16.msra.mxu1 %v5812_v9  ;;  %v5860_v10 = vld [vmem:[#allocation2 + $0x410] sm:$0xff]  ;;  %v5867_v9 = vld [vmem:[#allocation2 + $0x448] sm:$0xff] }
 0x96e   :  { %6818 = vmatprep.subr.bf16.mxu0 %v5819_v15  ;;  %7146 = vmatprep.subr.bf16.mxu1 %v5821_v22  ;;  %v5869_v15 = vld [vmem:[#allocation2 + $0x458] sm:$0xff]  ;;  %v12790_v22 = vpack.c.bf16 %v5065_v46, %v5065_v46  ;;  %v5876_v46 = vld [vmem:[#allocation2 + $0x490] sm:$0xff] }
 0x971   :  { %6819 = vmatpush1.bf16.msra.mxu0 %v5818_v38  ;;  %7147 = vmatpush1.bf16.msra.mxu1 %v5820_v60  ;;  %v5875_v38 = vld [vmem:[#allocation2 + $0x488] sm:$0xff]  ;;  %v5877_v60 = vld [vmem:[#allocation2 + $0x498] sm:$0xff] }
 0x972   :  { %6820 = vmatprep.subr.bf16.mxu0 %v5827_v61  ;;  %7148 = vmatprep.subr.bf16.mxu1 %v5829_v14  ;;  %v5883_v61 = vld [vmem:[#allocation2 + $0x4c8] sm:$0xff]  ;;  %v5885_v14 = vld [vmem:[#allocation2 + $0x4d8] sm:$0xff] }
 0x975   :  { %6821 = vmatpush1.bf16.msra.mxu0 %v5826_v0  ;;  %7149 = vmatpush1.bf16.msra.mxu1 %v5828_v17  ;;  %v5882_v0 = vld [vmem:[#allocation2 + $0x4c0] sm:$0xff]  ;;  %v5884_v17 = vld [vmem:[#allocation2 + $0x4d0] sm:$0xff] }
 0x976   :  { %6822 = vmatprep.subr.bf16.mxu0 %v5835_v23  ;;  %7150 = vmatprep.subr.bf16.mxu1 %v5837_v54  ;;  %v5891_v23 = vld [vmem:[#allocation2 + $0x508] sm:$0xff]  ;;  %v5893_v54 = vld [vmem:[#allocation2 + $0x518] sm:$0xff] }
 0x979   :  { %6823 = vmatpush1.bf16.msra.mxu0 %v5834_v63  ;;  %7151 = vmatpush1.bf16.msra.mxu1 %v5836_v25  ;;  %v5890_v63 = vld [vmem:[#allocation2 + $0x500] sm:$0xff]  ;;  %v5892_v25 = vld [vmem:[#allocation2 + $0x510] sm:$0xff] }
 0x97a   :  { %6824 = vmatprep.subr.bf16.mxu0 %v5843_v30  ;;  %7152 = vmatprep.subr.bf16.mxu1 %v5845_v36  ;;  %v5899_v30 = vld [vmem:[#allocation2 + $0x548] sm:$0xff]  ;;  %v5901_v36 = vld [vmem:[#allocation2 + $0x558] sm:$0xff] }
 0x97d   :  { %6825 = vmatpush1.bf16.msra.mxu0 %v5842_v40  ;;  %7153 = vmatpush1.bf16.msra.mxu1 %v5844_v19  ;;  %v5898_v40 = vld [vmem:[#allocation2 + $0x540] sm:$0xff]  ;;  %v5900_v19 = vld [vmem:[#allocation2 + $0x550] sm:$0xff] }
 0x97e   :  { %6826 = vmatprep.subr.bf16.mxu0 %v5851_v45  ;;  %7154 = vmatprep.subr.bf16.mxu1 %v5853_v44  ;;  %v5907_v45 = vld [vmem:[#allocation2 + $0x588] sm:$0xff]  ;;  %v5909_v44 = vld [vmem:[#allocation2 + $0x598] sm:$0xff] }
 0x981   :  { %6827 = vmatpush1.bf16.msra.mxu0 %v5850_v42  ;;  %7155 = vmatpush1.bf16.msra.mxu1 %v5852_v51  ;;  %v5906_v42 = vld [vmem:[#allocation2 + $0x580] sm:$0xff]  ;;  %v5908_v51 = vld [vmem:[#allocation2 + $0x590] sm:$0xff] }
 0x982   :  { %6837 = vmatprep.subr.bf16.mxu0 %v5859_v62  ;;  %7165 = vmatprep.subr.bf16.mxu1 %v5861_v52  ;;  %v5915_v62 = vld [vmem:[#allocation2 + $0x5c8] sm:$0xff]  ;;  %v5917_v52 = vld [vmem:[#allocation2 + $0x5d8] sm:$0xff] }
 0x984   :  { %6829 = vmatmul.mubr.bf16.vlgmr.msra.gmra.mrb[56].mxu0 %v12785_v1  ;;  %7157 = vmatmul.mubr.bf16.vlgmr.msra.gmra.mrb[60].mxu1 %v12785_v1 }
 0x985   :  { %6838 = vmatpush1.bf16.msra.mxu0 %v5858_v4  ;;  %7166 = vmatpush1.bf16.msra.mxu1 %v5860_v10  ;;  %v5914_v4 = vld [vmem:[#allocation2 + $0x5c0] sm:$0xff]  ;;  %v5916_v10 = vld [vmem:[#allocation2 + $0x5d0] sm:$0xff] }
 0x986   :  { %6839 = vmatprep.subr.bf16.mxu0 %v5867_v9  ;;  %7167 = vmatprep.subr.bf16.mxu1 %v5869_v15  ;;  %v5923_v9 = vld [vmem:[#allocation2 + $0x608] sm:$0xff]  ;;  %v5925_v15 = vld [vmem:[#allocation2 + $0x618] sm:$0xff] }
 0x987   :  { %6869 = vmatprep.mubr.bf16.mxu0 %v12790_v22  ;;  %7197 = vmatprep.mubr.bf16.mxu1 %v12790_v22 }
 0x989   :  { %6840 = vmatpush1.bf16.msra.mxu0 %v5866_v33  ;;  %7168 = vmatpush1.bf16.msra.mxu1 %v5868_v37  ;;  %v5922_v33 = vld [vmem:[#allocation2 + $0x600] sm:$0xff]  ;;  %v5924_v37 = vld [vmem:[#allocation2 + $0x610] sm:$0xff] }
 0x98a   :  { %6841 = vmatprep.subr.bf16.mxu0 %v5875_v38  ;;  %7169 = vmatprep.subr.bf16.mxu1 %v5877_v60  ;;  %v5931_v38 = vld [vmem:[#allocation2 + $0x648] sm:$0xff]  ;;  %v5933_v60 = vld [vmem:[#allocation2 + $0x658] sm:$0xff] }
 0x98d   :  { %6842 = vmatpush1.bf16.msra.mxu0 %v5874_v41  ;;  %7170 = vmatpush1.bf16.msra.mxu1 %v5876_v46  ;;  %v5930_v41 = vld [vmem:[#allocation2 + $0x640] sm:$0xff]  ;;  %v5932_v46 = vld [vmem:[#allocation2 + $0x650] sm:$0xff] }
 0x98e   :  { %6843 = vmatprep.subr.bf16.mxu0 %v5883_v61  ;;  %7171 = vmatprep.subr.bf16.mxu1 %v5885_v14  ;;  %v5939_v61 = vld [vmem:[#allocation2 + $0x688] sm:$0xff]  ;;  %v5941_v14 = vld [vmem:[#allocation2 + $0x698] sm:$0xff] }
 0x991   :  { %6844 = vmatpush1.bf16.msra.mxu0 %v5882_v0  ;;  %7172 = vmatpush1.bf16.msra.mxu1 %v5884_v17  ;;  %v5938_v0 = vld [vmem:[#allocation2 + $0x680] sm:$0xff]  ;;  %v5940_v17 = vld [vmem:[#allocation2 + $0x690] sm:$0xff] }
 0x992   :  { %6845 = vmatprep.subr.bf16.mxu0 %v5891_v23  ;;  %7173 = vmatprep.subr.bf16.mxu1 %v5893_v54  ;;  %v5947_v23 = vld [vmem:[#allocation2 + $0x6c8] sm:$0xff]  ;;  %v5949_v54 = vld [vmem:[#allocation2 + $0x6d8] sm:$0xff] }
 0x995   :  { %6846 = vmatpush1.bf16.msra.mxu0 %v5890_v63  ;;  %7174 = vmatpush1.bf16.msra.mxu1 %v5892_v25  ;;  %v5946_v63 = vld [vmem:[#allocation2 + $0x6c0] sm:$0xff]  ;;  %v5948_v25 = vld [vmem:[#allocation2 + $0x6d0] sm:$0xff] }
 0x996   :  { %6847 = vmatprep.subr.bf16.mxu0 %v5899_v30  ;;  %7175 = vmatprep.subr.bf16.mxu1 %v5901_v36  ;;  %v5955_v30 = vld [vmem:[#allocation2 + $0x708] sm:$0xff]  ;;  %v5957_v36 = vld [vmem:[#allocation2 + $0x718] sm:$0xff] }
 0x999   :  { %6848 = vmatpush1.bf16.msra.mxu0 %v5898_v40  ;;  %7176 = vmatpush1.bf16.msra.mxu1 %v5900_v19  ;;  %v5954_v40 = vld [vmem:[#allocation2 + $0x700] sm:$0xff]  ;;  %v5956_v19 = vld [vmem:[#allocation2 + $0x710] sm:$0xff] }
 0x99a   :  { %6849 = vmatprep.subr.bf16.mxu0 %v5907_v45  ;;  %7177 = vmatprep.subr.bf16.mxu1 %v5909_v44  ;;  %v5963_v45 = vld [vmem:[#allocation2 + $0x748] sm:$0xff]  ;;  %v5965_v44 = vld [vmem:[#allocation2 + $0x758] sm:$0xff] }
 0x99d   :  { %6850 = vmatpush1.bf16.msra.mxu0 %v5906_v42  ;;  %7178 = vmatpush1.bf16.msra.mxu1 %v5908_v51  ;;  %v5962_v42 = vld [vmem:[#allocation2 + $0x740] sm:$0xff]  ;;  %v5964_v51 = vld [vmem:[#allocation2 + $0x750] sm:$0xff] }
 0x99e   :  { %6851 = vmatprep.subr.bf16.mxu0 %v5915_v62  ;;  %7179 = vmatprep.subr.bf16.mxu1 %v5917_v52  ;;  %v5971_v62 = vld [vmem:[#allocation2 + $0x788] sm:$0xff]  ;;  %v5973_v52 = vld [vmem:[#allocation2 + $0x798] sm:$0xff] }
 0x9a1   :  { %6852 = vmatpush1.bf16.msra.mxu0 %v5914_v4  ;;  %7180 = vmatpush1.bf16.msra.mxu1 %v5916_v10  ;;  %v5970_v4 = vld [vmem:[#allocation2 + $0x780] sm:$0xff]  ;;  %v5972_v10 = vld [vmem:[#allocation2 + $0x790] sm:$0xff] }
 0x9a2   :  { %6853 = vmatprep.subr.bf16.mxu0 %v5923_v9  ;;  %7181 = vmatprep.subr.bf16.mxu1 %v5925_v15  ;;  %v5979_v9 = vld [vmem:[#allocation2 + $0x7c8] sm:$0xff]  ;;  %v5981_v15 = vld [vmem:[#allocation2 + $0x7d8] sm:$0xff] }
 0x9a5   :  { %6854 = vmatpush1.bf16.msra.mxu0 %v5922_v33  ;;  %7182 = vmatpush1.bf16.msra.mxu1 %v5924_v37  ;;  %v5978_v33 = vld [vmem:[#allocation2 + $0x7c0] sm:$0xff]  ;;  %v5980_v37 = vld [vmem:[#allocation2 + $0x7d0] sm:$0xff] }
 0x9a6   :  { %6855 = vmatprep.subr.bf16.mxu0 %v5931_v38  ;;  %7183 = vmatprep.subr.bf16.mxu1 %v5933_v60  ;;  %v5987_v38 = vld [vmem:[#allocation2 + $0x808] sm:$0xff]  ;;  %v5989_v60 = vld [vmem:[#allocation2 + $0x818] sm:$0xff] }
 0x9a9   :  { %6856 = vmatpush1.bf16.msra.mxu0 %v5930_v41  ;;  %7184 = vmatpush1.bf16.msra.mxu1 %v5932_v46  ;;  %v12799_v41 = vpack.c.bf16 %v5064_v16, %v5064_v16  ;;  %v5986_v46 = vld [vmem:[#allocation2 + $0x800] sm:$0xff]  ;;  %v5996_v16 = vld [vmem:[#allocation2 + $0x850] sm:$0xff] }
 0x9aa   :  { %6857 = vmatprep.subr.bf16.mxu0 %v5939_v61  ;;  %7185 = vmatprep.subr.bf16.mxu1 %v5941_v14  ;;  %v5988_v61 = vld [vmem:[#allocation2 + $0x810] sm:$0xff]  ;;  %v5995_v14 = vld [vmem:[#allocation2 + $0x848] sm:$0xff] }
 0x9ad   :  { %6858 = vmatpush1.bf16.msra.mxu0 %v5938_v0  ;;  %7186 = vmatpush1.bf16.msra.mxu1 %v5940_v17  ;;  %v5997_v0 = vld [vmem:[#allocation2 + $0x858] sm:$0xff]  ;;  %v12804_v17 = vpack.c.bf16 %v5067_v53, %v5067_v53  ;;  %v6004_v53 = vld [vmem:[#allocation2 + $0x890] sm:$0xff] }
 0x9ae   :  { %6859 = vmatprep.subr.bf16.mxu0 %v5947_v23  ;;  %7187 = vmatprep.subr.bf16.mxu1 %v5949_v54  ;;  %v6003_v23 = vld [vmem:[#allocation2 + $0x888] sm:$0xff]  ;;  %v6005_v54 = vld [vmem:[#allocation2 + $0x898] sm:$0xff] }
 0x9b1   :  { %6860 = vmatpush1.bf16.msra.mxu0 %v5946_v63  ;;  %7188 = vmatpush1.bf16.msra.mxu1 %v5948_v25  ;;  %v6011_v63 = vld [vmem:[#allocation2 + $0x8c8] sm:$0xff]  ;;  %v6013_v25 = vld [vmem:[#allocation2 + $0x8d8] sm:$0xff] }
 0x9b2   :  { %6861 = vmatprep.subr.bf16.mxu0 %v5955_v30  ;;  %7189 = vmatprep.subr.bf16.mxu1 %v5957_v36  ;;  %v6010_v30 = vld [vmem:[#allocation2 + $0x8c0] sm:$0xff]  ;;  %v6012_v36 = vld [vmem:[#allocation2 + $0x8d0] sm:$0xff] }
 0x9b5   :  { %6862 = vmatpush1.bf16.msra.mxu0 %v5954_v40  ;;  %7190 = vmatpush1.bf16.msra.mxu1 %v5956_v19  ;;  %v6019_v40 = vld [vmem:[#allocation2 + $0x908] sm:$0xff]  ;;  %v6021_v19 = vld [vmem:[#allocation2 + $0x918] sm:$0xff] }
 0x9b6   :  { %6863 = vmatprep.subr.bf16.mxu0 %v5963_v45  ;;  %7191 = vmatprep.subr.bf16.mxu1 %v5965_v44  ;;  %v6018_v45 = vld [vmem:[#allocation2 + $0x900] sm:$0xff]  ;;  %v6020_v44 = vld [vmem:[#allocation2 + $0x910] sm:$0xff] }
 0x9b9   :  { %6864 = vmatpush1.bf16.msra.mxu0 %v5962_v42  ;;  %7192 = vmatpush1.bf16.msra.mxu1 %v5964_v51  ;;  %v6027_v42 = vld [vmem:[#allocation2 + $0x948] sm:$0xff]  ;;  %v6029_v51 = vld [vmem:[#allocation2 + $0x958] sm:$0xff] }
 0x9ba   :  { %6865 = vmatprep.subr.bf16.mxu0 %v5971_v62  ;;  %7193 = vmatprep.subr.bf16.mxu1 %v5973_v52  ;;  %v6026_v62 = vld [vmem:[#allocation2 + $0x940] sm:$0xff]  ;;  %v6028_v52 = vld [vmem:[#allocation2 + $0x950] sm:$0xff] }
 0x9bd   :  { %6866 = vmatpush1.bf16.msra.mxu0 %v5970_v4  ;;  %7194 = vmatpush1.bf16.msra.mxu1 %v5972_v10  ;;  %v6035_v4 = vld [vmem:[#allocation2 + $0x988] sm:$0xff]  ;;  %v6037_v10 = vld [vmem:[#allocation2 + $0x998] sm:$0xff] }
 0x9be   :  { %6867 = vmatprep.subr.bf16.mxu0 %v5979_v9  ;;  %7195 = vmatprep.subr.bf16.mxu1 %v5981_v15  ;;  %v6034_v9 = vld [vmem:[#allocation2 + $0x980] sm:$0xff]  ;;  %v6036_v15 = vld [vmem:[#allocation2 + $0x990] sm:$0xff] }
 0x9c1   :  { %6868 = vmatpush1.bf16.msra.mxu0 %v5978_v33  ;;  %7196 = vmatpush1.bf16.msra.mxu1 %v5980_v37  ;;  %v6043_v33 = vld [vmem:[#allocation2 + $0x9c8] sm:$0xff]  ;;  %v6045_v37 = vld [vmem:[#allocation2 + $0x9d8] sm:$0xff] }
 0x9c2   :  { %6878 = vmatprep.subr.bf16.mxu0 %v5987_v38  ;;  %7206 = vmatprep.subr.bf16.mxu1 %v5989_v60  ;;  %v6042_v38 = vld [vmem:[#allocation2 + $0x9c0] sm:$0xff]  ;;  %v6044_v60 = vld [vmem:[#allocation2 + $0x9d0] sm:$0xff] }
 0x9c4   :  { %6870 = vmatmul.mubr.bf16.vlgmr.msra.gmra.mrb[56].mxu0 %v12799_v41  ;;  %7198 = vmatmul.mubr.bf16.vlgmr.msra.gmra.mrb[60].mxu1 %v12799_v41 }
 0x9c5   :  { %6879 = vmatpush1.bf16.msra.mxu0 %v5986_v46  ;;  %7207 = vmatpush1.bf16.msra.mxu1 %v5988_v61  ;;  %v6051_v46 = vld [vmem:[#allocation2 + $0xa08] sm:$0xff]  ;;  %v6053_v61 = vld [vmem:[#allocation2 + $0xa18] sm:$0xff] }
 0x9c6   :  { %6880 = vmatprep.subr.bf16.mxu0 %v5995_v14  ;;  %7208 = vmatprep.subr.bf16.mxu1 %v5997_v0  ;;  %v6050_v14 = vld [vmem:[#allocation2 + $0xa00] sm:$0xff]  ;;  %v6052_v0 = vld [vmem:[#allocation2 + $0xa10] sm:$0xff] }
 0x9c7   :  { %6910 = vmatprep.mubr.bf16.mxu0 %v12804_v17  ;;  %7238 = vmatprep.mubr.bf16.mxu1 %v12804_v17 }
 0x9c9   :  { %6881 = vmatpush1.bf16.msra.mxu0 %v5994_v34  ;;  %7209 = vmatpush1.bf16.msra.mxu1 %v5996_v16  ;;  %v6059_v34 = vld [vmem:[#allocation2 + $0xa48] sm:$0xff]  ;;  %v6061_v16 = vld [vmem:[#allocation2 + $0xa58] sm:$0xff] }
 0x9ca   :  { %6882 = vmatprep.subr.bf16.mxu0 %v6003_v23  ;;  %7210 = vmatprep.subr.bf16.mxu1 %v6005_v54  ;;  %v6058_v23 = vld [vmem:[#allocation2 + $0xa40] sm:$0xff]  ;;  %v6060_v54 = vld [vmem:[#allocation2 + $0xa50] sm:$0xff] }
 0x9cd   :  { %6883 = vmatpush1.bf16.msra.mxu0 %v6002_v47  ;;  %7211 = vmatpush1.bf16.msra.mxu1 %v6004_v53  ;;  %v6067_v47 = vld [vmem:[#allocation2 + $0xa88] sm:$0xff]  ;;  %v6069_v53 = vld [vmem:[#allocation2 + $0xa98] sm:$0xff] }
 0x9ce   :  { %6884 = vmatprep.subr.bf16.mxu0 %v6011_v63  ;;  %7212 = vmatprep.subr.bf16.mxu1 %v6013_v25  ;;  %v6066_v63 = vld [vmem:[#allocation2 + $0xa80] sm:$0xff]  ;;  %v6068_v25 = vld [vmem:[#allocation2 + $0xa90] sm:$0xff] }
 0x9d1   :  { %6885 = vmatpush1.bf16.msra.mxu0 %v6010_v30  ;;  %7213 = vmatpush1.bf16.msra.mxu1 %v6012_v36  ;;  %v6075_v30 = vld [vmem:[#allocation2 + $0xac8] sm:$0xff]  ;;  %v6077_v36 = vld [vmem:[#allocation2 + $0xad8] sm:$0xff] }
 0x9d2   :  { %6886 = vmatprep.subr.bf16.mxu0 %v6019_v40  ;;  %7214 = vmatprep.subr.bf16.mxu1 %v6021_v19  ;;  %v6074_v40 = vld [vmem:[#allocation2 + $0xac0] sm:$0xff]  ;;  %v6076_v19 = vld [vmem:[#allocation2 + $0xad0] sm:$0xff] }
 0x9d5   :  { %6887 = vmatpush1.bf16.msra.mxu0 %v6018_v45  ;;  %7215 = vmatpush1.bf16.msra.mxu1 %v6020_v44  ;;  %v6083_v45 = vld [vmem:[#allocation2 + $0xb08] sm:$0xff]  ;;  %v6085_v44 = vld [vmem:[#allocation2 + $0xb18] sm:$0xff] }
 0x9d6   :  { %6888 = vmatprep.subr.bf16.mxu0 %v6027_v42  ;;  %7216 = vmatprep.subr.bf16.mxu1 %v6029_v51  ;;  %v6082_v42 = vld [vmem:[#allocation2 + $0xb00] sm:$0xff]  ;;  %v6084_v51 = vld [vmem:[#allocation2 + $0xb10] sm:$0xff] }
 0x9d9   :  { %6889 = vmatpush1.bf16.msra.mxu0 %v6026_v62  ;;  %7217 = vmatpush1.bf16.msra.mxu1 %v6028_v52  ;;  %v6091_v62 = vld [vmem:[#allocation2 + $0xb48] sm:$0xff]  ;;  %v6093_v52 = vld [vmem:[#allocation2 + $0xb58] sm:$0xff] }
 0x9da   :  { %6890 = vmatprep.subr.bf16.mxu0 %v6035_v4  ;;  %7218 = vmatprep.subr.bf16.mxu1 %v6037_v10  ;;  %v6090_v4 = vld [vmem:[#allocation2 + $0xb40] sm:$0xff]  ;;  %v6092_v10 = vld [vmem:[#allocation2 + $0xb50] sm:$0xff] }
 0x9dd   :  { %6891 = vmatpush1.bf16.msra.mxu0 %v6034_v9  ;;  %7219 = vmatpush1.bf16.msra.mxu1 %v6036_v15  ;;  %v6099_v9 = vld [vmem:[#allocation2 + $0xb88] sm:$0xff]  ;;  %v6101_v15 = vld [vmem:[#allocation2 + $0xb98] sm:$0xff] }
 0x9de   :  { %6892 = vmatprep.subr.bf16.mxu0 %v6043_v33  ;;  %7220 = vmatprep.subr.bf16.mxu1 %v6045_v37  ;;  %v6098_v33 = vld [vmem:[#allocation2 + $0xb80] sm:$0xff]  ;;  %v6100_v37 = vld [vmem:[#allocation2 + $0xb90] sm:$0xff] }
 0x9e1   :  { %6893 = vmatpush1.bf16.msra.mxu0 %v6042_v38  ;;  %7221 = vmatpush1.bf16.msra.mxu1 %v6044_v60  ;;  %v6107_v38 = vld [vmem:[#allocation2 + $0xbc8] sm:$0xff]  ;;  %v6109_v60 = vld [vmem:[#allocation2 + $0xbd8] sm:$0xff] }
 0x9e2   :  { %6894 = vmatprep.subr.bf16.mxu0 %v6051_v46  ;;  %7222 = vmatprep.subr.bf16.mxu1 %v6053_v61  ;;  %v6106_v46 = vld [vmem:[#allocation2 + $0xbc0] sm:$0xff]  ;;  %v6108_v61 = vld [vmem:[#allocation2 + $0xbd0] sm:$0xff] }
 0x9e5   :  { %6895 = vmatpush1.bf16.msra.mxu0 %v6050_v14  ;;  %7223 = vmatpush1.bf16.msra.mxu1 %v6052_v0  ;;  %v6115_v14 = vld [vmem:[#allocation2 + $0xc08] sm:$0xff]  ;;  %v6117_v0 = vld [vmem:[#allocation2 + $0xc18] sm:$0xff] }
 0x9e6   :  { %6896 = vmatprep.subr.bf16.mxu0 %v6059_v34  ;;  %7224 = vmatprep.subr.bf16.mxu1 %v6061_v16  ;;  %v12813_v34 = vpack.c.bf16 %v5066_v12, %v5066_v12  ;;  %v6114_v16 = vld [vmem:[#allocation2 + $0xc00] sm:$0xff]  ;;  %v6124_v12 = vld [vmem:[#allocation2 + $0xc50] sm:$0xff] }
 0x9e9   :  { %6897 = vmatpush1.bf16.msra.mxu0 %v6058_v23  ;;  %7225 = vmatpush1.bf16.msra.mxu1 %v6060_v54  ;;  %v6116_v23 = vld [vmem:[#allocation2 + $0xc10] sm:$0xff]  ;;  %v6123_v54 = vld [vmem:[#allocation2 + $0xc48] sm:$0xff] }
 0x9ea   :  { %6898 = vmatprep.subr.bf16.mxu0 %v6067_v47  ;;  %7226 = vmatprep.subr.bf16.mxu1 %v6069_v53  ;;  %v6125_v47 = vld [vmem:[#allocation2 + $0xc58] sm:$0xff]  ;;  %v12818_v53 = vpack.c.bf16 %v5069_v13, %v5069_v13  ;;  %v6132_v13 = vld [vmem:[#allocation2 + $0xc90] sm:$0xff] }
 0x9ed   :  { %6899 = vmatpush1.bf16.msra.mxu0 %v6066_v63  ;;  %7227 = vmatpush1.bf16.msra.mxu1 %v6068_v25  ;;  %v6131_v63 = vld [vmem:[#allocation2 + $0xc88] sm:$0xff]  ;;  %v6133_v25 = vld [vmem:[#allocation2 + $0xc98] sm:$0xff] }
 0x9ee   :  { %6900 = vmatprep.subr.bf16.mxu0 %v6075_v30  ;;  %7228 = vmatprep.subr.bf16.mxu1 %v6077_v36  ;;  %v6139_v30 = vld [vmem:[#allocation2 + $0xcc8] sm:$0xff]  ;;  %v6141_v36 = vld [vmem:[#allocation2 + $0xcd8] sm:$0xff] }
 0x9f1   :  { %6901 = vmatpush1.bf16.msra.mxu0 %v6074_v40  ;;  %7229 = vmatpush1.bf16.msra.mxu1 %v6076_v19  ;;  %v6138_v40 = vld [vmem:[#allocation2 + $0xcc0] sm:$0xff]  ;;  %v6140_v19 = vld [vmem:[#allocation2 + $0xcd0] sm:$0xff] }
 0x9f2   :  { %6902 = vmatprep.subr.bf16.mxu0 %v6083_v45  ;;  %7230 = vmatprep.subr.bf16.mxu1 %v6085_v44  ;;  %v6147_v45 = vld [vmem:[#allocation2 + $0xd08] sm:$0xff]  ;;  %v6149_v44 = vld [vmem:[#allocation2 + $0xd18] sm:$0xff] }
 0x9f5   :  { %6903 = vmatpush1.bf16.msra.mxu0 %v6082_v42  ;;  %7231 = vmatpush1.bf16.msra.mxu1 %v6084_v51  ;;  %v6146_v42 = vld [vmem:[#allocation2 + $0xd00] sm:$0xff]  ;;  %v6148_v51 = vld [vmem:[#allocation2 + $0xd10] sm:$0xff] }
 0x9f6   :  { %6904 = vmatprep.subr.bf16.mxu0 %v6091_v62  ;;  %7232 = vmatprep.subr.bf16.mxu1 %v6093_v52  ;;  %v6155_v62 = vld [vmem:[#allocation2 + $0xd48] sm:$0xff]  ;;  %v6157_v52 = vld [vmem:[#allocation2 + $0xd58] sm:$0xff] }
 0x9f9   :  { %6905 = vmatpush1.bf16.msra.mxu0 %v6090_v4  ;;  %7233 = vmatpush1.bf16.msra.mxu1 %v6092_v10  ;;  %v6154_v4 = vld [vmem:[#allocation2 + $0xd40] sm:$0xff]  ;;  %v6156_v10 = vld [vmem:[#allocation2 + $0xd50] sm:$0xff] }
 0x9fa   :  { %6906 = vmatprep.subr.bf16.mxu0 %v6099_v9  ;;  %7234 = vmatprep.subr.bf16.mxu1 %v6101_v15  ;;  %v6163_v9 = vld [vmem:[#allocation2 + $0xd88] sm:$0xff]  ;;  %v6165_v15 = vld [vmem:[#allocation2 + $0xd98] sm:$0xff] }
 0x9fd   :  { %6907 = vmatpush1.bf16.msra.mxu0 %v6098_v33  ;;  %7235 = vmatpush1.bf16.msra.mxu1 %v6100_v37  ;;  %v6162_v33 = vld [vmem:[#allocation2 + $0xd80] sm:$0xff]  ;;  %v6164_v37 = vld [vmem:[#allocation2 + $0xd90] sm:$0xff] }
 0x9fe   :  { %6908 = vmatprep.subr.bf16.mxu0 %v6107_v38  ;;  %7236 = vmatprep.subr.bf16.mxu1 %v6109_v60  ;;  %v6171_v38 = vld [vmem:[#allocation2 + $0xdc8] sm:$0xff]  ;;  %v6173_v60 = vld [vmem:[#allocation2 + $0xdd8] sm:$0xff] }
 0xa01   :  { %6909 = vmatpush1.bf16.msra.mxu0 %v6106_v46  ;;  %7237 = vmatpush1.bf16.msra.mxu1 %v6108_v61  ;;  %v6170_v46 = vld [vmem:[#allocation2 + $0xdc0] sm:$0xff]  ;;  %v6172_v61 = vld [vmem:[#allocation2 + $0xdd0] sm:$0xff] }
 0xa02   :  { %6919 = vmatprep.subr.bf16.mxu0 %v6115_v14  ;;  %7247 = vmatprep.subr.bf16.mxu1 %v6117_v0  ;;  %v6179_v14 = vld [vmem:[#allocation2 + $0xe08] sm:$0xff]  ;;  %v6181_v0 = vld [vmem:[#allocation2 + $0xe18] sm:$0xff] }
 0xa04   :  { %6911 = vmatmul.mubr.bf16.vlgmr.msra.gmra.mrb[56].mxu0 %v12813_v34  ;;  %7239 = vmatmul.mubr.bf16.vlgmr.msra.gmra.mrb[60].mxu1 %v12813_v34 }
 0xa05   :  { %6920 = vmatpush1.bf16.msra.mxu0 %v6114_v16  ;;  %7248 = vmatpush1.bf16.msra.mxu1 %v6116_v23  ;;  %v6178_v16 = vld [vmem:[#allocation2 + $0xe00] sm:$0xff]  ;;  %v6180_v23 = vld [vmem:[#allocation2 + $0xe10] sm:$0xff] }
 0xa06   :  { %6921 = vmatprep.subr.bf16.mxu0 %v6123_v54  ;;  %7249 = vmatprep.subr.bf16.mxu1 %v6125_v47  ;;  %v6187_v54 = vld [vmem:[#allocation2 + $0xe48] sm:$0xff]  ;;  %v6189_v47 = vld [vmem:[#allocation2 + $0xe58] sm:$0xff] }
 0xa07   :  { %6951 = vmatprep.mubr.bf16.mxu0 %v12818_v53  ;;  %7279 = vmatprep.mubr.bf16.mxu1 %v12818_v53 }
 0xa09   :  { %6922 = vmatpush1.bf16.msra.mxu0 %v6122_v5  ;;  %7250 = vmatpush1.bf16.msra.mxu1 %v6124_v12  ;;  %v6186_v5 = vld [vmem:[#allocation2 + $0xe40] sm:$0xff]  ;;  %v6188_v12 = vld [vmem:[#allocation2 + $0xe50] sm:$0xff] }
 0xa0a   :  { %6923 = vmatprep.subr.bf16.mxu0 %v6131_v63  ;;  %7251 = vmatprep.subr.bf16.mxu1 %v6133_v25  ;;  %v6195_v63 = vld [vmem:[#allocation2 + $0xe88] sm:$0xff]  ;;  %v6197_v25 = vld [vmem:[#allocation2 + $0xe98] sm:$0xff] }
 0xa0d   :  { %6924 = vmatpush1.bf16.msra.mxu0 %v6130_v43  ;;  %7252 = vmatpush1.bf16.msra.mxu1 %v6132_v13  ;;  %v6194_v43 = vld [vmem:[#allocation2 + $0xe80] sm:$0xff]  ;;  %v6196_v13 = vld [vmem:[#allocation2 + $0xe90] sm:$0xff] }
 0xa0e   :  { %6925 = vmatprep.subr.bf16.mxu0 %v6139_v30  ;;  %7253 = vmatprep.subr.bf16.mxu1 %v6141_v36  ;;  %v6203_v30 = vld [vmem:[#allocation2 + $0xec8] sm:$0xff]  ;;  %v6205_v36 = vld [vmem:[#allocation2 + $0xed8] sm:$0xff] }
 0xa11   :  { %6926 = vmatpush1.bf16.msra.mxu0 %v6138_v40  ;;  %7254 = vmatpush1.bf16.msra.mxu1 %v6140_v19  ;;  %v6202_v40 = vld [vmem:[#allocation2 + $0xec0] sm:$0xff]  ;;  %v6204_v19 = vld [vmem:[#allocation2 + $0xed0] sm:$0xff] }
 0xa12   :  { %6927 = vmatprep.subr.bf16.mxu0 %v6147_v45  ;;  %7255 = vmatprep.subr.bf16.mxu1 %v6149_v44  ;;  %v6211_v45 = vld [vmem:[#allocation2 + $0xf08] sm:$0xff]  ;;  %v6213_v44 = vld [vmem:[#allocation2 + $0xf18] sm:$0xff] }
 0xa15   :  { %6928 = vmatpush1.bf16.msra.mxu0 %v6146_v42  ;;  %7256 = vmatpush1.bf16.msra.mxu1 %v6148_v51  ;;  %v6210_v42 = vld [vmem:[#allocation2 + $0xf00] sm:$0xff]  ;;  %v6212_v51 = vld [vmem:[#allocation2 + $0xf10] sm:$0xff] }
 0xa16   :  { %6929 = vmatprep.subr.bf16.mxu0 %v6155_v62  ;;  %7257 = vmatprep.subr.bf16.mxu1 %v6157_v52  ;;  %v6219_v62 = vld [vmem:[#allocation2 + $0xf48] sm:$0xff]  ;;  %v6221_v52 = vld [vmem:[#allocation2 + $0xf58] sm:$0xff] }
 0xa19   :  { %6930 = vmatpush1.bf16.msra.mxu0 %v6154_v4  ;;  %7258 = vmatpush1.bf16.msra.mxu1 %v6156_v10  ;;  %v6218_v4 = vld [vmem:[#allocation2 + $0xf40] sm:$0xff]  ;;  %v6220_v10 = vld [vmem:[#allocation2 + $0xf50] sm:$0xff] }
 0xa1a   :  { %6931 = vmatprep.subr.bf16.mxu0 %v6163_v9  ;;  %7259 = vmatprep.subr.bf16.mxu1 %v6165_v15  ;;  %v6227_v9 = vld [vmem:[#allocation2 + $0xf88] sm:$0xff]  ;;  %v6229_v15 = vld [vmem:[#allocation2 + $0xf98] sm:$0xff] }
 0xa1d   :  { %6932 = vmatpush1.bf16.msra.mxu0 %v6162_v33  ;;  %7260 = vmatpush1.bf16.msra.mxu1 %v6164_v37  ;;  %v6226_v33 = vld [vmem:[#allocation2 + $0xf80] sm:$0xff]  ;;  %v6228_v37 = vld [vmem:[#allocation2 + $0xf90] sm:$0xff] }
 0xa1e   :  { %6933 = vmatprep.subr.bf16.mxu0 %v6171_v38  ;;  %7261 = vmatprep.subr.bf16.mxu1 %v6173_v60  ;;  %v6235_v38 = vld [vmem:[#allocation2 + $0xfc8] sm:$0xff]  ;;  %v6237_v60 = vld [vmem:[#allocation2 + $0xfd8] sm:$0xff] }
 0xa21   :  { %6934 = vmatpush1.bf16.msra.mxu0 %v6170_v46  ;;  %7262 = vmatpush1.bf16.msra.mxu1 %v6172_v61  ;;  %v6234_v46 = vld [vmem:[#allocation2 + $0xfc0] sm:$0xff]  ;;  %v6236_v61 = vld [vmem:[#allocation2 + $0xfd0] sm:$0xff] }
 0xa22   :  { %6935 = vmatprep.subr.bf16.mxu0 %v6179_v14  ;;  %7263 = vmatprep.subr.bf16.mxu1 %v6181_v0  ;;  %v6243_v14 = vld [vmem:[#allocation2 + $0x1008] sm:$0xff]  ;;  %v6245_v0 = vld [vmem:[#allocation2 + $0x1018] sm:$0xff] }
 0xa25   :  { %6936 = vmatpush1.bf16.msra.mxu0 %v6178_v16  ;;  %7264 = vmatpush1.bf16.msra.mxu1 %v6180_v23  ;;  %v12827_v16 = vpack.c.bf16 %v5068_v27, %v5068_v27  ;;  %v6242_v23 = vld [vmem:[#allocation2 + $0x1000] sm:$0xff]  ;;  %v6252_v27 = vld [vmem:[#allocation2 + $0x1050] sm:$0xff] }
 0xa26   :  { %6937 = vmatprep.subr.bf16.mxu0 %v6187_v54  ;;  %7265 = vmatprep.subr.bf16.mxu1 %v6189_v47  ;;  %v6244_v54 = vld [vmem:[#allocation2 + $0x1010] sm:$0xff]  ;;  %v6251_v47 = vld [vmem:[#allocation2 + $0x1048] sm:$0xff] }
 0xa29   :  { %6938 = vmatpush1.bf16.msra.mxu0 %v6186_v5  ;;  %7266 = vmatpush1.bf16.msra.mxu1 %v6188_v12  ;;  %v6253_v5 = vld [vmem:[#allocation2 + $0x1058] sm:$0xff]  ;;  %v12832_v12 = vpack.c.bf16 %v5071_v20, %v5071_v20  ;;  %v6260_v20 = vld [vmem:[#allocation2 + $0x1090] sm:$0xff] }
 0xa2a   :  { %6939 = vmatprep.subr.bf16.mxu0 %v6195_v63  ;;  %7267 = vmatprep.subr.bf16.mxu1 %v6197_v25  ;;  %v6259_v63 = vld [vmem:[#allocation2 + $0x1088] sm:$0xff]  ;;  %v6261_v25 = vld [vmem:[#allocation2 + $0x1098] sm:$0xff] }
 0xa2d   :  { %6940 = vmatpush1.bf16.msra.mxu0 %v6194_v43  ;;  %7268 = vmatpush1.bf16.msra.mxu1 %v6196_v13  ;;  %v6267_v43 = vld [vmem:[#allocation2 + $0x10c8] sm:$0xff]  ;;  %v6269_v13 = vld [vmem:[#allocation2 + $0x10d8] sm:$0xff] }
 0xa2e   :  { %6941 = vmatprep.subr.bf16.mxu0 %v6203_v30  ;;  %7269 = vmatprep.subr.bf16.mxu1 %v6205_v36  ;;  %v6266_v30 = vld [vmem:[#allocation2 + $0x10c0] sm:$0xff]  ;;  %v6268_v36 = vld [vmem:[#allocation2 + $0x10d0] sm:$0xff] }
 0xa31   :  { %6942 = vmatpush1.bf16.msra.mxu0 %v6202_v40  ;;  %7270 = vmatpush1.bf16.msra.mxu1 %v6204_v19  ;;  %v6275_v40 = vld [vmem:[#allocation2 + $0x1108] sm:$0xff]  ;;  %v6277_v19 = vld [vmem:[#allocation2 + $0x1118] sm:$0xff] }
 0xa32   :  { %6943 = vmatprep.subr.bf16.mxu0 %v6211_v45  ;;  %7271 = vmatprep.subr.bf16.mxu1 %v6213_v44  ;;  %v6274_v45 = vld [vmem:[#allocation2 + $0x1100] sm:$0xff]  ;;  %v6276_v44 = vld [vmem:[#allocation2 + $0x1110] sm:$0xff] }
 0xa35   :  { %6944 = vmatpush1.bf16.msra.mxu0 %v6210_v42  ;;  %7272 = vmatpush1.bf16.msra.mxu1 %v6212_v51  ;;  %v6283_v42 = vld [vmem:[#allocation2 + $0x1148] sm:$0xff]  ;;  %v6285_v51 = vld [vmem:[#allocation2 + $0x1158] sm:$0xff] }
 0xa36   :  { %6945 = vmatprep.subr.bf16.mxu0 %v6219_v62  ;;  %7273 = vmatprep.subr.bf16.mxu1 %v6221_v52  ;;  %v6282_v62 = vld [vmem:[#allocation2 + $0x1140] sm:$0xff]  ;;  %v6284_v52 = vld [vmem:[#allocation2 + $0x1150] sm:$0xff] }
 0xa39   :  { %6946 = vmatpush1.bf16.msra.mxu0 %v6218_v4  ;;  %7274 = vmatpush1.bf16.msra.mxu1 %v6220_v10  ;;  %v6291_v4 = vld [vmem:[#allocation2 + $0x1188] sm:$0xff]  ;;  %v6293_v10 = vld [vmem:[#allocation2 + $0x1198] sm:$0xff] }
 0xa3a   :  { %6947 = vmatprep.subr.bf16.mxu0 %v6227_v9  ;;  %7275 = vmatprep.subr.bf16.mxu1 %v6229_v15  ;;  %v6290_v9 = vld [vmem:[#allocation2 + $0x1180] sm:$0xff]  ;;  %v6292_v15 = vld [vmem:[#allocation2 + $0x1190] sm:$0xff] }
 0xa3d   :  { %6948 = vmatpush1.bf16.msra.mxu0 %v6226_v33  ;;  %7276 = vmatpush1.bf16.msra.mxu1 %v6228_v37  ;;  %v6299_v33 = vld [vmem:[#allocation2 + $0x11c8] sm:$0xff]  ;;  %v6301_v37 = vld [vmem:[#allocation2 + $0x11d8] sm:$0xff] }
 0xa3e   :  { %6949 = vmatprep.subr.bf16.mxu0 %v6235_v38  ;;  %7277 = vmatprep.subr.bf16.mxu1 %v6237_v60  ;;  %v6298_v38 = vld [vmem:[#allocation2 + $0x11c0] sm:$0xff]  ;;  %v6300_v60 = vld [vmem:[#allocation2 + $0x11d0] sm:$0xff] }
 0xa41   :  { %6950 = vmatpush1.bf16.msra.mxu0 %v6234_v46  ;;  %7278 = vmatpush1.bf16.msra.mxu1 %v6236_v61  ;;  %v6307_v46 = vld [vmem:[#allocation2 + $0x1208] sm:$0xff]  ;;  %v6309_v61 = vld [vmem:[#allocation2 + $0x1218] sm:$0xff] }
 0xa42   :  { %6960 = vmatprep.subr.bf16.mxu0 %v6243_v14  ;;  %7288 = vmatprep.subr.bf16.mxu1 %v6245_v0  ;;  %v6306_v14 = vld [vmem:[#allocation2 + $0x1200] sm:$0xff]  ;;  %v6308_v0 = vld [vmem:[#allocation2 + $0x1210] sm:$0xff] }
 0xa44   :  { %6952 = vmatmul.mubr.bf16.vlgmr.msra.gmra.mrb[56].mxu0 %v12827_v16  ;;  %7280 = vmatmul.mubr.bf16.vlgmr.msra.gmra.mrb[60].mxu1 %v12827_v16 }
 0xa45   :  { %6961 = vmatpush1.bf16.msra.mxu0 %v6242_v23  ;;  %7289 = vmatpush1.bf16.msra.mxu1 %v6244_v54  ;;  %v6315_v23 = vld [vmem:[#allocation2 + $0x1248] sm:$0xff]  ;;  %v6317_v54 = vld [vmem:[#allocation2 + $0x1258] sm:$0xff] }
 0xa46   :  { %6962 = vmatprep.subr.bf16.mxu0 %v6251_v47  ;;  %7290 = vmatprep.subr.bf16.mxu1 %v6253_v5  ;;  %v6314_v47 = vld [vmem:[#allocation2 + $0x1240] sm:$0xff]  ;;  %v6316_v5 = vld [vmem:[#allocation2 + $0x1250] sm:$0xff] }
 0xa47   :  { %6992 = vmatprep.mubr.bf16.mxu0 %v12832_v12  ;;  %7320 = vmatprep.mubr.bf16.mxu1 %v12832_v12 }
 0xa49   :  { %6963 = vmatpush1.bf16.msra.mxu0 %v6250_v7  ;;  %7291 = vmatpush1.bf16.msra.mxu1 %v6252_v27  ;;  %v6323_v7 = vld [vmem:[#allocation2 + $0x1288] sm:$0xff]  ;;  %v6325_v27 = vld [vmem:[#allocation2 + $0x1298] sm:$0xff] }
 0xa4a   :  { %6964 = vmatprep.subr.bf16.mxu0 %v6259_v63  ;;  %7292 = vmatprep.subr.bf16.mxu1 %v6261_v25  ;;  %v6322_v63 = vld [vmem:[#allocation2 + $0x1280] sm:$0xff]  ;;  %v6324_v25 = vld [vmem:[#allocation2 + $0x1290] sm:$0xff] }
 0xa4d   :  { %6965 = vmatpush1.bf16.msra.mxu0 %v6258_v26  ;;  %7293 = vmatpush1.bf16.msra.mxu1 %v6260_v20  ;;  %v6331_v26 = vld [vmem:[#allocation2 + $0x12c8] sm:$0xff]  ;;  %v6333_v20 = vld [vmem:[#allocation2 + $0x12d8] sm:$0xff] }
 0xa4e   :  { %6966 = vmatprep.subr.bf16.mxu0 %v6267_v43  ;;  %7294 = vmatprep.subr.bf16.mxu1 %v6269_v13  ;;  %v6330_v43 = vld [vmem:[#allocation2 + $0x12c0] sm:$0xff]  ;;  %v6332_v13 = vld [vmem:[#allocation2 + $0x12d0] sm:$0xff] }
 0xa51   :  { %6967 = vmatpush1.bf16.msra.mxu0 %v6266_v30  ;;  %7295 = vmatpush1.bf16.msra.mxu1 %v6268_v36  ;;  %v6339_v30 = vld [vmem:[#allocation2 + $0x1308] sm:$0xff]  ;;  %v6341_v36 = vld [vmem:[#allocation2 + $0x1318] sm:$0xff] }
 0xa52   :  { %6968 = vmatprep.subr.bf16.mxu0 %v6275_v40  ;;  %7296 = vmatprep.subr.bf16.mxu1 %v6277_v19  ;;  %v6338_v40 = vld [vmem:[#allocation2 + $0x1300] sm:$0xff]  ;;  %v6340_v19 = vld [vmem:[#allocation2 + $0x1310] sm:$0xff] }
 0xa55   :  { %6969 = vmatpush1.bf16.msra.mxu0 %v6274_v45  ;;  %7297 = vmatpush1.bf16.msra.mxu1 %v6276_v44  ;;  %v6347_v45 = vld [vmem:[#allocation2 + $0x1348] sm:$0xff]  ;;  %v6349_v44 = vld [vmem:[#allocation2 + $0x1358] sm:$0xff] }
 0xa56   :  { %6970 = vmatprep.subr.bf16.mxu0 %v6283_v42  ;;  %7298 = vmatprep.subr.bf16.mxu1 %v6285_v51  ;;  %v6346_v42 = vld [vmem:[#allocation2 + $0x1340] sm:$0xff]  ;;  %v6348_v51 = vld [vmem:[#allocation2 + $0x1350] sm:$0xff] }
 0xa59   :  { %6971 = vmatpush1.bf16.msra.mxu0 %v6282_v62  ;;  %7299 = vmatpush1.bf16.msra.mxu1 %v6284_v52  ;;  %v6355_v62 = vld [vmem:[#allocation2 + $0x1388] sm:$0xff]  ;;  %v6357_v52 = vld [vmem:[#allocation2 + $0x1398] sm:$0xff] }
 0xa5a   :  { %6972 = vmatprep.subr.bf16.mxu0 %v6291_v4  ;;  %7300 = vmatprep.subr.bf16.mxu1 %v6293_v10  ;;  %v6354_v4 = vld [vmem:[#allocation2 + $0x1380] sm:$0xff]  ;;  %v6356_v10 = vld [vmem:[#allocation2 + $0x1390] sm:$0xff] }
 0xa5d   :  { %6973 = vmatpush1.bf16.msra.mxu0 %v6290_v9  ;;  %7301 = vmatpush1.bf16.msra.mxu1 %v6292_v15  ;;  %v6363_v9 = vld [vmem:[#allocation2 + $0x13c8] sm:$0xff]  ;;  %v6365_v15 = vld [vmem:[#allocation2 + $0x13d8] sm:$0xff] }
 0xa5e   :  { %6974 = vmatprep.subr.bf16.mxu0 %v6299_v33  ;;  %7302 = vmatprep.subr.bf16.mxu1 %v6301_v37  ;;  %v6362_v33 = vld [vmem:[#allocation2 + $0x13c0] sm:$0xff]  ;;  %v6364_v37 = vld [vmem:[#allocation2 + $0x13d0] sm:$0xff] }
 0xa61   :  { %6975 = vmatpush1.bf16.msra.mxu0 %v6298_v38  ;;  %7303 = vmatpush1.bf16.msra.mxu1 %v6300_v60  ;;  %v6371_v38 = vld [vmem:[#allocation2 + $0x1408] sm:$0xff]  ;;  %v6373_v60 = vld [vmem:[#allocation2 + $0x1418] sm:$0xff] }
 0xa62   :  { %6976 = vmatprep.subr.bf16.mxu0 %v6307_v46  ;;  %7304 = vmatprep.subr.bf16.mxu1 %v6309_v61  ;;  %v12841_v46 = vpack.c.bf16 %v5070_v39, %v5070_v39  ;;  %v6370_v61 = vld [vmem:[#allocation2 + $0x1400] sm:$0xff]  ;;  %v6380_v39 = vld [vmem:[#allocation2 + $0x1450] sm:$0xff] }
 0xa65   :  { %6977 = vmatpush1.bf16.msra.mxu0 %v6306_v14  ;;  %7305 = vmatpush1.bf16.msra.mxu1 %v6308_v0  ;;  %v6372_v14 = vld [vmem:[#allocation2 + $0x1410] sm:$0xff]  ;;  %v6379_v0 = vld [vmem:[#allocation2 + $0x1448] sm:$0xff] }
 0xa66   :  { %6978 = vmatprep.subr.bf16.mxu0 %v6315_v23  ;;  %7306 = vmatprep.subr.bf16.mxu1 %v6317_v54  ;;  %v6381_v23 = vld [vmem:[#allocation2 + $0x1458] sm:$0xff]  ;;  %v13160_v54 = vmax.f32 %v12722_v29, 0.0  ;;  %v6386_v29 = vld [vmem:[#allocation2 + $0x1480] sm:$0xff] }
 0xa69   :  { %6979 = vmatpush1.bf16.msra.mxu0 %v6314_v47  ;;  %7307 = vmatpush1.bf16.msra.mxu1 %v6316_v5  ;;  %v12846_v47 = vpack.c.bf16 %v13160_v54, %v13160_v54  ;;  %v6387_v5 = vld [vmem:[#allocation2 + $0x1488] sm:$0xff] }
 0xa6a   :  { %6980 = vmatprep.subr.bf16.mxu0 %v6323_v7  ;;  %7308 = vmatprep.subr.bf16.mxu1 %v6325_v27  ;;  %v6389_v7 = vld [vmem:[#allocation2 + $0x1498] sm:$0xff]  ;;  %v6388_v27 = vld [vmem:[#allocation2 + $0x1490] sm:$0xff]  ;;  %v6451_v54 = vld [vmem:[#allocation2 + $0x1688] sm:$0xff] }
 0xa6d   :  { %6981 = vmatpush1.bf16.msra.mxu0 %v6322_v63  ;;  %7309 = vmatpush1.bf16.msra.mxu1 %v6324_v25  ;;  %v6395_v63 = vld [vmem:[#allocation2 + $0x14c8] sm:$0xff]  ;;  %v6397_v25 = vld [vmem:[#allocation2 + $0x14d8] sm:$0xff] }
 0xa6e   :  { %6982 = vmatprep.subr.bf16.mxu0 %v6331_v26  ;;  %7310 = vmatprep.subr.bf16.mxu1 %v6333_v20  ;;  %v6394_v26 = vld [vmem:[#allocation2 + $0x14c0] sm:$0xff]  ;;  %v6396_v20 = vld [vmem:[#allocation2 + $0x14d0] sm:$0xff] }
 0xa71   :  { %6983 = vmatpush1.bf16.msra.mxu0 %v6330_v43  ;;  %7311 = vmatpush1.bf16.msra.mxu1 %v6332_v13  ;;  %v6403_v43 = vld [vmem:[#allocation2 + $0x1508] sm:$0xff]  ;;  %v6405_v13 = vld [vmem:[#allocation2 + $0x1518] sm:$0xff] }
 0xa72   :  { %6984 = vmatprep.subr.bf16.mxu0 %v6339_v30  ;;  %7312 = vmatprep.subr.bf16.mxu1 %v6341_v36  ;;  %v6402_v30 = vld [vmem:[#allocation2 + $0x1500] sm:$0xff]  ;;  %v6404_v36 = vld [vmem:[#allocation2 + $0x1510] sm:$0xff] }
 0xa75   :  { %6985 = vmatpush1.bf16.msra.mxu0 %v6338_v40  ;;  %7313 = vmatpush1.bf16.msra.mxu1 %v6340_v19  ;;  %v6411_v40 = vld [vmem:[#allocation2 + $0x1548] sm:$0xff]  ;;  %v6413_v19 = vld [vmem:[#allocation2 + $0x1558] sm:$0xff] }
 0xa76   :  { %6986 = vmatprep.subr.bf16.mxu0 %v6347_v45  ;;  %7314 = vmatprep.subr.bf16.mxu1 %v6349_v44  ;;  %v6410_v45 = vld [vmem:[#allocation2 + $0x1540] sm:$0xff]  ;;  %v6412_v44 = vld [vmem:[#allocation2 + $0x1550] sm:$0xff] }
 0xa79   :  { %6987 = vmatpush1.bf16.msra.mxu0 %v6346_v42  ;;  %7315 = vmatpush1.bf16.msra.mxu1 %v6348_v51  ;;  %v6419_v42 = vld [vmem:[#allocation2 + $0x1588] sm:$0xff]  ;;  %v6421_v51 = vld [vmem:[#allocation2 + $0x1598] sm:$0xff] }
 0xa7a   :  { %6988 = vmatprep.subr.bf16.mxu0 %v6355_v62  ;;  %7316 = vmatprep.subr.bf16.mxu1 %v6357_v52  ;;  %v6418_v62 = vld [vmem:[#allocation2 + $0x1580] sm:$0xff]  ;;  %v6420_v52 = vld [vmem:[#allocation2 + $0x1590] sm:$0xff] }
 0xa7d   :  { %6989 = vmatpush1.bf16.msra.mxu0 %v6354_v4  ;;  %7317 = vmatpush1.bf16.msra.mxu1 %v6356_v10  ;;  %v6427_v4 = vld [vmem:[#allocation2 + $0x15c8] sm:$0xff]  ;;  %v6429_v10 = vld [vmem:[#allocation2 + $0x15d8] sm:$0xff] }
 0xa7e   :  { %6990 = vmatprep.subr.bf16.mxu0 %v6363_v9  ;;  %7318 = vmatprep.subr.bf16.mxu1 %v6365_v15  ;;  %v6426_v9 = vld [vmem:[#allocation2 + $0x15c0] sm:$0xff]  ;;  %v6428_v15 = vld [vmem:[#allocation2 + $0x15d0] sm:$0xff] }
 0xa81   :  { %6991 = vmatpush1.bf16.msra.mxu0 %v6362_v33  ;;  %7319 = vmatpush1.bf16.msra.mxu1 %v6364_v37  ;;  %v6435_v33 = vld [vmem:[#allocation2 + $0x1608] sm:$0xff]  ;;  %v6437_v37 = vld [vmem:[#allocation2 + $0x1618] sm:$0xff] }
 0xa82   :  { %7001 = vmatprep.subr.bf16.mxu0 %v6371_v38  ;;  %7329 = vmatprep.subr.bf16.mxu1 %v6373_v60  ;;  %v6434_v38 = vld [vmem:[#allocation2 + $0x1600] sm:$0xff]  ;;  %v6436_v60 = vld [vmem:[#allocation2 + $0x1610] sm:$0xff] }
 0xa84   :  { %6993 = vmatmul.mubr.bf16.vlgmr.msra.gmra.mrb[56].mxu0 %v12841_v46  ;;  %7321 = vmatmul.mubr.bf16.vlgmr.msra.gmra.mrb[60].mxu1 %v12841_v46 }
 0xa85   :  { %7002 = vmatpush1.bf16.msra.mxu0 %v6370_v61  ;;  %7330 = vmatpush1.bf16.msra.mxu1 %v6372_v14  ;;  %v6443_v61 = vld [vmem:[#allocation2 + $0x1648] sm:$0xff]  ;;  %v6445_v14 = vld [vmem:[#allocation2 + $0x1658] sm:$0xff] }
 0xa86   :  { %7003 = vmatprep.subr.bf16.mxu0 %v6379_v0  ;;  %7331 = vmatprep.subr.bf16.mxu1 %v6381_v23  ;;  %v6442_v0 = vld [vmem:[#allocation2 + $0x1640] sm:$0xff]  ;;  %v6444_v23 = vld [vmem:[#allocation2 + $0x1650] sm:$0xff] }
 0xa87   :  { %7033 = vmatprep.mubr.bf16.mxu0 %v12846_v47  ;;  %7361 = vmatprep.mubr.bf16.mxu1 %v12846_v47 }
 0xa89   :  { %7004 = vmatpush1.bf16.msra.mxu0 %v6378_v21  ;;  %7332 = vmatpush1.bf16.msra.mxu1 %v6380_v39  ;;  %v6453_v21 = vld [vmem:[#allocation2 + $0x1698] sm:$0xff]  ;;  %v6450_v39 = vld [vmem:[#allocation2 + $0x1680] sm:$0xff] }
 0xa8a   :  { %7005 = vmatprep.subr.bf16.mxu0 %v6387_v5  ;;  %7333 = vmatprep.subr.bf16.mxu1 %v6389_v7  ;;  %v6452_v5 = vld [vmem:[#allocation2 + $0x1690] sm:$0xff]  ;;  %v6459_v7 = vld [vmem:[#allocation2 + $0x16c8] sm:$0xff] }
 0xa8d   :  { %7006 = vmatpush1.bf16.msra.mxu0 %v6386_v29  ;;  %7334 = vmatpush1.bf16.msra.mxu1 %v6388_v27  ;;  %v6461_v29 = vld [vmem:[#allocation2 + $0x16d8] sm:$0xff]  ;;  %v6458_v27 = vld [vmem:[#allocation2 + $0x16c0] sm:$0xff] }
 0xa8e   :  { %7007 = vmatprep.subr.bf16.mxu0 %v6395_v63  ;;  %7335 = vmatprep.subr.bf16.mxu1 %v6397_v25  ;;  %v6460_v63 = vld [vmem:[#allocation2 + $0x16d0] sm:$0xff]  ;;  %v6467_v25 = vld [vmem:[#allocation2 + $0x1708] sm:$0xff] }
 0xa91   :  { %7008 = vmatpush1.bf16.msra.mxu0 %v6394_v26  ;;  %7336 = vmatpush1.bf16.msra.mxu1 %v6396_v20  ;;  %v6469_v26 = vld [vmem:[#allocation2 + $0x1718] sm:$0xff]  ;;  %v6466_v20 = vld [vmem:[#allocation2 + $0x1700] sm:$0xff] }
 0xa92   :  { %7009 = vmatprep.subr.bf16.mxu0 %v6403_v43  ;;  %7337 = vmatprep.subr.bf16.mxu1 %v6405_v13  ;;  %v6468_v43 = vld [vmem:[#allocation2 + $0x1710] sm:$0xff]  ;;  %v6475_v13 = vld [vmem:[#allocation2 + $0x1748] sm:$0xff] }
 0xa95   :  { %7010 = vmatpush1.bf16.msra.mxu0 %v6402_v30  ;;  %7338 = vmatpush1.bf16.msra.mxu1 %v6404_v36  ;;  %v6477_v30 = vld [vmem:[#allocation2 + $0x1758] sm:$0xff]  ;;  %v6474_v36 = vld [vmem:[#allocation2 + $0x1740] sm:$0xff] }
 0xa96   :  { %7011 = vmatprep.subr.bf16.mxu0 %v6411_v40  ;;  %7339 = vmatprep.subr.bf16.mxu1 %v6413_v19  ;;  %v6476_v40 = vld [vmem:[#allocation2 + $0x1750] sm:$0xff]  ;;  %v6483_v19 = vld [vmem:[#allocation2 + $0x1788] sm:$0xff] }
 0xa99   :  { %7012 = vmatpush1.bf16.msra.mxu0 %v6410_v45  ;;  %7340 = vmatpush1.bf16.msra.mxu1 %v6412_v44  ;;  %v6485_v45 = vld [vmem:[#allocation2 + $0x1798] sm:$0xff]  ;;  %v6482_v44 = vld [vmem:[#allocation2 + $0x1780] sm:$0xff] }
 0xa9a   :  { %7013 = vmatprep.subr.bf16.mxu0 %v6419_v42  ;;  %7341 = vmatprep.subr.bf16.mxu1 %v6421_v51  ;;  %v6484_v42 = vld [vmem:[#allocation2 + $0x1790] sm:$0xff]  ;;  %v6491_v51 = vld [vmem:[#allocation2 + $0x17c8] sm:$0xff] }
 0xa9d   :  { %7014 = vmatpush1.bf16.msra.mxu0 %v6418_v62  ;;  %7342 = vmatpush1.bf16.msra.mxu1 %v6420_v52  ;;  %v6493_v62 = vld [vmem:[#allocation2 + $0x17d8] sm:$0xff]  ;;  %v6490_v52 = vld [vmem:[#allocation2 + $0x17c0] sm:$0xff] }
 0xa9e   :  { %7015 = vmatprep.subr.bf16.mxu0 %v6427_v4  ;;  %7343 = vmatprep.subr.bf16.mxu1 %v6429_v10  ;;  %v6492_v4 = vld [vmem:[#allocation2 + $0x17d0] sm:$0xff]  ;;  %v6499_v10 = vld [vmem:[#allocation2 + $0x1808] sm:$0xff] }
 0xaa1   :  { %7016 = vmatpush1.bf16.msra.mxu0 %v6426_v9  ;;  %7344 = vmatpush1.bf16.msra.mxu1 %v6428_v15  ;;  %v6501_v9 = vld [vmem:[#allocation2 + $0x1818] sm:$0xff]  ;;  %v13161_v15 = vmax.f32 %v12718_v24, 0.0  ;;  %v6506_v24 = vld [vmem:[#allocation2 + $0x1840] sm:$0xff] }
 0xaa2   :  { %7017 = vmatprep.subr.bf16.mxu0 %v6435_v33  ;;  %7345 = vmatprep.subr.bf16.mxu1 %v6437_v37  ;;  %v6498_v37 = vld [vmem:[#allocation2 + $0x1800] sm:$0xff] }
 0xaa3   :  { %v12855_v33 = vpack.c.bf16 %v13161_v15, %v13161_v15  ;;  %v6564_v15 = vld [vmem:[#allocation2 + $0x1a10] sm:$0xff] }
 0xaa5   :  { %7018 = vmatpush1.bf16.msra.mxu0 %v6434_v38  ;;  %7346 = vmatpush1.bf16.msra.mxu1 %v6436_v60  ;;  %v6500_v38 = vld [vmem:[#allocation2 + $0x1810] sm:$0xff]  ;;  %v6507_v60 = vld [vmem:[#allocation2 + $0x1848] sm:$0xff] }
 0xaa6   :  { %7019 = vmatprep.subr.bf16.mxu0 %v6443_v61  ;;  %7347 = vmatprep.subr.bf16.mxu1 %v6445_v14  ;;  %v6509_v61 = vld [vmem:[#allocation2 + $0x1858] sm:$0xff]  ;;  %v13162_v14 = vmax.f32 %v12736_v31, 0.0  ;;  %v6514_v31 = vld [vmem:[#allocation2 + $0x1880] sm:$0xff] }
 0xaa9   :  { %7020 = vmatpush1.bf16.msra.mxu0 %v6442_v0  ;;  %7348 = vmatpush1.bf16.msra.mxu1 %v6444_v23  ;;  %v12860_v0 = vpack.c.bf16 %v13162_v14, %v13162_v14  ;;  %v6508_v23 = vld [vmem:[#allocation2 + $0x1850] sm:$0xff]  ;;  %v6579_v14 = vld [vmem:[#allocation2 + $0x1a88] sm:$0xff] }
 0xaaa   :  { %7021 = vmatprep.subr.bf16.mxu0 %v6451_v54  ;;  %7349 = vmatprep.subr.bf16.mxu1 %v6453_v21  ;;  %v6515_v54 = vld [vmem:[#allocation2 + $0x1888] sm:$0xff]  ;;  %v6517_v21 = vld [vmem:[#allocation2 + $0x1898] sm:$0xff] }
 0xaad   :  { %7022 = vmatpush1.bf16.msra.mxu0 %v6450_v39  ;;  %7350 = vmatpush1.bf16.msra.mxu1 %v6452_v5  ;;  %v6516_v39 = vld [vmem:[#allocation2 + $0x1890] sm:$0xff]  ;;  %v6523_v5 = vld [vmem:[#allocation2 + $0x18c8] sm:$0xff] }
 0xaae   :  { %7023 = vmatprep.subr.bf16.mxu0 %v6459_v7  ;;  %7351 = vmatprep.subr.bf16.mxu1 %v6461_v29  ;;  %v6525_v7 = vld [vmem:[#allocation2 + $0x18d8] sm:$0xff]  ;;  %v6522_v29 = vld [vmem:[#allocation2 + $0x18c0] sm:$0xff] }
 0xab1   :  { %7024 = vmatpush1.bf16.msra.mxu0 %v6458_v27  ;;  %7352 = vmatpush1.bf16.msra.mxu1 %v6460_v63  ;;  %v6524_v27 = vld [vmem:[#allocation2 + $0x18d0] sm:$0xff]  ;;  %v6531_v63 = vld [vmem:[#allocation2 + $0x1908] sm:$0xff] }
 0xab2   :  { %7025 = vmatprep.subr.bf16.mxu0 %v6467_v25  ;;  %7353 = vmatprep.subr.bf16.mxu1 %v6469_v26  ;;  %v6533_v25 = vld [vmem:[#allocation2 + $0x1918] sm:$0xff]  ;;  %v6530_v26 = vld [vmem:[#allocation2 + $0x1900] sm:$0xff] }
 0xab5   :  { %7026 = vmatpush1.bf16.msra.mxu0 %v6466_v20  ;;  %7354 = vmatpush1.bf16.msra.mxu1 %v6468_v43  ;;  %v6532_v20 = vld [vmem:[#allocation2 + $0x1910] sm:$0xff]  ;;  %v6539_v43 = vld [vmem:[#allocation2 + $0x1948] sm:$0xff] }
 0xab6   :  { %7027 = vmatprep.subr.bf16.mxu0 %v6475_v13  ;;  %7355 = vmatprep.subr.bf16.mxu1 %v6477_v30  ;;  %v6541_v13 = vld [vmem:[#allocation2 + $0x1958] sm:$0xff]  ;;  %v6538_v30 = vld [vmem:[#allocation2 + $0x1940] sm:$0xff] }
 0xab9   :  { %7028 = vmatpush1.bf16.msra.mxu0 %v6474_v36  ;;  %7356 = vmatpush1.bf16.msra.mxu1 %v6476_v40  ;;  %v6540_v36 = vld [vmem:[#allocation2 + $0x1950] sm:$0xff]  ;;  %v6547_v40 = vld [vmem:[#allocation2 + $0x1988] sm:$0xff] }
 0xaba   :  { %7029 = vmatprep.subr.bf16.mxu0 %v6483_v19  ;;  %7357 = vmatprep.subr.bf16.mxu1 %v6485_v45  ;;  %v6549_v19 = vld [vmem:[#allocation2 + $0x1998] sm:$0xff]  ;;  %v6546_v45 = vld [vmem:[#allocation2 + $0x1980] sm:$0xff] }
 0xabd   :  { %7030 = vmatpush1.bf16.msra.mxu0 %v6482_v44  ;;  %7358 = vmatpush1.bf16.msra.mxu1 %v6484_v42  ;;  %v6548_v44 = vld [vmem:[#allocation2 + $0x1990] sm:$0xff]  ;;  %v6555_v42 = vld [vmem:[#allocation2 + $0x19c8] sm:$0xff] }
 0xabe   :  { %7031 = vmatprep.subr.bf16.mxu0 %v6491_v51  ;;  %7359 = vmatprep.subr.bf16.mxu1 %v6493_v62  ;;  %v6557_v51 = vld [vmem:[#allocation2 + $0x19d8] sm:$0xff]  ;;  %v6554_v62 = vld [vmem:[#allocation2 + $0x19c0] sm:$0xff] }
 0xac1   :  { %7032 = vmatpush1.bf16.msra.mxu0 %v6490_v52  ;;  %7360 = vmatpush1.bf16.msra.mxu1 %v6492_v4  ;;  %v6556_v52 = vld [vmem:[#allocation2 + $0x19d0] sm:$0xff]  ;;  %v6563_v4 = vld [vmem:[#allocation2 + $0x1a08] sm:$0xff] }
 0xac2   :  { %7042 = vmatprep.subr.bf16.mxu0 %v6499_v10  ;;  %7370 = vmatprep.subr.bf16.mxu1 %v6501_v9  ;;  %v6565_v10 = vld [vmem:[#allocation2 + $0x1a18] sm:$0xff]  ;;  %v6562_v9 = vld [vmem:[#allocation2 + $0x1a00] sm:$0xff] }
 0xac4   :  { %7034 = vmatmul.mubr.bf16.vlgmr.msra.gmra.mrb[56].mxu0 %v12855_v33  ;;  %7362 = vmatmul.mubr.bf16.vlgmr.msra.gmra.mrb[60].mxu1 %v12855_v33 }
 0xac5   :  { %7043 = vmatpush1.bf16.msra.mxu0 %v6498_v37  ;;  %7371 = vmatpush1.bf16.msra.mxu1 %v6500_v38  ;;  %v6571_v37 = vld [vmem:[#allocation2 + $0x1a48] sm:$0xff]  ;;  %v6573_v38 = vld [vmem:[#allocation2 + $0x1a58] sm:$0xff] }
 0xac6   :  { %7044 = vmatprep.subr.bf16.mxu0 %v6507_v60  ;;  %7372 = vmatprep.subr.bf16.mxu1 %v6509_v61  ;;  %v6570_v60 = vld [vmem:[#allocation2 + $0x1a40] sm:$0xff]  ;;  %v6572_v61 = vld [vmem:[#allocation2 + $0x1a50] sm:$0xff] }
 0xac7   :  { %7074 = vmatprep.mubr.bf16.mxu0 %v12860_v0  ;;  %7402 = vmatprep.mubr.bf16.mxu1 %v12860_v0 }
 0xac9   :  { %7045 = vmatpush1.bf16.msra.mxu0 %v6506_v24  ;;  %7373 = vmatpush1.bf16.msra.mxu1 %v6508_v23  ;;  %v6581_v24 = vld [vmem:[#allocation2 + $0x1a98] sm:$0xff]  ;;  %v6578_v23 = vld [vmem:[#allocation2 + $0x1a80] sm:$0xff] }
 0xaca   :  { %7046 = vmatprep.subr.bf16.mxu0 %v6515_v54  ;;  %7374 = vmatprep.subr.bf16.mxu1 %v6517_v21  ;;  %v6580_v54 = vld [vmem:[#allocation2 + $0x1a90] sm:$0xff]  ;;  %v6587_v21 = vld [vmem:[#allocation2 + $0x1ac8] sm:$0xff] }
 0xacd   :  { %7047 = vmatpush1.bf16.msra.mxu0 %v6514_v31  ;;  %7375 = vmatpush1.bf16.msra.mxu1 %v6516_v39  ;;  %v6589_v31 = vld [vmem:[#allocation2 + $0x1ad8] sm:$0xff]  ;;  %v6586_v39 = vld [vmem:[#allocation2 + $0x1ac0] sm:$0xff] }
 0xace   :  { %7048 = vmatprep.subr.bf16.mxu0 %v6523_v5  ;;  %7376 = vmatprep.subr.bf16.mxu1 %v6525_v7  ;;  %v6588_v5 = vld [vmem:[#allocation2 + $0x1ad0] sm:$0xff]  ;;  %v6595_v7 = vld [vmem:[#allocation2 + $0x1b08] sm:$0xff] }
 0xad1   :  { %7049 = vmatpush1.bf16.msra.mxu0 %v6522_v29  ;;  %7377 = vmatpush1.bf16.msra.mxu1 %v6524_v27  ;;  %v6597_v29 = vld [vmem:[#allocation2 + $0x1b18] sm:$0xff]  ;;  %v6594_v27 = vld [vmem:[#allocation2 + $0x1b00] sm:$0xff] }
 0xad2   :  { %7050 = vmatprep.subr.bf16.mxu0 %v6531_v63  ;;  %7378 = vmatprep.subr.bf16.mxu1 %v6533_v25  ;;  %v6596_v63 = vld [vmem:[#allocation2 + $0x1b10] sm:$0xff]  ;;  %v6603_v25 = vld [vmem:[#allocation2 + $0x1b48] sm:$0xff] }
 0xad5   :  { %7051 = vmatpush1.bf16.msra.mxu0 %v6530_v26  ;;  %7379 = vmatpush1.bf16.msra.mxu1 %v6532_v20  ;;  %v6605_v26 = vld [vmem:[#allocation2 + $0x1b58] sm:$0xff]  ;;  %v6602_v20 = vld [vmem:[#allocation2 + $0x1b40] sm:$0xff] }
 0xad6   :  { %7052 = vmatprep.subr.bf16.mxu0 %v6539_v43  ;;  %7380 = vmatprep.subr.bf16.mxu1 %v6541_v13  ;;  %v6604_v43 = vld [vmem:[#allocation2 + $0x1b50] sm:$0xff]  ;;  %v6611_v13 = vld [vmem:[#allocation2 + $0x1b88] sm:$0xff] }
 0xad9   :  { %7053 = vmatpush1.bf16.msra.mxu0 %v6538_v30  ;;  %7381 = vmatpush1.bf16.msra.mxu1 %v6540_v36  ;;  %v6613_v30 = vld [vmem:[#allocation2 + $0x1b98] sm:$0xff]  ;;  %v6610_v36 = vld [vmem:[#allocation2 + $0x1b80] sm:$0xff] }
 0xada   :  { %7054 = vmatprep.subr.bf16.mxu0 %v6547_v40  ;;  %7382 = vmatprep.subr.bf16.mxu1 %v6549_v19  ;;  %v6612_v40 = vld [vmem:[#allocation2 + $0x1b90] sm:$0xff]  ;;  %v6619_v19 = vld [vmem:[#allocation2 + $0x1bc8] sm:$0xff] }
 0xadd   :  { %7055 = vmatpush1.bf16.msra.mxu0 %v6546_v45  ;;  %7383 = vmatpush1.bf16.msra.mxu1 %v6548_v44  ;;  %v6621_v45 = vld [vmem:[#allocation2 + $0x1bd8] sm:$0xff]  ;;  %v6618_v44 = vld [vmem:[#allocation2 + $0x1bc0] sm:$0xff] }
 0xade   :  { %7056 = vmatprep.subr.bf16.mxu0 %v6555_v42  ;;  %7384 = vmatprep.subr.bf16.mxu1 %v6557_v51  ;;  %v6620_v42 = vld [vmem:[#allocation2 + $0x1bd0] sm:$0xff]  ;;  %v6627_v51 = vld [vmem:[#allocation2 + $0x1c08] sm:$0xff] }
 0xae1   :  { %7057 = vmatpush1.bf16.msra.mxu0 %v6554_v62  ;;  %7385 = vmatpush1.bf16.msra.mxu1 %v6556_v52  ;;  %v6629_v62 = vld [vmem:[#allocation2 + $0x1c18] sm:$0xff]  ;;  %v13163_v52 = vmax.f32 %v12732_v11, 0.0  ;;  %v6634_v11 = vld [vmem:[#allocation2 + $0x1c40] sm:$0xff] }
 0xae2   :  { %7058 = vmatprep.subr.bf16.mxu0 %v6563_v4  ;;  %7386 = vmatprep.subr.bf16.mxu1 %v6565_v10  ;;  %v6626_v10 = vld [vmem:[#allocation2 + $0x1c00] sm:$0xff] }
 0xae3   :  { %v12869_v4 = vpack.c.bf16 %v13163_v52, %v13163_v52  ;;  %v6692_v52 = vld [vmem:[#allocation2 + $0x1e10] sm:$0xff] }
 0xae5   :  { %7059 = vmatpush1.bf16.msra.mxu0 %v6562_v9  ;;  %7387 = vmatpush1.bf16.msra.mxu1 %v6564_v15  ;;  %v6628_v9 = vld [vmem:[#allocation2 + $0x1c10] sm:$0xff]  ;;  %v6635_v15 = vld [vmem:[#allocation2 + $0x1c48] sm:$0xff] }
 0xae6   :  { %7060 = vmatprep.subr.bf16.mxu0 %v6571_v37  ;;  %7388 = vmatprep.subr.bf16.mxu1 %v6573_v38  ;;  %v6637_v37 = vld [vmem:[#allocation2 + $0x1c58] sm:$0xff]  ;;  %v13164_v38 = vmax.f32 %v12738_v58, 0.0  ;;  %v6642_v58 = vld [vmem:[#allocation2 + $0x1c80] sm:$0xff] }
 0xae9   :  { %7061 = vmatpush1.bf16.msra.mxu0 %v6570_v60  ;;  %7389 = vmatpush1.bf16.msra.mxu1 %v6572_v61  ;;  %v12874_v60 = vpack.c.bf16 %v13164_v38, %v13164_v38  ;;  %v6636_v61 = vld [vmem:[#allocation2 + $0x1c50] sm:$0xff]  ;;  %v6707_v38 = vld [vmem:[#allocation2 + $0x1e88] sm:$0xff] }
 0xaea   :  { %7062 = vmatprep.subr.bf16.mxu0 %v6579_v14  ;;  %7390 = vmatprep.subr.bf16.mxu1 %v6581_v24  ;;  %v6643_v14 = vld [vmem:[#allocation2 + $0x1c88] sm:$0xff]  ;;  %v6645_v24 = vld [vmem:[#allocation2 + $0x1c98] sm:$0xff] }
 0xaed   :  { %7063 = vmatpush1.bf16.msra.mxu0 %v6578_v23  ;;  %7391 = vmatpush1.bf16.msra.mxu1 %v6580_v54  ;;  %v6644_v23 = vld [vmem:[#allocation2 + $0x1c90] sm:$0xff]  ;;  %v6651_v54 = vld [vmem:[#allocation2 + $0x1cc8] sm:$0xff] }
 0xaee   :  { %7064 = vmatprep.subr.bf16.mxu0 %v6587_v21  ;;  %7392 = vmatprep.subr.bf16.mxu1 %v6589_v31  ;;  %v6653_v21 = vld [vmem:[#allocation2 + $0x1cd8] sm:$0xff]  ;;  %v6650_v31 = vld [vmem:[#allocation2 + $0x1cc0] sm:$0xff] }
 0xaf1   :  { %7065 = vmatpush1.bf16.msra.mxu0 %v6586_v39  ;;  %7393 = vmatpush1.bf16.msra.mxu1 %v6588_v5  ;;  %v6652_v39 = vld [vmem:[#allocation2 + $0x1cd0] sm:$0xff]  ;;  %v6659_v5 = vld [vmem:[#allocation2 + $0x1d08] sm:$0xff] }
 0xaf2   :  { %7066 = vmatprep.subr.bf16.mxu0 %v6595_v7  ;;  %7394 = vmatprep.subr.bf16.mxu1 %v6597_v29  ;;  %v6661_v7 = vld [vmem:[#allocation2 + $0x1d18] sm:$0xff]  ;;  %v6658_v29 = vld [vmem:[#allocation2 + $0x1d00] sm:$0xff] }
 0xaf5   :  { %7067 = vmatpush1.bf16.msra.mxu0 %v6594_v27  ;;  %7395 = vmatpush1.bf16.msra.mxu1 %v6596_v63  ;;  %v6660_v27 = vld [vmem:[#allocation2 + $0x1d10] sm:$0xff]  ;;  %v6667_v63 = vld [vmem:[#allocation2 + $0x1d48] sm:$0xff] }
 0xaf6   :  { %7068 = vmatprep.subr.bf16.mxu0 %v6603_v25  ;;  %7396 = vmatprep.subr.bf16.mxu1 %v6605_v26  ;;  %v6669_v25 = vld [vmem:[#allocation2 + $0x1d58] sm:$0xff]  ;;  %v6666_v26 = vld [vmem:[#allocation2 + $0x1d40] sm:$0xff] }
 0xaf9   :  { %7069 = vmatpush1.bf16.msra.mxu0 %v6602_v20  ;;  %7397 = vmatpush1.bf16.msra.mxu1 %v6604_v43  ;;  %v6668_v20 = vld [vmem:[#allocation2 + $0x1d50] sm:$0xff]  ;;  %v6675_v43 = vld [vmem:[#allocation2 + $0x1d88] sm:$0xff] }
 0xafa   :  { %7070 = vmatprep.subr.bf16.mxu0 %v6611_v13  ;;  %7398 = vmatprep.subr.bf16.mxu1 %v6613_v30  ;;  %v6677_v13 = vld [vmem:[#allocation2 + $0x1d98] sm:$0xff]  ;;  %v6674_v30 = vld [vmem:[#allocation2 + $0x1d80] sm:$0xff] }
 0xafd   :  { %7071 = vmatpush1.bf16.msra.mxu0 %v6610_v36  ;;  %7399 = vmatpush1.bf16.msra.mxu1 %v6612_v40  ;;  %v6676_v36 = vld [vmem:[#allocation2 + $0x1d90] sm:$0xff]  ;;  %v6683_v40 = vld [vmem:[#allocation2 + $0x1dc8] sm:$0xff] }
 0xafe   :  { %7072 = vmatprep.subr.bf16.mxu0 %v6619_v19  ;;  %7400 = vmatprep.subr.bf16.mxu1 %v6621_v45  ;;  %v6685_v19 = vld [vmem:[#allocation2 + $0x1dd8] sm:$0xff]  ;;  %v6682_v45 = vld [vmem:[#allocation2 + $0x1dc0] sm:$0xff] }
 0xb01   :  { %7073 = vmatpush1.bf16.msra.mxu0 %v6618_v44  ;;  %7401 = vmatpush1.bf16.msra.mxu1 %v6620_v42  ;;  %v6684_v44 = vld [vmem:[#allocation2 + $0x1dd0] sm:$0xff]  ;;  %v6691_v42 = vld [vmem:[#allocation2 + $0x1e08] sm:$0xff] }
 0xb02   :  { %7083 = vmatprep.subr.bf16.mxu0 %v6627_v51  ;;  %7411 = vmatprep.subr.bf16.mxu1 %v6629_v62  ;;  %v6693_v51 = vld [vmem:[#allocation2 + $0x1e18] sm:$0xff]  ;;  %v6690_v62 = vld [vmem:[#allocation2 + $0x1e00] sm:$0xff] }
 0xb04   :  { %7075 = vmatmul.mubr.bf16.vlgmr.msra.gmra.mrb[56].mxu0 %v12869_v4  ;;  %7403 = vmatmul.mubr.bf16.vlgmr.msra.gmra.mrb[60].mxu1 %v12869_v4 }
 0xb05   :  { %7084 = vmatpush1.bf16.msra.mxu0 %v6626_v10  ;;  %7412 = vmatpush1.bf16.msra.mxu1 %v6628_v9  ;;  %v6699_v10 = vld [vmem:[#allocation2 + $0x1e48] sm:$0xff]  ;;  %v6701_v9 = vld [vmem:[#allocation2 + $0x1e58] sm:$0xff] }
 0xb06   :  { %7085 = vmatprep.subr.bf16.mxu0 %v6635_v15  ;;  %7413 = vmatprep.subr.bf16.mxu1 %v6637_v37  ;;  %v6698_v15 = vld [vmem:[#allocation2 + $0x1e40] sm:$0xff]  ;;  %v6700_v37 = vld [vmem:[#allocation2 + $0x1e50] sm:$0xff] }
 0xb07   :  { %7115 = vmatprep.mubr.bf16.mxu0 %v12874_v60  ;;  %7443 = vmatprep.mubr.bf16.mxu1 %v12874_v60 }
 0xb09   :  { %7086 = vmatpush1.bf16.msra.mxu0 %v6634_v11  ;;  %7414 = vmatpush1.bf16.msra.mxu1 %v6636_v61  ;;  %v6709_v11 = vld [vmem:[#allocation2 + $0x1e98] sm:$0xff]  ;;  %v6706_v61 = vld [vmem:[#allocation2 + $0x1e80] sm:$0xff] }
 0xb0a   :  { %7087 = vmatprep.subr.bf16.mxu0 %v6643_v14  ;;  %7415 = vmatprep.subr.bf16.mxu1 %v6645_v24  ;;  %v6708_v14 = vld [vmem:[#allocation2 + $0x1e90] sm:$0xff]  ;;  %v6715_v24 = vld [vmem:[#allocation2 + $0x1ec8] sm:$0xff] }
 0xb0d   :  { %7088 = vmatpush1.bf16.msra.mxu0 %v6642_v58  ;;  %7416 = vmatpush1.bf16.msra.mxu1 %v6644_v23  ;;  %v6717_v58 = vld [vmem:[#allocation2 + $0x1ed8] sm:$0xff]  ;;  %v6714_v23 = vld [vmem:[#allocation2 + $0x1ec0] sm:$0xff] }
 0xb0e   :  { %7089 = vmatprep.subr.bf16.mxu0 %v6651_v54  ;;  %7417 = vmatprep.subr.bf16.mxu1 %v6653_v21  ;;  %v6716_v54 = vld [vmem:[#allocation2 + $0x1ed0] sm:$0xff]  ;;  %v6723_v21 = vld [vmem:[#allocation2 + $0x1f08] sm:$0xff] }
 0xb11   :  { %7090 = vmatpush1.bf16.msra.mxu0 %v6650_v31  ;;  %7418 = vmatpush1.bf16.msra.mxu1 %v6652_v39  ;;  %v6725_v31 = vld [vmem:[#allocation2 + $0x1f18] sm:$0xff]  ;;  %v6722_v39 = vld [vmem:[#allocation2 + $0x1f00] sm:$0xff] }
 0xb12   :  { %7091 = vmatprep.subr.bf16.mxu0 %v6659_v5  ;;  %7419 = vmatprep.subr.bf16.mxu1 %v6661_v7  ;;  %v6724_v5 = vld [vmem:[#allocation2 + $0x1f10] sm:$0xff]  ;;  %v6731_v7 = vld [vmem:[#allocation2 + $0x1f48] sm:$0xff] }
 0xb15   :  { %7092 = vmatpush1.bf16.msra.mxu0 %v6658_v29  ;;  %7420 = vmatpush1.bf16.msra.mxu1 %v6660_v27  ;;  %v6733_v29 = vld [vmem:[#allocation2 + $0x1f58] sm:$0xff]  ;;  %v6730_v27 = vld [vmem:[#allocation2 + $0x1f40] sm:$0xff] }
 0xb16   :  { %7093 = vmatprep.subr.bf16.mxu0 %v6667_v63  ;;  %7421 = vmatprep.subr.bf16.mxu1 %v6669_v25  ;;  %v6732_v63 = vld [vmem:[#allocation2 + $0x1f50] sm:$0xff]  ;;  %v6739_v25 = vld [vmem:[#allocation2 + $0x1f88] sm:$0xff] }
 0xb19   :  { %7094 = vmatpush1.bf16.msra.mxu0 %v6666_v26  ;;  %7422 = vmatpush1.bf16.msra.mxu1 %v6668_v20  ;;  %v6741_v26 = vld [vmem:[#allocation2 + $0x1f98] sm:$0xff]  ;;  %v6738_v20 = vld [vmem:[#allocation2 + $0x1f80] sm:$0xff] }
 0xb1a   :  { %7095 = vmatprep.subr.bf16.mxu0 %v6675_v43  ;;  %7423 = vmatprep.subr.bf16.mxu1 %v6677_v13  ;;  %v6740_v43 = vld [vmem:[#allocation2 + $0x1f90] sm:$0xff]  ;;  %v6747_v13 = vld [vmem:[#allocation2 + $0x1fc8] sm:$0xff] }
 0xb1d   :  { %7096 = vmatpush1.bf16.msra.mxu0 %v6674_v30  ;;  %7424 = vmatpush1.bf16.msra.mxu1 %v6676_v36  ;;  %v6749_v30 = vld [vmem:[#allocation2 + $0x1fd8] sm:$0xff]  ;;  %v6746_v36 = vld [vmem:[#allocation2 + $0x1fc0] sm:$0xff] }
 0xb1e   :  { %7097 = vmatprep.subr.bf16.mxu0 %v6683_v40  ;;  %7425 = vmatprep.subr.bf16.mxu1 %v6685_v19  ;;  %v6748_v40 = vld [vmem:[#allocation2 + $0x1fd0] sm:$0xff]  ;;  %v5735_v19 = vld [vmem:[#allocation2 + $0x28] sm:$0xff] }
 0xb21   :  { %7098 = vmatpush1.bf16.msra.mxu0 %v6682_v45  ;;  %7426 = vmatpush1.bf16.msra.mxu1 %v6684_v44  ;;  %v5737_v45 = vld [vmem:[#allocation2 + $0x38] sm:$0xff]  ;;  %v13165_v44 = vmax.f32 %v12734_v48, 0.0  ;;  %v5742_v48 = vld [vmem:[#allocation2 + $0x60] sm:$0xff] }
 0xb22   :  { %7099 = vmatprep.subr.bf16.mxu0 %v6691_v42  ;;  %7427 = vmatprep.subr.bf16.mxu1 %v6693_v51  ;;  %v5734_v51 = vld [vmem:[#allocation2 + $0x20] sm:$0xff] }
 0xb23   :  { %v12883_v42 = vpack.c.bf16 %v13165_v44, %v13165_v44  ;;  %v5809_v44 = vld [vmem:[#allocation2 + $0x278] sm:$0xff] }
 0xb25   :  { %7100 = vmatpush1.bf16.msra.mxu0 %v6690_v62  ;;  %7428 = vmatpush1.bf16.msra.mxu1 %v6692_v52  ;;  %v5736_v62 = vld [vmem:[#allocation2 + $0x30] sm:$0xff]  ;;  %v5743_v52 = vld [vmem:[#allocation2 + $0x68] sm:$0xff] }
 0xb26   :  { %7101 = vmatprep.subr.bf16.mxu0 %v6699_v10  ;;  %7429 = vmatprep.subr.bf16.mxu1 %v6701_v9  ;;  %v5745_v10 = vld [vmem:[#allocation2 + $0x78] sm:$0xff]  ;;  %v5744_v9 = vld [vmem:[#allocation2 + $0x70] sm:$0xff] }
 0xb29   :  { %7102 = vmatpush1.bf16.msra.mxu0 %v6698_v15  ;;  %7430 = vmatpush1.bf16.msra.mxu1 %v6700_v37  ;;  %v5751_v15 = vld [vmem:[#allocation2 + $0xa8] sm:$0xff]  ;;  %v5753_v37 = vld [vmem:[#allocation2 + $0xb8] sm:$0xff] }
 0xb2a   :  { %7103 = vmatprep.subr.bf16.mxu0 %v6707_v38  ;;  %7431 = vmatprep.subr.bf16.mxu1 %v6709_v11  ;;  %v5750_v38 = vld [vmem:[#allocation2 + $0xa0] sm:$0xff]  ;;  %v5752_v11 = vld [vmem:[#allocation2 + $0xb0] sm:$0xff] }
 0xb2d   :  { %7104 = vmatpush1.bf16.msra.mxu0 %v6706_v61  ;;  %7432 = vmatpush1.bf16.msra.mxu1 %v6708_v14  ;;  %v5759_v61 = vld [vmem:[#allocation2 + $0xe8] sm:$0xff]  ;;  %v5761_v14 = vld [vmem:[#allocation2 + $0xf8] sm:$0xff] }
 0xb2e   :  { %7105 = vmatprep.subr.bf16.mxu0 %v6715_v24  ;;  %7433 = vmatprep.subr.bf16.mxu1 %v6717_v58  ;;  %v5758_v24 = vld [vmem:[#allocation2 + $0xe0] sm:$0xff]  ;;  %v5760_v58 = vld [vmem:[#allocation2 + $0xf0] sm:$0xff] }
 0xb31   :  { %7106 = vmatpush1.bf16.msra.mxu0 %v6714_v23  ;;  %7434 = vmatpush1.bf16.msra.mxu1 %v6716_v54  ;;  %v5767_v23 = vld [vmem:[#allocation2 + $0x128] sm:$0xff]  ;;  %v5769_v54 = vld [vmem:[#allocation2 + $0x138] sm:$0xff] }
 0xb32   :  { %7107 = vmatprep.subr.bf16.mxu0 %v6723_v21  ;;  %7435 = vmatprep.subr.bf16.mxu1 %v6725_v31  ;;  %v5768_v21 = vld [vmem:[#allocation2 + $0x130] sm:$0xff]  ;;  %v5775_v31 = vld [vmem:[#allocation2 + $0x168] sm:$0xff] }
 0xb35   :  { %7108 = vmatpush1.bf16.msra.mxu0 %v6722_v39  ;;  %7436 = vmatpush1.bf16.msra.mxu1 %v6724_v5  ;;  %v5777_v39 = vld [vmem:[#allocation2 + $0x178] sm:$0xff]  ;;  %v5774_v5 = vld [vmem:[#allocation2 + $0x160] sm:$0xff] }
 0xb36   :  { %7109 = vmatprep.subr.bf16.mxu0 %v6731_v7  ;;  %7437 = vmatprep.subr.bf16.mxu1 %v6733_v29  ;;  %v5776_v7 = vld [vmem:[#allocation2 + $0x170] sm:$0xff]  ;;  %v5783_v29 = vld [vmem:[#allocation2 + $0x1a8] sm:$0xff] }
 0xb39   :  { %7110 = vmatpush1.bf16.msra.mxu0 %v6730_v27  ;;  %7438 = vmatpush1.bf16.msra.mxu1 %v6732_v63  ;;  %v5785_v27 = vld [vmem:[#allocation2 + $0x1b8] sm:$0xff]  ;;  %v5782_v63 = vld [vmem:[#allocation2 + $0x1a0] sm:$0xff] }
 0xb3a   :  { %7111 = vmatprep.subr.bf16.mxu0 %v6739_v25  ;;  %7439 = vmatprep.subr.bf16.mxu1 %v6741_v26  ;;  %v5784_v25 = vld [vmem:[#allocation2 + $0x1b0] sm:$0xff]  ;;  %v5791_v26 = vld [vmem:[#allocation2 + $0x1e8] sm:$0xff] }
 0xb3d   :  { %7112 = vmatpush1.bf16.msra.mxu0 %v6738_v20  ;;  %7440 = vmatpush1.bf16.msra.mxu1 %v6740_v43  ;;  %v5793_v20 = vld [vmem:[#allocation2 + $0x1f8] sm:$0xff]  ;;  %v5790_v43 = vld [vmem:[#allocation2 + $0x1e0] sm:$0xff] }
 0xb3e   :  { %7113 = vmatprep.subr.bf16.mxu0 %v6747_v13  ;;  %7441 = vmatprep.subr.bf16.mxu1 %v6749_v30  ;;  %v5792_v13 = vld [vmem:[#allocation2 + $0x1f0] sm:$0xff]  ;;  %v5799_v30 = vld [vmem:[#allocation2 + $0x228] sm:$0xff] }
 0xb41   :  { %7114 = vmatpush1.bf16.msra.mxu0 %v6746_v36  ;;  %7442 = vmatpush1.bf16.msra.mxu1 %v6748_v40  ;;  %v5801_v36 = vld [vmem:[#allocation2 + $0x238] sm:$0xff]  ;;  %v5798_v40 = vld [vmem:[#allocation2 + $0x220] sm:$0xff] }
 0xb42   :  { %7452 = vmatprep.subr.bf16.mxu0 %v5735_v19  ;;  %7780 = vmatprep.subr.bf16.mxu1 %v5737_v45  ;;  %v5800_v19 = vld [vmem:[#allocation2 + $0x230] sm:$0xff]  ;;  %v5807_v45 = vld [vmem:[#allocation2 + $0x268] sm:$0xff] }
 0xb44   :  { %7116 = vmatmul.mubr.bf16.vlgmr.msra.gmra.mrb[56].mxu0 %v12883_v42  ;;  %7444 = vmatmul.mubr.bf16.vlgmr.msra.gmra.mrb[60].mxu1 %v12883_v42 }
 0xb45   :  { %7453 = vmatpush1.bf16.msra.mxu0 %v5734_v51  ;;  %7781 = vmatpush1.bf16.msra.mxu1 %v5736_v62  ;;  %v5806_v51 = vld [vmem:[#allocation2 + $0x260] sm:$0xff]  ;;  %v5808_v62 = vld [vmem:[#allocation2 + $0x270] sm:$0xff] }
 0xb46   :  { %7454 = vmatprep.subr.bf16.mxu0 %v5743_v52  ;;  %7782 = vmatprep.subr.bf16.mxu1 %v5745_v10  ;;  %v5815_v52 = vld [vmem:[#allocation2 + $0x2a8] sm:$0xff]  ;;  %v5817_v10 = vld [vmem:[#allocation2 + $0x2b8] sm:$0xff] }
 0xb47   :  { %7484 = vmatprep.mubr.bf16.mxu0 %v12778_v18  ;;  %7812 = vmatprep.mubr.bf16.mxu1 %v12778_v18  ;;  %v5766_v18 = vld [vmem:[#allocation2 + $0x120] sm:$0xff] }
 0xb49   :  { %7455 = vmatpush1.bf16.msra.mxu0 %v5742_v48  ;;  %7783 = vmatpush1.bf16.msra.mxu1 %v5744_v9  ;;  %v5814_v48 = vld [vmem:[#allocation2 + $0x2a0] sm:$0xff]  ;;  %v5816_v9 = vld [vmem:[#allocation2 + $0x2b0] sm:$0xff] }
 0xb4a   :  { %7456 = vmatprep.subr.bf16.mxu0 %v5751_v15  ;;  %7784 = vmatprep.subr.bf16.mxu1 %v5753_v37  ;;  %v5823_v15 = vld [vmem:[#allocation2 + $0x2e8] sm:$0xff]  ;;  %v5825_v37 = vld [vmem:[#allocation2 + $0x2f8] sm:$0xff] }
 0xb4d   :  { %7457 = vmatpush1.bf16.msra.mxu0 %v5750_v38  ;;  %7785 = vmatpush1.bf16.msra.mxu1 %v5752_v11  ;;  %v5822_v38 = vld [vmem:[#allocation2 + $0x2e0] sm:$0xff]  ;;  %v5824_v11 = vld [vmem:[#allocation2 + $0x2f0] sm:$0xff] }
 0xb4e   :  { %7458 = vmatprep.subr.bf16.mxu0 %v5759_v61  ;;  %7786 = vmatprep.subr.bf16.mxu1 %v5761_v14  ;;  %v5831_v61 = vld [vmem:[#allocation2 + $0x328] sm:$0xff]  ;;  %v5833_v14 = vld [vmem:[#allocation2 + $0x338] sm:$0xff] }
 0xb51   :  { %7459 = vmatpush1.bf16.msra.mxu0 %v5758_v24  ;;  %7787 = vmatpush1.bf16.msra.mxu1 %v5760_v58  ;;  %v5830_v24 = vld [vmem:[#allocation2 + $0x320] sm:$0xff]  ;;  %v5832_v58 = vld [vmem:[#allocation2 + $0x330] sm:$0xff] }
 0xb52   :  { %7460 = vmatprep.subr.bf16.mxu0 %v5767_v23  ;;  %7788 = vmatprep.subr.bf16.mxu1 %v5769_v54  ;;  %v5839_v23 = vld [vmem:[#allocation2 + $0x368] sm:$0xff]  ;;  %v5841_v54 = vld [vmem:[#allocation2 + $0x378] sm:$0xff] }
 0xb55   :  { %7461 = vmatpush1.bf16.msra.mxu0 %v5766_v18  ;;  %7789 = vmatpush1.bf16.msra.mxu1 %v5768_v21  ;;  %v5838_v18 = vld [vmem:[#allocation2 + $0x360] sm:$0xff]  ;;  %v5840_v21 = vld [vmem:[#allocation2 + $0x370] sm:$0xff] }
 0xb56   :  { %7462 = vmatprep.subr.bf16.mxu0 %v5775_v31  ;;  %7790 = vmatprep.subr.bf16.mxu1 %v5777_v39  ;;  %v5847_v31 = vld [vmem:[#allocation2 + $0x3a8] sm:$0xff]  ;;  %v5849_v39 = vld [vmem:[#allocation2 + $0x3b8] sm:$0xff] }
 0xb59   :  { %7463 = vmatpush1.bf16.msra.mxu0 %v5774_v5  ;;  %7791 = vmatpush1.bf16.msra.mxu1 %v5776_v7  ;;  %v5846_v5 = vld [vmem:[#allocation2 + $0x3a0] sm:$0xff]  ;;  %v5848_v7 = vld [vmem:[#allocation2 + $0x3b0] sm:$0xff] }
 0xb5a   :  { %7464 = vmatprep.subr.bf16.mxu0 %v5783_v29  ;;  %7792 = vmatprep.subr.bf16.mxu1 %v5785_v27  ;;  %v5855_v29 = vld [vmem:[#allocation2 + $0x3e8] sm:$0xff]  ;;  %v5857_v27 = vld [vmem:[#allocation2 + $0x3f8] sm:$0xff] }
 0xb5d   :  { %7465 = vmatpush1.bf16.msra.mxu0 %v5782_v63  ;;  %7793 = vmatpush1.bf16.msra.mxu1 %v5784_v25  ;;  %v5854_v63 = vld [vmem:[#allocation2 + $0x3e0] sm:$0xff]  ;;  %v5856_v25 = vld [vmem:[#allocation2 + $0x3f0] sm:$0xff] }
 0xb5e   :  { %7466 = vmatprep.subr.bf16.mxu0 %v5791_v26  ;;  %7794 = vmatprep.subr.bf16.mxu1 %v5793_v20  ;;  %v5863_v26 = vld [vmem:[#allocation2 + $0x428] sm:$0xff]  ;;  %v5865_v20 = vld [vmem:[#allocation2 + $0x438] sm:$0xff] }
 0xb61   :  { %7467 = vmatpush1.bf16.msra.mxu0 %v5790_v43  ;;  %7795 = vmatpush1.bf16.msra.mxu1 %v5792_v13  ;;  %v5862_v43 = vld [vmem:[#allocation2 + $0x420] sm:$0xff]  ;;  %v5864_v13 = vld [vmem:[#allocation2 + $0x430] sm:$0xff] }
 0xb62   :  { %7468 = vmatprep.subr.bf16.mxu0 %v5799_v30  ;;  %7796 = vmatprep.subr.bf16.mxu1 %v5801_v36  ;;  %v5871_v30 = vld [vmem:[#allocation2 + $0x468] sm:$0xff]  ;;  %v5873_v36 = vld [vmem:[#allocation2 + $0x478] sm:$0xff] }
 0xb65   :  { %7469 = vmatpush1.bf16.msra.mxu0 %v5798_v40  ;;  %7797 = vmatpush1.bf16.msra.mxu1 %v5800_v19  ;;  %v5870_v40 = vld [vmem:[#allocation2 + $0x460] sm:$0xff]  ;;  %v5872_v19 = vld [vmem:[#allocation2 + $0x470] sm:$0xff] }
 0xb66   :  { %7470 = vmatprep.subr.bf16.mxu0 %v5807_v45  ;;  %7798 = vmatprep.subr.bf16.mxu1 %v5809_v44  ;;  %v5879_v45 = vld [vmem:[#allocation2 + $0x4a8] sm:$0xff]  ;;  %v5881_v44 = vld [vmem:[#allocation2 + $0x4b8] sm:$0xff] }
 0xb69   :  { %7471 = vmatpush1.bf16.msra.mxu0 %v5806_v51  ;;  %7799 = vmatpush1.bf16.msra.mxu1 %v5808_v62  ;;  %v5878_v51 = vld [vmem:[#allocation2 + $0x4a0] sm:$0xff]  ;;  %v5880_v62 = vld [vmem:[#allocation2 + $0x4b0] sm:$0xff] }
 0xb6a   :  { %7472 = vmatprep.subr.bf16.mxu0 %v5815_v52  ;;  %7800 = vmatprep.subr.bf16.mxu1 %v5817_v10  ;;  %v5887_v52 = vld [vmem:[#allocation2 + $0x4e8] sm:$0xff]  ;;  %v5886_v10 = vld [vmem:[#allocation2 + $0x4e0] sm:$0xff] }
 0xb6d   :  { %7473 = vmatpush1.bf16.msra.mxu0 %v5814_v48  ;;  %7801 = vmatpush1.bf16.msra.mxu1 %v5816_v9  ;;  %v5888_v48 = vld [vmem:[#allocation2 + $0x4f0] sm:$0xff]  ;;  %v5895_v9 = vld [vmem:[#allocation2 + $0x528] sm:$0xff] }
 0xb6e   :  { %7474 = vmatprep.subr.bf16.mxu0 %v5823_v15  ;;  %7802 = vmatprep.subr.bf16.mxu1 %v5825_v37  ;;  %v5897_v15 = vld [vmem:[#allocation2 + $0x538] sm:$0xff]  ;;  %v5896_v37 = vld [vmem:[#allocation2 + $0x530] sm:$0xff] }
 0xb71   :  { %7475 = vmatpush1.bf16.msra.mxu0 %v5822_v38  ;;  %7803 = vmatpush1.bf16.msra.mxu1 %v5824_v11  ;;  %v5903_v38 = vld [vmem:[#allocation2 + $0x568] sm:$0xff]  ;;  %v5905_v11 = vld [vmem:[#allocation2 + $0x578] sm:$0xff] }
 0xb72   :  { %7476 = vmatprep.subr.bf16.mxu0 %v5831_v61  ;;  %7804 = vmatprep.subr.bf16.mxu1 %v5833_v14  ;;  %v5902_v61 = vld [vmem:[#allocation2 + $0x560] sm:$0xff]  ;;  %v5904_v14 = vld [vmem:[#allocation2 + $0x570] sm:$0xff] }
 0xb75   :  { %7477 = vmatpush1.bf16.msra.mxu0 %v5830_v24  ;;  %7805 = vmatpush1.bf16.msra.mxu1 %v5832_v58  ;;  %v5911_v24 = vld [vmem:[#allocation2 + $0x5a8] sm:$0xff]  ;;  %v5913_v58 = vld [vmem:[#allocation2 + $0x5b8] sm:$0xff] }
 0xb76   :  { %7478 = vmatprep.subr.bf16.mxu0 %v5839_v23  ;;  %7806 = vmatprep.subr.bf16.mxu1 %v5841_v54  ;;  %v5910_v23 = vld [vmem:[#allocation2 + $0x5a0] sm:$0xff]  ;;  %v5912_v54 = vld [vmem:[#allocation2 + $0x5b0] sm:$0xff] }
 0xb79   :  { %7479 = vmatpush1.bf16.msra.mxu0 %v5838_v18  ;;  %7807 = vmatpush1.bf16.msra.mxu1 %v5840_v21  ;;  %v5919_v18 = vld [vmem:[#allocation2 + $0x5e8] sm:$0xff]  ;;  %v5921_v21 = vld [vmem:[#allocation2 + $0x5f8] sm:$0xff] }
 0xb7a   :  { %7480 = vmatprep.subr.bf16.mxu0 %v5847_v31  ;;  %7808 = vmatprep.subr.bf16.mxu1 %v5849_v39  ;;  %v5918_v31 = vld [vmem:[#allocation2 + $0x5e0] sm:$0xff]  ;;  %v5920_v39 = vld [vmem:[#allocation2 + $0x5f0] sm:$0xff] }
 0xb7d   :  { %7481 = vmatpush1.bf16.msra.mxu0 %v5846_v5  ;;  %7809 = vmatpush1.bf16.msra.mxu1 %v5848_v7  ;;  %v5927_v5 = vld [vmem:[#allocation2 + $0x628] sm:$0xff]  ;;  %v5929_v7 = vld [vmem:[#allocation2 + $0x638] sm:$0xff] }
 0xb7e   :  { %7482 = vmatprep.subr.bf16.mxu0 %v5855_v29  ;;  %7810 = vmatprep.subr.bf16.mxu1 %v5857_v27  ;;  %v5926_v29 = vld [vmem:[#allocation2 + $0x620] sm:$0xff]  ;;  %v5928_v27 = vld [vmem:[#allocation2 + $0x630] sm:$0xff] }
 0xb81   :  { %7483 = vmatpush1.bf16.msra.mxu0 %v5854_v63  ;;  %7811 = vmatpush1.bf16.msra.mxu1 %v5856_v25  ;;  %v5935_v63 = vld [vmem:[#allocation2 + $0x668] sm:$0xff]  ;;  %v5937_v25 = vld [vmem:[#allocation2 + $0x678] sm:$0xff] }
 0xb82   :  { %7493 = vmatprep.subr.bf16.mxu0 %v5863_v26  ;;  %7821 = vmatprep.subr.bf16.mxu1 %v5865_v20  ;;  %v5934_v26 = vld [vmem:[#allocation2 + $0x660] sm:$0xff]  ;;  %v5936_v20 = vld [vmem:[#allocation2 + $0x670] sm:$0xff] }
 0xb84   :  { %7485 = vmatmul.mubr.bf16.vlgmr.msra.gmra.mrb[60].mxu0 %v12785_v1  ;;  %7813 = vmatmul.mubr.bf16.vlgmr.msra.gmra.mrb[64].mxu1 %v12785_v1  ;;  %v5889_v1 = vld [vmem:[#allocation2 + $0x4f8] sm:$0xff] }
 0xb85   :  { %7494 = vmatpush1.bf16.msra.mxu0 %v5862_v43  ;;  %7822 = vmatpush1.bf16.msra.mxu1 %v5864_v13  ;;  %v5943_v43 = vld [vmem:[#allocation2 + $0x6a8] sm:$0xff]  ;;  %v5945_v13 = vld [vmem:[#allocation2 + $0x6b8] sm:$0xff] }
 0xb86   :  { %7495 = vmatprep.subr.bf16.mxu0 %v5871_v30  ;;  %7823 = vmatprep.subr.bf16.mxu1 %v5873_v36  ;;  %v5942_v30 = vld [vmem:[#allocation2 + $0x6a0] sm:$0xff]  ;;  %v5944_v36 = vld [vmem:[#allocation2 + $0x6b0] sm:$0xff] }
 0xb87   :  { %7525 = vmatprep.mubr.bf16.mxu0 %v12790_v22  ;;  %7853 = vmatprep.mubr.bf16.mxu1 %v12790_v22  ;;  %v5894_v22 = vld [vmem:[#allocation2 + $0x520] sm:$0xff] }
 0xb89   :  { %7496 = vmatpush1.bf16.msra.mxu0 %v5870_v40  ;;  %7824 = vmatpush1.bf16.msra.mxu1 %v5872_v19  ;;  %v5951_v40 = vld [vmem:[#allocation2 + $0x6e8] sm:$0xff]  ;;  %v5953_v19 = vld [vmem:[#allocation2 + $0x6f8] sm:$0xff] }
 0xb8a   :  { %7497 = vmatprep.subr.bf16.mxu0 %v5879_v45  ;;  %7825 = vmatprep.subr.bf16.mxu1 %v5881_v44  ;;  %v5950_v45 = vld [vmem:[#allocation2 + $0x6e0] sm:$0xff]  ;;  %v5952_v44 = vld [vmem:[#allocation2 + $0x6f0] sm:$0xff] }
 0xb8d   :  { %7498 = vmatpush1.bf16.msra.mxu0 %v5878_v51  ;;  %7826 = vmatpush1.bf16.msra.mxu1 %v5880_v62  ;;  %v5959_v51 = vld [vmem:[#allocation2 + $0x728] sm:$0xff]  ;;  %v5961_v62 = vld [vmem:[#allocation2 + $0x738] sm:$0xff] }
 0xb8e   :  { %7499 = vmatprep.subr.bf16.mxu0 %v5887_v52  ;;  %7827 = vmatprep.subr.bf16.mxu1 %v5889_v1  ;;  %v5958_v52 = vld [vmem:[#allocation2 + $0x720] sm:$0xff]  ;;  %v5960_v1 = vld [vmem:[#allocation2 + $0x730] sm:$0xff] }
 0xb91   :  { %7500 = vmatpush1.bf16.msra.mxu0 %v5886_v10  ;;  %7828 = vmatpush1.bf16.msra.mxu1 %v5888_v48  ;;  %v5967_v10 = vld [vmem:[#allocation2 + $0x768] sm:$0xff]  ;;  %v5969_v48 = vld [vmem:[#allocation2 + $0x778] sm:$0xff] }
 0xb92   :  { %7501 = vmatprep.subr.bf16.mxu0 %v5895_v9  ;;  %7829 = vmatprep.subr.bf16.mxu1 %v5897_v15  ;;  %v5966_v9 = vld [vmem:[#allocation2 + $0x760] sm:$0xff]  ;;  %v5968_v15 = vld [vmem:[#allocation2 + $0x770] sm:$0xff] }
 0xb95   :  { %7502 = vmatpush1.bf16.msra.mxu0 %v5894_v22  ;;  %7830 = vmatpush1.bf16.msra.mxu1 %v5896_v37  ;;  %v5975_v22 = vld [vmem:[#allocation2 + $0x7a8] sm:$0xff]  ;;  %v5977_v37 = vld [vmem:[#allocation2 + $0x7b8] sm:$0xff] }
 0xb96   :  { %7503 = vmatprep.subr.bf16.mxu0 %v5903_v38  ;;  %7831 = vmatprep.subr.bf16.mxu1 %v5905_v11  ;;  %v5974_v38 = vld [vmem:[#allocation2 + $0x7a0] sm:$0xff]  ;;  %v5976_v11 = vld [vmem:[#allocation2 + $0x7b0] sm:$0xff] }
 0xb99   :  { %7504 = vmatpush1.bf16.msra.mxu0 %v5902_v61  ;;  %7832 = vmatpush1.bf16.msra.mxu1 %v5904_v14  ;;  %v5983_v61 = vld [vmem:[#allocation2 + $0x7e8] sm:$0xff]  ;;  %v5985_v14 = vld [vmem:[#allocation2 + $0x7f8] sm:$0xff] }
 0xb9a   :  { %7505 = vmatprep.subr.bf16.mxu0 %v5911_v24  ;;  %7833 = vmatprep.subr.bf16.mxu1 %v5913_v58  ;;  %v5982_v24 = vld [vmem:[#allocation2 + $0x7e0] sm:$0xff]  ;;  %v5984_v58 = vld [vmem:[#allocation2 + $0x7f0] sm:$0xff] }
 0xb9d   :  { %7506 = vmatpush1.bf16.msra.mxu0 %v5910_v23  ;;  %7834 = vmatpush1.bf16.msra.mxu1 %v5912_v54  ;;  %v5991_v23 = vld [vmem:[#allocation2 + $0x828] sm:$0xff]  ;;  %v5993_v54 = vld [vmem:[#allocation2 + $0x838] sm:$0xff] }
 0xb9e   :  { %7507 = vmatprep.subr.bf16.mxu0 %v5919_v18  ;;  %7835 = vmatprep.subr.bf16.mxu1 %v5921_v21  ;;  %v5990_v18 = vld [vmem:[#allocation2 + $0x820] sm:$0xff]  ;;  %v5992_v21 = vld [vmem:[#allocation2 + $0x830] sm:$0xff] }
 0xba1   :  { %7508 = vmatpush1.bf16.msra.mxu0 %v5918_v31  ;;  %7836 = vmatpush1.bf16.msra.mxu1 %v5920_v39  ;;  %v5999_v31 = vld [vmem:[#allocation2 + $0x868] sm:$0xff]  ;;  %v6001_v39 = vld [vmem:[#allocation2 + $0x878] sm:$0xff] }
 0xba2   :  { %7509 = vmatprep.subr.bf16.mxu0 %v5927_v5  ;;  %7837 = vmatprep.subr.bf16.mxu1 %v5929_v7  ;;  %v5998_v5 = vld [vmem:[#allocation2 + $0x860] sm:$0xff]  ;;  %v6000_v7 = vld [vmem:[#allocation2 + $0x870] sm:$0xff] }
 0xba5   :  { %7510 = vmatpush1.bf16.msra.mxu0 %v5926_v29  ;;  %7838 = vmatpush1.bf16.msra.mxu1 %v5928_v27  ;;  %v6007_v29 = vld [vmem:[#allocation2 + $0x8a8] sm:$0xff]  ;;  %v6009_v27 = vld [vmem:[#allocation2 + $0x8b8] sm:$0xff] }
 0xba6   :  { %7511 = vmatprep.subr.bf16.mxu0 %v5935_v63  ;;  %7839 = vmatprep.subr.bf16.mxu1 %v5937_v25  ;;  %v6006_v63 = vld [vmem:[#allocation2 + $0x8a0] sm:$0xff]  ;;  %v6008_v25 = vld [vmem:[#allocation2 + $0x8b0] sm:$0xff] }
 0xba9   :  { %7512 = vmatpush1.bf16.msra.mxu0 %v5934_v26  ;;  %7840 = vmatpush1.bf16.msra.mxu1 %v5936_v20  ;;  %v6015_v26 = vld [vmem:[#allocation2 + $0x8e8] sm:$0xff]  ;;  %v6014_v20 = vld [vmem:[#allocation2 + $0x8e0] sm:$0xff] }
 0xbaa   :  { %7513 = vmatprep.subr.bf16.mxu0 %v5943_v43  ;;  %7841 = vmatprep.subr.bf16.mxu1 %v5945_v13  ;;  %v6016_v43 = vld [vmem:[#allocation2 + $0x8f0] sm:$0xff]  ;;  %v6023_v13 = vld [vmem:[#allocation2 + $0x928] sm:$0xff] }
 0xbad   :  { %7514 = vmatpush1.bf16.msra.mxu0 %v5942_v30  ;;  %7842 = vmatpush1.bf16.msra.mxu1 %v5944_v36  ;;  %v6025_v30 = vld [vmem:[#allocation2 + $0x938] sm:$0xff]  ;;  %v6024_v36 = vld [vmem:[#allocation2 + $0x930] sm:$0xff] }
 0xbae   :  { %7515 = vmatprep.subr.bf16.mxu0 %v5951_v40  ;;  %7843 = vmatprep.subr.bf16.mxu1 %v5953_v19  ;;  %v6031_v40 = vld [vmem:[#allocation2 + $0x968] sm:$0xff]  ;;  %v6033_v19 = vld [vmem:[#allocation2 + $0x978] sm:$0xff] }
 0xbb1   :  { %7516 = vmatpush1.bf16.msra.mxu0 %v5950_v45  ;;  %7844 = vmatpush1.bf16.msra.mxu1 %v5952_v44  ;;  %v6030_v45 = vld [vmem:[#allocation2 + $0x960] sm:$0xff]  ;;  %v6032_v44 = vld [vmem:[#allocation2 + $0x970] sm:$0xff] }
 0xbb2   :  { %7517 = vmatprep.subr.bf16.mxu0 %v5959_v51  ;;  %7845 = vmatprep.subr.bf16.mxu1 %v5961_v62  ;;  %v6039_v51 = vld [vmem:[#allocation2 + $0x9a8] sm:$0xff]  ;;  %v6041_v62 = vld [vmem:[#allocation2 + $0x9b8] sm:$0xff] }
 0xbb5   :  { %7518 = vmatpush1.bf16.msra.mxu0 %v5958_v52  ;;  %7846 = vmatpush1.bf16.msra.mxu1 %v5960_v1  ;;  %v6038_v52 = vld [vmem:[#allocation2 + $0x9a0] sm:$0xff]  ;;  %v6040_v1 = vld [vmem:[#allocation2 + $0x9b0] sm:$0xff] }
 0xbb6   :  { %7519 = vmatprep.subr.bf16.mxu0 %v5967_v10  ;;  %7847 = vmatprep.subr.bf16.mxu1 %v5969_v48  ;;  %v6047_v10 = vld [vmem:[#allocation2 + $0x9e8] sm:$0xff]  ;;  %v6049_v48 = vld [vmem:[#allocation2 + $0x9f8] sm:$0xff] }
 0xbb9   :  { %7520 = vmatpush1.bf16.msra.mxu0 %v5966_v9  ;;  %7848 = vmatpush1.bf16.msra.mxu1 %v5968_v15  ;;  %v6046_v9 = vld [vmem:[#allocation2 + $0x9e0] sm:$0xff]  ;;  %v6048_v15 = vld [vmem:[#allocation2 + $0x9f0] sm:$0xff] }
 0xbba   :  { %7521 = vmatprep.subr.bf16.mxu0 %v5975_v22  ;;  %7849 = vmatprep.subr.bf16.mxu1 %v5977_v37  ;;  %v6055_v22 = vld [vmem:[#allocation2 + $0xa28] sm:$0xff]  ;;  %v6057_v37 = vld [vmem:[#allocation2 + $0xa38] sm:$0xff] }
 0xbbd   :  { %7522 = vmatpush1.bf16.msra.mxu0 %v5974_v38  ;;  %7850 = vmatpush1.bf16.msra.mxu1 %v5976_v11  ;;  %v6054_v38 = vld [vmem:[#allocation2 + $0xa20] sm:$0xff]  ;;  %v6056_v11 = vld [vmem:[#allocation2 + $0xa30] sm:$0xff] }
 0xbbe   :  { %7523 = vmatprep.subr.bf16.mxu0 %v5983_v61  ;;  %7851 = vmatprep.subr.bf16.mxu1 %v5985_v14  ;;  %v6063_v61 = vld [vmem:[#allocation2 + $0xa68] sm:$0xff]  ;;  %v6065_v14 = vld [vmem:[#allocation2 + $0xa78] sm:$0xff] }
 0xbc1   :  { %7524 = vmatpush1.bf16.msra.mxu0 %v5982_v24  ;;  %7852 = vmatpush1.bf16.msra.mxu1 %v5984_v58  ;;  %v6062_v24 = vld [vmem:[#allocation2 + $0xa60] sm:$0xff]  ;;  %v6064_v58 = vld [vmem:[#allocation2 + $0xa70] sm:$0xff] }
 0xbc2   :  { %7534 = vmatprep.subr.bf16.mxu0 %v5991_v23  ;;  %7862 = vmatprep.subr.bf16.mxu1 %v5993_v54  ;;  %v6071_v23 = vld [vmem:[#allocation2 + $0xaa8] sm:$0xff]  ;;  %v6073_v54 = vld [vmem:[#allocation2 + $0xab8] sm:$0xff] }
 0xbc4   :  { %7526 = vmatmul.mubr.bf16.vlgmr.msra.gmra.mrb[60].mxu0 %v12799_v41  ;;  %7854 = vmatmul.mubr.bf16.vlgmr.msra.gmra.mrb[64].mxu1 %v12799_v41  ;;  %v6017_v41 = vld [vmem:[#allocation2 + $0x8f8] sm:$0xff] }
 0xbc5   :  { %7535 = vmatpush1.bf16.msra.mxu0 %v5990_v18  ;;  %7863 = vmatpush1.bf16.msra.mxu1 %v5992_v21  ;;  %v6070_v18 = vld [vmem:[#allocation2 + $0xaa0] sm:$0xff]  ;;  %v6072_v21 = vld [vmem:[#allocation2 + $0xab0] sm:$0xff] }
 0xbc6   :  { %7536 = vmatprep.subr.bf16.mxu0 %v5999_v31  ;;  %7864 = vmatprep.subr.bf16.mxu1 %v6001_v39  ;;  %v6079_v31 = vld [vmem:[#allocation2 + $0xae8] sm:$0xff]  ;;  %v6081_v39 = vld [vmem:[#allocation2 + $0xaf8] sm:$0xff] }
 0xbc7   :  { %7566 = vmatprep.mubr.bf16.mxu0 %v12804_v17  ;;  %7894 = vmatprep.mubr.bf16.mxu1 %v12804_v17  ;;  %v6022_v17 = vld [vmem:[#allocation2 + $0x920] sm:$0xff] }
 0xbc9   :  { %7537 = vmatpush1.bf16.msra.mxu0 %v5998_v5  ;;  %7865 = vmatpush1.bf16.msra.mxu1 %v6000_v7  ;;  %v6078_v5 = vld [vmem:[#allocation2 + $0xae0] sm:$0xff]  ;;  %v6080_v7 = vld [vmem:[#allocation2 + $0xaf0] sm:$0xff] }
 0xbca   :  { %7538 = vmatprep.subr.bf16.mxu0 %v6007_v29  ;;  %7866 = vmatprep.subr.bf16.mxu1 %v6009_v27  ;;  %v6087_v29 = vld [vmem:[#allocation2 + $0xb28] sm:$0xff]  ;;  %v6089_v27 = vld [vmem:[#allocation2 + $0xb38] sm:$0xff] }
 0xbcd   :  { %7539 = vmatpush1.bf16.msra.mxu0 %v6006_v63  ;;  %7867 = vmatpush1.bf16.msra.mxu1 %v6008_v25  ;;  %v6086_v63 = vld [vmem:[#allocation2 + $0xb20] sm:$0xff]  ;;  %v6088_v25 = vld [vmem:[#allocation2 + $0xb30] sm:$0xff] }
 0xbce   :  { %7540 = vmatprep.subr.bf16.mxu0 %v6015_v26  ;;  %7868 = vmatprep.subr.bf16.mxu1 %v6017_v41  ;;  %v6095_v26 = vld [vmem:[#allocation2 + $0xb68] sm:$0xff]  ;;  %v6097_v41 = vld [vmem:[#allocation2 + $0xb78] sm:$0xff] }
 0xbd1   :  { %7541 = vmatpush1.bf16.msra.mxu0 %v6014_v20  ;;  %7869 = vmatpush1.bf16.msra.mxu1 %v6016_v43  ;;  %v6094_v20 = vld [vmem:[#allocation2 + $0xb60] sm:$0xff]  ;;  %v6096_v43 = vld [vmem:[#allocation2 + $0xb70] sm:$0xff] }
 0xbd2   :  { %7542 = vmatprep.subr.bf16.mxu0 %v6023_v13  ;;  %7870 = vmatprep.subr.bf16.mxu1 %v6025_v30  ;;  %v6103_v13 = vld [vmem:[#allocation2 + $0xba8] sm:$0xff]  ;;  %v6105_v30 = vld [vmem:[#allocation2 + $0xbb8] sm:$0xff] }
 0xbd5   :  { %7543 = vmatpush1.bf16.msra.mxu0 %v6022_v17  ;;  %7871 = vmatpush1.bf16.msra.mxu1 %v6024_v36  ;;  %v6102_v17 = vld [vmem:[#allocation2 + $0xba0] sm:$0xff]  ;;  %v6104_v36 = vld [vmem:[#allocation2 + $0xbb0] sm:$0xff] }
 0xbd6   :  { %7544 = vmatprep.subr.bf16.mxu0 %v6031_v40  ;;  %7872 = vmatprep.subr.bf16.mxu1 %v6033_v19  ;;  %v6111_v40 = vld [vmem:[#allocation2 + $0xbe8] sm:$0xff]  ;;  %v6113_v19 = vld [vmem:[#allocation2 + $0xbf8] sm:$0xff] }
 0xbd9   :  { %7545 = vmatpush1.bf16.msra.mxu0 %v6030_v45  ;;  %7873 = vmatpush1.bf16.msra.mxu1 %v6032_v44  ;;  %v6110_v45 = vld [vmem:[#allocation2 + $0xbe0] sm:$0xff]  ;;  %v6112_v44 = vld [vmem:[#allocation2 + $0xbf0] sm:$0xff] }
 0xbda   :  { %7546 = vmatprep.subr.bf16.mxu0 %v6039_v51  ;;  %7874 = vmatprep.subr.bf16.mxu1 %v6041_v62  ;;  %v6119_v51 = vld [vmem:[#allocation2 + $0xc28] sm:$0xff]  ;;  %v6121_v62 = vld [vmem:[#allocation2 + $0xc38] sm:$0xff] }
 0xbdd   :  { %7547 = vmatpush1.bf16.msra.mxu0 %v6038_v52  ;;  %7875 = vmatpush1.bf16.msra.mxu1 %v6040_v1  ;;  %v6118_v52 = vld [vmem:[#allocation2 + $0xc20] sm:$0xff]  ;;  %v6120_v1 = vld [vmem:[#allocation2 + $0xc30] sm:$0xff] }
 0xbde   :  { %7548 = vmatprep.subr.bf16.mxu0 %v6047_v10  ;;  %7876 = vmatprep.subr.bf16.mxu1 %v6049_v48  ;;  %v6127_v10 = vld [vmem:[#allocation2 + $0xc68] sm:$0xff]  ;;  %v6129_v48 = vld [vmem:[#allocation2 + $0xc78] sm:$0xff] }
 0xbe1   :  { %7549 = vmatpush1.bf16.msra.mxu0 %v6046_v9  ;;  %7877 = vmatpush1.bf16.msra.mxu1 %v6048_v15  ;;  %v6126_v9 = vld [vmem:[#allocation2 + $0xc60] sm:$0xff]  ;;  %v6128_v15 = vld [vmem:[#allocation2 + $0xc70] sm:$0xff] }
 0xbe2   :  { %7550 = vmatprep.subr.bf16.mxu0 %v6055_v22  ;;  %7878 = vmatprep.subr.bf16.mxu1 %v6057_v37  ;;  %v6135_v22 = vld [vmem:[#allocation2 + $0xca8] sm:$0xff]  ;;  %v6137_v37 = vld [vmem:[#allocation2 + $0xcb8] sm:$0xff] }
 0xbe5   :  { %7551 = vmatpush1.bf16.msra.mxu0 %v6054_v38  ;;  %7879 = vmatpush1.bf16.msra.mxu1 %v6056_v11  ;;  %v6134_v38 = vld [vmem:[#allocation2 + $0xca0] sm:$0xff]  ;;  %v6136_v11 = vld [vmem:[#allocation2 + $0xcb0] sm:$0xff] }
 0xbe6   :  { %7552 = vmatprep.subr.bf16.mxu0 %v6063_v61  ;;  %7880 = vmatprep.subr.bf16.mxu1 %v6065_v14  ;;  %v6143_v61 = vld [vmem:[#allocation2 + $0xce8] sm:$0xff]  ;;  %v6142_v14 = vld [vmem:[#allocation2 + $0xce0] sm:$0xff] }
 0xbe9   :  { %7553 = vmatpush1.bf16.msra.mxu0 %v6062_v24  ;;  %7881 = vmatpush1.bf16.msra.mxu1 %v6064_v58  ;;  %v6144_v24 = vld [vmem:[#allocation2 + $0xcf0] sm:$0xff]  ;;  %v6151_v58 = vld [vmem:[#allocation2 + $0xd28] sm:$0xff] }
 0xbea   :  { %7554 = vmatprep.subr.bf16.mxu0 %v6071_v23  ;;  %7882 = vmatprep.subr.bf16.mxu1 %v6073_v54  ;;  %v6153_v23 = vld [vmem:[#allocation2 + $0xd38] sm:$0xff]  ;;  %v6754_v54 = vld [vmem:[#allocation31] sm:$0xff] }
 0xbed   :  { %7555 = vmatpush1.bf16.msra.mxu0 %v6070_v18  ;;  %7883 = vmatpush1.bf16.msra.mxu1 %v6072_v21  ;;  %v6152_v18 = vld [vmem:[#allocation2 + $0xd30] sm:$0xff]  ;;  %v6159_v21 = vld [vmem:[#allocation2 + $0xd68] sm:$0xff] }
 0xbee   :  { %7556 = vmatprep.subr.bf16.mxu0 %v6079_v31  ;;  %7884 = vmatprep.subr.bf16.mxu1 %v6081_v39  ;;  %v6161_v31 = vld [vmem:[#allocation2 + $0xd78] sm:$0xff]  ;;  %v6759_v39 = vrot.slane %v6754_v54, %v12444_v56 }
 0xbf1   :  { %7557 = vmatpush1.bf16.msra.mxu0 %v6078_v5  ;;  %7885 = vmatpush1.bf16.msra.mxu1 %v6080_v7  ;;  %v6767_v5 = vrot.slane %v6754_v54, %v12466_v3  ;;  %v6763_v7 = vrot.slane %v6754_v54, %v12449_v35 }
 0xbf2   :  { %7558 = vmatprep.subr.bf16.mxu0 %v6087_v29  ;;  %7886 = vmatprep.subr.bf16.mxu1 %v6089_v27  ;;  %v6771_v29 = vrot.slane %v6754_v54, %v12452_v59  ;;  %v6158_v27 = vld [vmem:[#allocation2 + $0xd60] sm:$0xff]  ;;  %v6199_v54 = vld [vmem:[#allocation2 + $0xea8] sm:$0xff] }
 0xbf5   :  { %7559 = vmatpush1.bf16.msra.mxu0 %v6086_v63  ;;  %7887 = vmatpush1.bf16.msra.mxu1 %v6088_v25  ;;  %v6160_v63 = vld [vmem:[#allocation2 + $0xd70] sm:$0xff] }
 0xbf6   :  { %7560 = vmatprep.subr.bf16.mxu0 %v6095_v26  ;;  %7888 = vmatprep.subr.bf16.mxu1 %v6097_v41  ;;  %v6167_v41 = vld [vmem:[#allocation2 + $0xda8] sm:$0xff] }
 0xbf9   :  { %7561 = vmatpush1.bf16.msra.mxu0 %v6094_v20  ;;  %7889 = vmatpush1.bf16.msra.mxu1 %v6096_v43  ;;  %v6169_v20 = vld [vmem:[#allocation2 + $0xdb8] sm:$0xff] }
 0xbfa   :  { %7562 = vmatprep.subr.bf16.mxu0 %v6103_v13  ;;  %7890 = vmatprep.subr.bf16.mxu1 %v6105_v30 }
 0xbfd   :  { %7563 = vmatpush1.bf16.msra.mxu0 %v6102_v17  ;;  %7891 = vmatpush1.bf16.msra.mxu1 %v6104_v36 }
 0xbfe   :  { %7564 = vmatprep.subr.bf16.mxu0 %v6111_v40  ;;  %7892 = vmatprep.subr.bf16.mxu1 %v6113_v19 }
 0xc01   :  { %7565 = vmatpush1.bf16.msra.mxu0 %v6110_v45  ;;  %7893 = vmatpush1.bf16.msra.mxu1 %v6112_v44 }
 0xc02   :  { %7575 = vmatprep.subr.bf16.mxu0 %v6119_v51  ;;  %7903 = vmatprep.subr.bf16.mxu1 %v6121_v62 }
 0xc04   :  { %7567 = vmatmul.mubr.bf16.vlgmr.msra.gmra.mrb[60].mxu0 %v12813_v34  ;;  %7895 = vmatmul.mubr.bf16.vlgmr.msra.gmra.mrb[64].mxu1 %v12813_v34  ;;  %v6145_v34 = vld [vmem:[#allocation2 + $0xcf8] sm:$0xff] }
 0xc05   :  { %7576 = vmatpush1.bf16.msra.mxu0 %v6118_v52  ;;  %7904 = vmatpush1.bf16.msra.mxu1 %v6120_v1  ;;  %v6166_v52 = vld [vmem:[#allocation2 + $0xda0] sm:$0xff]  ;;  %v6168_v1 = vld [vmem:[#allocation2 + $0xdb0] sm:$0xff] }
 0xc06   :  { %7577 = vmatprep.subr.bf16.mxu0 %v6127_v10  ;;  %7905 = vmatprep.subr.bf16.mxu1 %v6129_v48 }
 0xc07   :  { %7607 = vmatprep.mubr.bf16.mxu0 %v12818_v53  ;;  %7935 = vmatprep.mubr.bf16.mxu1 %v12818_v53  ;;  %v6150_v53 = vld [vmem:[#allocation2 + $0xd20] sm:$0xff] }
 0xc09   :  { %7578 = vmatpush1.bf16.msra.mxu0 %v6126_v9  ;;  %7906 = vmatpush1.bf16.msra.mxu1 %v6128_v15  ;;  %v6175_v9 = vld [vmem:[#allocation2 + $0xde8] sm:$0xff]  ;;  %v6177_v15 = vld [vmem:[#allocation2 + $0xdf8] sm:$0xff] }
 0xc0a   :  { %7579 = vmatprep.subr.bf16.mxu0 %v6135_v22  ;;  %7907 = vmatprep.subr.bf16.mxu1 %v6137_v37  ;;  %v6174_v22 = vld [vmem:[#allocation2 + $0xde0] sm:$0xff]  ;;  %v6176_v37 = vld [vmem:[#allocation2 + $0xdf0] sm:$0xff] }
 0xc0d   :  { %7580 = vmatpush1.bf16.msra.mxu0 %v6134_v38  ;;  %7908 = vmatpush1.bf16.msra.mxu1 %v6136_v11  ;;  %v6183_v38 = vld [vmem:[#allocation2 + $0xe28] sm:$0xff]  ;;  %v6185_v11 = vld [vmem:[#allocation2 + $0xe38] sm:$0xff] }
 0xc0e   :  { %7581 = vmatprep.subr.bf16.mxu0 %v6143_v61  ;;  %7909 = vmatprep.subr.bf16.mxu1 %v6145_v34  ;;  %v6182_v61 = vld [vmem:[#allocation2 + $0xe20] sm:$0xff]  ;;  %v6184_v34 = vld [vmem:[#allocation2 + $0xe30] sm:$0xff] }
 0xc11   :  { %7582 = vmatpush1.bf16.msra.mxu0 %v6142_v14  ;;  %7910 = vmatpush1.bf16.msra.mxu1 %v6144_v24  ;;  %v6191_v14 = vld [vmem:[#allocation2 + $0xe68] sm:$0xff]  ;;  %v6193_v24 = vld [vmem:[#allocation2 + $0xe78] sm:$0xff] }
 0xc12   :  { %7583 = vmatprep.subr.bf16.mxu0 %v6151_v58  ;;  %7911 = vmatprep.subr.bf16.mxu1 %v6153_v23  ;;  %v6190_v58 = vld [vmem:[#allocation2 + $0xe60] sm:$0xff]  ;;  %v6192_v23 = vld [vmem:[#allocation2 + $0xe70] sm:$0xff] }
 0xc15   :  { %7584 = vmatpush1.bf16.msra.mxu0 %v6150_v53  ;;  %7912 = vmatpush1.bf16.msra.mxu1 %v6152_v18  ;;  %v6201_v53 = vld [vmem:[#allocation2 + $0xeb8] sm:$0xff]  ;;  %v6198_v18 = vld [vmem:[#allocation2 + $0xea0] sm:$0xff] }
 0xc16   :  { %7585 = vmatprep.subr.bf16.mxu0 %v6159_v21  ;;  %7913 = vmatprep.subr.bf16.mxu1 %v6161_v31  ;;  %v6200_v21 = vld [vmem:[#allocation2 + $0xeb0] sm:$0xff]  ;;  %v6207_v31 = vld [vmem:[#allocation2 + $0xee8] sm:$0xff] }
 0xc17   :  { %v7117_v25 = vpop.f32.mrb[56].mxu0  ;;  %v7445_v26 = vpop.f32.mrb[60].mxu1 }
 0xc18   :  { %v12905_v43 = vadd.f32 %v7117_v25, %v6759_v39  ;;  %v12907_v13 = vadd.f32 %v7445_v26, %v6767_v5  ;;  %v7119_v30 = vpop.f32.mrb[57].mxu0  ;;  %v7447_v17 = vpop.f32.mrb[61].mxu1  ;;  %v6209_v39 = vld [vmem:[#allocation2 + $0xef8] sm:$0xff]  ;;  %v6206_v5 = vld [vmem:[#allocation2 + $0xee0] sm:$0xff]  ;;  %v6216_v25 = vld [vmem:[#allocation2 + $0xf30] sm:$0xff] }
 0xc19   :  { %v12909_v36 = vadd.f32 %v7119_v30, %v6763_v7  ;;  %v12911_v40 = vadd.f32 %v7447_v17, %v6771_v29  ;;  %v7121_v19 = vpop.f32.mrb[58].mxu0  ;;  %v7449_v59 = vpop.f32.mrb[62].mxu1  ;;  %7586 = vmatpush1.bf16.msra.mxu0 %v6158_v27  ;;  %7914 = vmatpush1.bf16.msra.mxu1 %v6160_v63  ;;  %v6208_v7 = vld [vmem:[#allocation2 + $0xef0] sm:$0xff]  ;;  %v6215_v29 = vld [vmem:[#allocation2 + $0xf28] sm:$0xff]  ;;  %v6217_v27 = vld [vmem:[#allocation2 + $0xf38] sm:$0xff] }
 0xc1a   :  { %v8108_v45 = vmax.f32 %v12905_v43, 0.0  ;;  %v8110_v44 = vmax.f32 %v12907_v13, 0.0  ;;  %v7122_v51 = vpop.f32.mrb[59].mxu0  ;;  %v7450_v62 = vpop.f32.mrb[63].mxu1  ;;  %7587 = vmatprep.subr.bf16.mxu0 %v6167_v41  ;;  %7915 = vmatprep.subr.bf16.mxu1 %v6169_v20  ;;  %v6214_v63 = vld [vmem:[#allocation2 + $0xf20] sm:$0xff]  ;;  %v6223_v26 = vld [vmem:[#allocation2 + $0xf68] sm:$0xff] }
 0xc1b   :  { %v8109_v10 = vmax.f32 %v12909_v36, 0.0  ;;  %v8111_v48 = vmax.f32 %v12911_v40, 0.0  ;;  %v6225_v41 = vld [vmem:[#allocation2 + $0xf78] sm:$0xff]  ;;  %v6222_v20 = vld [vmem:[#allocation2 + $0xf60] sm:$0xff]  ;;  %v6224_v30 = vld [vmem:[#allocation2 + $0xf70] sm:$0xff] }
 0xc1c   :  { %v6231_v17 = vld [vmem:[#allocation2 + $0xfa8] sm:$0xff]  ;;  %v6233_v19 = vld [vmem:[#allocation2 + $0xfb8] sm:$0xff]  ;;  %v6230_v59 = vld [vmem:[#allocation2 + $0xfa0] sm:$0xff] }
 0xc1d   :  { %7588 = vmatpush1.bf16.msra.mxu0 %v6166_v52  ;;  %7916 = vmatpush1.bf16.msra.mxu1 %v6168_v1  ;;  %v6232_v51 = vld [vmem:[#allocation2 + $0xfb0] sm:$0xff]  ;;  %v6239_v62 = vld [vmem:[#allocation2 + $0xfe8] sm:$0xff]  ;;  %v6241_v52 = vld [vmem:[#allocation2 + $0xff8] sm:$0xff] }
 0xc1e   :  { %7589 = vmatprep.subr.bf16.mxu0 %v6175_v9  ;;  %7917 = vmatprep.subr.bf16.mxu1 %v6177_v15  ;;  %v6238_v1 = vld [vmem:[#allocation2 + $0xfe0] sm:$0xff]  ;;  %v6240_v9 = vld [vmem:[#allocation2 + $0xff0] sm:$0xff]  ;;  %v6247_v15 = vld [vmem:[#allocation2 + $0x1028] sm:$0xff] }
 0xc21   :  { %7590 = vmatpush1.bf16.msra.mxu0 %v6174_v22  ;;  %7918 = vmatpush1.bf16.msra.mxu1 %v6176_v37  ;;  %v6249_v22 = vld [vmem:[#allocation2 + $0x1038] sm:$0xff]  ;;  %v6246_v37 = vld [vmem:[#allocation2 + $0x1020] sm:$0xff] }
 0xc22   :  { %7591 = vmatprep.subr.bf16.mxu0 %v6183_v38  ;;  %7919 = vmatprep.subr.bf16.mxu1 %v6185_v11  ;;  %v6248_v38 = vld [vmem:[#allocation2 + $0x1030] sm:$0xff]  ;;  %v6255_v11 = vld [vmem:[#allocation2 + $0x1068] sm:$0xff] }
 0xc25   :  { %7592 = vmatpush1.bf16.msra.mxu0 %v6182_v61  ;;  %7920 = vmatpush1.bf16.msra.mxu1 %v6184_v34  ;;  %v6257_v61 = vld [vmem:[#allocation2 + $0x1078] sm:$0xff]  ;;  %v6254_v34 = vld [vmem:[#allocation2 + $0x1060] sm:$0xff] }
 0xc26   :  { %7593 = vmatprep.subr.bf16.mxu0 %v6191_v14  ;;  %7921 = vmatprep.subr.bf16.mxu1 %v6193_v24  ;;  %v6256_v14 = vld [vmem:[#allocation2 + $0x1070] sm:$0xff]  ;;  %v6263_v24 = vld [vmem:[#allocation2 + $0x10a8] sm:$0xff] }
 0xc29   :  { %7594 = vmatpush1.bf16.msra.mxu0 %v6190_v58  ;;  %7922 = vmatpush1.bf16.msra.mxu1 %v6192_v23  ;;  %v6265_v58 = vld [vmem:[#allocation2 + $0x10b8] sm:$0xff]  ;;  %v6262_v23 = vld [vmem:[#allocation2 + $0x10a0] sm:$0xff] }
 0xc2a   :  { %7595 = vmatprep.subr.bf16.mxu0 %v6199_v54  ;;  %7923 = vmatprep.subr.bf16.mxu1 %v6201_v53  ;;  %v6264_v54 = vld [vmem:[#allocation2 + $0x10b0] sm:$0xff]  ;;  %v6271_v53 = vld [vmem:[#allocation2 + $0x10e8] sm:$0xff] }
 0xc2d   :  { %7596 = vmatpush1.bf16.msra.mxu0 %v6198_v18  ;;  %7924 = vmatpush1.bf16.msra.mxu1 %v6200_v21  ;;  %v6270_v18 = vld [vmem:[#allocation2 + $0x10e0] sm:$0xff]  ;;  %v6272_v21 = vld [vmem:[#allocation2 + $0x10f0] sm:$0xff] }
 0xc2e   :  { %7597 = vmatprep.subr.bf16.mxu0 %v6207_v31  ;;  %7925 = vmatprep.subr.bf16.mxu1 %v6209_v39  ;;  %v6279_v31 = vld [vmem:[#allocation2 + $0x1128] sm:$0xff]  ;;  %v6281_v39 = vld [vmem:[#allocation2 + $0x1138] sm:$0xff] }
 0xc31   :  { %7598 = vmatpush1.bf16.msra.mxu0 %v6206_v5  ;;  %7926 = vmatpush1.bf16.msra.mxu1 %v6208_v7  ;;  %v6280_v5 = vld [vmem:[#allocation2 + $0x1130] sm:$0xff]  ;;  %v6287_v7 = vld [vmem:[#allocation2 + $0x1168] sm:$0xff] }
 0xc32   :  { %7599 = vmatprep.subr.bf16.mxu0 %v6215_v29  ;;  %7927 = vmatprep.subr.bf16.mxu1 %v6217_v27  ;;  %v6289_v29 = vld [vmem:[#allocation2 + $0x1178] sm:$0xff]  ;;  %v6286_v27 = vld [vmem:[#allocation2 + $0x1160] sm:$0xff] }
 0xc35   :  { %7600 = vmatpush1.bf16.msra.mxu0 %v6214_v63  ;;  %7928 = vmatpush1.bf16.msra.mxu1 %v6216_v25  ;;  %v6288_v63 = vld [vmem:[#allocation2 + $0x1170] sm:$0xff]  ;;  %v6295_v25 = vld [vmem:[#allocation2 + $0x11a8] sm:$0xff] }
 0xc36   :  { %7601 = vmatprep.subr.bf16.mxu0 %v6223_v26  ;;  %7929 = vmatprep.subr.bf16.mxu1 %v6225_v41  ;;  %v6297_v26 = vld [vmem:[#allocation2 + $0x11b8] sm:$0xff]  ;;  %v6294_v41 = vld [vmem:[#allocation2 + $0x11a0] sm:$0xff] }
 0xc39   :  { %7602 = vmatpush1.bf16.msra.mxu0 %v6222_v20  ;;  %7930 = vmatpush1.bf16.msra.mxu1 %v6224_v30  ;;  %v6296_v20 = vld [vmem:[#allocation2 + $0x11b0] sm:$0xff]  ;;  %v6303_v30 = vld [vmem:[#allocation2 + $0x11e8] sm:$0xff] }
 0xc3a   :  { %7603 = vmatprep.subr.bf16.mxu0 %v6231_v17  ;;  %7931 = vmatprep.subr.bf16.mxu1 %v6233_v19  ;;  %v6305_v17 = vld [vmem:[#allocation2 + $0x11f8] sm:$0xff]  ;;  %v6302_v19 = vld [vmem:[#allocation2 + $0x11e0] sm:$0xff] }
 0xc3d   :  { %7604 = vmatpush1.bf16.msra.mxu0 %v6230_v59  ;;  %7932 = vmatpush1.bf16.msra.mxu1 %v6232_v51  ;;  %v6304_v59 = vld [vmem:[#allocation2 + $0x11f0] sm:$0xff]  ;;  %v6311_v51 = vld [vmem:[#allocation2 + $0x1228] sm:$0xff] }
 0xc3e   :  { %7605 = vmatprep.subr.bf16.mxu0 %v6239_v62  ;;  %7933 = vmatprep.subr.bf16.mxu1 %v6241_v52  ;;  %v6313_v62 = vld [vmem:[#allocation2 + $0x1238] sm:$0xff]  ;;  %v6310_v52 = vld [vmem:[#allocation2 + $0x1220] sm:$0xff] }
 0xc41   :  { %7606 = vmatpush1.bf16.msra.mxu0 %v6238_v1  ;;  %7934 = vmatpush1.bf16.msra.mxu1 %v6240_v9  ;;  %v6312_v1 = vld [vmem:[#allocation2 + $0x1230] sm:$0xff]  ;;  %v6319_v9 = vld [vmem:[#allocation2 + $0x1268] sm:$0xff] }
 0xc42   :  { %7616 = vmatprep.subr.bf16.mxu0 %v6247_v15  ;;  %7944 = vmatprep.subr.bf16.mxu1 %v6249_v22  ;;  %v6321_v15 = vld [vmem:[#allocation2 + $0x1278] sm:$0xff]  ;;  %v6318_v22 = vld [vmem:[#allocation2 + $0x1260] sm:$0xff] }
 0xc44   :  { %7608 = vmatmul.mubr.bf16.vlgmr.msra.gmra.mrb[60].mxu0 %v12827_v16  ;;  %7936 = vmatmul.mubr.bf16.vlgmr.msra.gmra.mrb[64].mxu1 %v12827_v16  ;;  %v6273_v16 = vld [vmem:[#allocation2 + $0x10f8] sm:$0xff] }
 0xc45   :  { %7617 = vmatpush1.bf16.msra.mxu0 %v6246_v37  ;;  %7945 = vmatpush1.bf16.msra.mxu1 %v6248_v38  ;;  %v6320_v37 = vld [vmem:[#allocation2 + $0x1270] sm:$0xff]  ;;  %v6327_v38 = vld [vmem:[#allocation2 + $0x12a8] sm:$0xff] }
 0xc46   :  { %7618 = vmatprep.subr.bf16.mxu0 %v6255_v11  ;;  %7946 = vmatprep.subr.bf16.mxu1 %v6257_v61  ;;  %v6329_v11 = vld [vmem:[#allocation2 + $0x12b8] sm:$0xff]  ;;  %v6326_v61 = vld [vmem:[#allocation2 + $0x12a0] sm:$0xff] }
 0xc47   :  { %7648 = vmatprep.mubr.bf16.mxu0 %v12832_v12  ;;  %7976 = vmatprep.mubr.bf16.mxu1 %v12832_v12  ;;  %v6278_v12 = vld [vmem:[#allocation2 + $0x1120] sm:$0xff] }
 0xc49   :  { %7619 = vmatpush1.bf16.msra.mxu0 %v6254_v34  ;;  %7947 = vmatpush1.bf16.msra.mxu1 %v6256_v14  ;;  %v6328_v34 = vld [vmem:[#allocation2 + $0x12b0] sm:$0xff]  ;;  %v6335_v14 = vld [vmem:[#allocation2 + $0x12e8] sm:$0xff] }
 0xc4a   :  { %7620 = vmatprep.subr.bf16.mxu0 %v6263_v24  ;;  %7948 = vmatprep.subr.bf16.mxu1 %v6265_v58  ;;  %v6337_v24 = vld [vmem:[#allocation2 + $0x12f8] sm:$0xff]  ;;  %v6334_v58 = vld [vmem:[#allocation2 + $0x12e0] sm:$0xff] }
 0xc4d   :  { %7621 = vmatpush1.bf16.msra.mxu0 %v6262_v23  ;;  %7949 = vmatpush1.bf16.msra.mxu1 %v6264_v54  ;;  %v6336_v23 = vld [vmem:[#allocation2 + $0x12f0] sm:$0xff]  ;;  %v6343_v54 = vld [vmem:[#allocation2 + $0x1328] sm:$0xff] }
 0xc4e   :  { %7622 = vmatprep.subr.bf16.mxu0 %v6271_v53  ;;  %7950 = vmatprep.subr.bf16.mxu1 %v6273_v16  ;;  %v6345_v53 = vld [vmem:[#allocation2 + $0x1338] sm:$0xff]  ;;  %v6342_v16 = vld [vmem:[#allocation2 + $0x1320] sm:$0xff] }
 0xc51   :  { %7623 = vmatpush1.bf16.msra.mxu0 %v6270_v18  ;;  %7951 = vmatpush1.bf16.msra.mxu1 %v6272_v21  ;;  %v6344_v18 = vld [vmem:[#allocation2 + $0x1330] sm:$0xff]  ;;  %v6351_v21 = vld [vmem:[#allocation2 + $0x1368] sm:$0xff] }
 0xc52   :  { %7624 = vmatprep.subr.bf16.mxu0 %v6279_v31  ;;  %7952 = vmatprep.subr.bf16.mxu1 %v6281_v39  ;;  %v6353_v31 = vld [vmem:[#allocation2 + $0x1378] sm:$0xff]  ;;  %v6350_v39 = vld [vmem:[#allocation2 + $0x1360] sm:$0xff] }
 0xc55   :  { %7625 = vmatpush1.bf16.msra.mxu0 %v6278_v12  ;;  %7953 = vmatpush1.bf16.msra.mxu1 %v6280_v5  ;;  %v6352_v12 = vld [vmem:[#allocation2 + $0x1370] sm:$0xff]  ;;  %v6359_v5 = vld [vmem:[#allocation2 + $0x13a8] sm:$0xff] }
 0xc56   :  { %7626 = vmatprep.subr.bf16.mxu0 %v6287_v7  ;;  %7954 = vmatprep.subr.bf16.mxu1 %v6289_v29  ;;  %v6361_v7 = vld [vmem:[#allocation2 + $0x13b8] sm:$0xff]  ;;  %v6358_v29 = vld [vmem:[#allocation2 + $0x13a0] sm:$0xff] }
 0xc59   :  { %7627 = vmatpush1.bf16.msra.mxu0 %v6286_v27  ;;  %7955 = vmatpush1.bf16.msra.mxu1 %v6288_v63  ;;  %v6360_v27 = vld [vmem:[#allocation2 + $0x13b0] sm:$0xff]  ;;  %v6367_v63 = vld [vmem:[#allocation2 + $0x13e8] sm:$0xff] }
 0xc5a   :  { %7628 = vmatprep.subr.bf16.mxu0 %v6295_v25  ;;  %7956 = vmatprep.subr.bf16.mxu1 %v6297_v26  ;;  %v6369_v25 = vld [vmem:[#allocation2 + $0x13f8] sm:$0xff]  ;;  %v6366_v26 = vld [vmem:[#allocation2 + $0x13e0] sm:$0xff] }
 0xc5d   :  { %7629 = vmatpush1.bf16.msra.mxu0 %v6294_v41  ;;  %7957 = vmatpush1.bf16.msra.mxu1 %v6296_v20  ;;  %v6368_v41 = vld [vmem:[#allocation2 + $0x13f0] sm:$0xff]  ;;  %v6375_v20 = vld [vmem:[#allocation2 + $0x1428] sm:$0xff] }
 0xc5e   :  { %7630 = vmatprep.subr.bf16.mxu0 %v6303_v30  ;;  %7958 = vmatprep.subr.bf16.mxu1 %v6305_v17  ;;  %v6377_v30 = vld [vmem:[#allocation2 + $0x1438] sm:$0xff]  ;;  %v6374_v17 = vld [vmem:[#allocation2 + $0x1420] sm:$0xff] }
 0xc61   :  { %7631 = vmatpush1.bf16.msra.mxu0 %v6302_v19  ;;  %7959 = vmatpush1.bf16.msra.mxu1 %v6304_v59  ;;  %v6376_v19 = vld [vmem:[#allocation2 + $0x1430] sm:$0xff]  ;;  %v6383_v59 = vld [vmem:[#allocation2 + $0x1468] sm:$0xff] }
 0xc62   :  { %7632 = vmatprep.subr.bf16.mxu0 %v6311_v51  ;;  %7960 = vmatprep.subr.bf16.mxu1 %v6313_v62  ;;  %v6385_v51 = vld [vmem:[#allocation2 + $0x1478] sm:$0xff]  ;;  %v6382_v62 = vld [vmem:[#allocation2 + $0x1460] sm:$0xff] }
 0xc65   :  { %7633 = vmatpush1.bf16.msra.mxu0 %v6310_v52  ;;  %7961 = vmatpush1.bf16.msra.mxu1 %v6312_v1  ;;  %v6384_v52 = vld [vmem:[#allocation2 + $0x1470] sm:$0xff]  ;;  %v6391_v1 = vld [vmem:[#allocation2 + $0x14a8] sm:$0xff] }
 0xc66   :  { %7634 = vmatprep.subr.bf16.mxu0 %v6319_v9  ;;  %7962 = vmatprep.subr.bf16.mxu1 %v6321_v15  ;;  %v6393_v9 = vld [vmem:[#allocation2 + $0x14b8] sm:$0xff]  ;;  %v6390_v15 = vld [vmem:[#allocation2 + $0x14a0] sm:$0xff] }
 0xc69   :  { %7635 = vmatpush1.bf16.msra.mxu0 %v6318_v22  ;;  %7963 = vmatpush1.bf16.msra.mxu1 %v6320_v37  ;;  %v6392_v22 = vld [vmem:[#allocation2 + $0x14b0] sm:$0xff]  ;;  %v6399_v37 = vld [vmem:[#allocation2 + $0x14e8] sm:$0xff] }
 0xc6a   :  { %7636 = vmatprep.subr.bf16.mxu0 %v6327_v38  ;;  %7964 = vmatprep.subr.bf16.mxu1 %v6329_v11  ;;  %v6398_v38 = vld [vmem:[#allocation2 + $0x14e0] sm:$0xff]  ;;  %v6400_v11 = vld [vmem:[#allocation2 + $0x14f0] sm:$0xff] }
 0xc6d   :  { %7637 = vmatpush1.bf16.msra.mxu0 %v6326_v61  ;;  %7965 = vmatpush1.bf16.msra.mxu1 %v6328_v34  ;;  %v6407_v61 = vld [vmem:[#allocation2 + $0x1528] sm:$0xff]  ;;  %v6409_v34 = vld [vmem:[#allocation2 + $0x1538] sm:$0xff] }
 0xc6e   :  { %7638 = vmatprep.subr.bf16.mxu0 %v6335_v14  ;;  %7966 = vmatprep.subr.bf16.mxu1 %v6337_v24  ;;  %v6408_v14 = vld [vmem:[#allocation2 + $0x1530] sm:$0xff]  ;;  %v6415_v24 = vld [vmem:[#allocation2 + $0x1568] sm:$0xff] }
 0xc71   :  { %7639 = vmatpush1.bf16.msra.mxu0 %v6334_v58  ;;  %7967 = vmatpush1.bf16.msra.mxu1 %v6336_v23  ;;  %v6417_v58 = vld [vmem:[#allocation2 + $0x1578] sm:$0xff]  ;;  %v6414_v23 = vld [vmem:[#allocation2 + $0x1560] sm:$0xff] }
 0xc72   :  { %7640 = vmatprep.subr.bf16.mxu0 %v6343_v54  ;;  %7968 = vmatprep.subr.bf16.mxu1 %v6345_v53  ;;  %v6416_v54 = vld [vmem:[#allocation2 + $0x1570] sm:$0xff]  ;;  %v6423_v53 = vld [vmem:[#allocation2 + $0x15a8] sm:$0xff] }
 0xc75   :  { %7641 = vmatpush1.bf16.msra.mxu0 %v6342_v16  ;;  %7969 = vmatpush1.bf16.msra.mxu1 %v6344_v18  ;;  %v6425_v16 = vld [vmem:[#allocation2 + $0x15b8] sm:$0xff]  ;;  %v6422_v18 = vld [vmem:[#allocation2 + $0x15a0] sm:$0xff] }
 0xc76   :  { %7642 = vmatprep.subr.bf16.mxu0 %v6351_v21  ;;  %7970 = vmatprep.subr.bf16.mxu1 %v6353_v31  ;;  %v6424_v21 = vld [vmem:[#allocation2 + $0x15b0] sm:$0xff]  ;;  %v6431_v31 = vld [vmem:[#allocation2 + $0x15e8] sm:$0xff] }
 0xc79   :  { %7643 = vmatpush1.bf16.msra.mxu0 %v6350_v39  ;;  %7971 = vmatpush1.bf16.msra.mxu1 %v6352_v12  ;;  %v6433_v39 = vld [vmem:[#allocation2 + $0x15f8] sm:$0xff]  ;;  %v6430_v12 = vld [vmem:[#allocation2 + $0x15e0] sm:$0xff] }
 0xc7a   :  { %7644 = vmatprep.subr.bf16.mxu0 %v6359_v5  ;;  %7972 = vmatprep.subr.bf16.mxu1 %v6361_v7  ;;  %v6432_v5 = vld [vmem:[#allocation2 + $0x15f0] sm:$0xff]  ;;  %v6439_v7 = vld [vmem:[#allocation2 + $0x1628] sm:$0xff] }
 0xc7d   :  { %7645 = vmatpush1.bf16.msra.mxu0 %v6358_v29  ;;  %7973 = vmatpush1.bf16.msra.mxu1 %v6360_v27  ;;  %v6441_v29 = vld [vmem:[#allocation2 + $0x1638] sm:$0xff]  ;;  %v6438_v27 = vld [vmem:[#allocation2 + $0x1620] sm:$0xff] }
 0xc7e   :  { %7646 = vmatprep.subr.bf16.mxu0 %v6367_v63  ;;  %7974 = vmatprep.subr.bf16.mxu1 %v6369_v25  ;;  %v6440_v63 = vld [vmem:[#allocation2 + $0x1630] sm:$0xff]  ;;  %v6447_v25 = vld [vmem:[#allocation2 + $0x1668] sm:$0xff] }
 0xc81   :  { %7647 = vmatpush1.bf16.msra.mxu0 %v6366_v26  ;;  %7975 = vmatpush1.bf16.msra.mxu1 %v6368_v41  ;;  %v6449_v26 = vld [vmem:[#allocation2 + $0x1678] sm:$0xff]  ;;  %v6446_v41 = vld [vmem:[#allocation2 + $0x1660] sm:$0xff] }
 0xc82   :  { %7657 = vmatprep.subr.bf16.mxu0 %v6375_v20  ;;  %7985 = vmatprep.subr.bf16.mxu1 %v6377_v30  ;;  %v6448_v20 = vld [vmem:[#allocation2 + $0x1670] sm:$0xff]  ;;  %v6455_v30 = vld [vmem:[#allocation2 + $0x16a8] sm:$0xff] }
 0xc84   :  { %7649 = vmatmul.mubr.bf16.vlgmr.msra.gmra.mrb[60].mxu0 %v12841_v46  ;;  %7977 = vmatmul.mubr.bf16.vlgmr.msra.gmra.mrb[64].mxu1 %v12841_v46  ;;  %v6401_v46 = vld [vmem:[#allocation2 + $0x14f8] sm:$0xff] }
 0xc85   :  { %7658 = vmatpush1.bf16.msra.mxu0 %v6374_v17  ;;  %7986 = vmatpush1.bf16.msra.mxu1 %v6376_v19  ;;  %v6457_v17 = vld [vmem:[#allocation2 + $0x16b8] sm:$0xff]  ;;  %v6454_v19 = vld [vmem:[#allocation2 + $0x16a0] sm:$0xff] }
 0xc86   :  { %7659 = vmatprep.subr.bf16.mxu0 %v6383_v59  ;;  %7987 = vmatprep.subr.bf16.mxu1 %v6385_v51  ;;  %v6456_v59 = vld [vmem:[#allocation2 + $0x16b0] sm:$0xff]  ;;  %v6463_v51 = vld [vmem:[#allocation2 + $0x16e8] sm:$0xff] }
 0xc87   :  { %7689 = vmatprep.mubr.bf16.mxu0 %v12846_v47  ;;  %8017 = vmatprep.mubr.bf16.mxu1 %v12846_v47  ;;  %v6406_v47 = vld [vmem:[#allocation2 + $0x1520] sm:$0xff] }
 0xc89   :  { %7660 = vmatpush1.bf16.msra.mxu0 %v6382_v62  ;;  %7988 = vmatpush1.bf16.msra.mxu1 %v6384_v52  ;;  %v6465_v62 = vld [vmem:[#allocation2 + $0x16f8] sm:$0xff]  ;;  %v6462_v52 = vld [vmem:[#allocation2 + $0x16e0] sm:$0xff] }
 0xc8a   :  { %7661 = vmatprep.subr.bf16.mxu0 %v6391_v1  ;;  %7989 = vmatprep.subr.bf16.mxu1 %v6393_v9  ;;  %v6464_v1 = vld [vmem:[#allocation2 + $0x16f0] sm:$0xff]  ;;  %v6471_v9 = vld [vmem:[#allocation2 + $0x1728] sm:$0xff] }
 0xc8d   :  { %7662 = vmatpush1.bf16.msra.mxu0 %v6390_v15  ;;  %7990 = vmatpush1.bf16.msra.mxu1 %v6392_v22  ;;  %v6473_v15 = vld [vmem:[#allocation2 + $0x1738] sm:$0xff]  ;;  %v6470_v22 = vld [vmem:[#allocation2 + $0x1720] sm:$0xff] }
 0xc8e   :  { %7663 = vmatprep.subr.bf16.mxu0 %v6399_v37  ;;  %7991 = vmatprep.subr.bf16.mxu1 %v6401_v46  ;;  %v6472_v37 = vld [vmem:[#allocation2 + $0x1730] sm:$0xff]  ;;  %v6479_v46 = vld [vmem:[#allocation2 + $0x1768] sm:$0xff] }
 0xc91   :  { %7664 = vmatpush1.bf16.msra.mxu0 %v6398_v38  ;;  %7992 = vmatpush1.bf16.msra.mxu1 %v6400_v11  ;;  %v6481_v38 = vld [vmem:[#allocation2 + $0x1778] sm:$0xff]  ;;  %v6478_v11 = vld [vmem:[#allocation2 + $0x1760] sm:$0xff] }
 0xc92   :  { %7665 = vmatprep.subr.bf16.mxu0 %v6407_v61  ;;  %7993 = vmatprep.subr.bf16.mxu1 %v6409_v34  ;;  %v6480_v61 = vld [vmem:[#allocation2 + $0x1770] sm:$0xff]  ;;  %v6487_v34 = vld [vmem:[#allocation2 + $0x17a8] sm:$0xff] }
 0xc95   :  { %7666 = vmatpush1.bf16.msra.mxu0 %v6406_v47  ;;  %7994 = vmatpush1.bf16.msra.mxu1 %v6408_v14  ;;  %v6489_v47 = vld [vmem:[#allocation2 + $0x17b8] sm:$0xff]  ;;  %v6486_v14 = vld [vmem:[#allocation2 + $0x17a0] sm:$0xff] }
 0xc96   :  { %7667 = vmatprep.subr.bf16.mxu0 %v6415_v24  ;;  %7995 = vmatprep.subr.bf16.mxu1 %v6417_v58  ;;  %v6488_v24 = vld [vmem:[#allocation2 + $0x17b0] sm:$0xff]  ;;  %v6495_v58 = vld [vmem:[#allocation2 + $0x17e8] sm:$0xff] }
 0xc99   :  { %7668 = vmatpush1.bf16.msra.mxu0 %v6414_v23  ;;  %7996 = vmatpush1.bf16.msra.mxu1 %v6416_v54  ;;  %v6497_v23 = vld [vmem:[#allocation2 + $0x17f8] sm:$0xff]  ;;  %v6494_v54 = vld [vmem:[#allocation2 + $0x17e0] sm:$0xff] }
 0xc9a   :  { %7669 = vmatprep.subr.bf16.mxu0 %v6423_v53  ;;  %7997 = vmatprep.subr.bf16.mxu1 %v6425_v16  ;;  %v6496_v53 = vld [vmem:[#allocation2 + $0x17f0] sm:$0xff]  ;;  %v6503_v16 = vld [vmem:[#allocation2 + $0x1828] sm:$0xff] }
 0xc9d   :  { %7670 = vmatpush1.bf16.msra.mxu0 %v6422_v18  ;;  %7998 = vmatpush1.bf16.msra.mxu1 %v6424_v21  ;;  %v6505_v18 = vld [vmem:[#allocation2 + $0x1838] sm:$0xff]  ;;  %v6502_v21 = vld [vmem:[#allocation2 + $0x1820] sm:$0xff] }
 0xc9e   :  { %7671 = vmatprep.subr.bf16.mxu0 %v6431_v31  ;;  %7999 = vmatprep.subr.bf16.mxu1 %v6433_v39  ;;  %v6504_v31 = vld [vmem:[#allocation2 + $0x1830] sm:$0xff]  ;;  %v6511_v39 = vld [vmem:[#allocation2 + $0x1868] sm:$0xff] }
 0xca1   :  { %7672 = vmatpush1.bf16.msra.mxu0 %v6430_v12  ;;  %8000 = vmatpush1.bf16.msra.mxu1 %v6432_v5  ;;  %v6513_v12 = vld [vmem:[#allocation2 + $0x1878] sm:$0xff]  ;;  %v6510_v5 = vld [vmem:[#allocation2 + $0x1860] sm:$0xff] }
 0xca2   :  { %7673 = vmatprep.subr.bf16.mxu0 %v6439_v7  ;;  %8001 = vmatprep.subr.bf16.mxu1 %v6441_v29  ;;  %v6512_v7 = vld [vmem:[#allocation2 + $0x1870] sm:$0xff]  ;;  %v6519_v29 = vld [vmem:[#allocation2 + $0x18a8] sm:$0xff] }
 0xca5   :  { %7674 = vmatpush1.bf16.msra.mxu0 %v6438_v27  ;;  %8002 = vmatpush1.bf16.msra.mxu1 %v6440_v63  ;;  %v6521_v27 = vld [vmem:[#allocation2 + $0x18b8] sm:$0xff]  ;;  %v6518_v63 = vld [vmem:[#allocation2 + $0x18a0] sm:$0xff] }
 0xca6   :  { %7675 = vmatprep.subr.bf16.mxu0 %v6447_v25  ;;  %8003 = vmatprep.subr.bf16.mxu1 %v6449_v26  ;;  %v6520_v25 = vld [vmem:[#allocation2 + $0x18b0] sm:$0xff]  ;;  %v6527_v26 = vld [vmem:[#allocation2 + $0x18e8] sm:$0xff] }
 0xca9   :  { %7676 = vmatpush1.bf16.msra.mxu0 %v6446_v41  ;;  %8004 = vmatpush1.bf16.msra.mxu1 %v6448_v20  ;;  %v6526_v41 = vld [vmem:[#allocation2 + $0x18e0] sm:$0xff]  ;;  %v6528_v20 = vld [vmem:[#allocation2 + $0x18f0] sm:$0xff] }
 0xcaa   :  { %7677 = vmatprep.subr.bf16.mxu0 %v6455_v30  ;;  %8005 = vmatprep.subr.bf16.mxu1 %v6457_v17  ;;  %v6535_v30 = vld [vmem:[#allocation2 + $0x1928] sm:$0xff]  ;;  %v6537_v17 = vld [vmem:[#allocation2 + $0x1938] sm:$0xff] }
 0xcad   :  { %7678 = vmatpush1.bf16.msra.mxu0 %v6454_v19  ;;  %8006 = vmatpush1.bf16.msra.mxu1 %v6456_v59  ;;  %v6536_v19 = vld [vmem:[#allocation2 + $0x1930] sm:$0xff]  ;;  %v6543_v59 = vld [vmem:[#allocation2 + $0x1968] sm:$0xff] }
 0xcae   :  { %7679 = vmatprep.subr.bf16.mxu0 %v6463_v51  ;;  %8007 = vmatprep.subr.bf16.mxu1 %v6465_v62  ;;  %v6545_v51 = vld [vmem:[#allocation2 + $0x1978] sm:$0xff]  ;;  %v6542_v62 = vld [vmem:[#allocation2 + $0x1960] sm:$0xff] }
 0xcb1   :  { %7680 = vmatpush1.bf16.msra.mxu0 %v6462_v52  ;;  %8008 = vmatpush1.bf16.msra.mxu1 %v6464_v1  ;;  %v6544_v52 = vld [vmem:[#allocation2 + $0x1970] sm:$0xff]  ;;  %v6551_v1 = vld [vmem:[#allocation2 + $0x19a8] sm:$0xff] }
 0xcb2   :  { %7681 = vmatprep.subr.bf16.mxu0 %v6471_v9  ;;  %8009 = vmatprep.subr.bf16.mxu1 %v6473_v15  ;;  %v6553_v9 = vld [vmem:[#allocation2 + $0x19b8] sm:$0xff]  ;;  %v6550_v15 = vld [vmem:[#allocation2 + $0x19a0] sm:$0xff] }
 0xcb5   :  { %7682 = vmatpush1.bf16.msra.mxu0 %v6470_v22  ;;  %8010 = vmatpush1.bf16.msra.mxu1 %v6472_v37  ;;  %v6552_v22 = vld [vmem:[#allocation2 + $0x19b0] sm:$0xff]  ;;  %v6559_v37 = vld [vmem:[#allocation2 + $0x19e8] sm:$0xff] }
 0xcb6   :  { %7683 = vmatprep.subr.bf16.mxu0 %v6479_v46  ;;  %8011 = vmatprep.subr.bf16.mxu1 %v6481_v38  ;;  %v6561_v46 = vld [vmem:[#allocation2 + $0x19f8] sm:$0xff]  ;;  %v6558_v38 = vld [vmem:[#allocation2 + $0x19e0] sm:$0xff] }
 0xcb9   :  { %7684 = vmatpush1.bf16.msra.mxu0 %v6478_v11  ;;  %8012 = vmatpush1.bf16.msra.mxu1 %v6480_v61  ;;  %v6560_v11 = vld [vmem:[#allocation2 + $0x19f0] sm:$0xff]  ;;  %v6567_v61 = vld [vmem:[#allocation2 + $0x1a28] sm:$0xff] }
 0xcba   :  { %7685 = vmatprep.subr.bf16.mxu0 %v6487_v34  ;;  %8013 = vmatprep.subr.bf16.mxu1 %v6489_v47  ;;  %v6569_v34 = vld [vmem:[#allocation2 + $0x1a38] sm:$0xff]  ;;  %v6566_v47 = vld [vmem:[#allocation2 + $0x1a20] sm:$0xff] }
 0xcbd   :  { %7686 = vmatpush1.bf16.msra.mxu0 %v6486_v14  ;;  %8014 = vmatpush1.bf16.msra.mxu1 %v6488_v24  ;;  %v6568_v14 = vld [vmem:[#allocation2 + $0x1a30] sm:$0xff]  ;;  %v6575_v24 = vld [vmem:[#allocation2 + $0x1a68] sm:$0xff] }
 0xcbe   :  { %7687 = vmatprep.subr.bf16.mxu0 %v6495_v58  ;;  %8015 = vmatprep.subr.bf16.mxu1 %v6497_v23  ;;  %v6577_v58 = vld [vmem:[#allocation2 + $0x1a78] sm:$0xff]  ;;  %v6574_v23 = vld [vmem:[#allocation2 + $0x1a60] sm:$0xff] }
 0xcc1   :  { %7688 = vmatpush1.bf16.msra.mxu0 %v6494_v54  ;;  %8016 = vmatpush1.bf16.msra.mxu1 %v6496_v53  ;;  %v6576_v54 = vld [vmem:[#allocation2 + $0x1a70] sm:$0xff]  ;;  %v6583_v53 = vld [vmem:[#allocation2 + $0x1aa8] sm:$0xff] }
 0xcc2   :  { %7698 = vmatprep.subr.bf16.mxu0 %v6503_v16  ;;  %8026 = vmatprep.subr.bf16.mxu1 %v6505_v18  ;;  %v6585_v16 = vld [vmem:[#allocation2 + $0x1ab8] sm:$0xff]  ;;  %v6582_v18 = vld [vmem:[#allocation2 + $0x1aa0] sm:$0xff] }
 0xcc4   :  { %7690 = vmatmul.mubr.bf16.vlgmr.msra.gmra.mrb[60].mxu0 %v12855_v33  ;;  %8018 = vmatmul.mubr.bf16.vlgmr.msra.gmra.mrb[64].mxu1 %v12855_v33  ;;  %v6529_v33 = vld [vmem:[#allocation2 + $0x18f8] sm:$0xff] }
 0xcc5   :  { %7699 = vmatpush1.bf16.msra.mxu0 %v6502_v21  ;;  %8027 = vmatpush1.bf16.msra.mxu1 %v6504_v31  ;;  %v6584_v21 = vld [vmem:[#allocation2 + $0x1ab0] sm:$0xff]  ;;  %v6591_v31 = vld [vmem:[#allocation2 + $0x1ae8] sm:$0xff] }
 0xcc6   :  { %7700 = vmatprep.subr.bf16.mxu0 %v6511_v39  ;;  %8028 = vmatprep.subr.bf16.mxu1 %v6513_v12  ;;  %v6593_v39 = vld [vmem:[#allocation2 + $0x1af8] sm:$0xff]  ;;  %v6590_v12 = vld [vmem:[#allocation2 + $0x1ae0] sm:$0xff] }
 0xcc7   :  { %7730 = vmatprep.mubr.bf16.mxu0 %v12860_v0  ;;  %8058 = vmatprep.mubr.bf16.mxu1 %v12860_v0  ;;  %v6534_v0 = vld [vmem:[#allocation2 + $0x1920] sm:$0xff] }
 0xcc9   :  { %7701 = vmatpush1.bf16.msra.mxu0 %v6510_v5  ;;  %8029 = vmatpush1.bf16.msra.mxu1 %v6512_v7  ;;  %v6592_v5 = vld [vmem:[#allocation2 + $0x1af0] sm:$0xff]  ;;  %v6599_v7 = vld [vmem:[#allocation2 + $0x1b28] sm:$0xff] }
 0xcca   :  { %7702 = vmatprep.subr.bf16.mxu0 %v6519_v29  ;;  %8030 = vmatprep.subr.bf16.mxu1 %v6521_v27  ;;  %v6601_v29 = vld [vmem:[#allocation2 + $0x1b38] sm:$0xff]  ;;  %v6598_v27 = vld [vmem:[#allocation2 + $0x1b20] sm:$0xff] }
 0xccd   :  { %7703 = vmatpush1.bf16.msra.mxu0 %v6518_v63  ;;  %8031 = vmatpush1.bf16.msra.mxu1 %v6520_v25  ;;  %v6600_v63 = vld [vmem:[#allocation2 + $0x1b30] sm:$0xff]  ;;  %v6607_v25 = vld [vmem:[#allocation2 + $0x1b68] sm:$0xff] }
 0xcce   :  { %7704 = vmatprep.subr.bf16.mxu0 %v6527_v26  ;;  %8032 = vmatprep.subr.bf16.mxu1 %v6529_v33  ;;  %v6609_v26 = vld [vmem:[#allocation2 + $0x1b78] sm:$0xff]  ;;  %v6606_v33 = vld [vmem:[#allocation2 + $0x1b60] sm:$0xff] }
 0xcd1   :  { %7705 = vmatpush1.bf16.msra.mxu0 %v6526_v41  ;;  %8033 = vmatpush1.bf16.msra.mxu1 %v6528_v20  ;;  %v6608_v41 = vld [vmem:[#allocation2 + $0x1b70] sm:$0xff]  ;;  %v6615_v20 = vld [vmem:[#allocation2 + $0x1ba8] sm:$0xff] }
 0xcd2   :  { %7706 = vmatprep.subr.bf16.mxu0 %v6535_v30  ;;  %8034 = vmatprep.subr.bf16.mxu1 %v6537_v17  ;;  %v6617_v30 = vld [vmem:[#allocation2 + $0x1bb8] sm:$0xff]  ;;  %v6614_v17 = vld [vmem:[#allocation2 + $0x1ba0] sm:$0xff] }
 0xcd5   :  { %7707 = vmatpush1.bf16.msra.mxu0 %v6534_v0  ;;  %8035 = vmatpush1.bf16.msra.mxu1 %v6536_v19  ;;  %v6616_v0 = vld [vmem:[#allocation2 + $0x1bb0] sm:$0xff]  ;;  %v6623_v19 = vld [vmem:[#allocation2 + $0x1be8] sm:$0xff] }
 0xcd6   :  { %7708 = vmatprep.subr.bf16.mxu0 %v6543_v59  ;;  %8036 = vmatprep.subr.bf16.mxu1 %v6545_v51  ;;  %v6625_v59 = vld [vmem:[#allocation2 + $0x1bf8] sm:$0xff]  ;;  %v6622_v51 = vld [vmem:[#allocation2 + $0x1be0] sm:$0xff] }
 0xcd9   :  { %7709 = vmatpush1.bf16.msra.mxu0 %v6542_v62  ;;  %8037 = vmatpush1.bf16.msra.mxu1 %v6544_v52  ;;  %v6624_v62 = vld [vmem:[#allocation2 + $0x1bf0] sm:$0xff]  ;;  %v6631_v52 = vld [vmem:[#allocation2 + $0x1c28] sm:$0xff] }
 0xcda   :  { %7710 = vmatprep.subr.bf16.mxu0 %v6551_v1  ;;  %8038 = vmatprep.subr.bf16.mxu1 %v6553_v9  ;;  %v6633_v1 = vld [vmem:[#allocation2 + $0x1c38] sm:$0xff]  ;;  %v6630_v9 = vld [vmem:[#allocation2 + $0x1c20] sm:$0xff] }
 0xcdd   :  { %7711 = vmatpush1.bf16.msra.mxu0 %v6550_v15  ;;  %8039 = vmatpush1.bf16.msra.mxu1 %v6552_v22  ;;  %v6632_v15 = vld [vmem:[#allocation2 + $0x1c30] sm:$0xff]  ;;  %v6639_v22 = vld [vmem:[#allocation2 + $0x1c68] sm:$0xff] }
 0xcde   :  { %7712 = vmatprep.subr.bf16.mxu0 %v6559_v37  ;;  %8040 = vmatprep.subr.bf16.mxu1 %v6561_v46  ;;  %v6641_v37 = vld [vmem:[#allocation2 + $0x1c78] sm:$0xff]  ;;  %v6638_v46 = vld [vmem:[#allocation2 + $0x1c60] sm:$0xff] }
 0xce1   :  { %7713 = vmatpush1.bf16.msra.mxu0 %v6558_v38  ;;  %8041 = vmatpush1.bf16.msra.mxu1 %v6560_v11  ;;  %v6640_v38 = vld [vmem:[#allocation2 + $0x1c70] sm:$0xff]  ;;  %v6647_v11 = vld [vmem:[#allocation2 + $0x1ca8] sm:$0xff] }
 0xce2   :  { %7714 = vmatprep.subr.bf16.mxu0 %v6567_v61  ;;  %8042 = vmatprep.subr.bf16.mxu1 %v6569_v34  ;;  %v6649_v61 = vld [vmem:[#allocation2 + $0x1cb8] sm:$0xff]  ;;  %v6646_v34 = vld [vmem:[#allocation2 + $0x1ca0] sm:$0xff] }
 0xce5   :  { %7715 = vmatpush1.bf16.msra.mxu0 %v6566_v47  ;;  %8043 = vmatpush1.bf16.msra.mxu1 %v6568_v14  ;;  %v6648_v47 = vld [vmem:[#allocation2 + $0x1cb0] sm:$0xff]  ;;  %v6655_v14 = vld [vmem:[#allocation2 + $0x1ce8] sm:$0xff] }
 0xce6   :  { %7716 = vmatprep.subr.bf16.mxu0 %v6575_v24  ;;  %8044 = vmatprep.subr.bf16.mxu1 %v6577_v58  ;;  %v6654_v24 = vld [vmem:[#allocation2 + $0x1ce0] sm:$0xff]  ;;  %v6656_v58 = vld [vmem:[#allocation2 + $0x1cf0] sm:$0xff] }
 0xce9   :  { %7717 = vmatpush1.bf16.msra.mxu0 %v6574_v23  ;;  %8045 = vmatpush1.bf16.msra.mxu1 %v6576_v54  ;;  %v6663_v23 = vld [vmem:[#allocation2 + $0x1d28] sm:$0xff]  ;;  %v6665_v54 = vld [vmem:[#allocation2 + $0x1d38] sm:$0xff] }
 0xcea   :  { %7718 = vmatprep.subr.bf16.mxu0 %v6583_v53  ;;  %8046 = vmatprep.subr.bf16.mxu1 %v6585_v16  ;;  %v6664_v53 = vld [vmem:[#allocation2 + $0x1d30] sm:$0xff]  ;;  %v6671_v16 = vld [vmem:[#allocation2 + $0x1d68] sm:$0xff] }
 0xced   :  { %7719 = vmatpush1.bf16.msra.mxu0 %v6582_v18  ;;  %8047 = vmatpush1.bf16.msra.mxu1 %v6584_v21  ;;  %v6673_v18 = vld [vmem:[#allocation2 + $0x1d78] sm:$0xff]  ;;  %v6670_v21 = vld [vmem:[#allocation2 + $0x1d60] sm:$0xff] }
 0xcee   :  { %7720 = vmatprep.subr.bf16.mxu0 %v6591_v31  ;;  %8048 = vmatprep.subr.bf16.mxu1 %v6593_v39  ;;  %v6672_v31 = vld [vmem:[#allocation2 + $0x1d70] sm:$0xff]  ;;  %v6679_v39 = vld [vmem:[#allocation2 + $0x1da8] sm:$0xff] }
 0xcf1   :  { %7721 = vmatpush1.bf16.msra.mxu0 %v6590_v12  ;;  %8049 = vmatpush1.bf16.msra.mxu1 %v6592_v5  ;;  %v6681_v12 = vld [vmem:[#allocation2 + $0x1db8] sm:$0xff]  ;;  %v6678_v5 = vld [vmem:[#allocation2 + $0x1da0] sm:$0xff] }
 0xcf2   :  { %7722 = vmatprep.subr.bf16.mxu0 %v6599_v7  ;;  %8050 = vmatprep.subr.bf16.mxu1 %v6601_v29  ;;  %v6680_v7 = vld [vmem:[#allocation2 + $0x1db0] sm:$0xff]  ;;  %v6687_v29 = vld [vmem:[#allocation2 + $0x1de8] sm:$0xff] }
 0xcf5   :  { %7723 = vmatpush1.bf16.msra.mxu0 %v6598_v27  ;;  %8051 = vmatpush1.bf16.msra.mxu1 %v6600_v63  ;;  %v6689_v27 = vld [vmem:[#allocation2 + $0x1df8] sm:$0xff]  ;;  %v6686_v63 = vld [vmem:[#allocation2 + $0x1de0] sm:$0xff] }
 0xcf6   :  { %7724 = vmatprep.subr.bf16.mxu0 %v6607_v25  ;;  %8052 = vmatprep.subr.bf16.mxu1 %v6609_v26  ;;  %v6688_v25 = vld [vmem:[#allocation2 + $0x1df0] sm:$0xff]  ;;  %v6695_v26 = vld [vmem:[#allocation2 + $0x1e28] sm:$0xff] }
 0xcf9   :  { %7725 = vmatpush1.bf16.msra.mxu0 %v6606_v33  ;;  %8053 = vmatpush1.bf16.msra.mxu1 %v6608_v41  ;;  %v6697_v33 = vld [vmem:[#allocation2 + $0x1e38] sm:$0xff]  ;;  %v6694_v41 = vld [vmem:[#allocation2 + $0x1e20] sm:$0xff] }
 0xcfa   :  { %7726 = vmatprep.subr.bf16.mxu0 %v6615_v20  ;;  %8054 = vmatprep.subr.bf16.mxu1 %v6617_v30  ;;  %v6696_v20 = vld [vmem:[#allocation2 + $0x1e30] sm:$0xff]  ;;  %v6703_v30 = vld [vmem:[#allocation2 + $0x1e68] sm:$0xff] }
 0xcfd   :  { %7727 = vmatpush1.bf16.msra.mxu0 %v6614_v17  ;;  %8055 = vmatpush1.bf16.msra.mxu1 %v6616_v0  ;;  %v6705_v17 = vld [vmem:[#allocation2 + $0x1e78] sm:$0xff]  ;;  %v6702_v0 = vld [vmem:[#allocation2 + $0x1e60] sm:$0xff] }
 0xcfe   :  { %7728 = vmatprep.subr.bf16.mxu0 %v6623_v19  ;;  %8056 = vmatprep.subr.bf16.mxu1 %v6625_v59  ;;  %v6704_v19 = vld [vmem:[#allocation2 + $0x1e70] sm:$0xff]  ;;  %v6711_v59 = vld [vmem:[#allocation2 + $0x1ea8] sm:$0xff] }
 0xd01   :  { %7729 = vmatpush1.bf16.msra.mxu0 %v6622_v51  ;;  %8057 = vmatpush1.bf16.msra.mxu1 %v6624_v62  ;;  %v6713_v51 = vld [vmem:[#allocation2 + $0x1eb8] sm:$0xff]  ;;  %v6710_v62 = vld [vmem:[#allocation2 + $0x1ea0] sm:$0xff] }
 0xd02   :  { %7739 = vmatprep.subr.bf16.mxu0 %v6631_v52  ;;  %8067 = vmatprep.subr.bf16.mxu1 %v6633_v1  ;;  %v6712_v52 = vld [vmem:[#allocation2 + $0x1eb0] sm:$0xff]  ;;  %v6719_v1 = vld [vmem:[#allocation2 + $0x1ee8] sm:$0xff] }
 0xd04   :  { %7731 = vmatmul.mubr.bf16.vlgmr.msra.gmra.mrb[60].mxu0 %v12869_v4  ;;  %8059 = vmatmul.mubr.bf16.vlgmr.msra.gmra.mrb[64].mxu1 %v12869_v4  ;;  %v6657_v4 = vld [vmem:[#allocation2 + $0x1cf8] sm:$0xff] }
 0xd05   :  { %7740 = vmatpush1.bf16.msra.mxu0 %v6630_v9  ;;  %8068 = vmatpush1.bf16.msra.mxu1 %v6632_v15  ;;  %v6721_v9 = vld [vmem:[#allocation2 + $0x1ef8] sm:$0xff]  ;;  %v6718_v15 = vld [vmem:[#allocation2 + $0x1ee0] sm:$0xff] }
 0xd06   :  { %7741 = vmatprep.subr.bf16.mxu0 %v6639_v22  ;;  %8069 = vmatprep.subr.bf16.mxu1 %v6641_v37  ;;  %v6720_v22 = vld [vmem:[#allocation2 + $0x1ef0] sm:$0xff]  ;;  %v6727_v37 = vld [vmem:[#allocation2 + $0x1f28] sm:$0xff] }
 0xd07   :  { %7771 = vmatprep.mubr.bf16.mxu0 %v12874_v60  ;;  %8099 = vmatprep.mubr.bf16.mxu1 %v12874_v60  ;;  %v6662_v60 = vld [vmem:[#allocation2 + $0x1d20] sm:$0xff] }
 0xd09   :  { %7742 = vmatpush1.bf16.msra.mxu0 %v6638_v46  ;;  %8070 = vmatpush1.bf16.msra.mxu1 %v6640_v38  ;;  %v6729_v46 = vld [vmem:[#allocation2 + $0x1f38] sm:$0xff]  ;;  %v6726_v38 = vld [vmem:[#allocation2 + $0x1f20] sm:$0xff] }
 0xd0a   :  { %7743 = vmatprep.subr.bf16.mxu0 %v6647_v11  ;;  %8071 = vmatprep.subr.bf16.mxu1 %v6649_v61  ;;  %v6728_v11 = vld [vmem:[#allocation2 + $0x1f30] sm:$0xff]  ;;  %v6735_v61 = vld [vmem:[#allocation2 + $0x1f68] sm:$0xff] }
 0xd0d   :  { %7744 = vmatpush1.bf16.msra.mxu0 %v6646_v34  ;;  %8072 = vmatpush1.bf16.msra.mxu1 %v6648_v47  ;;  %v6737_v34 = vld [vmem:[#allocation2 + $0x1f78] sm:$0xff]  ;;  %v6734_v47 = vld [vmem:[#allocation2 + $0x1f60] sm:$0xff] }
 0xd0e   :  { %7745 = vmatprep.subr.bf16.mxu0 %v6655_v14  ;;  %8073 = vmatprep.subr.bf16.mxu1 %v6657_v4  ;;  %v6736_v14 = vld [vmem:[#allocation2 + $0x1f70] sm:$0xff]  ;;  %v6743_v4 = vld [vmem:[#allocation2 + $0x1fa8] sm:$0xff] }
 0xd11   :  { %7746 = vmatpush1.bf16.msra.mxu0 %v6654_v24  ;;  %8074 = vmatpush1.bf16.msra.mxu1 %v6656_v58  ;;  %v6745_v24 = vld [vmem:[#allocation2 + $0x1fb8] sm:$0xff]  ;;  %v6742_v58 = vld [vmem:[#allocation2 + $0x1fa0] sm:$0xff] }
 0xd12   :  { %7747 = vmatprep.subr.bf16.mxu0 %v6663_v23  ;;  %8075 = vmatprep.subr.bf16.mxu1 %v6665_v54  ;;  %v6744_v23 = vld [vmem:[#allocation2 + $0x1fb0] sm:$0xff]  ;;  %v6751_v54 = vld [vmem:[#allocation2 + $0x1fe8] sm:$0xff] }
 0xd15   :  { %7748 = vmatpush1.bf16.msra.mxu0 %v6662_v60  ;;  %8076 = vmatpush1.bf16.msra.mxu1 %v6664_v53  ;;  %v6753_v60 = vld [vmem:[#allocation2 + $0x1ff8] sm:$0xff]  ;;  %v6750_v53 = vld [vmem:[#allocation2 + $0x1fe0] sm:$0xff] }
 0xd16   :  { %7749 = vmatprep.subr.bf16.mxu0 %v6671_v16  ;;  %8077 = vmatprep.subr.bf16.mxu1 %v6673_v18  ;;  %v6752_v16 = vld [vmem:[#allocation2 + $0x1ff0] sm:$0xff] }
 0xd17   :  { %v11403_v18 = vld [vmem:[#allocation31] sm:$0xff] }
 0xd19   :  { %7750 = vmatpush1.bf16.msra.mxu0 %v6670_v21  ;;  %8078 = vmatpush1.bf16.msra.mxu1 %v6672_v31  ;;  %v6775_v21 = vrot.slane %v11403_v18, %v12475_v55  ;;  %v6783_v31 = vrot.slane %v11403_v18, %v12691_v28 }
 0xd1a   :  { %7751 = vmatprep.subr.bf16.mxu0 %v6679_v39  ;;  %8079 = vmatprep.subr.bf16.mxu1 %v6681_v12  ;;  %v6779_v39 = vrot.slane %v11403_v18, %v12478_v57  ;;  %v6787_v12 = vrot.slane %v11403_v18, %v12694_v50 }
 0xd1d   :  { %7752 = vmatpush1.bf16.msra.mxu0 %v6678_v5  ;;  %8080 = vmatpush1.bf16.msra.mxu1 %v6680_v7 }
 0xd1e   :  { %7753 = vmatprep.subr.bf16.mxu0 %v6687_v29  ;;  %8081 = vmatprep.subr.bf16.mxu1 %v6689_v27 }
 0xd21   :  { %7754 = vmatpush1.bf16.msra.mxu0 %v6686_v63  ;;  %8082 = vmatpush1.bf16.msra.mxu1 %v6688_v25 }
 0xd22   :  { %7755 = vmatprep.subr.bf16.mxu0 %v6695_v26  ;;  %8083 = vmatprep.subr.bf16.mxu1 %v6697_v33 }
 0xd25   :  { %7756 = vmatpush1.bf16.msra.mxu0 %v6694_v41  ;;  %8084 = vmatpush1.bf16.msra.mxu1 %v6696_v20 }
 0xd26   :  { %7757 = vmatprep.subr.bf16.mxu0 %v6703_v30  ;;  %8085 = vmatprep.subr.bf16.mxu1 %v6705_v17 }
 0xd29   :  { %7758 = vmatpush1.bf16.msra.mxu0 %v6702_v0  ;;  %8086 = vmatpush1.bf16.msra.mxu1 %v6704_v19 }
 0xd2a   :  { %7759 = vmatprep.subr.bf16.mxu0 %v6711_v59  ;;  %8087 = vmatprep.subr.bf16.mxu1 %v6713_v51 }
 0xd2d   :  { %7760 = vmatpush1.bf16.msra.mxu0 %v6710_v62  ;;  %8088 = vmatpush1.bf16.msra.mxu1 %v6712_v52 }
 0xd2e   :  { %7761 = vmatprep.subr.bf16.mxu0 %v6719_v1  ;;  %8089 = vmatprep.subr.bf16.mxu1 %v6721_v9 }
 0xd31   :  { %7762 = vmatpush1.bf16.msra.mxu0 %v6718_v15  ;;  %8090 = vmatpush1.bf16.msra.mxu1 %v6720_v22 }
 0xd32   :  { %7763 = vmatprep.subr.bf16.mxu0 %v6727_v37  ;;  %8091 = vmatprep.subr.bf16.mxu1 %v6729_v46 }
 0xd35   :  { %7764 = vmatpush1.bf16.msra.mxu0 %v6726_v38  ;;  %8092 = vmatpush1.bf16.msra.mxu1 %v6728_v11 }
 0xd36   :  { %7765 = vmatprep.subr.bf16.mxu0 %v6735_v61  ;;  %8093 = vmatprep.subr.bf16.mxu1 %v6737_v34 }
 0xd39   :  { %7766 = vmatpush1.bf16.msra.mxu0 %v6734_v47  ;;  %8094 = vmatpush1.bf16.msra.mxu1 %v6736_v14 }
 0xd3a   :  { %7767 = vmatprep.subr.bf16.mxu0 %v6743_v4  ;;  %8095 = vmatprep.subr.bf16.mxu1 %v6745_v24 }
 0xd3d   :  { %7768 = vmatpush1.bf16.msra.mxu0 %v6742_v58  ;;  %8096 = vmatpush1.bf16.msra.mxu1 %v6744_v23 }
 0xd3e   :  { %7769 = vmatprep.subr.bf16.mxu0 %v6751_v54  ;;  %8097 = vmatprep.subr.bf16.mxu1 %v6753_v60 }
 0xd41   :  { %7770 = vmatpush1.bf16.msra.mxu0 %v6750_v53  ;;  %8098 = vmatpush1.bf16.msra.mxu1 %v6752_v16 }
 0xd44   :  { %7772 = vmatmul.mubr.bf16.vlgmr.msra.gmra.mrb[60].mxu0 %v12883_v42  ;;  %8100 = vmatmul.mubr.bf16.vlgmr.msra.gmra.mrb[64].mxu1 %v12883_v42 }
 0xe17   :  { %v7773_v5 = vpop.f32.mrb[60].mxu0  ;;  %v8101_v7 = vpop.f32.mrb[64].mxu1 }
 0xe18   :  { %v12939_v29 = vadd.f32 %v7773_v5, %v6775_v21  ;;  %v12941_v27 = vadd.f32 %v8101_v7, %v6783_v31  ;;  %v7775_v63 = vpop.f32.mrb[61].mxu0  ;;  %v8103_v25 = vpop.f32.mrb[65].mxu1 }
 0xe19   :  { %v12943_v26 = vadd.f32 %v7775_v63, %v6779_v39  ;;  %v12945_v42 = vadd.f32 %v8103_v25, %v6787_v12  ;;  %v7777_v33 = vpop.f32.mrb[62].mxu0  ;;  %v8105_v55 = vpop.f32.mrb[66].mxu1 }
 0xe1a   :  { %v8112_v28 = vmax.f32 %v12939_v29, 0.0  ;;  %v8114_v57 = vmax.f32 %v12941_v27, 0.0  ;;  %v7778_v41 = vpop.f32.mrb[63].mxu0  ;;  %v8106_v50 = vpop.f32.mrb[67].mxu1 }
 0xe1b   :  { %v8113_v20 = vmax.f32 %v12943_v26, 0.0  ;;  %v8115_v30 = vmax.f32 %v12945_v42, 0.0 }
 0xe1c   :  { %11980 = dma.done.wait [#allocation7 + $0x1], 24576 }
 0xe1d   :  { %11981 = vsyncadd [#allocation7 + $0x1], 4294942720  ;;  %v8121_v17 = vpack.c.bf16 %v8109_v10, %v8109_v10  ;;  %v8129_v0 = vld [vmem:[#allocation3 + $0x8] sm:$0xff]  ;;  %v8128_v19 = vld [vmem:[#allocation3] sm:$0xff]  ;;  %v12957_v55 = vpack.c.bf16 %v8111_v48, %v8111_v48  ;;  %v8120_v41 = vpack.c.bf16 %v8108_v45, %v8108_v45 }
 0xe1e   :  { %v8132_v59 = vld [vmem:[#allocation3 + $0x20] sm:$0xff]  ;;  %8337 = vmatprep.subr.bf16.mxu0 %v8129_v0  ;;  %v8131_v51 = vld [vmem:[#allocation3 + $0x18] sm:$0xff]  ;;  %v8154_v52 = vld [vmem:[#allocation3 + $0xd0] sm:$0xff] }
 0xe1f   :  { %8369 = vmatprep.mubr.bf16.mxu0 %v8121_v17  ;;  %8533 = vmatprep.mubr.bf16.mxu1 %v8121_v17  ;;  %v8135_v62 = vld [vmem:[#allocation3 + $0x38] sm:$0xff]  ;;  %v8134_v1 = vld [vmem:[#allocation3 + $0x30] sm:$0xff]  ;;  %v8157_v15 = vld [vmem:[#allocation3 + $0xe8] sm:$0xff] }
 0xe20   :  { %8338 = vmatpush1.bf16.msra.mxu0 %v8128_v19  ;;  %10192 = vmatprep.subr.bf16.mxu1 %v8154_v52  ;;  %v8130_v9 = vld [vmem:[#allocation3 + $0x10] sm:$0xff]  ;;  %v8133_v10 = vld [vmem:[#allocation3 + $0x28] sm:$0xff]  ;;  %v8160_v22 = vld [vmem:[#allocation3 + $0x100] sm:$0xff] }
 0xe21   :  { %8339 = vmatprep.subr.bf16.mxu0 %v8132_v59  ;;  %v8138_v36 = vld [vmem:[#allocation3 + $0x50] sm:$0xff]  ;;  %10193 = vmatpush3.bf16.msra.mxu1 %v8130_v9  ;;  %v8137_v37 = vld [vmem:[#allocation3 + $0x48] sm:$0xff]  ;;  %v8136_v38 = vld [vmem:[#allocation3 + $0x40] sm:$0xff] }
 0xe22   :  { %10194 = vmatprep.subr.bf16.mxu1 %v8157_v15  ;;  %v8141_v46 = vld [vmem:[#allocation3 + $0x68] sm:$0xff]  ;;  %v8163_v11 = vld [vmem:[#allocation3 + $0x118] sm:$0xff]  ;;  %v8140_v61 = vld [vmem:[#allocation3 + $0x60] sm:$0xff] }
 0xe23   :  { %v8144_v34 = vld [vmem:[#allocation3 + $0x80] sm:$0xff]  ;;  %v8139_v47 = vld [vmem:[#allocation3 + $0x58] sm:$0xff]  ;;  %v8166_v14 = vld [vmem:[#allocation3 + $0x130] sm:$0xff] }
 0xe24   :  { %8340 = vmatpush1.bf16.msra.mxu0 %v8131_v51  ;;  %v8143_v4 = vld [vmem:[#allocation3 + $0x78] sm:$0xff]  ;;  %v8142_v58 = vld [vmem:[#allocation3 + $0x70] sm:$0xff]  ;;  %v8169_v23 = vld [vmem:[#allocation3 + $0x148] sm:$0xff] }
 0xe25   :  { %8341 = vmatprep.subr.bf16.mxu0 %v8135_v62  ;;  %10195 = vmatpush3.bf16.msra.mxu1 %v8133_v10  ;;  %v8147_v24 = vld [vmem:[#allocation3 + $0x98] sm:$0xff]  ;;  %v8146_v54 = vld [vmem:[#allocation3 + $0x90] sm:$0xff]  ;;  %v8145_v53 = vld [vmem:[#allocation3 + $0x88] sm:$0xff] }
 0xe26   :  { %10196 = vmatprep.subr.bf16.mxu1 %v8160_v22  ;;  %v8150_v60 = vld [vmem:[#allocation3 + $0xb0] sm:$0xff]  ;;  %v8172_v16 = vld [vmem:[#allocation3 + $0x160] sm:$0xff]  ;;  %v8149_v18 = vld [vmem:[#allocation3 + $0xa8] sm:$0xff] }
 0xe27   :  { %v8153_v21 = vld [vmem:[#allocation3 + $0xc8] sm:$0xff]  ;;  %v8148_v31 = vld [vmem:[#allocation3 + $0xa0] sm:$0xff]  ;;  %v8175_v39 = vld [vmem:[#allocation3 + $0x178] sm:$0xff] }
 0xe28   :  { %8342 = vmatpush1.bf16.msra.mxu0 %v8134_v1  ;;  %v8152_v12 = vld [vmem:[#allocation3 + $0xc0] sm:$0xff]  ;;  %v8151_v7 = vld [vmem:[#allocation3 + $0xb8] sm:$0xff]  ;;  %v8202_v63 = vld [vmem:[#allocation3 + $0x250] sm:$0xff] }
 0xe29   :  { %8343 = vmatprep.subr.bf16.mxu0 %v8138_v36  ;;  %10197 = vmatpush3.bf16.msra.mxu1 %v8136_v38  ;;  %v8156_v5 = vld [vmem:[#allocation3 + $0xe0] sm:$0xff]  ;;  %v8155_v25 = vld [vmem:[#allocation3 + $0xd8] sm:$0xff]  ;;  %v8178_v50 = vld [vmem:[#allocation3 + $0x190] sm:$0xff] }
 0xe2a   :  { %10198 = vmatprep.subr.bf16.mxu1 %v8163_v11  ;;  %v8159_v33 = vld [vmem:[#allocation3 + $0xf8] sm:$0xff]  ;;  %v8205_v17 = vld [vmem:[#allocation3 + $0x268] sm:$0xff]  ;;  %v8158_v0 = vld [vmem:[#allocation3 + $0xf0] sm:$0xff] }
 0xe2b   :  { %v8162_v19 = vld [vmem:[#allocation3 + $0x110] sm:$0xff]  ;;  %v8181_v40 = vld [vmem:[#allocation3 + $0x1a8] sm:$0xff]  ;;  %v8208_v48 = vld [vmem:[#allocation3 + $0x280] sm:$0xff] }
 0xe2c   :  { %8344 = vmatpush1.bf16.msra.mxu0 %v8137_v37  ;;  %v8161_v59 = vld [vmem:[#allocation3 + $0x108] sm:$0xff]  ;;  %v8184_v45 = vld [vmem:[#allocation3 + $0x1c0] sm:$0xff]  ;;  %v8211_v51 = vld [vmem:[#allocation3 + $0x298] sm:$0xff] }
 0xe2d   :  { %8345 = vmatprep.subr.bf16.mxu0 %v8141_v46  ;;  %10199 = vmatpush3.bf16.msra.mxu1 %v8139_v47  ;;  %v8165_v43 = vld [vmem:[#allocation3 + $0x128] sm:$0xff]  ;;  %v8164_v62 = vld [vmem:[#allocation3 + $0x120] sm:$0xff]  ;;  %v8187_v1 = vld [vmem:[#allocation3 + $0x1d8] sm:$0xff] }
 0xe2e   :  { %10200 = vmatprep.subr.bf16.mxu1 %v8166_v14  ;;  %v8168_v52 = vld [vmem:[#allocation3 + $0x140] sm:$0xff]  ;;  %v8214_v9 = vld [vmem:[#allocation3 + $0x2b0] sm:$0xff]  ;;  %v8167_v15 = vld [vmem:[#allocation3 + $0x138] sm:$0xff] }
 0xe2f   :  { %v8171_v36 = vld [vmem:[#allocation3 + $0x158] sm:$0xff]  ;;  %v8190_v10 = vld [vmem:[#allocation3 + $0x1f0] sm:$0xff]  ;;  %v8217_v22 = vld [vmem:[#allocation3 + $0x2c8] sm:$0xff] }
 0xe30   :  { %8346 = vmatpush1.bf16.msra.mxu0 %v8140_v61  ;;  %v8170_v37 = vld [vmem:[#allocation3 + $0x150] sm:$0xff]  ;;  %v8193_v38 = vld [vmem:[#allocation3 + $0x208] sm:$0xff]  ;;  %v8220_v11 = vld [vmem:[#allocation3 + $0x2e0] sm:$0xff] }
 0xe31   :  { %8347 = vmatprep.subr.bf16.mxu0 %v8144_v34  ;;  %10201 = vmatpush3.bf16.msra.mxu1 %v8142_v58  ;;  %v8174_v46 = vld [vmem:[#allocation3 + $0x170] sm:$0xff]  ;;  %v8173_v61 = vld [vmem:[#allocation3 + $0x168] sm:$0xff]  ;;  %v8196_v47 = vld [vmem:[#allocation3 + $0x220] sm:$0xff] }
 0xe32   :  { %10202 = vmatprep.subr.bf16.mxu1 %v8169_v23  ;;  %v8177_v34 = vld [vmem:[#allocation3 + $0x188] sm:$0xff]  ;;  %v8223_v14 = vld [vmem:[#allocation3 + $0x2f8] sm:$0xff]  ;;  %v8250_v23 = vld [vmem:[#allocation3 + $0x3d0] sm:$0xff] }
 0xe33   :  { %v8199_v58 = vld [vmem:[#allocation3 + $0x238] sm:$0xff]  ;;  %v8229_v13 = vld [vmem:[#allocation3 + $0x328] sm:$0xff] }
 0xe34   :  { %8348 = vmatpush1.bf16.msra.mxu0 %v8143_v4  ;;  %v8176_v4 = vld [vmem:[#allocation3 + $0x180] sm:$0xff]  ;;  %v8185_v26 = vld [vmem:[#allocation3 + $0x1c8] sm:$0xff]  ;;  %v8239_v27 = vld [vmem:[#allocation3 + $0x378] sm:$0xff] }
 0xe35   :  { %8349 = vmatprep.subr.bf16.mxu0 %v8147_v24  ;;  %10203 = vmatpush3.bf16.msra.mxu1 %v8145_v53  ;;  %v8180_v24 = vld [vmem:[#allocation3 + $0x1a0] sm:$0xff]  ;;  %v8183_v53 = vld [vmem:[#allocation3 + $0x1b8] sm:$0xff]  ;;  %v8277_v29 = vld [vmem:[#allocation3 + $0x4a8] sm:$0xff] }
 0xe36   :  { %10204 = vmatprep.subr.bf16.mxu1 %v8172_v16  ;;  %v12972_v16 = vpack.c.bf16 %v8113_v20, %v8113_v20  ;;  %v8189_v20 = vld [vmem:[#allocation3 + $0x1e8] sm:$0xff] }
 0xe37   :  { %v8209_v42 = vld [vmem:[#allocation3 + $0x288] sm:$0xff] }
 0xe38   :  { %8350 = vmatpush1.bf16.msra.mxu0 %v8146_v54  ;;  %v8179_v54 = vld [vmem:[#allocation3 + $0x198] sm:$0xff] }
 0xe39   :  { %8351 = vmatprep.subr.bf16.mxu0 %v8150_v60  ;;  %10205 = vmatpush3.bf16.msra.mxu1 %v8148_v31  ;;  %v12967_v60 = vpack.c.bf16 %v8110_v44, %v8110_v44  ;;  %v8182_v31 = vld [vmem:[#allocation3 + $0x1b0] sm:$0xff]  ;;  %v8256_v44 = vld [vmem:[#allocation3 + $0x400] sm:$0xff] }
 0xe3a   :  { %10206 = vmatprep.subr.bf16.mxu1 %v8175_v39  ;;  %v8186_v39 = vld [vmem:[#allocation3 + $0x1d0] sm:$0xff] }
 0xe3c   :  { %8352 = vmatpush1.bf16.msra.mxu0 %v8149_v18  ;;  %v8226_v18 = vld [vmem:[#allocation3 + $0x310] sm:$0xff] }
 0xe3d   :  { %8353 = vmatprep.subr.bf16.mxu0 %v8153_v21  ;;  %10207 = vmatpush3.bf16.msra.mxu1 %v8151_v7  ;;  %v8253_v21 = vld [vmem:[#allocation3 + $0x3e8] sm:$0xff]  ;;  %v8188_v7 = vld [vmem:[#allocation3 + $0x1e0] sm:$0xff] }
 0xe3e   :  { %10214 = vmatprep.subr.bf16.mxu1 %v8202_v63  ;;  %v8192_v63 = vld [vmem:[#allocation3 + $0x200] sm:$0xff] }
 0xe40   :  { %8354 = vmatpush1.bf16.msra.mxu0 %v8152_v12  ;;  %8534 = vmatmul.mubr.bf16.vlgmr.msra.gmra.mrb[68].mxu1 %v8120_v41  ;;  %v8232_v12 = vld [vmem:[#allocation3 + $0x340] sm:$0xff] }
 0xe41   :  { %8355 = vmatprep.subr.bf16.mxu0 %v8156_v5  ;;  %10215 = vmatpush3.bf16.msra.mxu1 %v8178_v50  ;;  %v8259_v5 = vld [vmem:[#allocation3 + $0x418] sm:$0xff]  ;;  %v8238_v50 = vld [vmem:[#allocation3 + $0x370] sm:$0xff] }
 0xe42   :  { %8573 = vmatprep.mubr.bf16.mxu1 %v12957_v55  ;;  %10216 = vmatprep.subr.bf16.mxu1 %v8205_v17  ;;  %v8265_v17 = vld [vmem:[#allocation3 + $0x448] sm:$0xff] }
 0xe44   :  { %8356 = vmatpush1.bf16.msra.mxu0 %v8155_v25  ;;  %v8235_v25 = vld [vmem:[#allocation3 + $0x358] sm:$0xff] }
 0xe45   :  { %8357 = vmatprep.subr.bf16.mxu0 %v8159_v33  ;;  %10217 = vmatpush3.bf16.msra.mxu1 %v8181_v40  ;;  %v8262_v33 = vld [vmem:[#allocation3 + $0x430] sm:$0xff]  ;;  %v8241_v40 = vld [vmem:[#allocation3 + $0x388] sm:$0xff] }
 0xe46   :  { %10218 = vmatprep.subr.bf16.mxu1 %v8208_v48  ;;  %v8268_v48 = vld [vmem:[#allocation3 + $0x460] sm:$0xff] }
 0xe48   :  { %8358 = vmatpush1.bf16.msra.mxu0 %v8158_v0  ;;  %v8194_v0 = vld [vmem:[#allocation3 + $0x210] sm:$0xff] }
 0xe49   :  { %8359 = vmatprep.subr.bf16.mxu0 %v8162_v19  ;;  %10219 = vmatpush3.bf16.msra.mxu1 %v8184_v45  ;;  %v8198_v19 = vld [vmem:[#allocation3 + $0x230] sm:$0xff]  ;;  %v8244_v45 = vld [vmem:[#allocation3 + $0x3a0] sm:$0xff] }
 0xe4a   :  { %10220 = vmatprep.subr.bf16.mxu1 %v8211_v51  ;;  %v8271_v51 = vld [vmem:[#allocation3 + $0x478] sm:$0xff] }
 0xe4c   :  { %8360 = vmatpush1.bf16.msra.mxu0 %v8161_v59  ;;  %v8197_v59 = vld [vmem:[#allocation3 + $0x228] sm:$0xff] }
 0xe4d   :  { %8361 = vmatprep.subr.bf16.mxu0 %v8165_v43  ;;  %10221 = vmatpush3.bf16.msra.mxu1 %v8187_v1  ;;  %v8201_v43 = vld [vmem:[#allocation3 + $0x248] sm:$0xff]  ;;  %v8247_v1 = vld [vmem:[#allocation3 + $0x3b8] sm:$0xff] }
 0xe4e   :  { %10222 = vmatprep.subr.bf16.mxu1 %v8214_v9  ;;  %v8298_v9 = vld [vmem:[#allocation3 + $0x550] sm:$0xff] }
 0xe50   :  { %8362 = vmatpush1.bf16.msra.mxu0 %v8164_v62  ;;  %v8200_v62 = vld [vmem:[#allocation3 + $0x240] sm:$0xff] }
 0xe51   :  { %8363 = vmatprep.subr.bf16.mxu0 %v8168_v52  ;;  %10223 = vmatpush3.bf16.msra.mxu1 %v8190_v10  ;;  %v8204_v52 = vld [vmem:[#allocation3 + $0x260] sm:$0xff]  ;;  %v8207_v10 = vld [vmem:[#allocation3 + $0x278] sm:$0xff] }
 0xe52   :  { %10224 = vmatprep.subr.bf16.mxu1 %v8217_v22  ;;  %v12984_v22 = vpack.c.bf16 %v8115_v30, %v8115_v30  ;;  %v8213_v30 = vld [vmem:[#allocation3 + $0x2a8] sm:$0xff] }
 0xe54   :  { %8364 = vmatpush1.bf16.msra.mxu0 %v8167_v15  ;;  %v8203_v15 = vld [vmem:[#allocation3 + $0x258] sm:$0xff] }
 0xe55   :  { %8365 = vmatprep.subr.bf16.mxu0 %v8171_v36  ;;  %10225 = vmatpush3.bf16.msra.mxu1 %v8193_v38  ;;  %v12979_v36 = vpack.c.bf16 %v8112_v28, %v8112_v28  ;;  %v8206_v38 = vld [vmem:[#allocation3 + $0x270] sm:$0xff]  ;;  %v8304_v28 = vld [vmem:[#allocation3 + $0x580] sm:$0xff] }
 0xe56   :  { %10226 = vmatprep.subr.bf16.mxu1 %v8220_v11  ;;  %v8210_v11 = vld [vmem:[#allocation3 + $0x290] sm:$0xff] }
 0xe58   :  { %8366 = vmatpush1.bf16.msra.mxu0 %v8170_v37  ;;  %v8274_v37 = vld [vmem:[#allocation3 + $0x490] sm:$0xff] }
 0xe59   :  { %8367 = vmatprep.subr.bf16.mxu0 %v8174_v46  ;;  %10227 = vmatpush3.bf16.msra.mxu1 %v8196_v47  ;;  %v8301_v46 = vld [vmem:[#allocation3 + $0x568] sm:$0xff]  ;;  %v8212_v47 = vld [vmem:[#allocation3 + $0x2a0] sm:$0xff] }
 0xe5a   :  { %10228 = vmatprep.subr.bf16.mxu1 %v8223_v14  ;;  %v8216_v14 = vld [vmem:[#allocation3 + $0x2c0] sm:$0xff] }
 0xe5c   :  { %8368 = vmatpush1.bf16.msra.mxu0 %v8173_v61  ;;  %v8280_v61 = vld [vmem:[#allocation3 + $0x4c0] sm:$0xff] }
 0xe5d   :  { %8378 = vmatprep.subr.bf16.mxu0 %v8177_v34  ;;  %10229 = vmatpush3.bf16.msra.mxu1 %v8199_v58  ;;  %v8307_v34 = vld [vmem:[#allocation3 + $0x598] sm:$0xff] }
 0xe5e   :  { %10236 = vmatprep.subr.bf16.mxu1 %v8250_v23  ;;  %v8215_v58 = vld [vmem:[#allocation3 + $0x2b8] sm:$0xff] }
 0xe5f   :  { %8370 = vmatmul.mubr.bf16.vlgmr.msra.gmra.mrb[64].mxu0 %v8120_v41  ;;  %v8195_v41 = vld [vmem:[#allocation3 + $0x218] sm:$0xff] }
 0xe60   :  { %8379 = vmatpush1.bf16.msra.mxu0 %v8176_v4  ;;  %8410 = vmatprep.mubr.bf16.mxu0 %v12957_v55  ;;  %v8191_v55 = vld [vmem:[#allocation3 + $0x1f8] sm:$0xff] }
 0xe61   :  { %8380 = vmatprep.subr.bf16.mxu0 %v8180_v24  ;;  %8574 = vmatmul.mubr.bf16.vlgmr.msra.gmra.mrb[72].mxu1 %v12967_v60  ;;  %v8283_v4 = vld [vmem:[#allocation3 + $0x4d8] sm:$0xff]  ;;  %v8310_v24 = vld [vmem:[#allocation3 + $0x5b0] sm:$0xff] }
 0xe62   :  { %10237 = vmatpush3.bf16.msra.mxu1 %v8226_v18  ;;  %8613 = vmatprep.mubr.bf16.mxu1 %v12972_v16  ;;  %v8219_v23 = vld [vmem:[#allocation3 + $0x2d8] sm:$0xff]  ;;  %v8218_v18 = vld [vmem:[#allocation3 + $0x2d0] sm:$0xff] }
 0xe63   :  { %10238 = vmatprep.subr.bf16.mxu1 %v8253_v21  ;;  %v8222_v21 = vld [vmem:[#allocation3 + $0x2f0] sm:$0xff] }
 0xe64   :  { %8381 = vmatpush1.bf16.msra.mxu0 %v8179_v54  ;;  %v8286_v54 = vld [vmem:[#allocation3 + $0x4f0] sm:$0xff] }
 0xe65   :  { %8382 = vmatprep.subr.bf16.mxu0 %v8183_v53  ;;  %v8313_v53 = vld [vmem:[#allocation3 + $0x5c8] sm:$0xff] }
 0xe66   :  { %10239 = vmatpush3.bf16.msra.mxu1 %v8229_v13  ;;  %v8221_v13 = vld [vmem:[#allocation3 + $0x2e8] sm:$0xff] }
 0xe67   :  { %10240 = vmatprep.subr.bf16.mxu1 %v8256_v44  ;;  %v8225_v44 = vld [vmem:[#allocation3 + $0x308] sm:$0xff] }
 0xe68   :  { %8383 = vmatpush1.bf16.msra.mxu0 %v8182_v31  ;;  %v8289_v31 = vld [vmem:[#allocation3 + $0x508] sm:$0xff] }
 0xe69   :  { %8384 = vmatprep.subr.bf16.mxu0 %v8186_v39  ;;  %v8316_v39 = vld [vmem:[#allocation3 + $0x5e0] sm:$0xff] }
 0xe6a   :  { %10241 = vmatpush3.bf16.msra.mxu1 %v8232_v12  ;;  %v8224_v12 = vld [vmem:[#allocation3 + $0x300] sm:$0xff] }
 0xe6b   :  { %10242 = vmatprep.subr.bf16.mxu1 %v8259_v5  ;;  %v8228_v5 = vld [vmem:[#allocation3 + $0x320] sm:$0xff] }
 0xe6c   :  { %8385 = vmatpush1.bf16.msra.mxu0 %v8185_v26  ;;  %v8292_v26 = vld [vmem:[#allocation3 + $0x520] sm:$0xff] }
 0xe6d   :  { %8386 = vmatprep.subr.bf16.mxu0 %v8189_v20  ;;  %v8319_v20 = vld [vmem:[#allocation3 + $0x5f8] sm:$0xff] }
 0xe6e   :  { %10243 = vmatpush3.bf16.msra.mxu1 %v8235_v25  ;;  %v12993_v25 = vpack.c.bf16 %v8114_v57, %v8114_v57  ;;  %v8243_v57 = vld [vmem:[#allocation3 + $0x398] sm:$0xff] }
 0xe6f   :  { %10244 = vmatprep.subr.bf16.mxu1 %v8262_v33  ;;  %v8231_v33 = vld [vmem:[#allocation3 + $0x338] sm:$0xff] }
 0xe70   :  { %8387 = vmatpush1.bf16.msra.mxu0 %v8188_v7  ;;  %v8295_v7 = vld [vmem:[#allocation3 + $0x538] sm:$0xff] }
 0xe71   :  { %8388 = vmatprep.subr.bf16.mxu0 %v8192_v63  ;;  %v8227_v63 = vld [vmem:[#allocation3 + $0x318] sm:$0xff] }
 0xe72   :  { %10245 = vmatpush3.bf16.msra.mxu1 %v8238_v50  ;;  %v8237_v50 = vld [vmem:[#allocation3 + $0x368] sm:$0xff] }
 0xe73   :  { %10246 = vmatprep.subr.bf16.mxu1 %v8265_v17  ;;  %v8240_v17 = vld [vmem:[#allocation3 + $0x380] sm:$0xff] }
 0xe74   :  { %8389 = vmatpush1.bf16.msra.mxu0 %v8191_v55  ;;  %v8230_v55 = vld [vmem:[#allocation3 + $0x330] sm:$0xff] }
 0xe75   :  { %8390 = vmatprep.subr.bf16.mxu0 %v8195_v41  ;;  %v8233_v41 = vld [vmem:[#allocation3 + $0x348] sm:$0xff] }
 0xe76   :  { %10247 = vmatpush3.bf16.msra.mxu1 %v8241_v40  ;;  %v8245_v40 = vld [vmem:[#allocation3 + $0x3a8] sm:$0xff] }
 0xe77   :  { %10248 = vmatprep.subr.bf16.mxu1 %v8268_v48  ;;  %v8249_v48 = vld [vmem:[#allocation3 + $0x3c8] sm:$0xff] }
 0xe78   :  { %8391 = vmatpush1.bf16.msra.mxu0 %v8194_v0  ;;  %v8242_v0 = vld [vmem:[#allocation3 + $0x390] sm:$0xff] }
 0xe79   :  { %8392 = vmatprep.subr.bf16.mxu0 %v8198_v19  ;;  %v8246_v19 = vld [vmem:[#allocation3 + $0x3b0] sm:$0xff] }
 0xe7a   :  { %10249 = vmatpush3.bf16.msra.mxu1 %v8244_v45  ;;  %v8251_v45 = vld [vmem:[#allocation3 + $0x3d8] sm:$0xff] }
 0xe7b   :  { %10250 = vmatprep.subr.bf16.mxu1 %v8271_v51  ;;  %v8255_v51 = vld [vmem:[#allocation3 + $0x3f8] sm:$0xff] }
 0xe7c   :  { %8393 = vmatpush1.bf16.msra.mxu0 %v8197_v59  ;;  %v8248_v59 = vld [vmem:[#allocation3 + $0x3c0] sm:$0xff] }
 0xe7d   :  { %8394 = vmatprep.subr.bf16.mxu0 %v8201_v43  ;;  %v8252_v43 = vld [vmem:[#allocation3 + $0x3e0] sm:$0xff] }
 0xe7e   :  { %10251 = vmatpush3.bf16.msra.mxu1 %v8247_v1  ;;  %v8257_v1 = vld [vmem:[#allocation3 + $0x408] sm:$0xff] }
 0xe7f   :  { %10258 = vmatprep.subr.bf16.mxu1 %v8298_v9  ;;  %v8261_v9 = vld [vmem:[#allocation3 + $0x428] sm:$0xff] }
 0xe80   :  { %8395 = vmatpush1.bf16.msra.mxu0 %v8200_v62  ;;  %v8254_v62 = vld [vmem:[#allocation3 + $0x3f0] sm:$0xff] }
 0xe81   :  { %8396 = vmatprep.subr.bf16.mxu0 %v8204_v52  ;;  %8614 = vmatmul.mubr.bf16.vlgmr.msra.gmra.mrb[76].mxu1 %v12979_v36  ;;  %v8258_v52 = vld [vmem:[#allocation3 + $0x410] sm:$0xff] }
 0xe82   :  { %10259 = vmatpush3.bf16.msra.mxu1 %v8274_v37  ;;  %8653 = vmatprep.mubr.bf16.mxu1 %v12984_v22  ;;  %v8263_v37 = vld [vmem:[#allocation3 + $0x438] sm:$0xff] }
 0xe83   :  { %10260 = vmatprep.subr.bf16.mxu1 %v8301_v46  ;;  %v8267_v46 = vld [vmem:[#allocation3 + $0x458] sm:$0xff] }
 0xe84   :  { %8397 = vmatpush1.bf16.msra.mxu0 %v8203_v15  ;;  %v8260_v15 = vld [vmem:[#allocation3 + $0x420] sm:$0xff] }
 0xe85   :  { %8398 = vmatprep.subr.bf16.mxu0 %v8207_v10  ;;  %v8264_v10 = vld [vmem:[#allocation3 + $0x440] sm:$0xff] }
 0xe86   :  { %10261 = vmatpush3.bf16.msra.mxu1 %v8277_v29  ;;  %v8269_v29 = vld [vmem:[#allocation3 + $0x468] sm:$0xff] }
 0xe87   :  { %10262 = vmatprep.subr.bf16.mxu1 %v8304_v28  ;;  %v8273_v28 = vld [vmem:[#allocation3 + $0x488] sm:$0xff] }
 0xe88   :  { %8399 = vmatpush1.bf16.msra.mxu0 %v8206_v38  ;;  %v8266_v38 = vld [vmem:[#allocation3 + $0x450] sm:$0xff] }
 0xe89   :  { %8400 = vmatprep.subr.bf16.mxu0 %v8210_v11  ;;  %v8270_v11 = vld [vmem:[#allocation3 + $0x470] sm:$0xff] }
 0xe8a   :  { %10263 = vmatpush3.bf16.msra.mxu1 %v8280_v61  ;;  %v8275_v61 = vld [vmem:[#allocation3 + $0x498] sm:$0xff] }
 0xe8b   :  { %10264 = vmatprep.subr.bf16.mxu1 %v8307_v34  ;;  %v8279_v34 = vld [vmem:[#allocation3 + $0x4b8] sm:$0xff] }
 0xe8c   :  { %8401 = vmatpush1.bf16.msra.mxu0 %v8209_v42  ;;  %v8272_v42 = vld [vmem:[#allocation3 + $0x480] sm:$0xff] }
 0xe8d   :  { %8402 = vmatprep.subr.bf16.mxu0 %v8213_v30  ;;  %v8276_v30 = vld [vmem:[#allocation3 + $0x4a0] sm:$0xff] }
 0xe8e   :  { %10265 = vmatpush3.bf16.msra.mxu1 %v8283_v4  ;;  %v8281_v4 = vld [vmem:[#allocation3 + $0x4c8] sm:$0xff] }
 0xe8f   :  { %10266 = vmatprep.subr.bf16.mxu1 %v8310_v24  ;;  %v8285_v24 = vld [vmem:[#allocation3 + $0x4e8] sm:$0xff] }
 0xe90   :  { %8403 = vmatpush1.bf16.msra.mxu0 %v8212_v47  ;;  %v8278_v47 = vld [vmem:[#allocation3 + $0x4b0] sm:$0xff] }
 0xe91   :  { %8404 = vmatprep.subr.bf16.mxu0 %v8216_v14  ;;  %v8282_v14 = vld [vmem:[#allocation3 + $0x4d0] sm:$0xff] }
 0xe92   :  { %10267 = vmatpush3.bf16.msra.mxu1 %v8286_v54  ;;  %v8291_v54 = vld [vmem:[#allocation3 + $0x518] sm:$0xff] }
 0xe93   :  { %10268 = vmatprep.subr.bf16.mxu1 %v8313_v53  ;;  %v8294_v53 = vld [vmem:[#allocation3 + $0x530] sm:$0xff] }
 0xe94   :  { %8405 = vmatpush1.bf16.msra.mxu0 %v8215_v58  ;;  %v8284_v58 = vld [vmem:[#allocation3 + $0x4e0] sm:$0xff] }
 0xe95   :  { %8406 = vmatprep.subr.bf16.mxu0 %v8219_v23  ;;  %v8288_v23 = vld [vmem:[#allocation3 + $0x500] sm:$0xff] }
 0xe96   :  { %10269 = vmatpush3.bf16.msra.mxu1 %v8289_v31  ;;  %v8296_v31 = vld [vmem:[#allocation3 + $0x540] sm:$0xff] }
 0xe97   :  { %10270 = vmatprep.subr.bf16.mxu1 %v8316_v39  ;;  %v8300_v39 = vld [vmem:[#allocation3 + $0x560] sm:$0xff] }
 0xe98   :  { %8407 = vmatpush1.bf16.msra.mxu0 %v8218_v18  ;;  %v8293_v18 = vld [vmem:[#allocation3 + $0x528] sm:$0xff] }
 0xe99   :  { %8408 = vmatprep.subr.bf16.mxu0 %v8222_v21  ;;  %v8297_v21 = vld [vmem:[#allocation3 + $0x548] sm:$0xff] }
 0xe9a   :  { %10271 = vmatpush3.bf16.msra.mxu1 %v8292_v26  ;;  %v8302_v26 = vld [vmem:[#allocation3 + $0x570] sm:$0xff] }
 0xe9b   :  { %10272 = vmatprep.subr.bf16.mxu1 %v8319_v20  ;;  %v8306_v20 = vld [vmem:[#allocation3 + $0x590] sm:$0xff] }
 0xe9c   :  { %8409 = vmatpush1.bf16.msra.mxu0 %v8221_v13  ;;  %v8299_v13 = vld [vmem:[#allocation3 + $0x558] sm:$0xff] }
 0xe9d   :  { %8419 = vmatprep.subr.bf16.mxu0 %v8225_v44  ;;  %v8303_v44 = vld [vmem:[#allocation3 + $0x578] sm:$0xff] }
 0xe9e   :  { %10273 = vmatpush3.bf16.msra.mxu1 %v8295_v7  ;;  %v8308_v7 = vld [vmem:[#allocation3 + $0x5a0] sm:$0xff] }
 0xe9f   :  { %8411 = vmatmul.mubr.bf16.vlgmr.msra.gmra.mrb[64].mxu0 %v12967_v60  ;;  %v8234_v60 = vld [vmem:[#allocation3 + $0x350] sm:$0xff] }
 0xea0   :  { %8420 = vmatpush1.bf16.msra.mxu0 %v8224_v12  ;;  %8451 = vmatprep.mubr.bf16.mxu0 %v12972_v16  ;;  %v8236_v16 = vld [vmem:[#allocation3 + $0x360] sm:$0xff]  ;;  %v8305_v12 = vld [vmem:[#allocation3 + $0x588] sm:$0xff] }
 0xea1   :  { %8421 = vmatprep.subr.bf16.mxu0 %v8228_v5  ;;  %8654 = vmatmul.mubr.bf16.vlgmr.msra.gmra.mrb[80].mxu1 %v12993_v25  ;;  %v8309_v5 = vld [vmem:[#allocation3 + $0x5a8] sm:$0xff] }
 0xea4   :  { %8422 = vmatpush1.bf16.msra.mxu0 %v8227_v63  ;;  %v8312_v63 = vld [vmem:[#allocation3 + $0x5c0] sm:$0xff] }
 0xea5   :  { %8423 = vmatprep.subr.bf16.mxu0 %v8231_v33  ;;  %v8311_v33 = vld [vmem:[#allocation3 + $0x5b8] sm:$0xff] }
 0xea8   :  { %8424 = vmatpush1.bf16.msra.mxu0 %v8230_v55  ;;  %v8315_v55 = vld [vmem:[#allocation3 + $0x5d8] sm:$0xff] }
 0xea9   :  { %8425 = vmatprep.subr.bf16.mxu0 %v8234_v60  ;;  %v8314_v60 = vld [vmem:[#allocation3 + $0x5d0] sm:$0xff] }
 0xeac   :  { %8426 = vmatpush1.bf16.msra.mxu0 %v8233_v41  ;;  %v8318_v41 = vld [vmem:[#allocation3 + $0x5f0] sm:$0xff] }
 0xead   :  { %8427 = vmatprep.subr.bf16.mxu0 %v8237_v50 }
 0xeb0   :  { %8428 = vmatpush1.bf16.msra.mxu0 %v8236_v16  ;;  %v8317_v16 = vld [vmem:[#allocation3 + $0x5e8] sm:$0xff] }
 0xeb1   :  { %8429 = vmatprep.subr.bf16.mxu0 %v8240_v17 }
 0xeb4   :  { %8430 = vmatpush1.bf16.msra.mxu0 %v8239_v27 }
 0xeb5   :  { %8431 = vmatprep.subr.bf16.mxu0 %v8243_v57 }
 0xeb8   :  { %8432 = vmatpush1.bf16.msra.mxu0 %v8242_v0 }
 0xeb9   :  { %8433 = vmatprep.subr.bf16.mxu0 %v8246_v19  ;;  %v8320_v19 = vld [vmem:[#allocation32] sm:$0x7] }
 0xebc   :  { %8434 = vmatpush1.bf16.msra.mxu0 %v8245_v40  ;;  %v8333_v40 = vrot.slane %v8320_v19, %v12466_v3 }
 0xebd   :  { %8435 = vmatprep.subr.bf16.mxu0 %v8249_v48 }
 0xec0   :  { %8436 = vmatpush1.bf16.msra.mxu0 %v8248_v59 }
 0xec1   :  { %8437 = vmatprep.subr.bf16.mxu0 %v8252_v43 }
 0xec4   :  { %8438 = vmatpush1.bf16.msra.mxu0 %v8251_v45 }
 0xec5   :  { %8439 = vmatprep.subr.bf16.mxu0 %v8255_v51 }
 0xec8   :  { %8440 = vmatpush1.bf16.msra.mxu0 %v8254_v62 }
 0xec9   :  { %8441 = vmatprep.subr.bf16.mxu0 %v8258_v52 }
 0xecc   :  { %8442 = vmatpush1.bf16.msra.mxu0 %v8257_v1 }
 0xecd   :  { %8443 = vmatprep.subr.bf16.mxu0 %v8261_v9 }
 0xed0   :  { %8444 = vmatpush1.bf16.msra.mxu0 %v8260_v15 }
 0xed1   :  { %8445 = vmatprep.subr.bf16.mxu0 %v8264_v10 }
 0xed4   :  { %8446 = vmatpush1.bf16.msra.mxu0 %v8263_v37 }
 0xed5   :  { %8447 = vmatprep.subr.bf16.mxu0 %v8267_v46 }
 0xed8   :  { %8448 = vmatpush1.bf16.msra.mxu0 %v8266_v38 }
 0xed9   :  { %8449 = vmatprep.subr.bf16.mxu0 %v8270_v11 }
 0xedc   :  { %8450 = vmatpush1.bf16.msra.mxu0 %v8269_v29 }
 0xedd   :  { %8460 = vmatprep.subr.bf16.mxu0 %v8273_v28 }
 0xedf   :  { %8452 = vmatmul.mubr.bf16.vlgmr.msra.gmra.mrb[64].mxu0 %v12979_v36  ;;  %v8287_v36 = vld [vmem:[#allocation3 + $0x4f8] sm:$0xff] }
 0xee0   :  { %8461 = vmatpush1.bf16.msra.mxu0 %v8272_v42  ;;  %8492 = vmatprep.mubr.bf16.mxu0 %v12984_v22  ;;  %v8290_v22 = vld [vmem:[#allocation3 + $0x510] sm:$0xff] }
 0xee1   :  { %8462 = vmatprep.subr.bf16.mxu0 %v8276_v30  ;;  %v8325_v30 = vrot.slane %v8320_v19, %v12444_v56 }
 0xee4   :  { %8463 = vmatpush1.bf16.msra.mxu0 %v8275_v61  ;;  %v8329_v61 = vrot.slane %v8320_v19, %v12449_v35 }
 0xee5   :  { %8464 = vmatprep.subr.bf16.mxu0 %v8279_v34 }
 0xee8   :  { %8465 = vmatpush1.bf16.msra.mxu0 %v8278_v47 }
 0xee9   :  { %8466 = vmatprep.subr.bf16.mxu0 %v8282_v14 }
 0xeec   :  { %8467 = vmatpush1.bf16.msra.mxu0 %v8281_v4 }
 0xeed   :  { %8468 = vmatprep.subr.bf16.mxu0 %v8285_v24 }
 0xef0   :  { %8469 = vmatpush1.bf16.msra.mxu0 %v8284_v58 }
 0xef1   :  { %8470 = vmatprep.subr.bf16.mxu0 %v8288_v23 }
 0xef4   :  { %8471 = vmatpush1.bf16.msra.mxu0 %v8287_v36 }
 0xef5   :  { %8472 = vmatprep.subr.bf16.mxu0 %v8291_v54 }
 0xef8   :  { %8473 = vmatpush1.bf16.msra.mxu0 %v8290_v22 }
 0xef9   :  { %8474 = vmatprep.subr.bf16.mxu0 %v8294_v53 }
 0xefc   :  { %8475 = vmatpush1.bf16.msra.mxu0 %v8293_v18 }
 0xefd   :  { %8476 = vmatprep.subr.bf16.mxu0 %v8297_v21 }
 0xf00   :  { %8477 = vmatpush1.bf16.msra.mxu0 %v8296_v31 }
 0xf01   :  { %8478 = vmatprep.subr.bf16.mxu0 %v8300_v39 }
 0xf04   :  { %8479 = vmatpush1.bf16.msra.mxu0 %v8299_v13 }
 0xf05   :  { %8480 = vmatprep.subr.bf16.mxu0 %v8303_v44 }
 0xf08   :  { %8481 = vmatpush1.bf16.msra.mxu0 %v8302_v26 }
 0xf09   :  { %8482 = vmatprep.subr.bf16.mxu0 %v8306_v20 }
 0xf0c   :  { %8483 = vmatpush1.bf16.msra.mxu0 %v8305_v12 }
 0xf0d   :  { %8484 = vmatprep.subr.bf16.mxu0 %v8309_v5 }
 0xf10   :  { %8485 = vmatpush1.bf16.msra.mxu0 %v8308_v7 }
 0xf11   :  { %8486 = vmatprep.subr.bf16.mxu0 %v8312_v63 }
 0xf13   :  { %v10208_v50 = vpop.f32.mrb[68].mxu1 }
 0xf14   :  { %8487 = vmatpush1.bf16.msra.mxu0 %v8311_v33  ;;  %v10209_v17 = vpop.f32.mrb[69].mxu1 }
 0xf15   :  { %8488 = vmatprep.subr.bf16.mxu0 %v8315_v55  ;;  %v10210_v27 = vadd.f32 %v10209_v17, %v10208_v50  ;;  %v10211_v57 = vpop.f32.mrb[70].mxu1  ;;  %v8661_v17 = vld [vmem:[#allocation34] sm:$0x7] }
 0xf16   :  { %v10212_v0 = vpop.f32.mrb[71].mxu1  ;;  %v8704_v57 = vrot.slane %v8661_v17, %v12449_v35 }
 0xf17   :  { %v8536_v48 = vadd.f32 %v10210_v27, %v8333_v40  ;;  %v8662_v27 = vld [vmem:[#allocation35] sm:$0x7]  ;;  %v8708_v0 = vrot.slane %v8661_v17, %v12466_v3 }
 0xf18   :  { %8489 = vmatpush1.bf16.msra.mxu0 %v8314_v60  ;;  %v8719_v40 = vrot.slane %v8662_v27, %v12444_v56 }
 0xf19   :  { %8490 = vmatprep.subr.bf16.mxu0 %v8318_v41 }
 0xf1c   :  { %8491 = vmatpush1.bf16.msra.mxu0 %v8317_v16 }
 0xf1f   :  { %8493 = vmatmul.mubr.bf16.vlgmr.msra.gmra.mrb[64].mxu0 %v12993_v25 }
 0xf34   :  { %v10230_v59 = vpop.f32.mrb[72].mxu1 }
 0xf35   :  { %v10231_v43 = vpop.f32.mrb[73].mxu1 }
 0xf36   :  { %v10232_v45 = vadd.f32 %v10231_v43, %v10230_v59  ;;  %v10233_v51 = vpop.f32.mrb[74].mxu1  ;;  %v8727_v59 = vrot.slane %v8662_v27, %v12466_v3 }
 0xf37   :  { %v10234_v62 = vpop.f32.mrb[75].mxu1 }
 0xf38   :  { %v8576_v52 = vadd.f32 %v10232_v45, %v8536_v48  ;;  %v8723_v48 = vrot.slane %v8662_v27, %v12449_v35 }
 0xf54   :  { %v10252_v1 = vpop.f32.mrb[76].mxu1 }
 0xf55   :  { %v10253_v9 = vpop.f32.mrb[77].mxu1 }
 0xf56   :  { %v10254_v15 = vadd.f32 %v10253_v9, %v10252_v1  ;;  %v10255_v10 = vpop.f32.mrb[78].mxu1 }
 0xf57   :  { %v10256_v37 = vpop.f32.mrb[79].mxu1 }
 0xf58   :  { %v8616_v46 = vadd.f32 %v10254_v15, %v8576_v52 }
 0xf74   :  { %v10274_v38 = vpop.f32.mrb[80].mxu1 }
 0xf75   :  { %v10275_v11 = vpop.f32.mrb[81].mxu1 }
 0xf76   :  { %v10276_v29 = vadd.f32 %v10275_v11, %v10274_v38  ;;  %v10277_v25 = vpop.f32.mrb[82].mxu1 }
 0xf77   :  { %v10278_v28 = vpop.f32.mrb[83].mxu1 }
 0xf78   :  { %v8656_v42 = vadd.f32 %v10276_v29, %v8616_v46 }
 0xf7a   :  { %v8665_v58 = vmul.f32 %v12549_v32, %v8656_v42 }
 0xf7c   :  { %v8669_v53 = vsel %vm3934_vm3, %v8665_v58, 0.0 }
 0xff2   :  { %v8494_v34 = vpop.f32.mrb[64].mxu0 }
 0xff3   :  { %v10529_v47 = vadd.f32 %v8494_v34, %v8325_v30  ;;  %v8496_v14 = vpop.f32.mrb[65].mxu0 }
 0xff4   :  { %v10530_v4 = vadd.f32 %v8496_v14, %v8329_v61  ;;  %v8498_v24 = vpop.f32.mrb[66].mxu0 }
 0xff5   :  { %v8666_v23 = vsel %vm3934_vm3, %v10529_v47, 0.0  ;;  %v8499_v36 = vpop.f32.mrb[67].mxu0 }
 0xff6   :  { %v8667_v54 = vsel %vm3934_vm3, %v10530_v4, 0.0 }
 0xff7   :  { %v8668_v22 = vadd.f32 %v8667_v54, %v8666_v23 }
 0xff9   :  { %v8670_v18 = vadd.f32 %v8669_v53, %v8668_v22 }
 0xffb   :  { %8671 = vadd.xlane.f32.xlu0 %v8670_v18 }
0x1088   :  { %v8672_v21 = vpop.xlane.xlu0 %8671 }
0x1089   :  { %v8673_v31 = vmul.f32 0.0033333334, %v8672_v21 }
0x108b   :  { %v8674_v39 = vsub.f32 %v10529_v47, %v8673_v31  ;;  %v8675_v13 = vsub.f32 %v10530_v4, %v8673_v31  ;;  %v8676_v44 = vsub.f32 %v8656_v42, %v8673_v31 }
0x108d   :  { %v8679_v26 = vmul.f32 %v12549_v32, %v8676_v44  ;;  %v8680_v20 = vmul.f32 %v8674_v39, %v8674_v39  ;;  %v8681_v12 = vmul.f32 %v8675_v13, %v8675_v13  ;;  %v8700_v32 = vrot.slane %v8661_v17, %v12444_v56 }
0x108f   :  { %v8682_v5 = vmul.f32 %v8679_v26, %v8679_v26  ;;  %v8683_v7 = vsel %vm3934_vm3, %v8680_v20, 0.0  ;;  %v8684_v63 = vsel %vm3934_vm3, %v8681_v12, 0.0 }
0x1090   :  { %v8685_v33 = vadd.f32 %v8684_v63, %v8683_v7 }
0x1091   :  { %v8686_v55 = vsel %vm3934_vm3, %v8682_v5, 0.0 }
0x1092   :  { %v8687_v60 = vadd.f32 %v8686_v55, %v8685_v33 }
0x1094   :  { %8688 = vadd.xlane.f32.xlu0 %v8687_v60 }
0x1121   :  { %v8689_v41 = vpop.xlane.xlu0 %8688 }
0x1122   :  { %v8690_v50 = vmul.f32 0.0033333334, %v8689_v41 }
0x1124   :  { %v8691_v16 = vadd.f32 1e-05, %v8690_v50 }
0x1126   :  { %11404 = vrsqrt.f32 %v8691_v16 }
0x1130   :  { %v11405_v19 = vpop.eup %11404 }
0x1131   :  { %v8693_v43 = vmul.f32 %v11405_v19, %v8674_v39  ;;  %v8694_v45 = vmul.f32 %v11405_v19, %v8675_v13  ;;  %v8695_v51 = vmul.f32 %v11405_v19, %v8679_v26 }
0x1133   :  { %v8712_v62 = vmul.f32 %v8700_v32, %v8693_v43  ;;  %v8713_v52 = vmul.f32 %v8704_v57, %v8694_v45  ;;  %v8714_v1 = vmul.f32 %v8708_v0, %v8695_v51 }
0x1135   :  { %v8731_v9 = vadd.f32 %v8719_v40, %v8712_v62  ;;  %v8732_v15 = vadd.f32 %v8723_v48, %v8713_v52  ;;  %v8733_v10 = vadd.f32 %v8727_v59, %v8714_v1 }
0x1137   :  { %v13016_v37 = vmax.f32 %v8731_v9, 0.0  ;;  %v8735_v46 = vmax.f32 %v8732_v15, 0.0  ;;  %v13018_v38 = vmax.f32 %v8733_v10, 0.0 }
0x1139   :  { %v8740_v11 = vcombine.low %v13016_v37, %v8735_v46  ;;  %v8754_v25 = vrot.slane %v13018_v38, %v12395_v49 }
0x113b   :  { %v8747_v29 = vrot.slane %v8740_v11, %v12395_v49 }
0x113d   :  { %v8755_v28 = vcombine.low %v8747_v29, %v8754_v25 }
0x113f   :  { %8757 = vst [vmem:[#allocation41] sm:$0x3f] %v8755_v28 }
0x1140   :  { %11982 = dma.done.wait [#allocation7 + $0x2], 9216 }
0x1141   :  { %11983 = vsyncadd [#allocation7 + $0x2], 4294958080 }
0x1142   :  { %11984 = dma.done.wait [#allocation7 + $0x3], 9216 }
0x1143   :  { %11985 = vsyncadd [#allocation7 + $0x3], 4294958080  ;;  %v13166_v42 = vmov 0.0   ;;  %v13025_v30 = vpack.c.bf16 %v8735_v46, %v8735_v46  ;;  %v8843_v61 = vld [vmem:[#allocation5 + $0x8] sm:$0xff]  ;;  %v8842_v34 = vld [vmem:[#allocation5] sm:$0xff]  ;;  %v13039_v41 = vpack.c.bf16 %v13018_v38, %v13018_v38  ;;  %v13167_v19 = vmov 0  }
0x1144   :  { %10453 = vmatprep.subr.bf16.mxu0 %v13166_v42  ;;  %10469 = vmatprep.mubr.msk.bf16.mxu0 %vm12072_vm1, %v13166_v42  ;;  %v8846_v47 = vld [vmem:[#allocation5 + $0x20] sm:$0xff]  ;;  %v8845_v49 = vld [vmem:[#allocation5 + $0x18] sm:$0xff]  ;;  %v8892_v4 = vld [vmem:[#allocation5 + $0x190] sm:$0xff] }
0x1145   :  { %8946 = vmatprep.mubr.bf16.mxu1 %v13025_v30  ;;  %8914 = vmatprep.subr.bf16.mxu1 %v8843_v61  ;;  %v8849_v14 = vld [vmem:[#allocation5 + $0x38] sm:$0xff]  ;;  %v8848_v24 = vld [vmem:[#allocation5 + $0x30] sm:$0xff]  ;;  %v8895_v23 = vld [vmem:[#allocation5 + $0x1a8] sm:$0xff] }
0x1146   :  { %8915 = vmatpush1.bf16.msra.mxu1 %v8842_v34  ;;  %10454 = vmatpush3.bf16.msra.mxu0 %v8892_v4  ;;  %v8852_v58 = vld [vmem:[#allocation5 + $0x50] sm:$0xff]  ;;  %v8851_v36 = vld [vmem:[#allocation5 + $0x48] sm:$0xff]  ;;  %v8898_v22 = vld [vmem:[#allocation5 + $0x1c0] sm:$0xff] }
0x1147   :  { %8916 = vmatprep.subr.bf16.mxu1 %v8846_v47  ;;  %10455 = vmatprep.subr.bf16.mxu0 %v13166_v42  ;;  %v8855_v54 = vld [vmem:[#allocation5 + $0x68] sm:$0xff]  ;;  %v8854_v53 = vld [vmem:[#allocation5 + $0x60] sm:$0xff]  ;;  %v8901_v21 = vld [vmem:[#allocation5 + $0x1d8] sm:$0xff]  ;;  %v13045_v47 = vpack.c.bf16 %v13016_v37, %v13016_v37 }
0x1148   :  { %v8858_v18 = vld [vmem:[#allocation5 + $0x80] sm:$0xff]  ;;  %v8857_v31 = vld [vmem:[#allocation5 + $0x78] sm:$0xff]  ;;  %v8904_v13 = vld [vmem:[#allocation5 + $0x1f0] sm:$0xff] }
0x1149   :  { %v8861_v39 = vld [vmem:[#allocation5 + $0x98] sm:$0xff]  ;;  %v8860_v44 = vld [vmem:[#allocation5 + $0x90] sm:$0xff]  ;;  %v8907_v20 = vld [vmem:[#allocation5 + $0x208] sm:$0xff] }
0x114a   :  { %8917 = vmatpush1.bf16.msra.mxu1 %v8845_v49  ;;  %10456 = vmatpush3.bf16.msra.mxu0 %v8895_v23  ;;  %v8864_v26 = vld [vmem:[#allocation5 + $0xb0] sm:$0xff]  ;;  %v8863_v12 = vld [vmem:[#allocation5 + $0xa8] sm:$0xff]  ;;  %v8910_v7 = vld [vmem:[#allocation5 + $0x220] sm:$0xff]  ;;  %v13051_v23 = vpack.c.bf16 %v12659_v2, %v12659_v2 }
0x114b   :  { %8918 = vmatprep.subr.bf16.mxu1 %v8849_v14  ;;  %10457 = vmatprep.subr.bf16.mxu0 %v13166_v42  ;;  %v8867_v5 = vld [vmem:[#allocation5 + $0xc8] sm:$0xff]  ;;  %v8866_v63 = vld [vmem:[#allocation5 + $0xc0] sm:$0xff]  ;;  %v8913_v55 = vld [vmem:[#allocation5 + $0x238] sm:$0xff] }
0x114c   :  { %v8870_v33 = vld [vmem:[#allocation5 + $0xe0] sm:$0xff]  ;;  %v8816_v60 = vld [vmem:[#allocation4 + $0x188] sm:$0xff]  ;;  %v8869_v50 = vld [vmem:[#allocation5 + $0xd8] sm:$0xff] }
0x114d   :  { %v8873_v16 = vld [vmem:[#allocation5 + $0xf8] sm:$0xff]  ;;  %v8815_v17 = vld [vmem:[#allocation4 + $0x180] sm:$0xff]  ;;  %v8872_v32 = vld [vmem:[#allocation5 + $0xf0] sm:$0xff] }
0x114e   :  { %8919 = vmatpush1.bf16.msra.mxu1 %v8848_v24  ;;  %10458 = vmatpush3.bf16.msra.mxu0 %v8898_v22  ;;  %v8819_v27 = vld [vmem:[#allocation4 + $0x1a0] sm:$0xff]  ;;  %v8876_v57 = vld [vmem:[#allocation5 + $0x110] sm:$0xff]  ;;  %v8818_v0 = vld [vmem:[#allocation4 + $0x198] sm:$0xff]  ;;  %v13055_v22 = vpack.c.bf16 %v12657_v8, %v12657_v8 }
0x114f   :  { %8920 = vmatprep.subr.bf16.mxu1 %v8852_v58  ;;  %10459 = vmatprep.subr.bf16.mxu0 %v13166_v42  ;;  %v8822_v40 = vld [vmem:[#allocation4 + $0x1b8] sm:$0xff]  ;;  %v8875_v48 = vld [vmem:[#allocation5 + $0x108] sm:$0xff]  ;;  %v8821_v43 = vld [vmem:[#allocation4 + $0x1b0] sm:$0xff] }
0x1150   :  { %v8879_v59 = vld [vmem:[#allocation5 + $0x128] sm:$0xff]  ;;  %v8825_v45 = vld [vmem:[#allocation4 + $0x1d0] sm:$0xff]  ;;  %v8878_v51 = vld [vmem:[#allocation5 + $0x120] sm:$0xff] }
0x1151   :  { %v8882_v62 = vld [vmem:[#allocation5 + $0x140] sm:$0xff]  ;;  %v8824_v52 = vld [vmem:[#allocation4 + $0x1c8] sm:$0xff]  ;;  %v8881_v9 = vld [vmem:[#allocation5 + $0x138] sm:$0xff] }
0x1152   :  { %8921 = vmatpush1.bf16.msra.mxu1 %v8851_v36  ;;  %10460 = vmatpush3.bf16.msra.mxu0 %v8901_v21  ;;  %v8828_v1 = vld [vmem:[#allocation4 + $0x1e8] sm:$0xff]  ;;  %v8885_v15 = vld [vmem:[#allocation5 + $0x158] sm:$0xff]  ;;  %v8827_v10 = vld [vmem:[#allocation4 + $0x1e0] sm:$0xff] }
0x1153   :  { %8922 = vmatprep.subr.bf16.mxu1 %v8855_v54  ;;  %10461 = vmatprep.subr.bf16.mxu0 %v13166_v42  ;;  %v8831_v46 = vld [vmem:[#allocation4 + $0x200] sm:$0xff]  ;;  %v8884_v38 = vld [vmem:[#allocation5 + $0x150] sm:$0xff]  ;;  %v8830_v29 = vld [vmem:[#allocation4 + $0x1f8] sm:$0xff] }
0x1154   :  { %v8888_v11 = vld [vmem:[#allocation5 + $0x170] sm:$0xff]  ;;  %v8834_v25 = vld [vmem:[#allocation4 + $0x218] sm:$0xff]  ;;  %v8887_v28 = vld [vmem:[#allocation5 + $0x168] sm:$0xff] }
0x1155   :  { %v8891_v61 = vld [vmem:[#allocation5 + $0x188] sm:$0xff]  ;;  %v8833_v34 = vld [vmem:[#allocation4 + $0x210] sm:$0xff]  ;;  %v8890_v14 = vld [vmem:[#allocation5 + $0x180] sm:$0xff] }
0x1156   :  { %8923 = vmatpush1.bf16.msra.mxu1 %v8854_v53  ;;  %10462 = vmatpush3.bf16.msra.mxu0 %v8904_v13  ;;  %v8837_v49 = vld [vmem:[#allocation4 + $0x230] sm:$0xff]  ;;  %v8894_v4 = vld [vmem:[#allocation5 + $0x1a0] sm:$0xff]  ;;  %v8836_v24 = vld [vmem:[#allocation4 + $0x228] sm:$0xff] }
0x1157   :  { %8924 = vmatprep.subr.bf16.mxu1 %v8858_v18  ;;  %10463 = vmatprep.subr.bf16.mxu0 %v13166_v42  ;;  %v8793_v58 = vld [vmem:[#allocation4 + $0xd0] sm:$0xff]  ;;  %v8893_v37 = vld [vmem:[#allocation5 + $0x198] sm:$0xff]  ;;  %v8796_v53 = vld [vmem:[#allocation4 + $0xe8] sm:$0xff] }
0x1158   :  { %v8897_v36 = vld [vmem:[#allocation5 + $0x1b8] sm:$0xff]  ;;  %v8769_v54 = vld [vmem:[#allocation4 + $0x10] sm:$0xff]  ;;  %v8772_v2 = vld [vmem:[#allocation4 + $0x28] sm:$0xff] }
0x1159   :  { %v8896_v18 = vld [vmem:[#allocation5 + $0x1b0] sm:$0xff]  ;;  %v8903_v13 = vld [vmem:[#allocation5 + $0x1e8] sm:$0xff]  ;;  %v8775_v8 = vld [vmem:[#allocation4 + $0x40] sm:$0xff] }
0x115a   :  { %8925 = vmatpush1.bf16.msra.mxu1 %v8857_v31  ;;  %10464 = vmatpush3.bf16.msra.mxu0 %v8907_v20  ;;  %v8900_v21 = vld [vmem:[#allocation5 + $0x1d0] sm:$0xff]  ;;  %v8799_v31 = vld [vmem:[#allocation4 + $0x100] sm:$0xff] }
0x115b   :  { %8926 = vmatprep.subr.bf16.mxu1 %v8861_v39  ;;  %10465 = vmatprep.subr.bf16.mxu0 %v13166_v42  ;;  %v8899_v39 = vld [vmem:[#allocation5 + $0x1c8] sm:$0xff]  ;;  %v8906_v20 = vld [vmem:[#allocation5 + $0x200] sm:$0xff] }
0x115e   :  { %8927 = vmatpush1.bf16.msra.mxu1 %v8860_v44  ;;  %10466 = vmatpush3.bf16.msra.mxu0 %v8910_v7  ;;  %v8802_v44 = vld [vmem:[#allocation4 + $0x118] sm:$0xff] }
0x115f   :  { %8928 = vmatprep.subr.bf16.mxu1 %v8864_v26  ;;  %10467 = vmatprep.subr.bf16.mxu0 %v13166_v42  ;;  %v8902_v26 = vld [vmem:[#allocation5 + $0x1e0] sm:$0xff]  ;;  %v8905_v7 = vld [vmem:[#allocation5 + $0x1f8] sm:$0xff] }
0x1162   :  { %8929 = vmatpush1.bf16.msra.mxu1 %v8863_v12  ;;  %10468 = vmatpush3.bf16.msra.mxu0 %v8913_v55  ;;  %v8778_v12 = vld [vmem:[#allocation4 + $0x58] sm:$0xff]  ;;  %v8808_v55 = vld [vmem:[#allocation4 + $0x148] sm:$0xff] }
0x1163   :  { %8930 = vmatprep.subr.bf16.mxu1 %v8867_v5  ;;  %9117 = vmatprep.subr.bf16.mxu0 %v8816_v60  ;;  %v8805_v5 = vld [vmem:[#allocation4 + $0x130] sm:$0xff] }
0x1164   :  { %v8908_v60 = vld [vmem:[#allocation5 + $0x210] sm:$0xff] }
0x1165   :  { %10470 = vmatmul.mubr.bf16.vlgmr.msra.gmra.mrb[68].mxu0 %v13039_v41 }
0x1166   :  { %8931 = vmatpush1.bf16.msra.mxu1 %v8866_v63  ;;  %9118 = vmatpush1.bf16.msra.mxu0 %v8815_v17  ;;  %v8909_v63 = vld [vmem:[#allocation5 + $0x218] sm:$0xff]  ;;  %v8811_v17 = vld [vmem:[#allocation4 + $0x160] sm:$0xff] }
0x1167   :  { %8932 = vmatprep.subr.bf16.mxu1 %v8870_v33  ;;  %9119 = vmatprep.subr.bf16.mxu0 %v8819_v27  ;;  %v8781_v33 = vld [vmem:[#allocation4 + $0x70] sm:$0xff]  ;;  %v8911_v27 = vld [vmem:[#allocation5 + $0x228] sm:$0xff] }
0x1168   :  { %9149 = vmatprep.mubr.bf16.mxu0 %v13167_v19 }
0x116a   :  { %8933 = vmatpush1.bf16.msra.mxu1 %v8869_v50  ;;  %9120 = vmatpush1.bf16.msra.mxu0 %v8818_v0  ;;  %v8912_v50 = vld [vmem:[#allocation5 + $0x230] sm:$0xff]  ;;  %v8814_v0 = vld [vmem:[#allocation4 + $0x178] sm:$0xff] }
0x116b   :  { %8934 = vmatprep.subr.bf16.mxu1 %v8873_v16  ;;  %9121 = vmatprep.subr.bf16.mxu0 %v8822_v40  ;;  %v8784_v16 = vld [vmem:[#allocation4 + $0x88] sm:$0xff] }
0x116c   :  { %v8871_v40 = vld [vmem:[#allocation5 + $0xe8] sm:$0xff] }
0x116e   :  { %8935 = vmatpush1.bf16.msra.mxu1 %v8872_v32  ;;  %9122 = vmatpush1.bf16.msra.mxu0 %v8821_v43  ;;  %v8868_v32 = vld [vmem:[#allocation5 + $0xd0] sm:$0xff]  ;;  %v8847_v43 = vld [vmem:[#allocation5 + $0x28] sm:$0xff] }
0x116f   :  { %8936 = vmatprep.subr.bf16.mxu1 %v8876_v57  ;;  %9123 = vmatprep.subr.bf16.mxu0 %v8825_v45  ;;  %v8787_v57 = vld [vmem:[#allocation4 + $0xa0] sm:$0xff] }
0x1170   :  { %v8874_v45 = vld [vmem:[#allocation5 + $0x100] sm:$0xff] }
0x1172   :  { %8937 = vmatpush1.bf16.msra.mxu1 %v8875_v48  ;;  %9124 = vmatpush1.bf16.msra.mxu0 %v8824_v52  ;;  %v8790_v48 = vld [vmem:[#allocation4 + $0xb8] sm:$0xff]  ;;  %v8880_v52 = vld [vmem:[#allocation5 + $0x130] sm:$0xff] }
0x1173   :  { %8938 = vmatprep.subr.bf16.mxu1 %v8879_v59  ;;  %9125 = vmatprep.subr.bf16.mxu0 %v8828_v1  ;;  %v13063_v59 = vpack.c.bf16 %v12655_v6, %v12655_v6  ;;  %v8883_v1 = vld [vmem:[#allocation5 + $0x148] sm:$0xff] }
0x1174   :  { %v8859_v6 = vld [vmem:[#allocation5 + $0x88] sm:$0xff] }
0x1176   :  { %8939 = vmatpush1.bf16.msra.mxu1 %v8878_v51  ;;  %9126 = vmatpush1.bf16.msra.mxu0 %v8827_v10  ;;  %v8850_v51 = vld [vmem:[#allocation5 + $0x40] sm:$0xff]  ;;  %v8889_v10 = vld [vmem:[#allocation5 + $0x178] sm:$0xff] }
0x1177   :  { %8940 = vmatprep.subr.bf16.mxu1 %v8882_v62  ;;  %9127 = vmatprep.subr.bf16.mxu0 %v8831_v46  ;;  %v8877_v62 = vld [vmem:[#allocation5 + $0x118] sm:$0xff] }
0x1178   :  { %v8865_v46 = vld [vmem:[#allocation5 + $0xb8] sm:$0xff] }
0x117a   :  { %8941 = vmatpush1.bf16.msra.mxu1 %v8881_v9  ;;  %9128 = vmatpush1.bf16.msra.mxu0 %v8830_v29  ;;  %v8886_v9 = vld [vmem:[#allocation5 + $0x160] sm:$0xff] }
0x117b   :  { %8942 = vmatprep.subr.bf16.mxu1 %v8885_v15  ;;  %9129 = vmatprep.subr.bf16.mxu0 %v8834_v25  ;;  %v8862_v15 = vld [vmem:[#allocation5 + $0xa0] sm:$0xff]  ;;  %v8770_v25 = vld [vmem:[#allocation4 + $0x18] sm:$0xff] }
0x117c   :  { %v8771_v29 = vld [vmem:[#allocation4 + $0x20] sm:$0xff] }
0x117e   :  { %8943 = vmatpush1.bf16.msra.mxu1 %v8884_v38  ;;  %9130 = vmatpush1.bf16.msra.mxu0 %v8833_v34  ;;  %v8768_v38 = vld [vmem:[#allocation4 + $0x8] sm:$0xff]  ;;  %v8777_v34 = vld [vmem:[#allocation4 + $0x50] sm:$0xff] }
0x117f   :  { %8944 = vmatprep.subr.bf16.mxu1 %v8888_v11  ;;  %9131 = vmatprep.subr.bf16.mxu0 %v8837_v49  ;;  %v8767_v11 = vld [vmem:[#allocation4] sm:$0xff]  ;;  %v8776_v49 = vld [vmem:[#allocation4 + $0x48] sm:$0xff] }
0x1182   :  { %8945 = vmatpush1.bf16.msra.mxu1 %v8887_v28  ;;  %9132 = vmatpush1.bf16.msra.mxu0 %v8836_v24  ;;  %v8774_v28 = vld [vmem:[#allocation4 + $0x38] sm:$0xff]  ;;  %v8783_v24 = vld [vmem:[#allocation4 + $0x80] sm:$0xff] }
0x1183   :  { %8955 = vmatprep.subr.bf16.mxu1 %v8891_v61  ;;  %10311 = vmatprep.subr.bf16.mxu0 %v8793_v58  ;;  %v8773_v61 = vld [vmem:[#allocation4 + $0x30] sm:$0xff]  ;;  %v8786_v58 = vld [vmem:[#allocation4 + $0x98] sm:$0xff] }
0x1185   :  { %8947 = vmatmul.mubr.bf16.vlgmr.msra.gmra.mrb[84].mxu1 %v13045_v47  ;;  %9150 = vmatmul.mubr.bf16.vlgmr.msra.gmra.mrb[72].mxu0 %v13051_v23 }
0x1186   :  { %8956 = vmatpush1.bf16.msra.mxu1 %v8890_v14  ;;  %8987 = vmatprep.mubr.bf16.mxu1 %v13167_v19  ;;  %v8844_v19 = vld [vmem:[#allocation5 + $0x10] sm:$0xff]  ;;  %v8780_v14 = vld [vmem:[#allocation4 + $0x68] sm:$0xff] }
0x1187   :  { %8957 = vmatprep.subr.bf16.mxu1 %v8894_v4  ;;  %10312 = vmatpush3.bf16.msra.mxu0 %v8769_v54  ;;  %v8779_v4 = vld [vmem:[#allocation4 + $0x60] sm:$0xff]  ;;  %v8788_v54 = vld [vmem:[#allocation4 + $0xa8] sm:$0xff] }
0x1188   :  { %10313 = vmatprep.subr.bf16.mxu0 %v8796_v53  ;;  %9190 = vmatprep.mubr.bf16.mxu0 %v13055_v22  ;;  %v8791_v53 = vld [vmem:[#allocation4 + $0xc0] sm:$0xff] }
0x118a   :  { %8958 = vmatpush1.bf16.msra.mxu1 %v8893_v37  ;;  %v8785_v37 = vld [vmem:[#allocation4 + $0x90] sm:$0xff] }
0x118b   :  { %8959 = vmatprep.subr.bf16.mxu1 %v8897_v36  ;;  %10314 = vmatpush3.bf16.msra.mxu0 %v8772_v2  ;;  %v8789_v36 = vld [vmem:[#allocation4 + $0xb0] sm:$0xff]  ;;  %v8798_v2 = vld [vmem:[#allocation4 + $0xf8] sm:$0xff] }
0x118c   :  { %10315 = vmatprep.subr.bf16.mxu0 %v8799_v31  ;;  %v8797_v31 = vld [vmem:[#allocation4 + $0xf0] sm:$0xff] }
0x118e   :  { %8960 = vmatpush1.bf16.msra.mxu1 %v8896_v18  ;;  %v8795_v18 = vld [vmem:[#allocation4 + $0xe0] sm:$0xff] }
0x118f   :  { %8961 = vmatprep.subr.bf16.mxu1 %v8900_v21  ;;  %10316 = vmatpush3.bf16.msra.mxu0 %v8775_v8  ;;  %v8794_v21 = vld [vmem:[#allocation4 + $0xd8] sm:$0xff]  ;;  %v8804_v8 = vld [vmem:[#allocation4 + $0x128] sm:$0xff] }
0x1190   :  { %10317 = vmatprep.subr.bf16.mxu0 %v8802_v44  ;;  %v8803_v44 = vld [vmem:[#allocation4 + $0x120] sm:$0xff] }
0x1192   :  { %8962 = vmatpush1.bf16.msra.mxu1 %v8899_v39  ;;  %v8801_v39 = vld [vmem:[#allocation4 + $0x110] sm:$0xff] }
0x1193   :  { %8963 = vmatprep.subr.bf16.mxu1 %v8903_v13  ;;  %10318 = vmatpush3.bf16.msra.mxu0 %v8778_v12  ;;  %v8800_v13 = vld [vmem:[#allocation4 + $0x108] sm:$0xff]  ;;  %v8810_v12 = vld [vmem:[#allocation4 + $0x158] sm:$0xff] }
0x1194   :  { %10319 = vmatprep.subr.bf16.mxu0 %v8805_v5  ;;  %v8809_v5 = vld [vmem:[#allocation4 + $0x150] sm:$0xff] }
0x1196   :  { %8964 = vmatpush1.bf16.msra.mxu1 %v8902_v26  ;;  %v8807_v26 = vld [vmem:[#allocation4 + $0x140] sm:$0xff] }
0x1197   :  { %8965 = vmatprep.subr.bf16.mxu1 %v8906_v20  ;;  %10320 = vmatpush3.bf16.msra.mxu0 %v8781_v33  ;;  %v8806_v20 = vld [vmem:[#allocation4 + $0x138] sm:$0xff]  ;;  %v8817_v33 = vld [vmem:[#allocation4 + $0x190] sm:$0xff] }
0x1198   :  { %10321 = vmatprep.subr.bf16.mxu0 %v8808_v55  ;;  %v8820_v55 = vld [vmem:[#allocation4 + $0x1a8] sm:$0xff] }
0x119a   :  { %8966 = vmatpush1.bf16.msra.mxu1 %v8905_v7  ;;  %v8813_v7 = vld [vmem:[#allocation4 + $0x170] sm:$0xff] }
0x119b   :  { %8967 = vmatprep.subr.bf16.mxu1 %v8909_v63  ;;  %10322 = vmatpush3.bf16.msra.mxu0 %v8784_v16  ;;  %v8812_v63 = vld [vmem:[#allocation4 + $0x168] sm:$0xff]  ;;  %v8829_v16 = vld [vmem:[#allocation4 + $0x1f0] sm:$0xff] }
0x119c   :  { %10323 = vmatprep.subr.bf16.mxu0 %v8811_v17  ;;  %v8832_v17 = vld [vmem:[#allocation4 + $0x208] sm:$0xff] }
0x119e   :  { %8968 = vmatpush1.bf16.msra.mxu1 %v8908_v60  ;;  %v8823_v60 = vld [vmem:[#allocation4 + $0x1c0] sm:$0xff] }
0x119f   :  { %8969 = vmatprep.subr.bf16.mxu1 %v8912_v50  ;;  %10324 = vmatpush3.bf16.msra.mxu0 %v8787_v57  ;;  %v8826_v50 = vld [vmem:[#allocation4 + $0x1d8] sm:$0xff] }
0x11a0   :  { %10325 = vmatprep.subr.bf16.mxu0 %v8814_v0 }
0x11a2   :  { %8970 = vmatpush1.bf16.msra.mxu1 %v8911_v27  ;;  %v8835_v27 = vld [vmem:[#allocation4 + $0x220] sm:$0xff] }
0x11a3   :  { %10280 = vmatprep.subr.bf16.mxu1 %v8868_v32  ;;  %10326 = vmatpush3.bf16.msra.mxu0 %v8790_v48  ;;  %v8838_v32 = vld [vmem:[#allocation4 + $0x238] sm:$0xff] }
0x11a5   :  { %8988 = vmatmul.mubr.bf16.vlgmr.msra.gmra.mrb[88].mxu1 %v13039_v41  ;;  %v8853_v41 = vld [vmem:[#allocation5 + $0x58] sm:$0xff] }
0x11a6   :  { %10281 = vmatpush3.bf16.msra.mxu1 %v8844_v19  ;;  %9028 = vmatprep.mubr.bf16.mxu1 %v13025_v30  ;;  %v8856_v30 = vld [vmem:[#allocation5 + $0x70] sm:$0xff] }
0x11a7   :  { %10282 = vmatprep.subr.bf16.mxu1 %v8871_v40  ;;  %9191 = vmatmul.mubr.bf16.vlgmr.msra.gmra.mrb[76].mxu0 %v13063_v59 }
0x11aa   :  { %10283 = vmatpush3.bf16.msra.mxu1 %v8847_v43 }
0x11ab   :  { %10284 = vmatprep.subr.bf16.mxu1 %v8874_v45 }
0x11ae   :  { %10285 = vmatpush3.bf16.msra.mxu1 %v8850_v51 }
0x11af   :  { %10286 = vmatprep.subr.bf16.mxu1 %v8877_v62 }
0x11b2   :  { %10287 = vmatpush3.bf16.msra.mxu1 %v8853_v41 }
0x11b3   :  { %10288 = vmatprep.subr.bf16.mxu1 %v8880_v52 }
0x11b6   :  { %10289 = vmatpush3.bf16.msra.mxu1 %v8856_v30 }
0x11b7   :  { %10290 = vmatprep.subr.bf16.mxu1 %v8883_v1 }
0x11ba   :  { %10291 = vmatpush3.bf16.msra.mxu1 %v8859_v6 }
0x11bb   :  { %10292 = vmatprep.subr.bf16.mxu1 %v8886_v9 }
0x11be   :  { %10293 = vmatpush3.bf16.msra.mxu1 %v8862_v15 }
0x11bf   :  { %10294 = vmatprep.subr.bf16.mxu1 %v8889_v10 }
0x11c2   :  { %10295 = vmatpush3.bf16.msra.mxu1 %v8865_v46 }
0x11c3   :  { %9076 = vmatprep.subr.bf16.mxu1 %v8768_v38 }
0x11c5   :  { %9029 = vmatmul.mubr.bf16.vlgmr.msra.gmra.mrb[92].mxu1 %v13045_v47  ;;  %v8782_v47 = vld [vmem:[#allocation4 + $0x78] sm:$0xff] }
0x11c6   :  { %9077 = vmatpush1.bf16.msra.mxu1 %v8767_v11  ;;  %9108 = vmatprep.mubr.bf16.mxu1 %v13055_v22  ;;  %v8792_v22 = vld [vmem:[#allocation4 + $0xc8] sm:$0xff] }
0x11c7   :  { %9078 = vmatprep.subr.bf16.mxu1 %v8771_v29 }
0x11ca   :  { %9079 = vmatpush1.bf16.msra.mxu1 %v8770_v25 }
0x11cb   :  { %9080 = vmatprep.subr.bf16.mxu1 %v8774_v28 }
0x11ce   :  { %9081 = vmatpush1.bf16.msra.mxu1 %v8773_v61 }
0x11cf   :  { %9082 = vmatprep.subr.bf16.mxu1 %v8777_v34 }
0x11d2   :  { %9083 = vmatpush1.bf16.msra.mxu1 %v8776_v49 }
0x11d3   :  { %9084 = vmatprep.subr.bf16.mxu1 %v8780_v14 }
0x11d6   :  { %9085 = vmatpush1.bf16.msra.mxu1 %v8779_v4 }
0x11d7   :  { %9086 = vmatprep.subr.bf16.mxu1 %v8783_v24  ;;  %v9238_v24 = vld [vmem:[#allocation37] sm:$0x7] }
0x11da   :  { %9087 = vmatpush1.bf16.msra.mxu1 %v8782_v47 }
0x11db   :  { %9088 = vmatprep.subr.bf16.mxu1 %v8786_v58 }
0x11de   :  { %9089 = vmatpush1.bf16.msra.mxu1 %v8785_v37  ;;  %v9243_v37 = vrot.slane %v9238_v24, %v12444_v56 }
0x11df   :  { %9090 = vmatprep.subr.bf16.mxu1 %v8789_v36 }
0x11e2   :  { %9091 = vmatpush1.bf16.msra.mxu1 %v8788_v54 }
0x11e3   :  { %9092 = vmatprep.subr.bf16.mxu1 %v8792_v22  ;;  %v9247_v22 = vrot.slane %v9238_v24, %v12449_v35 }
0x11e6   :  { %9093 = vmatpush1.bf16.msra.mxu1 %v8791_v53 }
0x11e7   :  { %9094 = vmatprep.subr.bf16.mxu1 %v8795_v18 }
0x11ea   :  { %9095 = vmatpush1.bf16.msra.mxu1 %v8794_v21 }
0x11eb   :  { %9096 = vmatprep.subr.bf16.mxu1 %v8798_v2 }
0x11ee   :  { %9097 = vmatpush1.bf16.msra.mxu1 %v8797_v31 }
0x11ef   :  { %9098 = vmatprep.subr.bf16.mxu1 %v8801_v39 }
0x11f2   :  { %9099 = vmatpush1.bf16.msra.mxu1 %v8800_v13 }
0x11f3   :  { %9100 = vmatprep.subr.bf16.mxu1 %v8804_v8 }
0x11f6   :  { %9101 = vmatpush1.bf16.msra.mxu1 %v8803_v44  ;;  %v9251_v44 = vrot.slane %v9238_v24, %v12466_v3 }
0x11f7   :  { %9102 = vmatprep.subr.bf16.mxu1 %v8807_v26 }
0x11fa   :  { %9103 = vmatpush1.bf16.msra.mxu1 %v8806_v20 }
0x11fb   :  { %9104 = vmatprep.subr.bf16.mxu1 %v8810_v12 }
0x11fe   :  { %9105 = vmatpush1.bf16.msra.mxu1 %v8809_v5 }
0x11ff   :  { %9106 = vmatprep.subr.bf16.mxu1 %v8813_v7 }
0x1202   :  { %9107 = vmatpush1.bf16.msra.mxu1 %v8812_v63 }
0x1203   :  { %10473 = vmatprep.subr.bf16.mxu1 %v13166_v42 }
0x1205   :  { %9109 = vmatmul.mubr.bf16.vlgmr.msra.gmra.mrb[96].mxu1 %v13063_v59 }
0x1206   :  { %10474 = vmatpush3.bf16.msra.mxu1 %v8817_v33  ;;  %10489 = vmatprep.mubr.msk.bf16.mxu1 %vm12072_vm1, %v13166_v42 }
0x1207   :  { %10475 = vmatprep.subr.bf16.mxu1 %v13166_v42 }
0x120a   :  { %10476 = vmatpush3.bf16.msra.mxu1 %v8820_v55 }
0x120b   :  { %10477 = vmatprep.subr.bf16.mxu1 %v13166_v42 }
0x120e   :  { %10478 = vmatpush3.bf16.msra.mxu1 %v8823_v60 }
0x120f   :  { %10479 = vmatprep.subr.bf16.mxu1 %v13166_v42 }
0x1212   :  { %10480 = vmatpush3.bf16.msra.mxu1 %v8826_v50 }
0x1213   :  { %10481 = vmatprep.subr.bf16.mxu1 %v13166_v42 }
0x1216   :  { %10482 = vmatpush3.bf16.msra.mxu1 %v8829_v16 }
0x1217   :  { %10483 = vmatprep.subr.bf16.mxu1 %v13166_v42 }
0x121a   :  { %10484 = vmatpush3.bf16.msra.mxu1 %v8832_v17 }
0x121b   :  { %10485 = vmatprep.subr.bf16.mxu1 %v13166_v42 }
0x121e   :  { %10486 = vmatpush3.bf16.msra.mxu1 %v8835_v27 }
0x121f   :  { %10487 = vmatprep.subr.bf16.mxu1 %v13166_v42 }
0x1222   :  { %10488 = vmatpush3.bf16.msra.mxu1 %v8838_v32 }
0x1225   :  { %10490 = vmatmul.mubr.bf16.vlgmr.msra.gmra.mrb[100].mxu1 %v13051_v23 }
0x1238   :  { %v9070_v57 = vpop.f32.mrb[68].mxu0 }
0x1239   :  { %v10471_v0 = vpop.f32.mrb[69].mxu0 }
0x123a   :  { %v9073_v19 = vpop.f32.mrb[70].mxu0 }
0x123b   :  { %v10472_v40 = vpop.f32.mrb[71].mxu0 }
0x1258   :  { %v8948_v48 = vpop.f32.mrb[84].mxu1  ;;  %v9151_v51 = vpop.f32.mrb[72].mxu0 }
0x1259   :  { %v8950_v59 = vpop.f32.mrb[85].mxu1  ;;  %v9153_v62 = vpop.f32.mrb[73].mxu0 }
0x125a   :  { %v8952_v43 = vpop.f32.mrb[86].mxu1  ;;  %v9155_v41 = vpop.f32.mrb[74].mxu0 }
0x125b   :  { %v8953_v45 = vpop.f32.mrb[87].mxu1  ;;  %v9156_v52 = vpop.f32.mrb[75].mxu0 }
0x1278   :  { %v8989_v30 = vpop.f32.mrb[88].mxu1 }
0x1279   :  { %v8990_v1 = vadd.f32 %v8989_v30, %v8948_v48  ;;  %v8991_v6 = vpop.f32.mrb[89].mxu1 }
0x127a   :  { %v8992_v9 = vadd.f32 %v8991_v6, %v8950_v59  ;;  %v8993_v15 = vpop.f32.mrb[90].mxu1  ;;  %v10327_v46 = vpop.f32.mrb[76].mxu0 }
0x127b   :  { %v8994_v10 = vpop.f32.mrb[91].mxu1  ;;  %v10328_v23 = vpop.f32.mrb[77].mxu0 }
0x127c   :  { %v10329_v38 = vadd.f32 %v10328_v23, %v10327_v46  ;;  %v10330_v11 = vpop.f32.mrb[78].mxu0 }
0x127d   :  { %v10331_v29 = vpop.f32.mrb[79].mxu0 }
0x1298   :  { %v10296_v25 = vpop.f32.mrb[92].mxu1 }
0x1299   :  { %v10297_v28 = vpop.f32.mrb[93].mxu1 }
0x129a   :  { %v10298_v61 = vadd.f32 %v10297_v28, %v10296_v25  ;;  %v10299_v34 = vpop.f32.mrb[94].mxu1 }
0x129b   :  { %v10300_v49 = vpop.f32.mrb[95].mxu1 }
0x129c   :  { %v9071_v14 = vadd.f32 %v10298_v61, %v9070_v57 }
0x129e   :  { %v9193_v4 = vadd.f32 %v10329_v38, %v9071_v14 }
0x12d8   :  { %v9110_v47 = vpop.f32.mrb[96].mxu1 }
0x12d9   :  { %v9111_v58 = vadd.f32 %v9110_v47, %v8990_v1  ;;  %v9112_v36 = vpop.f32.mrb[97].mxu1 }
0x12da   :  { %v9113_v54 = vadd.f32 %v9112_v36, %v8992_v9  ;;  %v9114_v53 = vpop.f32.mrb[98].mxu1 }
0x12db   :  { %v9152_v18 = vadd.f32 %v9151_v51, %v9111_v58  ;;  %v9115_v21 = vpop.f32.mrb[99].mxu1 }
0x12dc   :  { %v9154_v2 = vadd.f32 %v9153_v62, %v9113_v54 }
0x12dd   :  { %v13082_v31 = vadd.f32 %v9243_v37, %v9152_v18 }
0x12de   :  { %v9256_v39 = vadd.f32 %v9247_v22, %v9154_v2 }
0x12df   :  { %v9258_v13 = vmax.f32 %v13082_v31, 0.0 }
0x12e0   :  { %v9259_v8 = vmax.f32 %v9256_v39, 0.0 }
0x12f8   :  { %v9232_v26 = vpop.f32.mrb[100].mxu1 }
0x12f9   :  { %v9233_v20 = vadd.f32 %v9232_v26, %v9193_v4  ;;  %v10491_v12 = vpop.f32.mrb[101].mxu1 }
0x12fa   :  { %v9235_v56 = vpop.f32.mrb[102].mxu1 }
0x12fb   :  { %v13086_v5 = vadd.f32 %v9251_v44, %v9233_v20  ;;  %v10492_v7 = vpop.f32.mrb[103].mxu1 }
0x12fd   :  { %v9260_v35 = vmax.f32 %v13086_v5, 0.0 }
0x12fe   :  { %11986 = dma.done.wait [#allocation7 + $0x4], 3072 }
0x12ff   :  { %11987 = vsyncadd [#allocation7 + $0x4], 4294964224  ;;  %10493 = vmatprep.subr.bf16.mxu1 %v13166_v42  ;;  %v9265_v63 = vpack.c.bf16 %v9259_v8, %v9259_v8  ;;  %10509 = vmatprep.mubr.msk.bf16.mxu1 %vm12072_vm1, %v13166_v42  ;;  %v9275_v33 = vld [vmem:[#allocation6 + $0x40] sm:$0xff]  ;;  %v9276_v60 = vld [vmem:[#allocation6 + $0x48] sm:$0xff]  ;;  %v9266_v9 = vpack.c.bf16 %v9260_v35, %v9260_v35  ;;  %v9264_v15 = vpack.c.bf16 %v9258_v13, %v9258_v13  ;;  %s12075_s21 = smov [#allocation41]   ;;  %s12076_s10 = smov [#allocation40]  }
0x1300   :  { %v9267_v3 = vld [vmem:[#allocation6] sm:$0xff]  ;;  %10342 = vmatprep.subr.bf16.mxu0 %v9275_v33  ;;  %v9284_v50 = vld [vmem:[#allocation6 + $0x88] sm:$0xff]  ;;  %v9277_v17 = vld [vmem:[#allocation6 + $0x50] sm:$0xff]  ;;  %s9395_s13 = sshll.u32 %s12075_s21, 4  ;;  %s9385_s22 = sshll.u32 %s12076_s10, 4  ;;  %s9396_s13 = int_to_ptr.vmem [resolvable:$true] %s9395_s13  ;;  %s9386_s22 = int_to_ptr.vmem [resolvable:$true] %s9385_s22 }
0x1301   :  { %9330 = vmatprep.mubr.bf16.mxu0 %v9265_v63  ;;  %v9283_v55 = vld [vmem:[#allocation6 + $0x80] sm:$0xff]  ;;  %10343 = vmatpush3.bf16.msra.mxu0 %v9267_v3  ;;  %v9268_v16 = vld [vmem:[#allocation6 + $0x8] sm:$0xff]  ;;  %v9285_v27 = vld [vmem:[#allocation6 + $0x90] sm:$0xff]  ;;  %s11868_s14 = scalar_lea.vmem %s9396_s13, 96  ;;  %p11873_p1 = scmp.lt.s32.totalorder %s9396_s13, %s9396_s13 }
0x1302   :  { %10494 = vmatpush3.bf16.msra.mxu1 %v9283_v55  ;;  %10344 = vmatprep.subr.bf16.mxu0 %v9276_v60  ;;  %v9269_v32 = vld [vmem:[#allocation6 + $0x10] sm:$0xff]  ;;  %v9278_v57 = vld [vmem:[#allocation6 + $0x58] sm:$0xff]  ;;  %v9279_v40 = vld [vmem:[#allocation6 + $0x60] sm:$0xff]  ;;  %p11869_p0 = scmp.ne.s32.totalorder %s9396_s13, %s11868_s14  ;;  %p11874_p2 = scmp.lt.s32.totalorder %s11868_s14, %s11868_s14 }
0x1303   :  { %10495 = vmatprep.subr.bf16.mxu1 %v13166_v42  ;;  %v9286_v0 = vld [vmem:[#allocation6 + $0x98] sm:$0xff]  ;;  %v9287_v48 = vld [vmem:[#allocation6 + $0xa0] sm:$0xff]  ;;  %v9280_v43 = vld [vmem:[#allocation6 + $0x68] sm:$0xff] }
0x1304   :  { %v9270_v19 = vld [vmem:[#allocation6 + $0x18] sm:$0xff]  ;;  %v9271_v59 = vld [vmem:[#allocation6 + $0x20] sm:$0xff]  ;;  %v9288_v45 = vld [vmem:[#allocation6 + $0xa8] sm:$0xff]  ;;  %p11875_p3 = por %p11874_p2, %p11873_p1 }
0x1305   :  { %10345 = vmatpush3.bf16.msra.mxu0 %v9268_v16  ;;  %v9272_v51 = vld [vmem:[#allocation6 + $0x28] sm:$0xff]  ;;  %v9281_v62 = vld [vmem:[#allocation6 + $0x70] sm:$0xff]  ;;  %v9282_v30 = vld [vmem:[#allocation6 + $0x78] sm:$0xff] }
0x1306   :  { %10496 = vmatpush3.bf16.msra.mxu1 %v9284_v50  ;;  %10346 = vmatprep.subr.bf16.mxu0 %v9277_v17  ;;  %v9289_v41 = vld [vmem:[#allocation6 + $0xb0] sm:$0xff]  ;;  %v9290_v1 = vld [vmem:[#allocation6 + $0xb8] sm:$0xff]  ;;  %p11876_p4 = pnand %p11875_p3, %p11869_p0 }
0x1307   :  { %10497 = vmatprep.subr.bf16.mxu1 %v13166_v42  ;;  %v9273_v52 = vld [vmem:[#allocation6 + $0x30] sm:$0xff]  ;;  %v9274_v6 = vld [vmem:[#allocation6 + $0x38] sm:$0xff] }
0x1309   :  { %10347 = vmatpush3.bf16.msra.mxu0 %v9269_v32 }
0x130a   :  { %10498 = vmatpush3.bf16.msra.mxu1 %v9285_v27  ;;  %10348 = vmatprep.subr.bf16.mxu0 %v9278_v57 }
0x130b   :  { %10499 = vmatprep.subr.bf16.mxu1 %v13166_v42 }
0x130d   :  { %10349 = vmatpush3.bf16.msra.mxu0 %v9270_v19 }
0x130e   :  { %10500 = vmatpush3.bf16.msra.mxu1 %v9286_v0  ;;  %10350 = vmatprep.subr.bf16.mxu0 %v9279_v40 }
0x130f   :  { %10501 = vmatprep.subr.bf16.mxu1 %v13166_v42 }
0x1311   :  { %10351 = vmatpush3.bf16.msra.mxu0 %v9271_v59 }
0x1312   :  { %10502 = vmatpush3.bf16.msra.mxu1 %v9287_v48  ;;  %10352 = vmatprep.subr.bf16.mxu0 %v9280_v43 }
0x1313   :  { %10503 = vmatprep.subr.bf16.mxu1 %v13166_v42 }
0x1315   :  { %10353 = vmatpush3.bf16.msra.mxu0 %v9272_v51 }
0x1316   :  { %10504 = vmatpush3.bf16.msra.mxu1 %v9288_v45  ;;  %10354 = vmatprep.subr.bf16.mxu0 %v9281_v62 }
0x1317   :  { %10505 = vmatprep.subr.bf16.mxu1 %v13166_v42 }
0x1319   :  { %10355 = vmatpush3.bf16.msra.mxu0 %v9273_v52 }
0x131a   :  { %10506 = vmatpush3.bf16.msra.mxu1 %v9289_v41  ;;  %10356 = vmatprep.subr.bf16.mxu0 %v9282_v30 }
0x131b   :  { %10507 = vmatprep.subr.bf16.mxu1 %v13166_v42 }
0x131d   :  { %10357 = vmatpush3.bf16.msra.mxu0 %v9274_v6 }
0x131e   :  { %10508 = vmatpush3.bf16.msra.mxu1 %v9290_v1 }
0x1320   :  { %9331 = vmatmul.mubr.bf16.vlgmr.msra.gmra.mrb[80].mxu0 %v9264_v15 }
0x1321   :  { %10510 = vmatmul.mubr.bf16.vlgmr.msra.gmra.mrb[104].mxu1 %v9266_v9 }
0x1322   :  { %11879 = shalt.err (!%p11876_p4)
}
0x1323   :  { %s11880_s5 = scalar_lea.hbm %s12232_s4, 96 }
0x1324   :  { %p11881_p5 = scmp.ne.s32.totalorder %s12232_s4, %s11880_s5  ;;  %p11884_p6 = scmp.lt.u32.totalorder %s11880_s5, %s12232_s4 }
0x1326   :  { %p11886_p7 = pnand %p11884_p6, %p11881_p5 }
0x1328   :  { %11889 = shalt.err (!%p11886_p7)
}
0x1329   :  { %9398 = dma.vmem_to_hbm [thread:$0]  %s9396_s13, 96, %s12232_s4, [#allocation42]  }
0x132a   :  { %s11890_s19 = scalar_lea.vmem %s9386_s22, 96  ;;  %p11895_p9 = scmp.lt.s32.totalorder %s9386_s22, %s9386_s22 }
0x132b   :  { %p11891_p8 = scmp.ne.s32.totalorder %s9386_s22, %s11890_s19  ;;  %p11896_p10 = scmp.lt.s32.totalorder %s11890_s19, %s11890_s19 }
0x132d   :  { %p11897_p11 = por %p11896_p10, %p11895_p9 }
0x132f   :  { %p11898_p12 = pnand %p11897_p11, %p11891_p8 }
0x1331   :  { %11901 = shalt.err (!%p11898_p12)
}
0x1332   :  { %s11902_s15 = scalar_lea.hbm %s12227_s6, 96 }
0x1333   :  { %p11903_p13 = scmp.ne.s32.totalorder %s12227_s6, %s11902_s15  ;;  %p11906_p0 = scmp.lt.u32.totalorder %s11902_s15, %s12227_s6 }
0x1335   :  { %p11908_p1 = pnand %p11906_p0, %p11903_p13 }
0x1337   :  { %11911 = shalt.err (!%p11908_p1)
}
0x1338   :  { %9388 = dma.vmem_to_hbm [thread:$0]  %s9386_s22, 96, %s12227_s6, [#allocation10]  }
0x1339   :  { %s12077_s24 = smov [#allocation43]  }
0x133a   :  { %s9405_s4 = sshll.u32 %s12077_s24, 4  ;;  %s9406_s4 = int_to_ptr.vmem [resolvable:$true] %s9405_s4 }
0x133b   :  { %s11912_s16 = scalar_lea.vmem %s9406_s4, 256  ;;  %p11917_p3 = scmp.lt.s32.totalorder %s9406_s4, %s9406_s4 }
0x133c   :  { %p11913_p2 = scmp.ne.s32.totalorder %s9406_s4, %s11912_s16  ;;  %p11918_p4 = scmp.lt.s32.totalorder %s11912_s16, %s11912_s16 }
0x133e   :  { %p11919_p5 = por %p11918_p4, %p11917_p3 }
0x1340   :  { %p11920_p6 = pnand %p11919_p5, %p11913_p2 }
0x1342   :  { %11923 = shalt.err (!%p11920_p6)
}
0x1343   :  { %s11924_s17 = scalar_lea.hbm %s12237_s20, 256 }
0x1344   :  { %p11925_p7 = scmp.ne.s32.totalorder %s12237_s20, %s11924_s17  ;;  %p11928_p8 = scmp.lt.u32.totalorder %s11924_s17, %s12237_s20 }
0x1346   :  { %p11930_p9 = pnand %p11928_p8, %p11925_p7 }
0x1348   :  { %11933 = shalt.err (!%p11930_p9)
}
0x1349   :  { %9408 = dma.vmem_to_hbm [thread:$0]  %s9406_s4, 256, %s12237_s20, [#allocation42]   ;;  %v10082_v38 = vld [vmem:[#allocation38] ss:$0 sm:$0xff] }
0x134a   :  { %s12078_s6 = smov [#allocation44]  }
0x134b   :  { %s9415_s18 = sshll.u32 %s12078_s6, 4  ;;  %s9416_s18 = int_to_ptr.vmem [resolvable:$true] %s9415_s18 }
0x134c   :  { %s11934_s0 = scalar_lea.vmem %s9416_s18, 32  ;;  %p11939_p11 = scmp.lt.s32.totalorder %s9416_s18, %s9416_s18 }
0x134d   :  { %p11935_p10 = scmp.ne.s32.totalorder %s9416_s18, %s11934_s0  ;;  %p11940_p12 = scmp.lt.s32.totalorder %s11934_s0, %s11934_s0 }
0x134f   :  { %p11941_p13 = por %p11940_p12, %p11939_p11 }
0x1351   :  { %p11942_p0 = pnand %p11941_p13, %p11935_p10 }
0x13f3   :  { %v10358_v10 = vpop.f32.mrb[80].mxu0 }
0x13f4   :  { %v9372_v42 = vpop.f32.mrb[104].mxu1  ;;  %v10359_v23 = vpop.f32.mrb[81].mxu0 }
0x13f5   :  { %v10511_v46 = vpop.f32.mrb[105].mxu1  ;;  %v10360_v29 = vadd.f32 %v10359_v23, %v10358_v10  ;;  %v10361_v25 = vpop.f32.mrb[82].mxu0 }
0x13f6   :  { %v9375_v11 = vpop.f32.mrb[106].mxu1  ;;  %v10362_v61 = vpop.f32.mrb[83].mxu0 }
0x13f7   :  { %v10512_v28 = vpop.f32.mrb[107].mxu1  ;;  %v9333_v34 = vadd.f32 %v10360_v29, %v10082_v38 }
0x13f9   :  { %v9373_v49 = vadd.f32 %v9372_v42, %v9333_v34 }
0x13fb   :  { %9378 = vst [vmem:[#allocation44] sm:$0x3] %v9373_v49 }
0x13fc   :  { %11945 = shalt.err (!%p11942_p0)
}
0x13fd   :  { %s11946_s20 = scalar_lea.hbm %s12242_s9, 32 }
0x13fe   :  { %p11947_p1 = scmp.ne.s32.totalorder %s12242_s9, %s11946_s20  ;;  %p11950_p2 = scmp.lt.u32.totalorder %s11946_s20, %s12242_s9 }
0x1400   :  { %p11952_p3 = pnand %p11950_p2, %p11947_p1 }
0x1402   :  { %11955 = shalt.err (!%p11952_p3)
}
0x1403   :  { %9418 = dma.vmem_to_hbm [thread:$0]  %s9416_s18, 32, %s12242_s9, [#allocation45]  }
0x1404   :  { %11988 = dma.done.wait [#allocation10], 96  }
0x1405   :  { %11989 = vsyncadd [#allocation10], 4294967200 }
0x1406   :  { %11990 = dma.done.wait [#allocation42], 352  }
0x1407   :  { %11991 = vsyncadd [#allocation42], 4294966944 }
0x1408   :  { %11992 = dma.done.wait [#allocation45], 32  }
0x1409   :  { %11993 = vsyncadd [#allocation45], 4294967264 }
0x140a   :  { %9431 = vsyncpa [#allocation9], 1 }
0x140b   :  { %9432 = vsyncpa [#allocation12], 1 }
0x140c   :  { %9433 = vsyncpa [#allocation15], 1 }
0x140d   :  { %9434 = vsyncpa [#allocation18], 1 }
0x140e   :  { %9435 = vsyncpa [#allocation21], 1 }
0x140f   :  { %9436 = vsyncpa [#allocation24], 1 }
0x1410   :  { %9437 = vsyncpa [#allocation27], 1 }
0x1411   :  { %9438 = vsyncpa [#allocation30], 1 }
0x1412   :  { %9439 = vsyncpa [#allocation33], 1 }
0x1413   :  { %9440 = vsyncpa [#allocation36], 1 }
0x1414   :  { %9441 = vsyncpa [#allocation39], 1 }
0x1415   :  { %9442 = vsyncpa [#allocation10], 1 }
0x1416   :  { %9443 = vsyncpa [#allocation42], 1 }
0x1417   :  { %9444 = vsyncpa [#allocation45], 1 }
0x1418   :  { %9445 = vsyncmov [#allocation7] }
0x141b   :  { %s9446_s9 = vpop.sfrf %9445 }
0x141c   :  { %p10083_p4 = scmp.ne.s32.totalorder %s9446_s9, 0 }
0x141e   :  { %9450 = shalt.err (%p10083_p4)  }
0x141f   :  { %9452 = vsyncmov [#allocation7 + $0x1] }
0x1422   :  { %s9453_s12 = vpop.sfrf %9452 }
0x1423   :  { %p10084_p5 = scmp.ne.s32.totalorder %s9453_s12, 0 }
0x1425   :  { %9457 = shalt.err (%p10084_p5)  }
0x1426   :  { %9459 = vsyncmov [#allocation7 + $0x2] }
0x1429   :  { %s9460_s29 = vpop.sfrf %9459 }
0x142a   :  { %p10085_p6 = scmp.ne.s32.totalorder %s9460_s29, 0 }
0x142c   :  { %9464 = shalt.err (%p10085_p6)  }
0x142d   :  { %9466 = vsyncmov [#allocation7 + $0x3] }
0x1430   :  { %s9467_s23 = vpop.sfrf %9466 }
0x1431   :  { %p10086_p7 = scmp.ne.s32.totalorder %s9467_s23, 0 }
0x1433   :  { %9471 = shalt.err (%p10086_p7)  }
0x1434   :  { %9473 = vsyncmov [#allocation7 + $0x4] }
0x1437   :  { %s9474_s26 = vpop.sfrf %9473 }
0x1438   :  { %p10087_p8 = scmp.ne.s32.totalorder %s9474_s26, 0 }
0x143a   :  { %9478 = shalt.err (%p10087_p8)  }

</bundles_post_ra>
